<compile_context>
chip_gen: v7x
topology: tpu7x:2x2x1
jax: 0.10.0
libtpu: 0.0.40
codegen_flags: <defaults>
</compile_context>

<pallas_src>
import jax
import jax.numpy as jnp
from jax.experimental import pallas as pl
from jax.experimental.pallas import tpu as pltpu

# Static problem sizes (Encoder applied to 16x16 RGB inputs).
H0 = W0 = 16            # input spatial size
C0 = 3                  # input channels
C1 = 32                 # channels after downconv1
C2 = 64                 # channels after downconv2 / encoder blocks
K5 = 5                  # downconv kernel size
K3 = 3                  # encoder-block kernel size
H1 = H0 // 2            # compact H after pool1  (8)
H2 = H0 // 4            # compact H after pool2  (4)
W2 = W0 // 4            # true final width        (4)


def _conv_taps(pad_ref, w_ref, base, rows, ksize, col_step, cin, cout):
    """Accumulate a ksize x ksize conv as shifted MXU matmuls.

    pad_ref  : zero-padded (lazy-W) input scratch in VMEM
    w_ref    : (n_taps, cin, cout) weight ref; tap index = base + kh*ksize + kw
    rows     : number of (compact) output rows
    col_step : lazy W stride between taps (1, 2 or 4)
    Returns an (rows * W0, cout) f32 accumulator.
    """
    m = rows * W0
    acc = jnp.zeros((m, cout), dtype=jnp.float32)
    for kh in range(ksize):
        for kw in range(ksize):
            col0 = kw * col_step
            patch = pad_ref[kh:kh + rows, col0:col0 + W0, :]       # (rows, W0, cin)
            acc = acc + jnp.dot(patch.reshape(m, cin),
                                w_ref[base + kh * ksize + kw],
                                preferred_element_type=jnp.float32)
    return acc


def _encoder_kernel(x_ref, w1_ref, b1_ref, w2_ref, b2_ref, wr_ref, br_ref,
                    o_ref, s1, s2, s3):
    # Pad regions must be exact zeros every grid step (scratch persists and,
    # under megacore partitioning, each core has its own private copy).
    s1[...] = jnp.zeros(s1.shape, s1.dtype)
    s2[...] = jnp.zeros(s2.shape, s2.dtype)
    s3[...] = jnp.zeros(s3.shape, s3.dtype)

    # ---------------- downconv1: conv5x5(3->32) + ReLU + maxpool2 ----------
    s1[2:2 + H0, 2:2 + W0, :] = x_ref[0]                      # pad=2, compact grid
    acc = _conv_taps(s1, w1_ref, base=0, rows=H0, ksize=K5, col_step=1,
                     cin=C0, cout=C1)
    y = jnp.maximum(acc + b1_ref[...], 0.0)                   # (256, 32)
    z = jnp.max(y.reshape(H0, W0, C1).reshape(H1, 2, W0, C1), axis=1)  # H-pool
    # W-pool (lazy stride 2): valid outputs are max(z[:, j], z[:, j+1]) at
    # even j <= 14 — a width-15 shifted max covers all of them.
    m1 = jnp.maximum(z[:, 0:W0 - 1, :], z[:, 1:W0, :])        # (8, 15, 32)

    # ---------------- downconv2: conv5x5(32->64) + ReLU + maxpool2 ---------
    s2[2:2 + H1, 4:4 + (W0 - 1), :] = m1                      # pad=2 -> lazy pad 4
    acc = _conv_taps(s2, w2_ref, base=0, rows=H1, ksize=K5, col_step=2,
                     cin=C1, cout=C2)
    y = jnp.maximum(acc + b2_ref[...], 0.0)                   # (128, 64)
    z = jnp.max(y.reshape(H1, W0, C2).reshape(H2, 2, W0, C2), axis=1)  # H-pool
    # W-pool (lazy stride 4): valid outputs are max(z[:, j], z[:, j+2]) at
    # j in {0,4,8,12} — a width-14 shifted max covers all of them.
    m2 = jnp.maximum(z[:, 0:W0 - 2, :], z[:, 2:W0, :])        # (4, 14, 64)

    # ---------------- two residual encoder blocks --------------------------
    # s3's interior always holds the current conv input in lazy-W layout
    # (width 16; columns 14/15 and the halo start out zero).
    s3[1:1 + H2, 4:4 + (W0 - 2), :] = m2
    r = s3[1:1 + H2, 4:4 + W0, :].reshape(H2 * W0, C2)        # (64, 64) lazy state

    def conv3(conv_idx):
        # 3x3 conv (pad=1 -> lazy W pad 4, H pad 1) over the current s3 interior.
        acc = _conv_taps(s3, wr_ref, base=conv_idx * K3 * K3, rows=H2,
                         ksize=K3, col_step=4, cin=C2, cout=C2)
        return acc + br_ref[conv_idx:conv_idx + 1, :]

    def set_s3(v_flat):
        s3[1:1 + H2, 4:4 + W0, :] = v_flat.reshape(H2, W0, C2)

    for blk in range(2):
        c = jnp.maximum(conv3(2 * blk), 0.0)                  # conv + ReLU
        set_s3(c)
        r = r + conv3(2 * blk + 1)                            # conv + residual
        if blk == 0:
            set_s3(r)                                         # input for block 2

    o_ref[...] = r.reshape(1, H2, W0, C2)


@jax.jit
def encoder_forward(x_nchw, params):
    """Equivalent of Encoder.forward.  x_nchw: (N, 3, 16, 16) f32."""
    w1, b1, w2, b2, wr, br = params
    N = x_nchw.shape[0]

    # Thin glue: NCHW -> NHWC for the activations, OIHW -> (taps, Cin, Cout)
    # for the weights.  Tiny one-off XLA ops.
    x_nhwc = jnp.transpose(x_nchw, (0, 2, 3, 1))                       # (N,16,16,3)
    w1_taps = jnp.transpose(w1, (2, 3, 1, 0)).reshape(K5 * K5, C0, C1)
    w2_taps = jnp.transpose(w2, (2, 3, 1, 0)).reshape(K5 * K5, C1, C2)
    wr_taps = jnp.transpose(wr, (0, 3, 4, 2, 1)).reshape(4 * K3 * K3, C2, C2)

    out_lazy = pl.pallas_call(
        _encoder_kernel,
        out_shape=jax.ShapeDtypeStruct((N, H2, W0, C2), jnp.float32),
        grid=(N,),
        in_specs=[
            pl.BlockSpec((1, H0, W0, C0), lambda n: (n, 0, 0, 0)),
            pl.BlockSpec((K5 * K5, C0, C1), lambda n: (0, 0, 0)),
            pl.BlockSpec((1, C1), lambda n: (0, 0)),
            pl.BlockSpec((K5 * K5, C1, C2), lambda n: (0, 0, 0)),
            pl.BlockSpec((1, C2), lambda n: (0, 0)),
            pl.BlockSpec((4 * K3 * K3, C2, C2), lambda n: (0, 0, 0)),
            pl.BlockSpec((4, C2), lambda n: (0, 0)),
        ],
        out_specs=pl.BlockSpec((1, H2, W0, C2), lambda n: (n, 0, 0, 0)),
        scratch_shapes=[
            pltpu.VMEM((H0 + 4, W0 + 4, C0), jnp.float32),   # s1: padded input
            pltpu.VMEM((H1 + 4, W0 + 8, C1), jnp.float32),   # s2: padded stage-2 in
            pltpu.VMEM((H2 + 2, W0 + 8, C2), jnp.float32),   # s3: padded block in
        ],
        compiler_params=pltpu.CompilerParams(
            dimension_semantics=("parallel",)),
    )(x_nhwc, w1_taps, b1.reshape(1, C1), w2_taps, b2.reshape(1, C2),
      wr_taps, br)

    out = out_lazy[:, :, ::4, :]                      # compact the lazy W axis
    return jnp.transpose(out, (0, 3, 1, 2))           # back to NCHW


if __name__ == "__main__":
    key = jax.random.PRNGKey(0)
    keys = jax.random.split(key, 8)
    N = 2
    x = jax.random.normal(keys[0], (N, C0, H0, W0), dtype=jnp.float32)

    def conv_init(k, cout, cin, ksz):
        fan_in = cin * ksz * ksz
        bound = 1.0 / (fan_in ** 0.5)
        kw_, kb_ = jax.random.split(k)
        w = jax.random.uniform(kw_, (cout, cin, ksz, ksz),
                               minval=-bound, maxval=bound, dtype=jnp.float32)
        b = jax.random.uniform(kb_, (cout,),
                               minval=-bound, maxval=bound, dtype=jnp.float32)
        return w, b

    w1, b1 = conv_init(keys[1], C1, C0, K5)
    w2, b2 = conv_init(keys[2], C2, C1, K5)
    res_w, res_b = [], []
    for i in range(4):
        w, b = conv_init(keys[3 + i], C2, C2, K3)
        res_w.append(w)
        res_b.append(b)
    wr = jnp.stack(res_w)        # (4, 64, 64, 3, 3): blk1 convA/B, blk2 convA/B
    br = jnp.stack(res_b)        # (4, 64)

    params = (w1, b1, w2, b2, wr, br)
    out = encoder_forward(x, params)
    out = jax.block_until_ready(out)
    assert out.shape == (N, C2, H2, W2), out.shape

    # Pure-JAX reference mirroring the PyTorch Encoder exactly.
    def conv_nchw(v, w, b, pad):
        y = jax.lax.conv_general_dilated(
            v, w, window_strides=(1, 1), padding=[(pad, pad), (pad, pad)],
            dimension_numbers=("NCHW", "OIHW", "NCHW"))
        return y + b.reshape(1, -1, 1, 1)

    def pool2(v):
        return jax.lax.reduce_window(v, -jnp.inf, jax.lax.max,
                                     (1, 1, 2, 2), (1, 1, 2, 2), "VALID")

    ref = pool2(jax.nn.relu(conv_nchw(x, w1, b1, 2)))
    ref = pool2(jax.nn.relu(conv_nchw(ref, w2, b2, 2)))
    ref = ref + conv_nchw(jax.nn.relu(conv_nchw(ref, wr[0], br[0], 1)),
                          wr[1], br[1], 1)
    ref = ref + conv_nchw(jax.nn.relu(conv_nchw(ref, wr[2], br[2], 1)),
                          wr[3], br[3], 1)
    ref = jax.block_until_ready(ref)

    assert jnp.allclose(out, ref, atol=2e-3, rtol=2e-3), \
        float(jnp.max(jnp.abs(out - ref)))
    print("KERNEL_OK")
</pallas_src>

<mosaic_0001>
module attributes {stable_mosaic.version = 11 : i64} {
  func.func @_encoder_kernel(%arg0: i32, %arg1: memref<1x16x16x3xf32, #tpu.memory_space<vmem>>, %arg2: memref<25x3x32xf32, #tpu.memory_space<vmem>>, %arg3: memref<1x32xf32, #tpu.memory_space<vmem>>, %arg4: memref<25x32x64xf32, #tpu.memory_space<vmem>>, %arg5: memref<1x64xf32, #tpu.memory_space<vmem>>, %arg6: memref<36x64x64xf32, #tpu.memory_space<vmem>>, %arg7: memref<4x64xf32, #tpu.memory_space<vmem>>, %arg8: memref<1x4x16x64xf32, #tpu.memory_space<vmem>>, %arg9: memref<20x20x3xf32, #tpu.memory_space<vmem>>, %arg10: memref<12x24x32xf32, #tpu.memory_space<vmem>>, %arg11: memref<6x24x64xf32, #tpu.memory_space<vmem>>) attributes {dimension_semantics = [#tpu.dimension_semantics<parallel>], iteration_bounds = array<i64: 2>, scalar_prefetch = 0 : i64, scratch_operands = 3 : i64, tpu.core_type = #tpu.core_type<tc>, window_params = [{transform_indices = @transform_0, window_bounds = array<i64: 1, 16, 16, 3>}, {pipeline_mode = #tpu.pipeline_mode<synchronous>, transform_indices = @transform_1, window_bounds = array<i64: 25, 3, 32>}, {pipeline_mode = #tpu.pipeline_mode<synchronous>, transform_indices = @transform_2, window_bounds = array<i64: 1, 32>}, {pipeline_mode = #tpu.pipeline_mode<synchronous>, transform_indices = @transform_3, window_bounds = array<i64: 25, 32, 64>}, {pipeline_mode = #tpu.pipeline_mode<synchronous>, transform_indices = @transform_4, window_bounds = array<i64: 1, 64>}, {pipeline_mode = #tpu.pipeline_mode<synchronous>, transform_indices = @transform_5, window_bounds = array<i64: 36, 64, 64>}, {pipeline_mode = #tpu.pipeline_mode<synchronous>, transform_indices = @transform_6, window_bounds = array<i64: 4, 64>}, {transform_indices = @transform_7, window_bounds = array<i64: 1, 4, 16, 64>}]} {
    %cst = arith.constant 0.000000e+00 : f32
    %0 = vector.broadcast %cst : f32 to vector<20x20x3xf32>
    %c0 = arith.constant 0 : index
    %c0_0 = arith.constant 0 : index
    %c0_1 = arith.constant 0 : index
    %1 = vector.load %arg9[%c0, %c0_0, %c0_1] : memref<20x20x3xf32, #tpu.memory_space<vmem>>, vector<20x20x3xf32>
    tpu.vector_store %arg9[%c0, %c0_0, %c0_1], %0 {strides = array<i32>} : memref<20x20x3xf32, #tpu.memory_space<vmem>>, vector<20x20x3xf32>,
    %cst_2 = arith.constant 0.000000e+00 : f32
    %2 = vector.broadcast %cst_2 : f32 to vector<12x24x32xf32>
    %c0_3 = arith.constant 0 : index
    %c0_4 = arith.constant 0 : index
    %c0_5 = arith.constant 0 : index
    %3 = vector.load %arg10[%c0_3, %c0_4, %c0_5] : memref<12x24x32xf32, #tpu.memory_space<vmem>>, vector<12x24x32xf32>
    tpu.vector_store %arg10[%c0_3, %c0_4, %c0_5], %2 {strides = array<i32>} : memref<12x24x32xf32, #tpu.memory_space<vmem>>, vector<12x24x32xf32>,
    %cst_6 = arith.constant 0.000000e+00 : f32
    %4 = vector.broadcast %cst_6 : f32 to vector<6x24x64xf32>
    %c0_7 = arith.constant 0 : index
    %c0_8 = arith.constant 0 : index
    %c0_9 = arith.constant 0 : index
    %5 = vector.load %arg11[%c0_7, %c0_8, %c0_9] : memref<6x24x64xf32, #tpu.memory_space<vmem>>, vector<6x24x64xf32>
    tpu.vector_store %arg11[%c0_7, %c0_8, %c0_9], %4 {strides = array<i32>} : memref<6x24x64xf32, #tpu.memory_space<vmem>>, vector<6x24x64xf32>,
    %c0_10 = arith.constant 0 : index
    %c0_11 = arith.constant 0 : index
    %c0_12 = arith.constant 0 : index
    %c0_13 = arith.constant 0 : index
    %6 = vector.load %arg1[%c0_10, %c0_11, %c0_12, %c0_13] : memref<1x16x16x3xf32, #tpu.memory_space<vmem>>, vector<1x16x16x3xf32>
    %7 = vector.shape_cast %6 : vector<1x16x16x3xf32> to vector<16x16x3xf32>
    %c2 = arith.constant 2 : index
    %c2_14 = arith.constant 2 : index
    %c0_15 = arith.constant 0 : index
    %8 = vector.load %arg9[%c2, %c2_14, %c0_15] : memref<20x20x3xf32, #tpu.memory_space<vmem>>, vector<16x16x3xf32>
    tpu.vector_store %arg9[%c2, %c2_14, %c0_15], %7 {strides = array<i32>} : memref<20x20x3xf32, #tpu.memory_space<vmem>>, vector<16x16x3xf32>,
    %cst_16 = arith.constant 0.000000e+00 : f32
    %9 = vector.broadcast %cst_16 : f32 to vector<256x32xf32>
    %c0_17 = arith.constant 0 : index
    %c0_18 = arith.constant 0 : index
    %c0_19 = arith.constant 0 : index
    %10 = vector.load %arg9[%c0_17, %c0_18, %c0_19] : memref<20x20x3xf32, #tpu.memory_space<vmem>>, vector<16x16x3xf32>
    %11 = vector.shape_cast %10 : vector<16x16x3xf32> to vector<256x3xf32>
    %c0_20 = arith.constant 0 : index
    %c0_21 = arith.constant 0 : index
    %c0_22 = arith.constant 0 : index
    %12 = vector.load %arg2[%c0_20, %c0_21, %c0_22] : memref<25x3x32xf32, #tpu.memory_space<vmem>>, vector<1x3x32xf32>
    %13 = vector.shape_cast %12 : vector<1x3x32xf32> to vector<3x32xf32>
    %cst_23 = arith.constant dense<0.000000e+00> : vector<256x32xf32>
    %14 = tpu.matmul %11, %13, %cst_23 {dimension_numbers = #tpu.dot_dimension_numbers<[1], [0], [0], [1], [0, 0, 1, 1], [], []>} : vector<256x3xf32>, vector<3x32xf32>, vector<256x32xf32> -> vector<256x32xf32>
    %15 = arith.addf %9, %14 : vector<256x32xf32>
    %c0_24 = arith.constant 0 : index
    %c1 = arith.constant 1 : index
    %c0_25 = arith.constant 0 : index
    %16 = vector.load %arg9[%c0_24, %c1, %c0_25] : memref<20x20x3xf32, #tpu.memory_space<vmem>>, vector<16x16x3xf32>
    %17 = vector.shape_cast %16 : vector<16x16x3xf32> to vector<256x3xf32>
    %c1_26 = arith.constant 1 : index
    %c0_27 = arith.constant 0 : index
    %c0_28 = arith.constant 0 : index
    %18 = vector.load %arg2[%c1_26, %c0_27, %c0_28] : memref<25x3x32xf32, #tpu.memory_space<vmem>>, vector<1x3x32xf32>
    %19 = vector.shape_cast %18 : vector<1x3x32xf32> to vector<3x32xf32>
    %cst_29 = arith.constant dense<0.000000e+00> : vector<256x32xf32>
    %20 = tpu.matmul %17, %19, %cst_29 {dimension_numbers = #tpu.dot_dimension_numbers<[1], [0], [0], [1], [0, 0, 1, 1], [], []>} : vector<256x3xf32>, vector<3x32xf32>, vector<256x32xf32> -> vector<256x32xf32>
    %21 = arith.addf %15, %20 : vector<256x32xf32>
    %c0_30 = arith.constant 0 : index
    %c2_31 = arith.constant 2 : index
    %c0_32 = arith.constant 0 : index
    %22 = vector.load %arg9[%c0_30, %c2_31, %c0_32] : memref<20x20x3xf32, #tpu.memory_space<vmem>>, vector<16x16x3xf32>
    %23 = vector.shape_cast %22 : vector<16x16x3xf32> to vector<256x3xf32>
    %c2_33 = arith.constant 2 : index
    %c0_34 = arith.constant 0 : index
    %c0_35 = arith.constant 0 : index
    %24 = vector.load %arg2[%c2_33, %c0_34, %c0_35] : memref<25x3x32xf32, #tpu.memory_space<vmem>>, vector<1x3x32xf32>
    %25 = vector.shape_cast %24 : vector<1x3x32xf32> to vector<3x32xf32>
    %cst_36 = arith.constant dense<0.000000e+00> : vector<256x32xf32>
    %26 = tpu.matmul %23, %25, %cst_36 {dimension_numbers = #tpu.dot_dimension_numbers<[1], [0], [0], [1], [0, 0, 1, 1], [], []>} : vector<256x3xf32>, vector<3x32xf32>, vector<256x32xf32> -> vector<256x32xf32>
    %27 = arith.addf %21, %26 : vector<256x32xf32>
    %c0_37 = arith.constant 0 : index
    %c3 = arith.constant 3 : index
    %c0_38 = arith.constant 0 : index
    %28 = vector.load %arg9[%c0_37, %c3, %c0_38] : memref<20x20x3xf32, #tpu.memory_space<vmem>>, vector<16x16x3xf32>
    %29 = vector.shape_cast %28 : vector<16x16x3xf32> to vector<256x3xf32>
    %c3_39 = arith.constant 3 : index
    %c0_40 = arith.constant 0 : index
    %c0_41 = arith.constant 0 : index
    %30 = vector.load %arg2[%c3_39, %c0_40, %c0_41] : memref<25x3x32xf32, #tpu.memory_space<vmem>>, vector<1x3x32xf32>
    %31 = vector.shape_cast %30 : vector<1x3x32xf32> to vector<3x32xf32>
    %cst_42 = arith.constant dense<0.000000e+00> : vector<256x32xf32>
    %32 = tpu.matmul %29, %31, %cst_42 {dimension_numbers = #tpu.dot_dimension_numbers<[1], [0], [0], [1], [0, 0, 1, 1], [], []>} : vector<256x3xf32>, vector<3x32xf32>, vector<256x32xf32> -> vector<256x32xf32>
    %33 = arith.addf %27, %32 : vector<256x32xf32>
    %c0_43 = arith.constant 0 : index
    %c4 = arith.constant 4 : index
    %c0_44 = arith.constant 0 : index
    %34 = vector.load %arg9[%c0_43, %c4, %c0_44] : memref<20x20x3xf32, #tpu.memory_space<vmem>>, vector<16x16x3xf32>
    %35 = vector.shape_cast %34 : vector<16x16x3xf32> to vector<256x3xf32>
    %c4_45 = arith.constant 4 : index
    %c0_46 = arith.constant 0 : index
    %c0_47 = arith.constant 0 : index
    %36 = vector.load %arg2[%c4_45, %c0_46, %c0_47] : memref<25x3x32xf32, #tpu.memory_space<vmem>>, vector<1x3x32xf32>
    %37 = vector.shape_cast %36 : vector<1x3x32xf32> to vector<3x32xf32>
    %cst_48 = arith.constant dense<0.000000e+00> : vector<256x32xf32>
    %38 = tpu.matmul %35, %37, %cst_48 {dimension_numbers = #tpu.dot_dimension_numbers<[1], [0], [0], [1], [0, 0, 1, 1], [], []>} : vector<256x3xf32>, vector<3x32xf32>, vector<256x32xf32> -> vector<256x32xf32>
    %39 = arith.addf %33, %38 : vector<256x32xf32>
    %c1_49 = arith.constant 1 : index
    %c0_50 = arith.constant 0 : index
    %c0_51 = arith.constant 0 : index
    %40 = vector.load %arg9[%c1_49, %c0_50, %c0_51] : memref<20x20x3xf32, #tpu.memory_space<vmem>>, vector<16x16x3xf32>
    %41 = vector.shape_cast %40 : vector<16x16x3xf32> to vector<256x3xf32>
    %c5 = arith.constant 5 : index
    %c0_52 = arith.constant 0 : index
    %c0_53 = arith.constant 0 : index
    %42 = vector.load %arg2[%c5, %c0_52, %c0_53] : memref<25x3x32xf32, #tpu.memory_space<vmem>>, vector<1x3x32xf32>
    %43 = vector.shape_cast %42 : vector<1x3x32xf32> to vector<3x32xf32>
    %cst_54 = arith.constant dense<0.000000e+00> : vector<256x32xf32>
    %44 = tpu.matmul %41, %43, %cst_54 {dimension_numbers = #tpu.dot_dimension_numbers<[1], [0], [0], [1], [0, 0, 1, 1], [], []>} : vector<256x3xf32>, vector<3x32xf32>, vector<256x32xf32> -> vector<256x32xf32>
    %45 = arith.addf %39, %44 : vector<256x32xf32>
    %c1_55 = arith.constant 1 : index
    %c1_56 = arith.constant 1 : index
    %c0_57 = arith.constant 0 : index
    %46 = vector.load %arg9[%c1_55, %c1_56, %c0_57] : memref<20x20x3xf32, #tpu.memory_space<vmem>>, vector<16x16x3xf32>
    %47 = vector.shape_cast %46 : vector<16x16x3xf32> to vector<256x3xf32>
    %c6 = arith.constant 6 : index
    %c0_58 = arith.constant 0 : index
    %c0_59 = arith.constant 0 : index
    %48 = vector.load %arg2[%c6, %c0_58, %c0_59] : memref<25x3x32xf32, #tpu.memory_space<vmem>>, vector<1x3x32xf32>
    %49 = vector.shape_cast %48 : vector<1x3x32xf32> to vector<3x32xf32>
    %cst_60 = arith.constant dense<0.000000e+00> : vector<256x32xf32>
    %50 = tpu.matmul %47, %49, %cst_60 {dimension_numbers = #tpu.dot_dimension_numbers<[1], [0], [0], [1], [0, 0, 1, 1], [], []>} : vector<256x3xf32>, vector<3x32xf32>, vector<256x32xf32> -> vector<256x32xf32>
    %51 = arith.addf %45, %50 : vector<256x32xf32>
    %c1_61 = arith.constant 1 : index
    %c2_62 = arith.constant 2 : index
    %c0_63 = arith.constant 0 : index
    %52 = vector.load %arg9[%c1_61, %c2_62, %c0_63] : memref<20x20x3xf32, #tpu.memory_space<vmem>>, vector<16x16x3xf32>
    %53 = vector.shape_cast %52 : vector<16x16x3xf32> to vector<256x3xf32>
    %c7 = arith.constant 7 : index
    %c0_64 = arith.constant 0 : index
    %c0_65 = arith.constant 0 : index
    %54 = vector.load %arg2[%c7, %c0_64, %c0_65] : memref<25x3x32xf32, #tpu.memory_space<vmem>>, vector<1x3x32xf32>
    %55 = vector.shape_cast %54 : vector<1x3x32xf32> to vector<3x32xf32>
    %cst_66 = arith.constant dense<0.000000e+00> : vector<256x32xf32>
    %56 = tpu.matmul %53, %55, %cst_66 {dimension_numbers = #tpu.dot_dimension_numbers<[1], [0], [0], [1], [0, 0, 1, 1], [], []>} : vector<256x3xf32>, vector<3x32xf32>, vector<256x32xf32> -> vector<256x32xf32>
    %57 = arith.addf %51, %56 : vector<256x32xf32>
    %c1_67 = arith.constant 1 : index
    %c3_68 = arith.constant 3 : index
    %c0_69 = arith.constant 0 : index
    %58 = vector.load %arg9[%c1_67, %c3_68, %c0_69] : memref<20x20x3xf32, #tpu.memory_space<vmem>>, vector<16x16x3xf32>
    %59 = vector.shape_cast %58 : vector<16x16x3xf32> to vector<256x3xf32>
    %c8 = arith.constant 8 : index
    %c0_70 = arith.constant 0 : index
    %c0_71 = arith.constant 0 : index
    %60 = vector.load %arg2[%c8, %c0_70, %c0_71] : memref<25x3x32xf32, #tpu.memory_space<vmem>>, vector<1x3x32xf32>
    %61 = vector.shape_cast %60 : vector<1x3x32xf32> to vector<3x32xf32>
    %cst_72 = arith.constant dense<0.000000e+00> : vector<256x32xf32>
    %62 = tpu.matmul %59, %61, %cst_72 {dimension_numbers = #tpu.dot_dimension_numbers<[1], [0], [0], [1], [0, 0, 1, 1], [], []>} : vector<256x3xf32>, vector<3x32xf32>, vector<256x32xf32> -> vector<256x32xf32>
    %63 = arith.addf %57, %62 : vector<256x32xf32>
    %c1_73 = arith.constant 1 : index
    %c4_74 = arith.constant 4 : index
    %c0_75 = arith.constant 0 : index
    %64 = vector.load %arg9[%c1_73, %c4_74, %c0_75] : memref<20x20x3xf32, #tpu.memory_space<vmem>>, vector<16x16x3xf32>
    %65 = vector.shape_cast %64 : vector<16x16x3xf32> to vector<256x3xf32>
    %c9 = arith.constant 9 : index
    %c0_76 = arith.constant 0 : index
    %c0_77 = arith.constant 0 : index
    %66 = vector.load %arg2[%c9, %c0_76, %c0_77] : memref<25x3x32xf32, #tpu.memory_space<vmem>>, vector<1x3x32xf32>
    %67 = vector.shape_cast %66 : vector<1x3x32xf32> to vector<3x32xf32>
    %cst_78 = arith.constant dense<0.000000e+00> : vector<256x32xf32>
    %68 = tpu.matmul %65, %67, %cst_78 {dimension_numbers = #tpu.dot_dimension_numbers<[1], [0], [0], [1], [0, 0, 1, 1], [], []>} : vector<256x3xf32>, vector<3x32xf32>, vector<256x32xf32> -> vector<256x32xf32>
    %69 = arith.addf %63, %68 : vector<256x32xf32>
    %c2_79 = arith.constant 2 : index
    %c0_80 = arith.constant 0 : index
    %c0_81 = arith.constant 0 : index
    %70 = vector.load %arg9[%c2_79, %c0_80, %c0_81] : memref<20x20x3xf32, #tpu.memory_space<vmem>>, vector<16x16x3xf32>
    %71 = vector.shape_cast %70 : vector<16x16x3xf32> to vector<256x3xf32>
    %c10 = arith.constant 10 : index
    %c0_82 = arith.constant 0 : index
    %c0_83 = arith.constant 0 : index
    %72 = vector.load %arg2[%c10, %c0_82, %c0_83] : memref<25x3x32xf32, #tpu.memory_space<vmem>>, vector<1x3x32xf32>
    %73 = vector.shape_cast %72 : vector<1x3x32xf32> to vector<3x32xf32>
    %cst_84 = arith.constant dense<0.000000e+00> : vector<256x32xf32>
    %74 = tpu.matmul %71, %73, %cst_84 {dimension_numbers = #tpu.dot_dimension_numbers<[1], [0], [0], [1], [0, 0, 1, 1], [], []>} : vector<256x3xf32>, vector<3x32xf32>, vector<256x32xf32> -> vector<256x32xf32>
    %75 = arith.addf %69, %74 : vector<256x32xf32>
    %c2_85 = arith.constant 2 : index
    %c1_86 = arith.constant 1 : index
    %c0_87 = arith.constant 0 : index
    %76 = vector.load %arg9[%c2_85, %c1_86, %c0_87] : memref<20x20x3xf32, #tpu.memory_space<vmem>>, vector<16x16x3xf32>
    %77 = vector.shape_cast %76 : vector<16x16x3xf32> to vector<256x3xf32>
    %c11 = arith.constant 11 : index
    %c0_88 = arith.constant 0 : index
    %c0_89 = arith.constant 0 : index
    %78 = vector.load %arg2[%c11, %c0_88, %c0_89] : memref<25x3x32xf32, #tpu.memory_space<vmem>>, vector<1x3x32xf32>
    %79 = vector.shape_cast %78 : vector<1x3x32xf32> to vector<3x32xf32>
    %cst_90 = arith.constant dense<0.000000e+00> : vector<256x32xf32>
    %80 = tpu.matmul %77, %79, %cst_90 {dimension_numbers = #tpu.dot_dimension_numbers<[1], [0], [0], [1], [0, 0, 1, 1], [], []>} : vector<256x3xf32>, vector<3x32xf32>, vector<256x32xf32> -> vector<256x32xf32>
    %81 = arith.addf %75, %80 : vector<256x32xf32>
    %c2_91 = arith.constant 2 : index
    %c2_92 = arith.constant 2 : index
    %c0_93 = arith.constant 0 : index
    %82 = vector.load %arg9[%c2_91, %c2_92, %c0_93] : memref<20x20x3xf32, #tpu.memory_space<vmem>>, vector<16x16x3xf32>
    %83 = vector.shape_cast %82 : vector<16x16x3xf32> to vector<256x3xf32>
    %c12 = arith.constant 12 : index
    %c0_94 = arith.constant 0 : index
    %c0_95 = arith.constant 0 : index
    %84 = vector.load %arg2[%c12, %c0_94, %c0_95] : memref<25x3x32xf32, #tpu.memory_space<vmem>>, vector<1x3x32xf32>
    %85 = vector.shape_cast %84 : vector<1x3x32xf32> to vector<3x32xf32>
    %cst_96 = arith.constant dense<0.000000e+00> : vector<256x32xf32>
    %86 = tpu.matmul %83, %85, %cst_96 {dimension_numbers = #tpu.dot_dimension_numbers<[1], [0], [0], [1], [0, 0, 1, 1], [], []>} : vector<256x3xf32>, vector<3x32xf32>, vector<256x32xf32> -> vector<256x32xf32>
    %87 = arith.addf %81, %86 : vector<256x32xf32>
    %c2_97 = arith.constant 2 : index
    %c3_98 = arith.constant 3 : index
    %c0_99 = arith.constant 0 : index
    %88 = vector.load %arg9[%c2_97, %c3_98, %c0_99] : memref<20x20x3xf32, #tpu.memory_space<vmem>>, vector<16x16x3xf32>
    %89 = vector.shape_cast %88 : vector<16x16x3xf32> to vector<256x3xf32>
    %c13 = arith.constant 13 : index
    %c0_100 = arith.constant 0 : index
    %c0_101 = arith.constant 0 : index
    %90 = vector.load %arg2[%c13, %c0_100, %c0_101] : memref<25x3x32xf32, #tpu.memory_space<vmem>>, vector<1x3x32xf32>
    %91 = vector.shape_cast %90 : vector<1x3x32xf32> to vector<3x32xf32>
    %cst_102 = arith.constant dense<0.000000e+00> : vector<256x32xf32>
    %92 = tpu.matmul %89, %91, %cst_102 {dimension_numbers = #tpu.dot_dimension_numbers<[1], [0], [0], [1], [0, 0, 1, 1], [], []>} : vector<256x3xf32>, vector<3x32xf32>, vector<256x32xf32> -> vector<256x32xf32>
    %93 = arith.addf %87, %92 : vector<256x32xf32>
    %c2_103 = arith.constant 2 : index
    %c4_104 = arith.constant 4 : index
    %c0_105 = arith.constant 0 : index
    %94 = vector.load %arg9[%c2_103, %c4_104, %c0_105] : memref<20x20x3xf32, #tpu.memory_space<vmem>>, vector<16x16x3xf32>
    %95 = vector.shape_cast %94 : vector<16x16x3xf32> to vector<256x3xf32>
    %c14 = arith.constant 14 : index
    %c0_106 = arith.constant 0 : index
    %c0_107 = arith.constant 0 : index
    %96 = vector.load %arg2[%c14, %c0_106, %c0_107] : memref<25x3x32xf32, #tpu.memory_space<vmem>>, vector<1x3x32xf32>
    %97 = vector.shape_cast %96 : vector<1x3x32xf32> to vector<3x32xf32>
    %cst_108 = arith.constant dense<0.000000e+00> : vector<256x32xf32>
    %98 = tpu.matmul %95, %97, %cst_108 {dimension_numbers = #tpu.dot_dimension_numbers<[1], [0], [0], [1], [0, 0, 1, 1], [], []>} : vector<256x3xf32>, vector<3x32xf32>, vector<256x32xf32> -> vector<256x32xf32>
    %99 = arith.addf %93, %98 : vector<256x32xf32>
    %c3_109 = arith.constant 3 : index
    %c0_110 = arith.constant 0 : index
    %c0_111 = arith.constant 0 : index
    %100 = vector.load %arg9[%c3_109, %c0_110, %c0_111] : memref<20x20x3xf32, #tpu.memory_space<vmem>>, vector<16x16x3xf32>
    %101 = vector.shape_cast %100 : vector<16x16x3xf32> to vector<256x3xf32>
    %c15 = arith.constant 15 : index
    %c0_112 = arith.constant 0 : index
    %c0_113 = arith.constant 0 : index
    %102 = vector.load %arg2[%c15, %c0_112, %c0_113] : memref<25x3x32xf32, #tpu.memory_space<vmem>>, vector<1x3x32xf32>
    %103 = vector.shape_cast %102 : vector<1x3x32xf32> to vector<3x32xf32>
    %cst_114 = arith.constant dense<0.000000e+00> : vector<256x32xf32>
    %104 = tpu.matmul %101, %103, %cst_114 {dimension_numbers = #tpu.dot_dimension_numbers<[1], [0], [0], [1], [0, 0, 1, 1], [], []>} : vector<256x3xf32>, vector<3x32xf32>, vector<256x32xf32> -> vector<256x32xf32>
    %105 = arith.addf %99, %104 : vector<256x32xf32>
    %c3_115 = arith.constant 3 : index
    %c1_116 = arith.constant 1 : index
    %c0_117 = arith.constant 0 : index
    %106 = vector.load %arg9[%c3_115, %c1_116, %c0_117] : memref<20x20x3xf32, #tpu.memory_space<vmem>>, vector<16x16x3xf32>
    %107 = vector.shape_cast %106 : vector<16x16x3xf32> to vector<256x3xf32>
    %c16 = arith.constant 16 : index
    %c0_118 = arith.constant 0 : index
    %c0_119 = arith.constant 0 : index
    %108 = vector.load %arg2[%c16, %c0_118, %c0_119] : memref<25x3x32xf32, #tpu.memory_space<vmem>>, vector<1x3x32xf32>
    %109 = vector.shape_cast %108 : vector<1x3x32xf32> to vector<3x32xf32>
    %cst_120 = arith.constant dense<0.000000e+00> : vector<256x32xf32>
    %110 = tpu.matmul %107, %109, %cst_120 {dimension_numbers = #tpu.dot_dimension_numbers<[1], [0], [0], [1], [0, 0, 1, 1], [], []>} : vector<256x3xf32>, vector<3x32xf32>, vector<256x32xf32> -> vector<256x32xf32>
    %111 = arith.addf %105, %110 : vector<256x32xf32>
    %c3_121 = arith.constant 3 : index
    %c2_122 = arith.constant 2 : index
    %c0_123 = arith.constant 0 : index
    %112 = vector.load %arg9[%c3_121, %c2_122, %c0_123] : memref<20x20x3xf32, #tpu.memory_space<vmem>>, vector<16x16x3xf32>
    %113 = vector.shape_cast %112 : vector<16x16x3xf32> to vector<256x3xf32>
    %c17 = arith.constant 17 : index
    %c0_124 = arith.constant 0 : index
    %c0_125 = arith.constant 0 : index
    %114 = vector.load %arg2[%c17, %c0_124, %c0_125] : memref<25x3x32xf32, #tpu.memory_space<vmem>>, vector<1x3x32xf32>
    %115 = vector.shape_cast %114 : vector<1x3x32xf32> to vector<3x32xf32>
    %cst_126 = arith.constant dense<0.000000e+00> : vector<256x32xf32>
    %116 = tpu.matmul %113, %115, %cst_126 {dimension_numbers = #tpu.dot_dimension_numbers<[1], [0], [0], [1], [0, 0, 1, 1], [], []>} : vector<256x3xf32>, vector<3x32xf32>, vector<256x32xf32> -> vector<256x32xf32>
    %117 = arith.addf %111, %116 : vector<256x32xf32>
    %c3_127 = arith.constant 3 : index
    %c3_128 = arith.constant 3 : index
    %c0_129 = arith.constant 0 : index
    %118 = vector.load %arg9[%c3_127, %c3_128, %c0_129] : memref<20x20x3xf32, #tpu.memory_space<vmem>>, vector<16x16x3xf32>
    %119 = vector.shape_cast %118 : vector<16x16x3xf32> to vector<256x3xf32>
    %c18 = arith.constant 18 : index
    %c0_130 = arith.constant 0 : index
    %c0_131 = arith.constant 0 : index
    %120 = vector.load %arg2[%c18, %c0_130, %c0_131] : memref<25x3x32xf32, #tpu.memory_space<vmem>>, vector<1x3x32xf32>
    %121 = vector.shape_cast %120 : vector<1x3x32xf32> to vector<3x32xf32>
    %cst_132 = arith.constant dense<0.000000e+00> : vector<256x32xf32>
    %122 = tpu.matmul %119, %121, %cst_132 {dimension_numbers = #tpu.dot_dimension_numbers<[1], [0], [0], [1], [0, 0, 1, 1], [], []>} : vector<256x3xf32>, vector<3x32xf32>, vector<256x32xf32> -> vector<256x32xf32>
    %123 = arith.addf %117, %122 : vector<256x32xf32>
    %c3_133 = arith.constant 3 : index
    %c4_134 = arith.constant 4 : index
    %c0_135 = arith.constant 0 : index
    %124 = vector.load %arg9[%c3_133, %c4_134, %c0_135] : memref<20x20x3xf32, #tpu.memory_space<vmem>>, vector<16x16x3xf32>
    %125 = vector.shape_cast %124 : vector<16x16x3xf32> to vector<256x3xf32>
    %c19 = arith.constant 19 : index
    %c0_136 = arith.constant 0 : index
    %c0_137 = arith.constant 0 : index
    %126 = vector.load %arg2[%c19, %c0_136, %c0_137] : memref<25x3x32xf32, #tpu.memory_space<vmem>>, vector<1x3x32xf32>
    %127 = vector.shape_cast %126 : vector<1x3x32xf32> to vector<3x32xf32>
    %cst_138 = arith.constant dense<0.000000e+00> : vector<256x32xf32>
    %128 = tpu.matmul %125, %127, %cst_138 {dimension_numbers = #tpu.dot_dimension_numbers<[1], [0], [0], [1], [0, 0, 1, 1], [], []>} : vector<256x3xf32>, vector<3x32xf32>, vector<256x32xf32> -> vector<256x32xf32>
    %129 = arith.addf %123, %128 : vector<256x32xf32>
    %c4_139 = arith.constant 4 : index
    %c0_140 = arith.constant 0 : index
    %c0_141 = arith.constant 0 : index
    %130 = vector.load %arg9[%c4_139, %c0_140, %c0_141] : memref<20x20x3xf32, #tpu.memory_space<vmem>>, vector<16x16x3xf32>
    %131 = vector.shape_cast %130 : vector<16x16x3xf32> to vector<256x3xf32>
    %c20 = arith.constant 20 : index
    %c0_142 = arith.constant 0 : index
    %c0_143 = arith.constant 0 : index
    %132 = vector.load %arg2[%c20, %c0_142, %c0_143] : memref<25x3x32xf32, #tpu.memory_space<vmem>>, vector<1x3x32xf32>
    %133 = vector.shape_cast %132 : vector<1x3x32xf32> to vector<3x32xf32>
    %cst_144 = arith.constant dense<0.000000e+00> : vector<256x32xf32>
    %134 = tpu.matmul %131, %133, %cst_144 {dimension_numbers = #tpu.dot_dimension_numbers<[1], [0], [0], [1], [0, 0, 1, 1], [], []>} : vector<256x3xf32>, vector<3x32xf32>, vector<256x32xf32> -> vector<256x32xf32>
    %135 = arith.addf %129, %134 : vector<256x32xf32>
    %c4_145 = arith.constant 4 : index
    %c1_146 = arith.constant 1 : index
    %c0_147 = arith.constant 0 : index
    %136 = vector.load %arg9[%c4_145, %c1_146, %c0_147] : memref<20x20x3xf32, #tpu.memory_space<vmem>>, vector<16x16x3xf32>
    %137 = vector.shape_cast %136 : vector<16x16x3xf32> to vector<256x3xf32>
    %c21 = arith.constant 21 : index
    %c0_148 = arith.constant 0 : index
    %c0_149 = arith.constant 0 : index
    %138 = vector.load %arg2[%c21, %c0_148, %c0_149] : memref<25x3x32xf32, #tpu.memory_space<vmem>>, vector<1x3x32xf32>
    %139 = vector.shape_cast %138 : vector<1x3x32xf32> to vector<3x32xf32>
    %cst_150 = arith.constant dense<0.000000e+00> : vector<256x32xf32>
    %140 = tpu.matmul %137, %139, %cst_150 {dimension_numbers = #tpu.dot_dimension_numbers<[1], [0], [0], [1], [0, 0, 1, 1], [], []>} : vector<256x3xf32>, vector<3x32xf32>, vector<256x32xf32> -> vector<256x32xf32>
    %141 = arith.addf %135, %140 : vector<256x32xf32>
    %c4_151 = arith.constant 4 : index
    %c2_152 = arith.constant 2 : index
    %c0_153 = arith.constant 0 : index
    %142 = vector.load %arg9[%c4_151, %c2_152, %c0_153] : memref<20x20x3xf32, #tpu.memory_space<vmem>>, vector<16x16x3xf32>
    %143 = vector.shape_cast %142 : vector<16x16x3xf32> to vector<256x3xf32>
    %c22 = arith.constant 22 : index
    %c0_154 = arith.constant 0 : index
    %c0_155 = arith.constant 0 : index
    %144 = vector.load %arg2[%c22, %c0_154, %c0_155] : memref<25x3x32xf32, #tpu.memory_space<vmem>>, vector<1x3x32xf32>
    %145 = vector.shape_cast %144 : vector<1x3x32xf32> to vector<3x32xf32>
    %cst_156 = arith.constant dense<0.000000e+00> : vector<256x32xf32>
    %146 = tpu.matmul %143, %145, %cst_156 {dimension_numbers = #tpu.dot_dimension_numbers<[1], [0], [0], [1], [0, 0, 1, 1], [], []>} : vector<256x3xf32>, vector<3x32xf32>, vector<256x32xf32> -> vector<256x32xf32>
    %147 = arith.addf %141, %146 : vector<256x32xf32>
    %c4_157 = arith.constant 4 : index
    %c3_158 = arith.constant 3 : index
    %c0_159 = arith.constant 0 : index
    %148 = vector.load %arg9[%c4_157, %c3_158, %c0_159] : memref<20x20x3xf32, #tpu.memory_space<vmem>>, vector<16x16x3xf32>
    %149 = vector.shape_cast %148 : vector<16x16x3xf32> to vector<256x3xf32>
    %c23 = arith.constant 23 : index
    %c0_160 = arith.constant 0 : index
    %c0_161 = arith.constant 0 : index
    %150 = vector.load %arg2[%c23, %c0_160, %c0_161] : memref<25x3x32xf32, #tpu.memory_space<vmem>>, vector<1x3x32xf32>
    %151 = vector.shape_cast %150 : vector<1x3x32xf32> to vector<3x32xf32>
    %cst_162 = arith.constant dense<0.000000e+00> : vector<256x32xf32>
    %152 = tpu.matmul %149, %151, %cst_162 {dimension_numbers = #tpu.dot_dimension_numbers<[1], [0], [0], [1], [0, 0, 1, 1], [], []>} : vector<256x3xf32>, vector<3x32xf32>, vector<256x32xf32> -> vector<256x32xf32>
    %153 = arith.addf %147, %152 : vector<256x32xf32>
    %c4_163 = arith.constant 4 : index
    %c4_164 = arith.constant 4 : index
    %c0_165 = arith.constant 0 : index
    %154 = vector.load %arg9[%c4_163, %c4_164, %c0_165] : memref<20x20x3xf32, #tpu.memory_space<vmem>>, vector<16x16x3xf32>
    %155 = vector.shape_cast %154 : vector<16x16x3xf32> to vector<256x3xf32>
    %c24 = arith.constant 24 : index
    %c0_166 = arith.constant 0 : index
    %c0_167 = arith.constant 0 : index
    %156 = vector.load %arg2[%c24, %c0_166, %c0_167] : memref<25x3x32xf32, #tpu.memory_space<vmem>>, vector<1x3x32xf32>
    %157 = vector.shape_cast %156 : vector<1x3x32xf32> to vector<3x32xf32>
    %cst_168 = arith.constant dense<0.000000e+00> : vector<256x32xf32>
    %158 = tpu.matmul %155, %157, %cst_168 {dimension_numbers = #tpu.dot_dimension_numbers<[1], [0], [0], [1], [0, 0, 1, 1], [], []>} : vector<256x3xf32>, vector<3x32xf32>, vector<256x32xf32> -> vector<256x32xf32>
    %159 = arith.addf %153, %158 : vector<256x32xf32>
    %c0_169 = arith.constant 0 : index
    %c0_170 = arith.constant 0 : index
    %160 = vector.load %arg3[%c0_169, %c0_170] : memref<1x32xf32, #tpu.memory_space<vmem>>, vector<1x32xf32>
    %161 = vector.broadcast %160 : vector<1x32xf32> to vector<256x32xf32>
    %162 = arith.addf %159, %161 : vector<256x32xf32>
    %cst_171 = arith.constant 0.000000e+00 : f32
    %163 = vector.broadcast %cst_171 : f32 to vector<256x32xf32>
    %164 = arith.maximumf %162, %163 : vector<256x32xf32>
    %165 = vector.shape_cast %164 : vector<256x32xf32> to vector<16x16x32xf32>
    %166 = vector.shape_cast %165 : vector<16x16x32xf32> to vector<8x2x16x32xf32>
    %cst_172 = arith.constant dense<0xFF800000> : vector<8x16x32xf32>
    %167 = vector.multi_reduction <maximumf>, %166, %cst_172 [1] : vector<8x2x16x32xf32> to vector<8x16x32xf32>
    %168 = vector.extract_strided_slice %167 {offsets = [0, 0, 0], sizes = [8, 15, 32], strides = [1, 1, 1]} : vector<8x16x32xf32> to vector<8x15x32xf32>
    %169 = vector.extract_strided_slice %167 {offsets = [0, 1, 0], sizes = [8, 15, 32], strides = [1, 1, 1]} : vector<8x16x32xf32> to vector<8x15x32xf32>
    %170 = arith.maximumf %168, %169 : vector<8x15x32xf32>
    %c2_173 = arith.constant 2 : index
    %c4_174 = arith.constant 4 : index
    %c0_175 = arith.constant 0 : index
    %171 = vector.load %arg10[%c2_173, %c4_174, %c0_175] : memref<12x24x32xf32, #tpu.memory_space<vmem>>, vector<8x15x32xf32>
    tpu.vector_store %arg10[%c2_173, %c4_174, %c0_175], %170 {strides = array<i32>} : memref<12x24x32xf32, #tpu.memory_space<vmem>>, vector<8x15x32xf32>,
    %cst_176 = arith.constant 0.000000e+00 : f32
    %172 = vector.broadcast %cst_176 : f32 to vector<128x64xf32>
    %c0_177 = arith.constant 0 : index
    %c0_178 = arith.constant 0 : index
    %c0_179 = arith.constant 0 : index
    %173 = vector.load %arg10[%c0_177, %c0_178, %c0_179] : memref<12x24x32xf32, #tpu.memory_space<vmem>>, vector<8x16x32xf32>
    %174 = vector.shape_cast %173 : vector<8x16x32xf32> to vector<128x32xf32>
    %c0_180 = arith.constant 0 : index
    %c0_181 = arith.constant 0 : index
    %c0_182 = arith.constant 0 : index
    %175 = vector.load %arg4[%c0_180, %c0_181, %c0_182] : memref<25x32x64xf32, #tpu.memory_space<vmem>>, vector<1x32x64xf32>
    %176 = vector.shape_cast %175 : vector<1x32x64xf32> to vector<32x64xf32>
    %cst_183 = arith.constant dense<0.000000e+00> : vector<128x64xf32>
    %177 = tpu.matmul %174, %176, %cst_183 {dimension_numbers = #tpu.dot_dimension_numbers<[1], [0], [0], [1], [0, 0, 1, 1], [], []>} : vector<128x32xf32>, vector<32x64xf32>, vector<128x64xf32> -> vector<128x64xf32>
    %178 = arith.addf %172, %177 : vector<128x64xf32>
    %c0_184 = arith.constant 0 : index
    %c2_185 = arith.constant 2 : index
    %c0_186 = arith.constant 0 : index
    %179 = vector.load %arg10[%c0_184, %c2_185, %c0_186] : memref<12x24x32xf32, #tpu.memory_space<vmem>>, vector<8x16x32xf32>
    %180 = vector.shape_cast %179 : vector<8x16x32xf32> to vector<128x32xf32>
    %c1_187 = arith.constant 1 : index
    %c0_188 = arith.constant 0 : index
    %c0_189 = arith.constant 0 : index
    %181 = vector.load %arg4[%c1_187, %c0_188, %c0_189] : memref<25x32x64xf32, #tpu.memory_space<vmem>>, vector<1x32x64xf32>
    %182 = vector.shape_cast %181 : vector<1x32x64xf32> to vector<32x64xf32>
    %cst_190 = arith.constant dense<0.000000e+00> : vector<128x64xf32>
    %183 = tpu.matmul %180, %182, %cst_190 {dimension_numbers = #tpu.dot_dimension_numbers<[1], [0], [0], [1], [0, 0, 1, 1], [], []>} : vector<128x32xf32>, vector<32x64xf32>, vector<128x64xf32> -> vector<128x64xf32>
    %184 = arith.addf %178, %183 : vector<128x64xf32>
    %c0_191 = arith.constant 0 : index
    %c4_192 = arith.constant 4 : index
    %c0_193 = arith.constant 0 : index
    %185 = vector.load %arg10[%c0_191, %c4_192, %c0_193] : memref<12x24x32xf32, #tpu.memory_space<vmem>>, vector<8x16x32xf32>
    %186 = vector.shape_cast %185 : vector<8x16x32xf32> to vector<128x32xf32>
    %c2_194 = arith.constant 2 : index
    %c0_195 = arith.constant 0 : index
    %c0_196 = arith.constant 0 : index
    %187 = vector.load %arg4[%c2_194, %c0_195, %c0_196] : memref<25x32x64xf32, #tpu.memory_space<vmem>>, vector<1x32x64xf32>
    %188 = vector.shape_cast %187 : vector<1x32x64xf32> to vector<32x64xf32>
    %cst_197 = arith.constant dense<0.000000e+00> : vector<128x64xf32>
    %189 = tpu.matmul %186, %188, %cst_197 {dimension_numbers = #tpu.dot_dimension_numbers<[1], [0], [0], [1], [0, 0, 1, 1], [], []>} : vector<128x32xf32>, vector<32x64xf32>, vector<128x64xf32> -> vector<128x64xf32>
    %190 = arith.addf %184, %189 : vector<128x64xf32>
    %c0_198 = arith.constant 0 : index
    %c6_199 = arith.constant 6 : index
    %c0_200 = arith.constant 0 : index
    %191 = vector.load %arg10[%c0_198, %c6_199, %c0_200] : memref<12x24x32xf32, #tpu.memory_space<vmem>>, vector<8x16x32xf32>
    %192 = vector.shape_cast %191 : vector<8x16x32xf32> to vector<128x32xf32>
    %c3_201 = arith.constant 3 : index
    %c0_202 = arith.constant 0 : index
    %c0_203 = arith.constant 0 : index
    %193 = vector.load %arg4[%c3_201, %c0_202, %c0_203] : memref<25x32x64xf32, #tpu.memory_space<vmem>>, vector<1x32x64xf32>
    %194 = vector.shape_cast %193 : vector<1x32x64xf32> to vector<32x64xf32>
    %cst_204 = arith.constant dense<0.000000e+00> : vector<128x64xf32>
    %195 = tpu.matmul %192, %194, %cst_204 {dimension_numbers = #tpu.dot_dimension_numbers<[1], [0], [0], [1], [0, 0, 1, 1], [], []>} : vector<128x32xf32>, vector<32x64xf32>, vector<128x64xf32> -> vector<128x64xf32>
    %196 = arith.addf %190, %195 : vector<128x64xf32>
    %c0_205 = arith.constant 0 : index
    %c8_206 = arith.constant 8 : index
    %c0_207 = arith.constant 0 : index
    %197 = vector.load %arg10[%c0_205, %c8_206, %c0_207] : memref<12x24x32xf32, #tpu.memory_space<vmem>>, vector<8x16x32xf32>
    %198 = vector.shape_cast %197 : vector<8x16x32xf32> to vector<128x32xf32>
    %c4_208 = arith.constant 4 : index
    %c0_209 = arith.constant 0 : index
    %c0_210 = arith.constant 0 : index
    %199 = vector.load %arg4[%c4_208, %c0_209, %c0_210] : memref<25x32x64xf32, #tpu.memory_space<vmem>>, vector<1x32x64xf32>
    %200 = vector.shape_cast %199 : vector<1x32x64xf32> to vector<32x64xf32>
    %cst_211 = arith.constant dense<0.000000e+00> : vector<128x64xf32>
    %201 = tpu.matmul %198, %200, %cst_211 {dimension_numbers = #tpu.dot_dimension_numbers<[1], [0], [0], [1], [0, 0, 1, 1], [], []>} : vector<128x32xf32>, vector<32x64xf32>, vector<128x64xf32> -> vector<128x64xf32>
    %202 = arith.addf %196, %201 : vector<128x64xf32>
    %c1_212 = arith.constant 1 : index
    %c0_213 = arith.constant 0 : index
    %c0_214 = arith.constant 0 : index
    %203 = vector.load %arg10[%c1_212, %c0_213, %c0_214] : memref<12x24x32xf32, #tpu.memory_space<vmem>>, vector<8x16x32xf32>
    %204 = vector.shape_cast %203 : vector<8x16x32xf32> to vector<128x32xf32>
    %c5_215 = arith.constant 5 : index
    %c0_216 = arith.constant 0 : index
    %c0_217 = arith.constant 0 : index
    %205 = vector.load %arg4[%c5_215, %c0_216, %c0_217] : memref<25x32x64xf32, #tpu.memory_space<vmem>>, vector<1x32x64xf32>
    %206 = vector.shape_cast %205 : vector<1x32x64xf32> to vector<32x64xf32>
    %cst_218 = arith.constant dense<0.000000e+00> : vector<128x64xf32>
    %207 = tpu.matmul %204, %206, %cst_218 {dimension_numbers = #tpu.dot_dimension_numbers<[1], [0], [0], [1], [0, 0, 1, 1], [], []>} : vector<128x32xf32>, vector<32x64xf32>, vector<128x64xf32> -> vector<128x64xf32>
    %208 = arith.addf %202, %207 : vector<128x64xf32>
    %c1_219 = arith.constant 1 : index
    %c2_220 = arith.constant 2 : index
    %c0_221 = arith.constant 0 : index
    %209 = vector.load %arg10[%c1_219, %c2_220, %c0_221] : memref<12x24x32xf32, #tpu.memory_space<vmem>>, vector<8x16x32xf32>
    %210 = vector.shape_cast %209 : vector<8x16x32xf32> to vector<128x32xf32>
    %c6_222 = arith.constant 6 : index
    %c0_223 = arith.constant 0 : index
    %c0_224 = arith.constant 0 : index
    %211 = vector.load %arg4[%c6_222, %c0_223, %c0_224] : memref<25x32x64xf32, #tpu.memory_space<vmem>>, vector<1x32x64xf32>
    %212 = vector.shape_cast %211 : vector<1x32x64xf32> to vector<32x64xf32>
    %cst_225 = arith.constant dense<0.000000e+00> : vector<128x64xf32>
    %213 = tpu.matmul %210, %212, %cst_225 {dimension_numbers = #tpu.dot_dimension_numbers<[1], [0], [0], [1], [0, 0, 1, 1], [], []>} : vector<128x32xf32>, vector<32x64xf32>, vector<128x64xf32> -> vector<128x64xf32>
    %214 = arith.addf %208, %213 : vector<128x64xf32>
    %c1_226 = arith.constant 1 : index
    %c4_227 = arith.constant 4 : index
    %c0_228 = arith.constant 0 : index
    %215 = vector.load %arg10[%c1_226, %c4_227, %c0_228] : memref<12x24x32xf32, #tpu.memory_space<vmem>>, vector<8x16x32xf32>
    %216 = vector.shape_cast %215 : vector<8x16x32xf32> to vector<128x32xf32>
    %c7_229 = arith.constant 7 : index
    %c0_230 = arith.constant 0 : index
    %c0_231 = arith.constant 0 : index
    %217 = vector.load %arg4[%c7_229, %c0_230, %c0_231] : memref<25x32x64xf32, #tpu.memory_space<vmem>>, vector<1x32x64xf32>
    %218 = vector.shape_cast %217 : vector<1x32x64xf32> to vector<32x64xf32>
    %cst_232 = arith.constant dense<0.000000e+00> : vector<128x64xf32>
    %219 = tpu.matmul %216, %218, %cst_232 {dimension_numbers = #tpu.dot_dimension_numbers<[1], [0], [0], [1], [0, 0, 1, 1], [], []>} : vector<128x32xf32>, vector<32x64xf32>, vector<128x64xf32> -> vector<128x64xf32>
    %220 = arith.addf %214, %219 : vector<128x64xf32>
    %c1_233 = arith.constant 1 : index
    %c6_234 = arith.constant 6 : index
    %c0_235 = arith.constant 0 : index
    %221 = vector.load %arg10[%c1_233, %c6_234, %c0_235] : memref<12x24x32xf32, #tpu.memory_space<vmem>>, vector<8x16x32xf32>
    %222 = vector.shape_cast %221 : vector<8x16x32xf32> to vector<128x32xf32>
    %c8_236 = arith.constant 8 : index
    %c0_237 = arith.constant 0 : index
    %c0_238 = arith.constant 0 : index
    %223 = vector.load %arg4[%c8_236, %c0_237, %c0_238] : memref<25x32x64xf32, #tpu.memory_space<vmem>>, vector<1x32x64xf32>
    %224 = vector.shape_cast %223 : vector<1x32x64xf32> to vector<32x64xf32>
    %cst_239 = arith.constant dense<0.000000e+00> : vector<128x64xf32>
    %225 = tpu.matmul %222, %224, %cst_239 {dimension_numbers = #tpu.dot_dimension_numbers<[1], [0], [0], [1], [0, 0, 1, 1], [], []>} : vector<128x32xf32>, vector<32x64xf32>, vector<128x64xf32> -> vector<128x64xf32>
    %226 = arith.addf %220, %225 : vector<128x64xf32>
    %c1_240 = arith.constant 1 : index
    %c8_241 = arith.constant 8 : index
    %c0_242 = arith.constant 0 : index
    %227 = vector.load %arg10[%c1_240, %c8_241, %c0_242] : memref<12x24x32xf32, #tpu.memory_space<vmem>>, vector<8x16x32xf32>
    %228 = vector.shape_cast %227 : vector<8x16x32xf32> to vector<128x32xf32>
    %c9_243 = arith.constant 9 : index
    %c0_244 = arith.constant 0 : index
    %c0_245 = arith.constant 0 : index
    %229 = vector.load %arg4[%c9_243, %c0_244, %c0_245] : memref<25x32x64xf32, #tpu.memory_space<vmem>>, vector<1x32x64xf32>
    %230 = vector.shape_cast %229 : vector<1x32x64xf32> to vector<32x64xf32>
    %cst_246 = arith.constant dense<0.000000e+00> : vector<128x64xf32>
    %231 = tpu.matmul %228, %230, %cst_246 {dimension_numbers = #tpu.dot_dimension_numbers<[1], [0], [0], [1], [0, 0, 1, 1], [], []>} : vector<128x32xf32>, vector<32x64xf32>, vector<128x64xf32> -> vector<128x64xf32>
    %232 = arith.addf %226, %231 : vector<128x64xf32>
    %c2_247 = arith.constant 2 : index
    %c0_248 = arith.constant 0 : index
    %c0_249 = arith.constant 0 : index
    %233 = vector.load %arg10[%c2_247, %c0_248, %c0_249] : memref<12x24x32xf32, #tpu.memory_space<vmem>>, vector<8x16x32xf32>
    %234 = vector.shape_cast %233 : vector<8x16x32xf32> to vector<128x32xf32>
    %c10_250 = arith.constant 10 : index
    %c0_251 = arith.constant 0 : index
    %c0_252 = arith.constant 0 : index
    %235 = vector.load %arg4[%c10_250, %c0_251, %c0_252] : memref<25x32x64xf32, #tpu.memory_space<vmem>>, vector<1x32x64xf32>
    %236 = vector.shape_cast %235 : vector<1x32x64xf32> to vector<32x64xf32>
    %cst_253 = arith.constant dense<0.000000e+00> : vector<128x64xf32>
    %237 = tpu.matmul %234, %236, %cst_253 {dimension_numbers = #tpu.dot_dimension_numbers<[1], [0], [0], [1], [0, 0, 1, 1], [], []>} : vector<128x32xf32>, vector<32x64xf32>, vector<128x64xf32> -> vector<128x64xf32>
    %238 = arith.addf %232, %237 : vector<128x64xf32>
    %c2_254 = arith.constant 2 : index
    %c2_255 = arith.constant 2 : index
    %c0_256 = arith.constant 0 : index
    %239 = vector.load %arg10[%c2_254, %c2_255, %c0_256] : memref<12x24x32xf32, #tpu.memory_space<vmem>>, vector<8x16x32xf32>
    %240 = vector.shape_cast %239 : vector<8x16x32xf32> to vector<128x32xf32>
    %c11_257 = arith.constant 11 : index
    %c0_258 = arith.constant 0 : index
    %c0_259 = arith.constant 0 : index
    %241 = vector.load %arg4[%c11_257, %c0_258, %c0_259] : memref<25x32x64xf32, #tpu.memory_space<vmem>>, vector<1x32x64xf32>
    %242 = vector.shape_cast %241 : vector<1x32x64xf32> to vector<32x64xf32>
    %cst_260 = arith.constant dense<0.000000e+00> : vector<128x64xf32>
    %243 = tpu.matmul %240, %242, %cst_260 {dimension_numbers = #tpu.dot_dimension_numbers<[1], [0], [0], [1], [0, 0, 1, 1], [], []>} : vector<128x32xf32>, vector<32x64xf32>, vector<128x64xf32> -> vector<128x64xf32>
    %244 = arith.addf %238, %243 : vector<128x64xf32>
    %c2_261 = arith.constant 2 : index
    %c4_262 = arith.constant 4 : index
    %c0_263 = arith.constant 0 : index
    %245 = vector.load %arg10[%c2_261, %c4_262, %c0_263] : memref<12x24x32xf32, #tpu.memory_space<vmem>>, vector<8x16x32xf32>
    %246 = vector.shape_cast %245 : vector<8x16x32xf32> to vector<128x32xf32>
    %c12_264 = arith.constant 12 : index
    %c0_265 = arith.constant 0 : index
    %c0_266 = arith.constant 0 : index
    %247 = vector.load %arg4[%c12_264, %c0_265, %c0_266] : memref<25x32x64xf32, #tpu.memory_space<vmem>>, vector<1x32x64xf32>
    %248 = vector.shape_cast %247 : vector<1x32x64xf32> to vector<32x64xf32>
    %cst_267 = arith.constant dense<0.000000e+00> : vector<128x64xf32>
    %249 = tpu.matmul %246, %248, %cst_267 {dimension_numbers = #tpu.dot_dimension_numbers<[1], [0], [0], [1], [0, 0, 1, 1], [], []>} : vector<128x32xf32>, vector<32x64xf32>, vector<128x64xf32> -> vector<128x64xf32>
    %250 = arith.addf %244, %249 : vector<128x64xf32>
    %c2_268 = arith.constant 2 : index
    %c6_269 = arith.constant 6 : index
    %c0_270 = arith.constant 0 : index
    %251 = vector.load %arg10[%c2_268, %c6_269, %c0_270] : memref<12x24x32xf32, #tpu.memory_space<vmem>>, vector<8x16x32xf32>
    %252 = vector.shape_cast %251 : vector<8x16x32xf32> to vector<128x32xf32>
    %c13_271 = arith.constant 13 : index
    %c0_272 = arith.constant 0 : index
    %c0_273 = arith.constant 0 : index
    %253 = vector.load %arg4[%c13_271, %c0_272, %c0_273] : memref<25x32x64xf32, #tpu.memory_space<vmem>>, vector<1x32x64xf32>
    %254 = vector.shape_cast %253 : vector<1x32x64xf32> to vector<32x64xf32>
    %cst_274 = arith.constant dense<0.000000e+00> : vector<128x64xf32>
    %255 = tpu.matmul %252, %254, %cst_274 {dimension_numbers = #tpu.dot_dimension_numbers<[1], [0], [0], [1], [0, 0, 1, 1], [], []>} : vector<128x32xf32>, vector<32x64xf32>, vector<128x64xf32> -> vector<128x64xf32>
    %256 = arith.addf %250, %255 : vector<128x64xf32>
    %c2_275 = arith.constant 2 : index
    %c8_276 = arith.constant 8 : index
    %c0_277 = arith.constant 0 : index
    %257 = vector.load %arg10[%c2_275, %c8_276, %c0_277] : memref<12x24x32xf32, #tpu.memory_space<vmem>>, vector<8x16x32xf32>
    %258 = vector.shape_cast %257 : vector<8x16x32xf32> to vector<128x32xf32>
    %c14_278 = arith.constant 14 : index
    %c0_279 = arith.constant 0 : index
    %c0_280 = arith.constant 0 : index
    %259 = vector.load %arg4[%c14_278, %c0_279, %c0_280] : memref<25x32x64xf32, #tpu.memory_space<vmem>>, vector<1x32x64xf32>
    %260 = vector.shape_cast %259 : vector<1x32x64xf32> to vector<32x64xf32>
    %cst_281 = arith.constant dense<0.000000e+00> : vector<128x64xf32>
    %261 = tpu.matmul %258, %260, %cst_281 {dimension_numbers = #tpu.dot_dimension_numbers<[1], [0], [0], [1], [0, 0, 1, 1], [], []>} : vector<128x32xf32>, vector<32x64xf32>, vector<128x64xf32> -> vector<128x64xf32>
    %262 = arith.addf %256, %261 : vector<128x64xf32>
    %c3_282 = arith.constant 3 : index
    %c0_283 = arith.constant 0 : index
    %c0_284 = arith.constant 0 : index
    %263 = vector.load %arg10[%c3_282, %c0_283, %c0_284] : memref<12x24x32xf32, #tpu.memory_space<vmem>>, vector<8x16x32xf32>
    %264 = vector.shape_cast %263 : vector<8x16x32xf32> to vector<128x32xf32>
    %c15_285 = arith.constant 15 : index
    %c0_286 = arith.constant 0 : index
    %c0_287 = arith.constant 0 : index
    %265 = vector.load %arg4[%c15_285, %c0_286, %c0_287] : memref<25x32x64xf32, #tpu.memory_space<vmem>>, vector<1x32x64xf32>
    %266 = vector.shape_cast %265 : vector<1x32x64xf32> to vector<32x64xf32>
    %cst_288 = arith.constant dense<0.000000e+00> : vector<128x64xf32>
    %267 = tpu.matmul %264, %266, %cst_288 {dimension_numbers = #tpu.dot_dimension_numbers<[1], [0], [0], [1], [0, 0, 1, 1], [], []>} : vector<128x32xf32>, vector<32x64xf32>, vector<128x64xf32> -> vector<128x64xf32>
    %268 = arith.addf %262, %267 : vector<128x64xf32>
    %c3_289 = arith.constant 3 : index
    %c2_290 = arith.constant 2 : index
    %c0_291 = arith.constant 0 : index
    %269 = vector.load %arg10[%c3_289, %c2_290, %c0_291] : memref<12x24x32xf32, #tpu.memory_space<vmem>>, vector<8x16x32xf32>
    %270 = vector.shape_cast %269 : vector<8x16x32xf32> to vector<128x32xf32>
    %c16_292 = arith.constant 16 : index
    %c0_293 = arith.constant 0 : index
    %c0_294 = arith.constant 0 : index
    %271 = vector.load %arg4[%c16_292, %c0_293, %c0_294] : memref<25x32x64xf32, #tpu.memory_space<vmem>>, vector<1x32x64xf32>
    %272 = vector.shape_cast %271 : vector<1x32x64xf32> to vector<32x64xf32>
    %cst_295 = arith.constant dense<0.000000e+00> : vector<128x64xf32>
    %273 = tpu.matmul %270, %272, %cst_295 {dimension_numbers = #tpu.dot_dimension_numbers<[1], [0], [0], [1], [0, 0, 1, 1], [], []>} : vector<128x32xf32>, vector<32x64xf32>, vector<128x64xf32> -> vector<128x64xf32>
    %274 = arith.addf %268, %273 : vector<128x64xf32>
    %c3_296 = arith.constant 3 : index
    %c4_297 = arith.constant 4 : index
    %c0_298 = arith.constant 0 : index
    %275 = vector.load %arg10[%c3_296, %c4_297, %c0_298] : memref<12x24x32xf32, #tpu.memory_space<vmem>>, vector<8x16x32xf32>
    %276 = vector.shape_cast %275 : vector<8x16x32xf32> to vector<128x32xf32>
    %c17_299 = arith.constant 17 : index
    %c0_300 = arith.constant 0 : index
    %c0_301 = arith.constant 0 : index
    %277 = vector.load %arg4[%c17_299, %c0_300, %c0_301] : memref<25x32x64xf32, #tpu.memory_space<vmem>>, vector<1x32x64xf32>
    %278 = vector.shape_cast %277 : vector<1x32x64xf32> to vector<32x64xf32>
    %cst_302 = arith.constant dense<0.000000e+00> : vector<128x64xf32>
    %279 = tpu.matmul %276, %278, %cst_302 {dimension_numbers = #tpu.dot_dimension_numbers<[1], [0], [0], [1], [0, 0, 1, 1], [], []>} : vector<128x32xf32>, vector<32x64xf32>, vector<128x64xf32> -> vector<128x64xf32>
    %280 = arith.addf %274, %279 : vector<128x64xf32>
    %c3_303 = arith.constant 3 : index
    %c6_304 = arith.constant 6 : index
    %c0_305 = arith.constant 0 : index
    %281 = vector.load %arg10[%c3_303, %c6_304, %c0_305] : memref<12x24x32xf32, #tpu.memory_space<vmem>>, vector<8x16x32xf32>
    %282 = vector.shape_cast %281 : vector<8x16x32xf32> to vector<128x32xf32>
    %c18_306 = arith.constant 18 : index
    %c0_307 = arith.constant 0 : index
    %c0_308 = arith.constant 0 : index
    %283 = vector.load %arg4[%c18_306, %c0_307, %c0_308] : memref<25x32x64xf32, #tpu.memory_space<vmem>>, vector<1x32x64xf32>
    %284 = vector.shape_cast %283 : vector<1x32x64xf32> to vector<32x64xf32>
    %cst_309 = arith.constant dense<0.000000e+00> : vector<128x64xf32>
    %285 = tpu.matmul %282, %284, %cst_309 {dimension_numbers = #tpu.dot_dimension_numbers<[1], [0], [0], [1], [0, 0, 1, 1], [], []>} : vector<128x32xf32>, vector<32x64xf32>, vector<128x64xf32> -> vector<128x64xf32>
    %286 = arith.addf %280, %285 : vector<128x64xf32>
    %c3_310 = arith.constant 3 : index
    %c8_311 = arith.constant 8 : index
    %c0_312 = arith.constant 0 : index
    %287 = vector.load %arg10[%c3_310, %c8_311, %c0_312] : memref<12x24x32xf32, #tpu.memory_space<vmem>>, vector<8x16x32xf32>
    %288 = vector.shape_cast %287 : vector<8x16x32xf32> to vector<128x32xf32>
    %c19_313 = arith.constant 19 : index
    %c0_314 = arith.constant 0 : index
    %c0_315 = arith.constant 0 : index
    %289 = vector.load %arg4[%c19_313, %c0_314, %c0_315] : memref<25x32x64xf32, #tpu.memory_space<vmem>>, vector<1x32x64xf32>
    %290 = vector.shape_cast %289 : vector<1x32x64xf32> to vector<32x64xf32>
    %cst_316 = arith.constant dense<0.000000e+00> : vector<128x64xf32>
    %291 = tpu.matmul %288, %290, %cst_316 {dimension_numbers = #tpu.dot_dimension_numbers<[1], [0], [0], [1], [0, 0, 1, 1], [], []>} : vector<128x32xf32>, vector<32x64xf32>, vector<128x64xf32> -> vector<128x64xf32>
    %292 = arith.addf %286, %291 : vector<128x64xf32>
    %c4_317 = arith.constant 4 : index
    %c0_318 = arith.constant 0 : index
    %c0_319 = arith.constant 0 : index
    %293 = vector.load %arg10[%c4_317, %c0_318, %c0_319] : memref<12x24x32xf32, #tpu.memory_space<vmem>>, vector<8x16x32xf32>
    %294 = vector.shape_cast %293 : vector<8x16x32xf32> to vector<128x32xf32>
    %c20_320 = arith.constant 20 : index
    %c0_321 = arith.constant 0 : index
    %c0_322 = arith.constant 0 : index
    %295 = vector.load %arg4[%c20_320, %c0_321, %c0_322] : memref<25x32x64xf32, #tpu.memory_space<vmem>>, vector<1x32x64xf32>
    %296 = vector.shape_cast %295 : vector<1x32x64xf32> to vector<32x64xf32>
    %cst_323 = arith.constant dense<0.000000e+00> : vector<128x64xf32>
    %297 = tpu.matmul %294, %296, %cst_323 {dimension_numbers = #tpu.dot_dimension_numbers<[1], [0], [0], [1], [0, 0, 1, 1], [], []>} : vector<128x32xf32>, vector<32x64xf32>, vector<128x64xf32> -> vector<128x64xf32>
    %298 = arith.addf %292, %297 : vector<128x64xf32>
    %c4_324 = arith.constant 4 : index
    %c2_325 = arith.constant 2 : index
    %c0_326 = arith.constant 0 : index
    %299 = vector.load %arg10[%c4_324, %c2_325, %c0_326] : memref<12x24x32xf32, #tpu.memory_space<vmem>>, vector<8x16x32xf32>
    %300 = vector.shape_cast %299 : vector<8x16x32xf32> to vector<128x32xf32>
    %c21_327 = arith.constant 21 : index
    %c0_328 = arith.constant 0 : index
    %c0_329 = arith.constant 0 : index
    %301 = vector.load %arg4[%c21_327, %c0_328, %c0_329] : memref<25x32x64xf32, #tpu.memory_space<vmem>>, vector<1x32x64xf32>
    %302 = vector.shape_cast %301 : vector<1x32x64xf32> to vector<32x64xf32>
    %cst_330 = arith.constant dense<0.000000e+00> : vector<128x64xf32>
    %303 = tpu.matmul %300, %302, %cst_330 {dimension_numbers = #tpu.dot_dimension_numbers<[1], [0], [0], [1], [0, 0, 1, 1], [], []>} : vector<128x32xf32>, vector<32x64xf32>, vector<128x64xf32> -> vector<128x64xf32>
    %304 = arith.addf %298, %303 : vector<128x64xf32>
    %c4_331 = arith.constant 4 : index
    %c4_332 = arith.constant 4 : index
    %c0_333 = arith.constant 0 : index
    %305 = vector.load %arg10[%c4_331, %c4_332, %c0_333] : memref<12x24x32xf32, #tpu.memory_space<vmem>>, vector<8x16x32xf32>
    %306 = vector.shape_cast %305 : vector<8x16x32xf32> to vector<128x32xf32>
    %c22_334 = arith.constant 22 : index
    %c0_335 = arith.constant 0 : index
    %c0_336 = arith.constant 0 : index
    %307 = vector.load %arg4[%c22_334, %c0_335, %c0_336] : memref<25x32x64xf32, #tpu.memory_space<vmem>>, vector<1x32x64xf32>
    %308 = vector.shape_cast %307 : vector<1x32x64xf32> to vector<32x64xf32>
    %cst_337 = arith.constant dense<0.000000e+00> : vector<128x64xf32>
    %309 = tpu.matmul %306, %308, %cst_337 {dimension_numbers = #tpu.dot_dimension_numbers<[1], [0], [0], [1], [0, 0, 1, 1], [], []>} : vector<128x32xf32>, vector<32x64xf32>, vector<128x64xf32> -> vector<128x64xf32>
    %310 = arith.addf %304, %309 : vector<128x64xf32>
    %c4_338 = arith.constant 4 : index
    %c6_339 = arith.constant 6 : index
    %c0_340 = arith.constant 0 : index
    %311 = vector.load %arg10[%c4_338, %c6_339, %c0_340] : memref<12x24x32xf32, #tpu.memory_space<vmem>>, vector<8x16x32xf32>
    %312 = vector.shape_cast %311 : vector<8x16x32xf32> to vector<128x32xf32>
    %c23_341 = arith.constant 23 : index
    %c0_342 = arith.constant 0 : index
    %c0_343 = arith.constant 0 : index
    %313 = vector.load %arg4[%c23_341, %c0_342, %c0_343] : memref<25x32x64xf32, #tpu.memory_space<vmem>>, vector<1x32x64xf32>
    %314 = vector.shape_cast %313 : vector<1x32x64xf32> to vector<32x64xf32>
    %cst_344 = arith.constant dense<0.000000e+00> : vector<128x64xf32>
    %315 = tpu.matmul %312, %314, %cst_344 {dimension_numbers = #tpu.dot_dimension_numbers<[1], [0], [0], [1], [0, 0, 1, 1], [], []>} : vector<128x32xf32>, vector<32x64xf32>, vector<128x64xf32> -> vector<128x64xf32>
    %316 = arith.addf %310, %315 : vector<128x64xf32>
    %c4_345 = arith.constant 4 : index
    %c8_346 = arith.constant 8 : index
    %c0_347 = arith.constant 0 : index
    %317 = vector.load %arg10[%c4_345, %c8_346, %c0_347] : memref<12x24x32xf32, #tpu.memory_space<vmem>>, vector<8x16x32xf32>
    %318 = vector.shape_cast %317 : vector<8x16x32xf32> to vector<128x32xf32>
    %c24_348 = arith.constant 24 : index
    %c0_349 = arith.constant 0 : index
    %c0_350 = arith.constant 0 : index
    %319 = vector.load %arg4[%c24_348, %c0_349, %c0_350] : memref<25x32x64xf32, #tpu.memory_space<vmem>>, vector<1x32x64xf32>
    %320 = vector.shape_cast %319 : vector<1x32x64xf32> to vector<32x64xf32>
    %cst_351 = arith.constant dense<0.000000e+00> : vector<128x64xf32>
    %321 = tpu.matmul %318, %320, %cst_351 {dimension_numbers = #tpu.dot_dimension_numbers<[1], [0], [0], [1], [0, 0, 1, 1], [], []>} : vector<128x32xf32>, vector<32x64xf32>, vector<128x64xf32> -> vector<128x64xf32>
    %322 = arith.addf %316, %321 : vector<128x64xf32>
    %c0_352 = arith.constant 0 : index
    %c0_353 = arith.constant 0 : index
    %323 = vector.load %arg5[%c0_352, %c0_353] : memref<1x64xf32, #tpu.memory_space<vmem>>, vector<1x64xf32>
    %324 = vector.broadcast %323 : vector<1x64xf32> to vector<128x64xf32>
    %325 = arith.addf %322, %324 : vector<128x64xf32>
    %cst_354 = arith.constant 0.000000e+00 : f32
    %326 = vector.broadcast %cst_354 : f32 to vector<128x64xf32>
    %327 = arith.maximumf %325, %326 : vector<128x64xf32>
    %328 = vector.shape_cast %327 : vector<128x64xf32> to vector<8x16x64xf32>
    %329 = vector.shape_cast %328 : vector<8x16x64xf32> to vector<4x2x16x64xf32>
    %cst_355 = arith.constant dense<0xFF800000> : vector<4x16x64xf32>
    %330 = vector.multi_reduction <maximumf>, %329, %cst_355 [1] : vector<4x2x16x64xf32> to vector<4x16x64xf32>
    %331 = vector.extract_strided_slice %330 {offsets = [0, 0, 0], sizes = [4, 14, 64], strides = [1, 1, 1]} : vector<4x16x64xf32> to vector<4x14x64xf32>
    %332 = vector.extract_strided_slice %330 {offsets = [0, 2, 0], sizes = [4, 14, 64], strides = [1, 1, 1]} : vector<4x16x64xf32> to vector<4x14x64xf32>
    %333 = arith.maximumf %331, %332 : vector<4x14x64xf32>
    %c1_356 = arith.constant 1 : index
    %c4_357 = arith.constant 4 : index
    %c0_358 = arith.constant 0 : index
    %334 = vector.load %arg11[%c1_356, %c4_357, %c0_358] : memref<6x24x64xf32, #tpu.memory_space<vmem>>, vector<4x14x64xf32>
    tpu.vector_store %arg11[%c1_356, %c4_357, %c0_358], %333 {strides = array<i32>} : memref<6x24x64xf32, #tpu.memory_space<vmem>>, vector<4x14x64xf32>,
    %c1_359 = arith.constant 1 : index
    %c4_360 = arith.constant 4 : index
    %c0_361 = arith.constant 0 : index
    %335 = vector.load %arg11[%c1_359, %c4_360, %c0_361] : memref<6x24x64xf32, #tpu.memory_space<vmem>>, vector<4x16x64xf32>
    %336 = vector.shape_cast %335 : vector<4x16x64xf32> to vector<64x64xf32>
    %cst_362 = arith.constant 0.000000e+00 : f32
    %337 = vector.broadcast %cst_362 : f32 to vector<64x64xf32>
    %c0_363 = arith.constant 0 : index
    %c0_364 = arith.constant 0 : index
    %c0_365 = arith.constant 0 : index
    %338 = vector.load %arg11[%c0_363, %c0_364, %c0_365] : memref<6x24x64xf32, #tpu.memory_space<vmem>>, vector<4x16x64xf32>
    %339 = vector.shape_cast %338 : vector<4x16x64xf32> to vector<64x64xf32>
    %c0_366 = arith.constant 0 : index
    %c0_367 = arith.constant 0 : index
    %c0_368 = arith.constant 0 : index
    %340 = vector.load %arg6[%c0_366, %c0_367, %c0_368] : memref<36x64x64xf32, #tpu.memory_space<vmem>>, vector<1x64x64xf32>
    %341 = vector.shape_cast %340 : vector<1x64x64xf32> to vector<64x64xf32>
    %cst_369 = arith.constant dense<0.000000e+00> : vector<64x64xf32>
    %342 = tpu.matmul %339, %341, %cst_369 {dimension_numbers = #tpu.dot_dimension_numbers<[1], [0], [0], [1], [0, 0, 1, 1], [], []>} : vector<64x64xf32>, vector<64x64xf32>, vector<64x64xf32> -> vector<64x64xf32>
    %343 = arith.addf %337, %342 : vector<64x64xf32>
    %c0_370 = arith.constant 0 : index
    %c4_371 = arith.constant 4 : index
    %c0_372 = arith.constant 0 : index
    %344 = vector.load %arg11[%c0_370, %c4_371, %c0_372] : memref<6x24x64xf32, #tpu.memory_space<vmem>>, vector<4x16x64xf32>
    %345 = vector.shape_cast %344 : vector<4x16x64xf32> to vector<64x64xf32>
    %c1_373 = arith.constant 1 : index
    %c0_374 = arith.constant 0 : index
    %c0_375 = arith.constant 0 : index
    %346 = vector.load %arg6[%c1_373, %c0_374, %c0_375] : memref<36x64x64xf32, #tpu.memory_space<vmem>>, vector<1x64x64xf32>
    %347 = vector.shape_cast %346 : vector<1x64x64xf32> to vector<64x64xf32>
    %cst_376 = arith.constant dense<0.000000e+00> : vector<64x64xf32>
    %348 = tpu.matmul %345, %347, %cst_376 {dimension_numbers = #tpu.dot_dimension_numbers<[1], [0], [0], [1], [0, 0, 1, 1], [], []>} : vector<64x64xf32>, vector<64x64xf32>, vector<64x64xf32> -> vector<64x64xf32>
    %349 = arith.addf %343, %348 : vector<64x64xf32>
    %c0_377 = arith.constant 0 : index
    %c8_378 = arith.constant 8 : index
    %c0_379 = arith.constant 0 : index
    %350 = vector.load %arg11[%c0_377, %c8_378, %c0_379] : memref<6x24x64xf32, #tpu.memory_space<vmem>>, vector<4x16x64xf32>
    %351 = vector.shape_cast %350 : vector<4x16x64xf32> to vector<64x64xf32>
    %c2_380 = arith.constant 2 : index
    %c0_381 = arith.constant 0 : index
    %c0_382 = arith.constant 0 : index
    %352 = vector.load %arg6[%c2_380, %c0_381, %c0_382] : memref<36x64x64xf32, #tpu.memory_space<vmem>>, vector<1x64x64xf32>
    %353 = vector.shape_cast %352 : vector<1x64x64xf32> to vector<64x64xf32>
    %cst_383 = arith.constant dense<0.000000e+00> : vector<64x64xf32>
    %354 = tpu.matmul %351, %353, %cst_383 {dimension_numbers = #tpu.dot_dimension_numbers<[1], [0], [0], [1], [0, 0, 1, 1], [], []>} : vector<64x64xf32>, vector<64x64xf32>, vector<64x64xf32> -> vector<64x64xf32>
    %355 = arith.addf %349, %354 : vector<64x64xf32>
    %c1_384 = arith.constant 1 : index
    %c0_385 = arith.constant 0 : index
    %c0_386 = arith.constant 0 : index
    %356 = vector.load %arg11[%c1_384, %c0_385, %c0_386] : memref<6x24x64xf32, #tpu.memory_space<vmem>>, vector<4x16x64xf32>
    %357 = vector.shape_cast %356 : vector<4x16x64xf32> to vector<64x64xf32>
    %c3_387 = arith.constant 3 : index
    %c0_388 = arith.constant 0 : index
    %c0_389 = arith.constant 0 : index
    %358 = vector.load %arg6[%c3_387, %c0_388, %c0_389] : memref<36x64x64xf32, #tpu.memory_space<vmem>>, vector<1x64x64xf32>
    %359 = vector.shape_cast %358 : vector<1x64x64xf32> to vector<64x64xf32>
    %cst_390 = arith.constant dense<0.000000e+00> : vector<64x64xf32>
    %360 = tpu.matmul %357, %359, %cst_390 {dimension_numbers = #tpu.dot_dimension_numbers<[1], [0], [0], [1], [0, 0, 1, 1], [], []>} : vector<64x64xf32>, vector<64x64xf32>, vector<64x64xf32> -> vector<64x64xf32>
    %361 = arith.addf %355, %360 : vector<64x64xf32>
    %c1_391 = arith.constant 1 : index
    %c4_392 = arith.constant 4 : index
    %c0_393 = arith.constant 0 : index
    %362 = vector.load %arg11[%c1_391, %c4_392, %c0_393] : memref<6x24x64xf32, #tpu.memory_space<vmem>>, vector<4x16x64xf32>
    %363 = vector.shape_cast %362 : vector<4x16x64xf32> to vector<64x64xf32>
    %c4_394 = arith.constant 4 : index
    %c0_395 = arith.constant 0 : index
    %c0_396 = arith.constant 0 : index
    %364 = vector.load %arg6[%c4_394, %c0_395, %c0_396] : memref<36x64x64xf32, #tpu.memory_space<vmem>>, vector<1x64x64xf32>
    %365 = vector.shape_cast %364 : vector<1x64x64xf32> to vector<64x64xf32>
    %cst_397 = arith.constant dense<0.000000e+00> : vector<64x64xf32>
    %366 = tpu.matmul %363, %365, %cst_397 {dimension_numbers = #tpu.dot_dimension_numbers<[1], [0], [0], [1], [0, 0, 1, 1], [], []>} : vector<64x64xf32>, vector<64x64xf32>, vector<64x64xf32> -> vector<64x64xf32>
    %367 = arith.addf %361, %366 : vector<64x64xf32>
    %c1_398 = arith.constant 1 : index
    %c8_399 = arith.constant 8 : index
    %c0_400 = arith.constant 0 : index
    %368 = vector.load %arg11[%c1_398, %c8_399, %c0_400] : memref<6x24x64xf32, #tpu.memory_space<vmem>>, vector<4x16x64xf32>
    %369 = vector.shape_cast %368 : vector<4x16x64xf32> to vector<64x64xf32>
    %c5_401 = arith.constant 5 : index
    %c0_402 = arith.constant 0 : index
    %c0_403 = arith.constant 0 : index
    %370 = vector.load %arg6[%c5_401, %c0_402, %c0_403] : memref<36x64x64xf32, #tpu.memory_space<vmem>>, vector<1x64x64xf32>
    %371 = vector.shape_cast %370 : vector<1x64x64xf32> to vector<64x64xf32>
    %cst_404 = arith.constant dense<0.000000e+00> : vector<64x64xf32>
    %372 = tpu.matmul %369, %371, %cst_404 {dimension_numbers = #tpu.dot_dimension_numbers<[1], [0], [0], [1], [0, 0, 1, 1], [], []>} : vector<64x64xf32>, vector<64x64xf32>, vector<64x64xf32> -> vector<64x64xf32>
    %373 = arith.addf %367, %372 : vector<64x64xf32>
    %c2_405 = arith.constant 2 : index
    %c0_406 = arith.constant 0 : index
    %c0_407 = arith.constant 0 : index
    %374 = vector.load %arg11[%c2_405, %c0_406, %c0_407] : memref<6x24x64xf32, #tpu.memory_space<vmem>>, vector<4x16x64xf32>
    %375 = vector.shape_cast %374 : vector<4x16x64xf32> to vector<64x64xf32>
    %c6_408 = arith.constant 6 : index
    %c0_409 = arith.constant 0 : index
    %c0_410 = arith.constant 0 : index
    %376 = vector.load %arg6[%c6_408, %c0_409, %c0_410] : memref<36x64x64xf32, #tpu.memory_space<vmem>>, vector<1x64x64xf32>
    %377 = vector.shape_cast %376 : vector<1x64x64xf32> to vector<64x64xf32>
    %cst_411 = arith.constant dense<0.000000e+00> : vector<64x64xf32>
    %378 = tpu.matmul %375, %377, %cst_411 {dimension_numbers = #tpu.dot_dimension_numbers<[1], [0], [0], [1], [0, 0, 1, 1], [], []>} : vector<64x64xf32>, vector<64x64xf32>, vector<64x64xf32> -> vector<64x64xf32>
    %379 = arith.addf %373, %378 : vector<64x64xf32>
    %c2_412 = arith.constant 2 : index
    %c4_413 = arith.constant 4 : index
    %c0_414 = arith.constant 0 : index
    %380 = vector.load %arg11[%c2_412, %c4_413, %c0_414] : memref<6x24x64xf32, #tpu.memory_space<vmem>>, vector<4x16x64xf32>
    %381 = vector.shape_cast %380 : vector<4x16x64xf32> to vector<64x64xf32>
    %c7_415 = arith.constant 7 : index
    %c0_416 = arith.constant 0 : index
    %c0_417 = arith.constant 0 : index
    %382 = vector.load %arg6[%c7_415, %c0_416, %c0_417] : memref<36x64x64xf32, #tpu.memory_space<vmem>>, vector<1x64x64xf32>
    %383 = vector.shape_cast %382 : vector<1x64x64xf32> to vector<64x64xf32>
    %cst_418 = arith.constant dense<0.000000e+00> : vector<64x64xf32>
    %384 = tpu.matmul %381, %383, %cst_418 {dimension_numbers = #tpu.dot_dimension_numbers<[1], [0], [0], [1], [0, 0, 1, 1], [], []>} : vector<64x64xf32>, vector<64x64xf32>, vector<64x64xf32> -> vector<64x64xf32>
    %385 = arith.addf %379, %384 : vector<64x64xf32>
    %c2_419 = arith.constant 2 : index
    %c8_420 = arith.constant 8 : index
    %c0_421 = arith.constant 0 : index
    %386 = vector.load %arg11[%c2_419, %c8_420, %c0_421] : memref<6x24x64xf32, #tpu.memory_space<vmem>>, vector<4x16x64xf32>
    %387 = vector.shape_cast %386 : vector<4x16x64xf32> to vector<64x64xf32>
    %c8_422 = arith.constant 8 : index
    %c0_423 = arith.constant 0 : index
    %c0_424 = arith.constant 0 : index
    %388 = vector.load %arg6[%c8_422, %c0_423, %c0_424] : memref<36x64x64xf32, #tpu.memory_space<vmem>>, vector<1x64x64xf32>
    %389 = vector.shape_cast %388 : vector<1x64x64xf32> to vector<64x64xf32>
    %cst_425 = arith.constant dense<0.000000e+00> : vector<64x64xf32>
    %390 = tpu.matmul %387, %389, %cst_425 {dimension_numbers = #tpu.dot_dimension_numbers<[1], [0], [0], [1], [0, 0, 1, 1], [], []>} : vector<64x64xf32>, vector<64x64xf32>, vector<64x64xf32> -> vector<64x64xf32>
    %391 = arith.addf %385, %390 : vector<64x64xf32>
    %c0_426 = arith.constant 0 : index
    %c0_427 = arith.constant 0 : index
    %392 = vector.load %arg7[%c0_426, %c0_427] : memref<4x64xf32, #tpu.memory_space<vmem>>, vector<1x64xf32>
    %393 = vector.broadcast %392 : vector<1x64xf32> to vector<64x64xf32>
    %394 = arith.addf %391, %393 : vector<64x64xf32>
    %cst_428 = arith.constant 0.000000e+00 : f32
    %395 = vector.broadcast %cst_428 : f32 to vector<64x64xf32>
    %396 = arith.maximumf %394, %395 : vector<64x64xf32>
    %397 = vector.shape_cast %396 : vector<64x64xf32> to vector<4x16x64xf32>
    %c1_429 = arith.constant 1 : index
    %c4_430 = arith.constant 4 : index
    %c0_431 = arith.constant 0 : index
    %398 = vector.load %arg11[%c1_429, %c4_430, %c0_431] : memref<6x24x64xf32, #tpu.memory_space<vmem>>, vector<4x16x64xf32>
    tpu.vector_store %arg11[%c1_429, %c4_430, %c0_431], %397 {strides = array<i32>} : memref<6x24x64xf32, #tpu.memory_space<vmem>>, vector<4x16x64xf32>,
    %cst_432 = arith.constant 0.000000e+00 : f32
    %399 = vector.broadcast %cst_432 : f32 to vector<64x64xf32>
    %c0_433 = arith.constant 0 : index
    %c0_434 = arith.constant 0 : index
    %c0_435 = arith.constant 0 : index
    %400 = vector.load %arg11[%c0_433, %c0_434, %c0_435] : memref<6x24x64xf32, #tpu.memory_space<vmem>>, vector<4x16x64xf32>
    %401 = vector.shape_cast %400 : vector<4x16x64xf32> to vector<64x64xf32>
    %c9_436 = arith.constant 9 : index
    %c0_437 = arith.constant 0 : index
    %c0_438 = arith.constant 0 : index
    %402 = vector.load %arg6[%c9_436, %c0_437, %c0_438] : memref<36x64x64xf32, #tpu.memory_space<vmem>>, vector<1x64x64xf32>
    %403 = vector.shape_cast %402 : vector<1x64x64xf32> to vector<64x64xf32>
    %cst_439 = arith.constant dense<0.000000e+00> : vector<64x64xf32>
    %404 = tpu.matmul %401, %403, %cst_439 {dimension_numbers = #tpu.dot_dimension_numbers<[1], [0], [0], [1], [0, 0, 1, 1], [], []>} : vector<64x64xf32>, vector<64x64xf32>, vector<64x64xf32> -> vector<64x64xf32>
    %405 = arith.addf %399, %404 : vector<64x64xf32>
    %c0_440 = arith.constant 0 : index
    %c4_441 = arith.constant 4 : index
    %c0_442 = arith.constant 0 : index
    %406 = vector.load %arg11[%c0_440, %c4_441, %c0_442] : memref<6x24x64xf32, #tpu.memory_space<vmem>>, vector<4x16x64xf32>
    %407 = vector.shape_cast %406 : vector<4x16x64xf32> to vector<64x64xf32>
    %c10_443 = arith.constant 10 : index
    %c0_444 = arith.constant 0 : index
    %c0_445 = arith.constant 0 : index
    %408 = vector.load %arg6[%c10_443, %c0_444, %c0_445] : memref<36x64x64xf32, #tpu.memory_space<vmem>>, vector<1x64x64xf32>
    %409 = vector.shape_cast %408 : vector<1x64x64xf32> to vector<64x64xf32>
    %cst_446 = arith.constant dense<0.000000e+00> : vector<64x64xf32>
    %410 = tpu.matmul %407, %409, %cst_446 {dimension_numbers = #tpu.dot_dimension_numbers<[1], [0], [0], [1], [0, 0, 1, 1], [], []>} : vector<64x64xf32>, vector<64x64xf32>, vector<64x64xf32> -> vector<64x64xf32>
    %411 = arith.addf %405, %410 : vector<64x64xf32>
    %c0_447 = arith.constant 0 : index
    %c8_448 = arith.constant 8 : index
    %c0_449 = arith.constant 0 : index
    %412 = vector.load %arg11[%c0_447, %c8_448, %c0_449] : memref<6x24x64xf32, #tpu.memory_space<vmem>>, vector<4x16x64xf32>
    %413 = vector.shape_cast %412 : vector<4x16x64xf32> to vector<64x64xf32>
    %c11_450 = arith.constant 11 : index
    %c0_451 = arith.constant 0 : index
    %c0_452 = arith.constant 0 : index
    %414 = vector.load %arg6[%c11_450, %c0_451, %c0_452] : memref<36x64x64xf32, #tpu.memory_space<vmem>>, vector<1x64x64xf32>
    %415 = vector.shape_cast %414 : vector<1x64x64xf32> to vector<64x64xf32>
    %cst_453 = arith.constant dense<0.000000e+00> : vector<64x64xf32>
    %416 = tpu.matmul %413, %415, %cst_453 {dimension_numbers = #tpu.dot_dimension_numbers<[1], [0], [0], [1], [0, 0, 1, 1], [], []>} : vector<64x64xf32>, vector<64x64xf32>, vector<64x64xf32> -> vector<64x64xf32>
    %417 = arith.addf %411, %416 : vector<64x64xf32>
    %c1_454 = arith.constant 1 : index
    %c0_455 = arith.constant 0 : index
    %c0_456 = arith.constant 0 : index
    %418 = vector.load %arg11[%c1_454, %c0_455, %c0_456] : memref<6x24x64xf32, #tpu.memory_space<vmem>>, vector<4x16x64xf32>
    %419 = vector.shape_cast %418 : vector<4x16x64xf32> to vector<64x64xf32>
    %c12_457 = arith.constant 12 : index
    %c0_458 = arith.constant 0 : index
    %c0_459 = arith.constant 0 : index
    %420 = vector.load %arg6[%c12_457, %c0_458, %c0_459] : memref<36x64x64xf32, #tpu.memory_space<vmem>>, vector<1x64x64xf32>
    %421 = vector.shape_cast %420 : vector<1x64x64xf32> to vector<64x64xf32>
    %cst_460 = arith.constant dense<0.000000e+00> : vector<64x64xf32>
    %422 = tpu.matmul %419, %421, %cst_460 {dimension_numbers = #tpu.dot_dimension_numbers<[1], [0], [0], [1], [0, 0, 1, 1], [], []>} : vector<64x64xf32>, vector<64x64xf32>, vector<64x64xf32> -> vector<64x64xf32>
    %423 = arith.addf %417, %422 : vector<64x64xf32>
    %c1_461 = arith.constant 1 : index
    %c4_462 = arith.constant 4 : index
    %c0_463 = arith.constant 0 : index
    %424 = vector.load %arg11[%c1_461, %c4_462, %c0_463] : memref<6x24x64xf32, #tpu.memory_space<vmem>>, vector<4x16x64xf32>
    %425 = vector.shape_cast %424 : vector<4x16x64xf32> to vector<64x64xf32>
    %c13_464 = arith.constant 13 : index
    %c0_465 = arith.constant 0 : index
    %c0_466 = arith.constant 0 : index
    %426 = vector.load %arg6[%c13_464, %c0_465, %c0_466] : memref<36x64x64xf32, #tpu.memory_space<vmem>>, vector<1x64x64xf32>
    %427 = vector.shape_cast %426 : vector<1x64x64xf32> to vector<64x64xf32>
    %cst_467 = arith.constant dense<0.000000e+00> : vector<64x64xf32>
    %428 = tpu.matmul %425, %427, %cst_467 {dimension_numbers = #tpu.dot_dimension_numbers<[1], [0], [0], [1], [0, 0, 1, 1], [], []>} : vector<64x64xf32>, vector<64x64xf32>, vector<64x64xf32> -> vector<64x64xf32>
    %429 = arith.addf %423, %428 : vector<64x64xf32>
    %c1_468 = arith.constant 1 : index
    %c8_469 = arith.constant 8 : index
    %c0_470 = arith.constant 0 : index
    %430 = vector.load %arg11[%c1_468, %c8_469, %c0_470] : memref<6x24x64xf32, #tpu.memory_space<vmem>>, vector<4x16x64xf32>
    %431 = vector.shape_cast %430 : vector<4x16x64xf32> to vector<64x64xf32>
    %c14_471 = arith.constant 14 : index
    %c0_472 = arith.constant 0 : index
    %c0_473 = arith.constant 0 : index
    %432 = vector.load %arg6[%c14_471, %c0_472, %c0_473] : memref<36x64x64xf32, #tpu.memory_space<vmem>>, vector<1x64x64xf32>
    %433 = vector.shape_cast %432 : vector<1x64x64xf32> to vector<64x64xf32>
    %cst_474 = arith.constant dense<0.000000e+00> : vector<64x64xf32>
    %434 = tpu.matmul %431, %433, %cst_474 {dimension_numbers = #tpu.dot_dimension_numbers<[1], [0], [0], [1], [0, 0, 1, 1], [], []>} : vector<64x64xf32>, vector<64x64xf32>, vector<64x64xf32> -> vector<64x64xf32>
    %435 = arith.addf %429, %434 : vector<64x64xf32>
    %c2_475 = arith.constant 2 : index
    %c0_476 = arith.constant 0 : index
    %c0_477 = arith.constant 0 : index
    %436 = vector.load %arg11[%c2_475, %c0_476, %c0_477] : memref<6x24x64xf32, #tpu.memory_space<vmem>>, vector<4x16x64xf32>
    %437 = vector.shape_cast %436 : vector<4x16x64xf32> to vector<64x64xf32>
    %c15_478 = arith.constant 15 : index
    %c0_479 = arith.constant 0 : index
    %c0_480 = arith.constant 0 : index
    %438 = vector.load %arg6[%c15_478, %c0_479, %c0_480] : memref<36x64x64xf32, #tpu.memory_space<vmem>>, vector<1x64x64xf32>
    %439 = vector.shape_cast %438 : vector<1x64x64xf32> to vector<64x64xf32>
    %cst_481 = arith.constant dense<0.000000e+00> : vector<64x64xf32>
    %440 = tpu.matmul %437, %439, %cst_481 {dimension_numbers = #tpu.dot_dimension_numbers<[1], [0], [0], [1], [0, 0, 1, 1], [], []>} : vector<64x64xf32>, vector<64x64xf32>, vector<64x64xf32> -> vector<64x64xf32>
    %441 = arith.addf %435, %440 : vector<64x64xf32>
    %c2_482 = arith.constant 2 : index
    %c4_483 = arith.constant 4 : index
    %c0_484 = arith.constant 0 : index
    %442 = vector.load %arg11[%c2_482, %c4_483, %c0_484] : memref<6x24x64xf32, #tpu.memory_space<vmem>>, vector<4x16x64xf32>
    %443 = vector.shape_cast %442 : vector<4x16x64xf32> to vector<64x64xf32>
    %c16_485 = arith.constant 16 : index
    %c0_486 = arith.constant 0 : index
    %c0_487 = arith.constant 0 : index
    %444 = vector.load %arg6[%c16_485, %c0_486, %c0_487] : memref<36x64x64xf32, #tpu.memory_space<vmem>>, vector<1x64x64xf32>
    %445 = vector.shape_cast %444 : vector<1x64x64xf32> to vector<64x64xf32>
    %cst_488 = arith.constant dense<0.000000e+00> : vector<64x64xf32>
    %446 = tpu.matmul %443, %445, %cst_488 {dimension_numbers = #tpu.dot_dimension_numbers<[1], [0], [0], [1], [0, 0, 1, 1], [], []>} : vector<64x64xf32>, vector<64x64xf32>, vector<64x64xf32> -> vector<64x64xf32>
    %447 = arith.addf %441, %446 : vector<64x64xf32>
    %c2_489 = arith.constant 2 : index
    %c8_490 = arith.constant 8 : index
    %c0_491 = arith.constant 0 : index
    %448 = vector.load %arg11[%c2_489, %c8_490, %c0_491] : memref<6x24x64xf32, #tpu.memory_space<vmem>>, vector<4x16x64xf32>
    %449 = vector.shape_cast %448 : vector<4x16x64xf32> to vector<64x64xf32>
    %c17_492 = arith.constant 17 : index
    %c0_493 = arith.constant 0 : index
    %c0_494 = arith.constant 0 : index
    %450 = vector.load %arg6[%c17_492, %c0_493, %c0_494] : memref<36x64x64xf32, #tpu.memory_space<vmem>>, vector<1x64x64xf32>
    %451 = vector.shape_cast %450 : vector<1x64x64xf32> to vector<64x64xf32>
    %cst_495 = arith.constant dense<0.000000e+00> : vector<64x64xf32>
    %452 = tpu.matmul %449, %451, %cst_495 {dimension_numbers = #tpu.dot_dimension_numbers<[1], [0], [0], [1], [0, 0, 1, 1], [], []>} : vector<64x64xf32>, vector<64x64xf32>, vector<64x64xf32> -> vector<64x64xf32>
    %453 = arith.addf %447, %452 : vector<64x64xf32>
    %c1_496 = arith.constant 1 : index
    %c0_497 = arith.constant 0 : index
    %454 = vector.load %arg7[%c1_496, %c0_497] : memref<4x64xf32, #tpu.memory_space<vmem>>, vector<1x64xf32>
    %455 = vector.broadcast %454 : vector<1x64xf32> to vector<64x64xf32>
    %456 = arith.addf %453, %455 : vector<64x64xf32>
    %457 = arith.addf %336, %456 : vector<64x64xf32>
    %458 = vector.shape_cast %457 : vector<64x64xf32> to vector<4x16x64xf32>
    %c1_498 = arith.constant 1 : index
    %c4_499 = arith.constant 4 : index
    %c0_500 = arith.constant 0 : index
    %459 = vector.load %arg11[%c1_498, %c4_499, %c0_500] : memref<6x24x64xf32, #tpu.memory_space<vmem>>, vector<4x16x64xf32>
    tpu.vector_store %arg11[%c1_498, %c4_499, %c0_500], %458 {strides = array<i32>} : memref<6x24x64xf32, #tpu.memory_space<vmem>>, vector<4x16x64xf32>,
    %cst_501 = arith.constant 0.000000e+00 : f32
    %460 = vector.broadcast %cst_501 : f32 to vector<64x64xf32>
    %c0_502 = arith.constant 0 : index
    %c0_503 = arith.constant 0 : index
    %c0_504 = arith.constant 0 : index
    %461 = vector.load %arg11[%c0_502, %c0_503, %c0_504] : memref<6x24x64xf32, #tpu.memory_space<vmem>>, vector<4x16x64xf32>
    %462 = vector.shape_cast %461 : vector<4x16x64xf32> to vector<64x64xf32>
    %c18_505 = arith.constant 18 : index
    %c0_506 = arith.constant 0 : index
    %c0_507 = arith.constant 0 : index
    %463 = vector.load %arg6[%c18_505, %c0_506, %c0_507] : memref<36x64x64xf32, #tpu.memory_space<vmem>>, vector<1x64x64xf32>
    %464 = vector.shape_cast %463 : vector<1x64x64xf32> to vector<64x64xf32>
    %cst_508 = arith.constant dense<0.000000e+00> : vector<64x64xf32>
    %465 = tpu.matmul %462, %464, %cst_508 {dimension_numbers = #tpu.dot_dimension_numbers<[1], [0], [0], [1], [0, 0, 1, 1], [], []>} : vector<64x64xf32>, vector<64x64xf32>, vector<64x64xf32> -> vector<64x64xf32>
    %466 = arith.addf %460, %465 : vector<64x64xf32>
    %c0_509 = arith.constant 0 : index
    %c4_510 = arith.constant 4 : index
    %c0_511 = arith.constant 0 : index
    %467 = vector.load %arg11[%c0_509, %c4_510, %c0_511] : memref<6x24x64xf32, #tpu.memory_space<vmem>>, vector<4x16x64xf32>
    %468 = vector.shape_cast %467 : vector<4x16x64xf32> to vector<64x64xf32>
    %c19_512 = arith.constant 19 : index
    %c0_513 = arith.constant 0 : index
    %c0_514 = arith.constant 0 : index
    %469 = vector.load %arg6[%c19_512, %c0_513, %c0_514] : memref<36x64x64xf32, #tpu.memory_space<vmem>>, vector<1x64x64xf32>
    %470 = vector.shape_cast %469 : vector<1x64x64xf32> to vector<64x64xf32>
    %cst_515 = arith.constant dense<0.000000e+00> : vector<64x64xf32>
    %471 = tpu.matmul %468, %470, %cst_515 {dimension_numbers = #tpu.dot_dimension_numbers<[1], [0], [0], [1], [0, 0, 1, 1], [], []>} : vector<64x64xf32>, vector<64x64xf32>, vector<64x64xf32> -> vector<64x64xf32>
    %472 = arith.addf %466, %471 : vector<64x64xf32>
    %c0_516 = arith.constant 0 : index
    %c8_517 = arith.constant 8 : index
    %c0_518 = arith.constant 0 : index
    %473 = vector.load %arg11[%c0_516, %c8_517, %c0_518] : memref<6x24x64xf32, #tpu.memory_space<vmem>>, vector<4x16x64xf32>
    %474 = vector.shape_cast %473 : vector<4x16x64xf32> to vector<64x64xf32>
    %c20_519 = arith.constant 20 : index
    %c0_520 = arith.constant 0 : index
    %c0_521 = arith.constant 0 : index
    %475 = vector.load %arg6[%c20_519, %c0_520, %c0_521] : memref<36x64x64xf32, #tpu.memory_space<vmem>>, vector<1x64x64xf32>
    %476 = vector.shape_cast %475 : vector<1x64x64xf32> to vector<64x64xf32>
    %cst_522 = arith.constant dense<0.000000e+00> : vector<64x64xf32>
    %477 = tpu.matmul %474, %476, %cst_522 {dimension_numbers = #tpu.dot_dimension_numbers<[1], [0], [0], [1], [0, 0, 1, 1], [], []>} : vector<64x64xf32>, vector<64x64xf32>, vector<64x64xf32> -> vector<64x64xf32>
    %478 = arith.addf %472, %477 : vector<64x64xf32>
    %c1_523 = arith.constant 1 : index
    %c0_524 = arith.constant 0 : index
    %c0_525 = arith.constant 0 : index
    %479 = vector.load %arg11[%c1_523, %c0_524, %c0_525] : memref<6x24x64xf32, #tpu.memory_space<vmem>>, vector<4x16x64xf32>
    %480 = vector.shape_cast %479 : vector<4x16x64xf32> to vector<64x64xf32>
    %c21_526 = arith.constant 21 : index
    %c0_527 = arith.constant 0 : index
    %c0_528 = arith.constant 0 : index
    %481 = vector.load %arg6[%c21_526, %c0_527, %c0_528] : memref<36x64x64xf32, #tpu.memory_space<vmem>>, vector<1x64x64xf32>
    %482 = vector.shape_cast %481 : vector<1x64x64xf32> to vector<64x64xf32>
    %cst_529 = arith.constant dense<0.000000e+00> : vector<64x64xf32>
    %483 = tpu.matmul %480, %482, %cst_529 {dimension_numbers = #tpu.dot_dimension_numbers<[1], [0], [0], [1], [0, 0, 1, 1], [], []>} : vector<64x64xf32>, vector<64x64xf32>, vector<64x64xf32> -> vector<64x64xf32>
    %484 = arith.addf %478, %483 : vector<64x64xf32>
    %c1_530 = arith.constant 1 : index
    %c4_531 = arith.constant 4 : index
    %c0_532 = arith.constant 0 : index
    %485 = vector.load %arg11[%c1_530, %c4_531, %c0_532] : memref<6x24x64xf32, #tpu.memory_space<vmem>>, vector<4x16x64xf32>
    %486 = vector.shape_cast %485 : vector<4x16x64xf32> to vector<64x64xf32>
    %c22_533 = arith.constant 22 : index
    %c0_534 = arith.constant 0 : index
    %c0_535 = arith.constant 0 : index
    %487 = vector.load %arg6[%c22_533, %c0_534, %c0_535] : memref<36x64x64xf32, #tpu.memory_space<vmem>>, vector<1x64x64xf32>
    %488 = vector.shape_cast %487 : vector<1x64x64xf32> to vector<64x64xf32>
    %cst_536 = arith.constant dense<0.000000e+00> : vector<64x64xf32>
    %489 = tpu.matmul %486, %488, %cst_536 {dimension_numbers = #tpu.dot_dimension_numbers<[1], [0], [0], [1], [0, 0, 1, 1], [], []>} : vector<64x64xf32>, vector<64x64xf32>, vector<64x64xf32> -> vector<64x64xf32>
    %490 = arith.addf %484, %489 : vector<64x64xf32>
    %c1_537 = arith.constant 1 : index
    %c8_538 = arith.constant 8 : index
    %c0_539 = arith.constant 0 : index
    %491 = vector.load %arg11[%c1_537, %c8_538, %c0_539] : memref<6x24x64xf32, #tpu.memory_space<vmem>>, vector<4x16x64xf32>
    %492 = vector.shape_cast %491 : vector<4x16x64xf32> to vector<64x64xf32>
    %c23_540 = arith.constant 23 : index
    %c0_541 = arith.constant 0 : index
    %c0_542 = arith.constant 0 : index
    %493 = vector.load %arg6[%c23_540, %c0_541, %c0_542] : memref<36x64x64xf32, #tpu.memory_space<vmem>>, vector<1x64x64xf32>
    %494 = vector.shape_cast %493 : vector<1x64x64xf32> to vector<64x64xf32>
    %cst_543 = arith.constant dense<0.000000e+00> : vector<64x64xf32>
    %495 = tpu.matmul %492, %494, %cst_543 {dimension_numbers = #tpu.dot_dimension_numbers<[1], [0], [0], [1], [0, 0, 1, 1], [], []>} : vector<64x64xf32>, vector<64x64xf32>, vector<64x64xf32> -> vector<64x64xf32>
    %496 = arith.addf %490, %495 : vector<64x64xf32>
    %c2_544 = arith.constant 2 : index
    %c0_545 = arith.constant 0 : index
    %c0_546 = arith.constant 0 : index
    %497 = vector.load %arg11[%c2_544, %c0_545, %c0_546] : memref<6x24x64xf32, #tpu.memory_space<vmem>>, vector<4x16x64xf32>
    %498 = vector.shape_cast %497 : vector<4x16x64xf32> to vector<64x64xf32>
    %c24_547 = arith.constant 24 : index
    %c0_548 = arith.constant 0 : index
    %c0_549 = arith.constant 0 : index
    %499 = vector.load %arg6[%c24_547, %c0_548, %c0_549] : memref<36x64x64xf32, #tpu.memory_space<vmem>>, vector<1x64x64xf32>
    %500 = vector.shape_cast %499 : vector<1x64x64xf32> to vector<64x64xf32>
    %cst_550 = arith.constant dense<0.000000e+00> : vector<64x64xf32>
    %501 = tpu.matmul %498, %500, %cst_550 {dimension_numbers = #tpu.dot_dimension_numbers<[1], [0], [0], [1], [0, 0, 1, 1], [], []>} : vector<64x64xf32>, vector<64x64xf32>, vector<64x64xf32> -> vector<64x64xf32>
    %502 = arith.addf %496, %501 : vector<64x64xf32>
    %c2_551 = arith.constant 2 : index
    %c4_552 = arith.constant 4 : index
    %c0_553 = arith.constant 0 : index
    %503 = vector.load %arg11[%c2_551, %c4_552, %c0_553] : memref<6x24x64xf32, #tpu.memory_space<vmem>>, vector<4x16x64xf32>
    %504 = vector.shape_cast %503 : vector<4x16x64xf32> to vector<64x64xf32>
    %c25 = arith.constant 25 : index
    %c0_554 = arith.constant 0 : index
    %c0_555 = arith.constant 0 : index
    %505 = vector.load %arg6[%c25, %c0_554, %c0_555] : memref<36x64x64xf32, #tpu.memory_space<vmem>>, vector<1x64x64xf32>
    %506 = vector.shape_cast %505 : vector<1x64x64xf32> to vector<64x64xf32>
    %cst_556 = arith.constant dense<0.000000e+00> : vector<64x64xf32>
    %507 = tpu.matmul %504, %506, %cst_556 {dimension_numbers = #tpu.dot_dimension_numbers<[1], [0], [0], [1], [0, 0, 1, 1], [], []>} : vector<64x64xf32>, vector<64x64xf32>, vector<64x64xf32> -> vector<64x64xf32>
    %508 = arith.addf %502, %507 : vector<64x64xf32>
    %c2_557 = arith.constant 2 : index
    %c8_558 = arith.constant 8 : index
    %c0_559 = arith.constant 0 : index
    %509 = vector.load %arg11[%c2_557, %c8_558, %c0_559] : memref<6x24x64xf32, #tpu.memory_space<vmem>>, vector<4x16x64xf32>
    %510 = vector.shape_cast %509 : vector<4x16x64xf32> to vector<64x64xf32>
    %c26 = arith.constant 26 : index
    %c0_560 = arith.constant 0 : index
    %c0_561 = arith.constant 0 : index
    %511 = vector.load %arg6[%c26, %c0_560, %c0_561] : memref<36x64x64xf32, #tpu.memory_space<vmem>>, vector<1x64x64xf32>
    %512 = vector.shape_cast %511 : vector<1x64x64xf32> to vector<64x64xf32>
    %cst_562 = arith.constant dense<0.000000e+00> : vector<64x64xf32>
    %513 = tpu.matmul %510, %512, %cst_562 {dimension_numbers = #tpu.dot_dimension_numbers<[1], [0], [0], [1], [0, 0, 1, 1], [], []>} : vector<64x64xf32>, vector<64x64xf32>, vector<64x64xf32> -> vector<64x64xf32>
    %514 = arith.addf %508, %513 : vector<64x64xf32>
    %c2_563 = arith.constant 2 : index
    %c0_564 = arith.constant 0 : index
    %515 = vector.load %arg7[%c2_563, %c0_564] : memref<4x64xf32, #tpu.memory_space<vmem>>, vector<1x64xf32>
    %516 = vector.broadcast %515 : vector<1x64xf32> to vector<64x64xf32>
    %517 = arith.addf %514, %516 : vector<64x64xf32>
    %cst_565 = arith.constant 0.000000e+00 : f32
    %518 = vector.broadcast %cst_565 : f32 to vector<64x64xf32>
    %519 = arith.maximumf %517, %518 : vector<64x64xf32>
    %520 = vector.shape_cast %519 : vector<64x64xf32> to vector<4x16x64xf32>
    %c1_566 = arith.constant 1 : index
    %c4_567 = arith.constant 4 : index
    %c0_568 = arith.constant 0 : index
    %521 = vector.load %arg11[%c1_566, %c4_567, %c0_568] : memref<6x24x64xf32, #tpu.memory_space<vmem>>, vector<4x16x64xf32>
    tpu.vector_store %arg11[%c1_566, %c4_567, %c0_568], %520 {strides = array<i32>} : memref<6x24x64xf32, #tpu.memory_space<vmem>>, vector<4x16x64xf32>,
    %cst_569 = arith.constant 0.000000e+00 : f32
    %522 = vector.broadcast %cst_569 : f32 to vector<64x64xf32>
    %c0_570 = arith.constant 0 : index
    %c0_571 = arith.constant 0 : index
    %c0_572 = arith.constant 0 : index
    %523 = vector.load %arg11[%c0_570, %c0_571, %c0_572] : memref<6x24x64xf32, #tpu.memory_space<vmem>>, vector<4x16x64xf32>
    %524 = vector.shape_cast %523 : vector<4x16x64xf32> to vector<64x64xf32>
    %c27 = arith.constant 27 : index
    %c0_573 = arith.constant 0 : index
    %c0_574 = arith.constant 0 : index
    %525 = vector.load %arg6[%c27, %c0_573, %c0_574] : memref<36x64x64xf32, #tpu.memory_space<vmem>>, vector<1x64x64xf32>
    %526 = vector.shape_cast %525 : vector<1x64x64xf32> to vector<64x64xf32>
    %cst_575 = arith.constant dense<0.000000e+00> : vector<64x64xf32>
    %527 = tpu.matmul %524, %526, %cst_575 {dimension_numbers = #tpu.dot_dimension_numbers<[1], [0], [0], [1], [0, 0, 1, 1], [], []>} : vector<64x64xf32>, vector<64x64xf32>, vector<64x64xf32> -> vector<64x64xf32>
    %528 = arith.addf %522, %527 : vector<64x64xf32>
    %c0_576 = arith.constant 0 : index
    %c4_577 = arith.constant 4 : index
    %c0_578 = arith.constant 0 : index
    %529 = vector.load %arg11[%c0_576, %c4_577, %c0_578] : memref<6x24x64xf32, #tpu.memory_space<vmem>>, vector<4x16x64xf32>
    %530 = vector.shape_cast %529 : vector<4x16x64xf32> to vector<64x64xf32>
    %c28 = arith.constant 28 : index
    %c0_579 = arith.constant 0 : index
    %c0_580 = arith.constant 0 : index
    %531 = vector.load %arg6[%c28, %c0_579, %c0_580] : memref<36x64x64xf32, #tpu.memory_space<vmem>>, vector<1x64x64xf32>
    %532 = vector.shape_cast %531 : vector<1x64x64xf32> to vector<64x64xf32>
    %cst_581 = arith.constant dense<0.000000e+00> : vector<64x64xf32>
    %533 = tpu.matmul %530, %532, %cst_581 {dimension_numbers = #tpu.dot_dimension_numbers<[1], [0], [0], [1], [0, 0, 1, 1], [], []>} : vector<64x64xf32>, vector<64x64xf32>, vector<64x64xf32> -> vector<64x64xf32>
    %534 = arith.addf %528, %533 : vector<64x64xf32>
    %c0_582 = arith.constant 0 : index
    %c8_583 = arith.constant 8 : index
    %c0_584 = arith.constant 0 : index
    %535 = vector.load %arg11[%c0_582, %c8_583, %c0_584] : memref<6x24x64xf32, #tpu.memory_space<vmem>>, vector<4x16x64xf32>
    %536 = vector.shape_cast %535 : vector<4x16x64xf32> to vector<64x64xf32>
    %c29 = arith.constant 29 : index
    %c0_585 = arith.constant 0 : index
    %c0_586 = arith.constant 0 : index
    %537 = vector.load %arg6[%c29, %c0_585, %c0_586] : memref<36x64x64xf32, #tpu.memory_space<vmem>>, vector<1x64x64xf32>
    %538 = vector.shape_cast %537 : vector<1x64x64xf32> to vector<64x64xf32>
    %cst_587 = arith.constant dense<0.000000e+00> : vector<64x64xf32>
    %539 = tpu.matmul %536, %538, %cst_587 {dimension_numbers = #tpu.dot_dimension_numbers<[1], [0], [0], [1], [0, 0, 1, 1], [], []>} : vector<64x64xf32>, vector<64x64xf32>, vector<64x64xf32> -> vector<64x64xf32>
    %540 = arith.addf %534, %539 : vector<64x64xf32>
    %c1_588 = arith.constant 1 : index
    %c0_589 = arith.constant 0 : index
    %c0_590 = arith.constant 0 : index
    %541 = vector.load %arg11[%c1_588, %c0_589, %c0_590] : memref<6x24x64xf32, #tpu.memory_space<vmem>>, vector<4x16x64xf32>
    %542 = vector.shape_cast %541 : vector<4x16x64xf32> to vector<64x64xf32>
    %c30 = arith.constant 30 : index
    %c0_591 = arith.constant 0 : index
    %c0_592 = arith.constant 0 : index
    %543 = vector.load %arg6[%c30, %c0_591, %c0_592] : memref<36x64x64xf32, #tpu.memory_space<vmem>>, vector<1x64x64xf32>
    %544 = vector.shape_cast %543 : vector<1x64x64xf32> to vector<64x64xf32>
    %cst_593 = arith.constant dense<0.000000e+00> : vector<64x64xf32>
    %545 = tpu.matmul %542, %544, %cst_593 {dimension_numbers = #tpu.dot_dimension_numbers<[1], [0], [0], [1], [0, 0, 1, 1], [], []>} : vector<64x64xf32>, vector<64x64xf32>, vector<64x64xf32> -> vector<64x64xf32>
    %546 = arith.addf %540, %545 : vector<64x64xf32>
    %c1_594 = arith.constant 1 : index
    %c4_595 = arith.constant 4 : index
    %c0_596 = arith.constant 0 : index
    %547 = vector.load %arg11[%c1_594, %c4_595, %c0_596] : memref<6x24x64xf32, #tpu.memory_space<vmem>>, vector<4x16x64xf32>
    %548 = vector.shape_cast %547 : vector<4x16x64xf32> to vector<64x64xf32>
    %c31 = arith.constant 31 : index
    %c0_597 = arith.constant 0 : index
    %c0_598 = arith.constant 0 : index
    %549 = vector.load %arg6[%c31, %c0_597, %c0_598] : memref<36x64x64xf32, #tpu.memory_space<vmem>>, vector<1x64x64xf32>
    %550 = vector.shape_cast %549 : vector<1x64x64xf32> to vector<64x64xf32>
    %cst_599 = arith.constant dense<0.000000e+00> : vector<64x64xf32>
    %551 = tpu.matmul %548, %550, %cst_599 {dimension_numbers = #tpu.dot_dimension_numbers<[1], [0], [0], [1], [0, 0, 1, 1], [], []>} : vector<64x64xf32>, vector<64x64xf32>, vector<64x64xf32> -> vector<64x64xf32>
    %552 = arith.addf %546, %551 : vector<64x64xf32>
    %c1_600 = arith.constant 1 : index
    %c8_601 = arith.constant 8 : index
    %c0_602 = arith.constant 0 : index
    %553 = vector.load %arg11[%c1_600, %c8_601, %c0_602] : memref<6x24x64xf32, #tpu.memory_space<vmem>>, vector<4x16x64xf32>
    %554 = vector.shape_cast %553 : vector<4x16x64xf32> to vector<64x64xf32>
    %c32 = arith.constant 32 : index
    %c0_603 = arith.constant 0 : index
    %c0_604 = arith.constant 0 : index
    %555 = vector.load %arg6[%c32, %c0_603, %c0_604] : memref<36x64x64xf32, #tpu.memory_space<vmem>>, vector<1x64x64xf32>
    %556 = vector.shape_cast %555 : vector<1x64x64xf32> to vector<64x64xf32>
    %cst_605 = arith.constant dense<0.000000e+00> : vector<64x64xf32>
    %557 = tpu.matmul %554, %556, %cst_605 {dimension_numbers = #tpu.dot_dimension_numbers<[1], [0], [0], [1], [0, 0, 1, 1], [], []>} : vector<64x64xf32>, vector<64x64xf32>, vector<64x64xf32> -> vector<64x64xf32>
    %558 = arith.addf %552, %557 : vector<64x64xf32>
    %c2_606 = arith.constant 2 : index
    %c0_607 = arith.constant 0 : index
    %c0_608 = arith.constant 0 : index
    %559 = vector.load %arg11[%c2_606, %c0_607, %c0_608] : memref<6x24x64xf32, #tpu.memory_space<vmem>>, vector<4x16x64xf32>
    %560 = vector.shape_cast %559 : vector<4x16x64xf32> to vector<64x64xf32>
    %c33 = arith.constant 33 : index
    %c0_609 = arith.constant 0 : index
    %c0_610 = arith.constant 0 : index
    %561 = vector.load %arg6[%c33, %c0_609, %c0_610] : memref<36x64x64xf32, #tpu.memory_space<vmem>>, vector<1x64x64xf32>
    %562 = vector.shape_cast %561 : vector<1x64x64xf32> to vector<64x64xf32>
    %cst_611 = arith.constant dense<0.000000e+00> : vector<64x64xf32>
    %563 = tpu.matmul %560, %562, %cst_611 {dimension_numbers = #tpu.dot_dimension_numbers<[1], [0], [0], [1], [0, 0, 1, 1], [], []>} : vector<64x64xf32>, vector<64x64xf32>, vector<64x64xf32> -> vector<64x64xf32>
    %564 = arith.addf %558, %563 : vector<64x64xf32>
    %c2_612 = arith.constant 2 : index
    %c4_613 = arith.constant 4 : index
    %c0_614 = arith.constant 0 : index
    %565 = vector.load %arg11[%c2_612, %c4_613, %c0_614] : memref<6x24x64xf32, #tpu.memory_space<vmem>>, vector<4x16x64xf32>
    %566 = vector.shape_cast %565 : vector<4x16x64xf32> to vector<64x64xf32>
    %c34 = arith.constant 34 : index
    %c0_615 = arith.constant 0 : index
    %c0_616 = arith.constant 0 : index
    %567 = vector.load %arg6[%c34, %c0_615, %c0_616] : memref<36x64x64xf32, #tpu.memory_space<vmem>>, vector<1x64x64xf32>
    %568 = vector.shape_cast %567 : vector<1x64x64xf32> to vector<64x64xf32>
    %cst_617 = arith.constant dense<0.000000e+00> : vector<64x64xf32>
    %569 = tpu.matmul %566, %568, %cst_617 {dimension_numbers = #tpu.dot_dimension_numbers<[1], [0], [0], [1], [0, 0, 1, 1], [], []>} : vector<64x64xf32>, vector<64x64xf32>, vector<64x64xf32> -> vector<64x64xf32>
    %570 = arith.addf %564, %569 : vector<64x64xf32>
    %c2_618 = arith.constant 2 : index
    %c8_619 = arith.constant 8 : index
    %c0_620 = arith.constant 0 : index
    %571 = vector.load %arg11[%c2_618, %c8_619, %c0_620] : memref<6x24x64xf32, #tpu.memory_space<vmem>>, vector<4x16x64xf32>
    %572 = vector.shape_cast %571 : vector<4x16x64xf32> to vector<64x64xf32>
    %c35 = arith.constant 35 : index
    %c0_621 = arith.constant 0 : index
    %c0_622 = arith.constant 0 : index
    %573 = vector.load %arg6[%c35, %c0_621, %c0_622] : memref<36x64x64xf32, #tpu.memory_space<vmem>>, vector<1x64x64xf32>
    %574 = vector.shape_cast %573 : vector<1x64x64xf32> to vector<64x64xf32>
    %cst_623 = arith.constant dense<0.000000e+00> : vector<64x64xf32>
    %575 = tpu.matmul %572, %574, %cst_623 {dimension_numbers = #tpu.dot_dimension_numbers<[1], [0], [0], [1], [0, 0, 1, 1], [], []>} : vector<64x64xf32>, vector<64x64xf32>, vector<64x64xf32> -> vector<64x64xf32>
    %576 = arith.addf %570, %575 : vector<64x64xf32>
    %c3_624 = arith.constant 3 : index
    %c0_625 = arith.constant 0 : index
    %577 = vector.load %arg7[%c3_624, %c0_625] : memref<4x64xf32, #tpu.memory_space<vmem>>, vector<1x64xf32>
    %578 = vector.broadcast %577 : vector<1x64xf32> to vector<64x64xf32>
    %579 = arith.addf %576, %578 : vector<64x64xf32>
    %580 = arith.addf %457, %579 : vector<64x64xf32>
    %581 = vector.shape_cast %580 : vector<64x64xf32> to vector<1x4x16x64xf32>
    %c0_626 = arith.constant 0 : index
    %c0_627 = arith.constant 0 : index
    %c0_628 = arith.constant 0 : index
    %c0_629 = arith.constant 0 : index
    %582 = vector.load %arg8[%c0_626, %c0_627, %c0_628, %c0_629] : memref<1x4x16x64xf32, #tpu.memory_space<vmem>>, vector<1x4x16x64xf32>
    tpu.vector_store %arg8[%c0_626, %c0_627, %c0_628, %c0_629], %581 {strides = array<i32>} : memref<1x4x16x64xf32, #tpu.memory_space<vmem>>, vector<1x4x16x64xf32>,
    return
  }
  func.func @transform_0(%arg0: i32) -> (i32, i32, i32, i32) {
    %c0_i32 = arith.constant 0 : i32
    %c0_i32_0 = arith.constant 0 : i32
    %c0_i32_1 = arith.constant 0 : i32
    %c0_i32_2 = arith.constant 0 : i32
    return %arg0, %c0_i32, %c0_i32_0, %c0_i32_1 : i32, i32, i32, i32
  }
  func.func @transform_1(%arg0: i32) -> (i32, i32, i32) {
    %c0_i32 = arith.constant 0 : i32
    %c0_i32_0 = arith.constant 0 : i32
    %c0_i32_1 = arith.constant 0 : i32
    %c0_i32_2 = arith.constant 0 : i32
    return %c0_i32, %c0_i32_0, %c0_i32_1 : i32, i32, i32
  }
  func.func @transform_2(%arg0: i32) -> (i32, i32) {
    %c0_i32 = arith.constant 0 : i32
    %c0_i32_0 = arith.constant 0 : i32
    %c0_i32_1 = arith.constant 0 : i32
    return %c0_i32, %c0_i32_0 : i32, i32
  }
  func.func @transform_3(%arg0: i32) -> (i32, i32, i32) {
    %c0_i32 = arith.constant 0 : i32
    %c0_i32_0 = arith.constant 0 : i32
    %c0_i32_1 = arith.constant 0 : i32
    %c0_i32_2 = arith.constant 0 : i32
    return %c0_i32, %c0_i32_0, %c0_i32_1 : i32, i32, i32
  }
  func.func @transform_4(%arg0: i32) -> (i32, i32) {
    %c0_i32 = arith.constant 0 : i32
    %c0_i32_0 = arith.constant 0 : i32
    %c0_i32_1 = arith.constant 0 : i32
    return %c0_i32, %c0_i32_0 : i32, i32
  }
  func.func @transform_5(%arg0: i32) -> (i32, i32, i32) {
    %c0_i32 = arith.constant 0 : i32
    %c0_i32_0 = arith.constant 0 : i32
    %c0_i32_1 = arith.constant 0 : i32
    %c0_i32_2 = arith.constant 0 : i32
    return %c0_i32, %c0_i32_0, %c0_i32_1 : i32, i32, i32
  }
  func.func @transform_6(%arg0: i32) -> (i32, i32) {
    %c0_i32 = arith.constant 0 : i32
    %c0_i32_0 = arith.constant 0 : i32
    %c0_i32_1 = arith.constant 0 : i32
    return %c0_i32, %c0_i32_0 : i32, i32
  }
  func.func @transform_7(%arg0: i32) -> (i32, i32, i32, i32) {
    %c0_i32 = arith.constant 0 : i32
    %c0_i32_0 = arith.constant 0 : i32
    %c0_i32_1 = arith.constant 0 : i32
    %c0_i32_2 = arith.constant 0 : i32
    return %arg0, %c0_i32, %c0_i32_0, %c0_i32_1 : i32, i32, i32, i32
  }
}

</mosaic_0001>

<bundles_post_ra>
// kernel: encoder_forward.1
= control target key start
LH: loop header
LB: loop body
LE: loop exit
PB: predicated region body
PF: predicated region fallthrough
CT: control target
= control target key end

     0   :  { %s30978_s24 = smov 0   ;;  %s36863_s0 = inlined_call_operand.vmem [shape: f32[2,16,16,3], index: 0, kind: input, shape index: {}]   ;;  %s36864_s1 = inlined_call_operand.vmem [shape: f32[25,3,32], index: 1, kind: input, shape index: {}]   ;;  %s36865_s2 = inlined_call_operand.vmem [shape: f32[1,32], index: 2, kind: input, shape index: {}]   ;;  %s36866_s3 = inlined_call_operand.vmem [shape: f32[25,32,64], index: 3, kind: input, shape index: {}]   ;;  %s36867_s4 = inlined_call_operand.vmem [shape: f32[1,64], index: 4, kind: input, shape index: {}]   ;;  %s36868_s5 = inlined_call_operand.vmem [shape: f32[36,64,64], index: 5, kind: input, shape index: {}]   ;;  %s36869_s6 = inlined_call_operand.vmem [shape: f32[4,64], index: 6, kind: input, shape index: {}]   ;;  %s36870_s7 = inlined_call_operand.vmem [shape: f32[2,4,16,64], index: 7, kind: output, shape index: {}]  }
   0x1 LB: > { %s21842_s25 = sadd.s32 4294967295, %s30935_s24   ;;  %p21846_p0 = scmp.ge.s32.totalorder %s30935_s24, 1  ;;  %s30935_s24 = sphi %s30978_s24, %s17_s24  }
   0x2   : > { %p237_p1 = scmp.lt.s32.totalorder %s30935_s24, 3 }
   0x4   : > { %p238_p2 = pnand %p21846_p0, %p237_p1 }
   0x6   : > { %241 = sbr.rel (%p238_p2) target bundleno = 4139 (0x102b), region = 48 }
   0xd   : > { %v494_v0 = vld [vmem:[%s36864_s1] sm:$0x7]  ;;  %vm625_vm0 = vcmask 1042432   ;;  %vm279_vm1 = vcmask 23552   ;;  %p30991_p3 = scmp.lt.s32.totalorder %s21842_s25, 1  ;;  %v36871_v1 = vmov 0.0  }
   0xe   : > { %25725 = vmatprep.subr.msk.mxu0 %vm625_vm0, %v494_v0  ;;  %280 = vst.msk [vmem:[#allocation2] sm:$0xff] %vm279_vm1, %v36871_v1  ;;  %281 = vst.msk [vmem:[#allocation2 + $0x8] sm:$0xff] %vm279_vm1, %v36871_v1  ;;  %v21918_v2 = vld [vmem:[%s36864_s1 + $0x8] sm:$0x7]  ;;  %vm282_vm2 = vcmask 19456   ;;  %vm341_vm3 = vcmask 261120  }
   0xf   : > { %284 = vst.msk [vmem:[#allocation2 + $0x18] sm:$0xff] %vm279_vm1, %v36871_v1  ;;  %285 = vst.msk [vmem:[#allocation2 + $0x20] sm:$0xff] %vm279_vm1, %v36871_v1  ;;  %25726 = vmatpush3.msk.msra.mxu0 %vm625_vm0, %v494_v0  ;;  %s37422_s25 = smov (!%p30991_p3, %s21842_s25), 1  ;;  %v31151_v12 = vld [vmem:[%s36864_s1 + $0xc] sm:$0x7]  ;;  %vm10286_vm4 = vcmask 1046528  }
  0x10   : > { %287 = vst.msk [vmem:[#allocation2 + $0x30] sm:$0xff] %vm279_vm1, %v36871_v1  ;;  %288 = vst.msk [vmem:[#allocation2 + $0x38] sm:$0xff] %vm279_vm1, %v36871_v1  ;;  %25775 = vmatprep.subr.msk.mxu0 %vm625_vm0, %v21918_v2  ;;  %s23772_s8 = sshll.u32 %s37422_s25, 8  ;;  %v31229_v43 = vld [vmem:[%s36864_s1 + $0x10] sm:$0x7]  ;;  %vm10345_vm5 = vcmask 260096  }
  0x11   : > { %290 = vst.msk [vmem:[#allocation2 + $0x48] sm:$0xff] %vm279_vm1, %v36871_v1  ;;  %291 = vst.msk [vmem:[#allocation2 + $0x50] sm:$0xff] %vm279_vm1, %v36871_v1  ;;  %s31131_s11 = scalar_lea.vmem %s36863_s0, %s23772_s8  ;;  %vm378_vm6 = vcmask 523264   ;;  %vm16152_vm7 = vcmask 1045504   ;;  %vm16183_vm8 = vcmask 521216   ;;  %s23773_s8 = sshll.u32 %s37422_s25, 6 }
  0x12   : > { %293 = vst.msk [vmem:[#allocation2 + $0x60] sm:$0xff] %vm279_vm1, %v36871_v1  ;;  %294 = vst.msk [vmem:[#allocation2 + $0x68] sm:$0xff] %vm279_vm1, %v36871_v1  ;;  %v397_v3 = vld [vmem:[%s31131_s11] sm:$0xff]  ;;  %v398_v4 = vld [vmem:[%s31131_s11 + $0x8] sm:$0xff] }
  0x13   : > { %296 = vst.msk [vmem:[#allocation2 + $0x78] sm:$0xff] %vm279_vm1, %v36871_v1  ;;  %297 = vst.msk [vmem:[#allocation2 + $0x80] sm:$0xff] %vm279_vm1, %v36871_v1  ;;  %v399_v5 = vld [vmem:[%s31131_s11 + $0x10] sm:$0xff]  ;;  %v400_v6 = vld [vmem:[%s31131_s11 + $0x18] sm:$0xff] }
  0x14   : > { %299 = vst.msk [vmem:[#allocation2 + $0x90] sm:$0xff] %vm279_vm1, %v36871_v1  ;;  %300 = vst.msk [vmem:[#allocation2 + $0x98] sm:$0xff] %vm279_vm1, %v36871_v1  ;;  %v401_v7 = vld [vmem:[%s31131_s11 + $0x20] sm:$0xff]  ;;  %v402_v8 = vld [vmem:[%s31131_s11 + $0x28] sm:$0xff] }
  0x15   : > { %302 = vst.msk [vmem:[#allocation2 + $0xa8] sm:$0xff] %vm279_vm1, %v36871_v1  ;;  %303 = vst.msk [vmem:[#allocation2 + $0xb0] sm:$0xff] %vm279_vm1, %v36871_v1  ;;  %v462_v9 = vld [vmem:[#allocation2] sm:$0xff]  ;;  %v463_v10 = vld [vmem:[#allocation2 + $0x8] sm:$0xff] }
  0x16   : > { %305 = vst.msk [vmem:[#allocation2 + $0xc0] sm:$0xff] %vm279_vm1, %v36871_v1  ;;  %306 = vst.msk [vmem:[#allocation2 + $0xc8] sm:$0xff] %vm279_vm1, %v36871_v1  ;;  %v31142_v11 = vld [vmem:[#allocation2 + $0x18] sm:$0xff]  ;;  %25727 = vmatprep.mubr.msk.f32.mxu0 %vm279_vm1, %v462_v9  ;;  %v31154_v13 = vld [vmem:[#allocation2 + $0x20] sm:$0xff] }
  0x17   : > { %308 = vst.msk [vmem:[#allocation2 + $0xd8] sm:$0xff] %vm279_vm1, %v36871_v1  ;;  %309 = vst.msk [vmem:[#allocation2 + $0xe0] sm:$0xff] %vm279_vm1, %v36871_v1  ;;  %25728 = vmatmul.mubr.msk.f32.vlgmr.msra.gmra.mrb[0].mxu0 %vm279_vm1, %v463_v10  ;;  %v403_v14 = vld [vmem:[%s31131_s11 + $0x30] sm:$0xff]  ;;  %v404_v15 = vld [vmem:[%s31131_s11 + $0x38] sm:$0xff] }
  0x18   : > { %311 = vst.msk [vmem:[#allocation2 + $0xf0] sm:$0xff] %vm279_vm1, %v36871_v1  ;;  %312 = vst.msk [vmem:[#allocation2 + $0xf8] sm:$0xff] %vm279_vm1, %v36871_v1  ;;  %25776 = vmatpush3.msk.msra.mxu0 %vm625_vm0, %v21918_v2  ;;  %25730 = vmatprep.mubr.msk.f32.mxu0 %vm279_vm1, %v31142_v11  ;;  %v405_v16 = vld [vmem:[%s31131_s11 + $0x40] sm:$0xff]  ;;  %v406_v17 = vld [vmem:[%s31131_s11 + $0x48] sm:$0xff] }
  0x19   : > { %314 = vst.msk [vmem:[#allocation2 + $0x108] sm:$0xff] %vm279_vm1, %v36871_v1  ;;  %315 = vst.msk [vmem:[#allocation2 + $0x110] sm:$0xff] %vm279_vm1, %v36871_v1  ;;  %25825 = vmatprep.subr.msk.mxu0 %vm625_vm0, %v31151_v12  ;;  %v407_v18 = vld [vmem:[%s31131_s11 + $0x50] sm:$0xff]  ;;  %v408_v19 = vld [vmem:[%s31131_s11 + $0x58] sm:$0xff] }
  0x1a   : > { %317 = vst.msk [vmem:[#allocation2 + $0x120] sm:$0xff] %vm279_vm1, %v36871_v1  ;;  %318 = vst.msk [vmem:[#allocation2 + $0x128] sm:$0xff] %vm279_vm1, %v36871_v1  ;;  %v409_v20 = vld [vmem:[%s31131_s11 + $0x60] sm:$0xff]  ;;  %v410_v21 = vld [vmem:[%s31131_s11 + $0x68] sm:$0xff] }
  0x1b   : > { %320 = vst.msk [vmem:[#allocation2 + $0x138] sm:$0xff] %vm279_vm1, %v36871_v1  ;;  %321 = vst.msk [vmem:[#allocation2 + $0x140] sm:$0xff] %vm279_vm1, %v36871_v1  ;;  %v411_v22 = vld [vmem:[%s31131_s11 + $0x70] sm:$0xff]  ;;  %v412_v23 = vld [vmem:[%s31131_s11 + $0x78] sm:$0xff]  ;;  %25731 = vmatmul.mubr.msk.f32.gmra.mrb[2].mxu0 %vm279_vm1, %v31154_v13 }
  0x1c   : > { %323 = vst.msk [vmem:[#allocation2 + $0x150] sm:$0xff] %vm279_vm1, %v36871_v1  ;;  %324 = vst.msk [vmem:[#allocation2 + $0x158] sm:$0xff] %vm279_vm1, %v36871_v1  ;;  %v413_v27 = vld [vmem:[%s31131_s11 + $0x80] sm:$0xff]  ;;  %v414_v28 = vld [vmem:[%s31131_s11 + $0x88] sm:$0xff] }
  0x1d   : > { %326 = vst.msk [vmem:[#allocation2 + $0x168] sm:$0xff] %vm279_vm1, %v36871_v1  ;;  %327 = vst.msk [vmem:[#allocation2 + $0x170] sm:$0xff] %vm279_vm1, %v36871_v1  ;;  %v415_v29 = vld [vmem:[%s31131_s11 + $0x90] sm:$0xff]  ;;  %v416_v30 = vld [vmem:[%s31131_s11 + $0x98] sm:$0xff] }
  0x1e   : > { %329 = vst.msk [vmem:[#allocation2 + $0x180] sm:$0xff] %vm279_vm1, %v36871_v1  ;;  %330 = vst.msk [vmem:[#allocation2 + $0x188] sm:$0xff] %vm279_vm1, %v36871_v1  ;;  %v1178_v32 = vld [vmem:[#allocation2 + $0x2] sm:$0xff]  ;;  %v419_v36 = vld [vmem:[%s31131_s11 + $0xb0] sm:$0xff] }
  0x1f   : > { %332 = vst.msk [vmem:[#allocation2 + $0x198] sm:$0xff] %vm279_vm1, %v36871_v1  ;;  %333 = vst.msk [vmem:[#allocation2 + $0x1a0] sm:$0xff] %vm279_vm1, %v36871_v1  ;;  %v417_v34 = vld [vmem:[%s31131_s11 + $0xa0] sm:$0xff]  ;;  %v418_v35 = vld [vmem:[%s31131_s11 + $0xa8] sm:$0xff] }
  0x20   : > { %335 = vst.msk [vmem:[#allocation2 + $0x1b0] sm:$0xff] %vm279_vm1, %v36871_v1  ;;  %336 = vst.msk [vmem:[#allocation2 + $0x1b8] sm:$0xff] %vm279_vm1, %v36871_v1  ;;  %v420_v37 = vld [vmem:[%s31131_s11 + $0xb8] sm:$0xff]  ;;  %v421_v38 = vld [vmem:[%s31131_s11 + $0xc0] sm:$0xff] }
  0x21   : > { %338 = vst.msk [vmem:[#allocation2 + $0x1c8] sm:$0xff] %vm279_vm1, %v36871_v1  ;;  %339 = vst.msk [vmem:[#allocation2 + $0x1d0] sm:$0xff] %vm279_vm1, %v36871_v1  ;;  %v422_v39 = vld [vmem:[%s31131_s11 + $0xc8] sm:$0xff]  ;;  %v31217_v40 = vld [vmem:[#allocation2 + $0x1a] sm:$0xff] }
  0x22   : > { %289 = vst.msk [vmem:[#allocation2 + $0x40] sm:$0xf] %vm282_vm2, %v36871_v1  ;;  %283 = vst.msk [vmem:[#allocation2 + $0x10] sm:$0xf] %vm282_vm2, %v36871_v1  ;;  %v423_v41 = vld [vmem:[%s31131_s11 + $0xd0] sm:$0xff]  ;;  %v424_v42 = vld [vmem:[%s31131_s11 + $0xd8] sm:$0xff] }
  0x23   : > { %286 = vst.msk [vmem:[#allocation2 + $0x28] sm:$0xf] %vm282_vm2, %v36871_v1  ;;  %292 = vst.msk [vmem:[#allocation2 + $0x58] sm:$0xf] %vm282_vm2, %v36871_v1  ;;  %v1568_v10 = vld [vmem:[#allocation2 + $0x3] sm:$0xff] }
  0x24   : > { %295 = vst.msk [vmem:[#allocation2 + $0x70] sm:$0xf] %vm282_vm2, %v36871_v1  ;;  %298 = vst.msk [vmem:[#allocation2 + $0x88] sm:$0xf] %vm282_vm2, %v36871_v1 }
  0x25   : > { %301 = vst.msk [vmem:[#allocation2 + $0xa0] sm:$0xf] %vm282_vm2, %v36871_v1  ;;  %304 = vst.msk [vmem:[#allocation2 + $0xb8] sm:$0xf] %vm282_vm2, %v36871_v1 }
  0x26   : > { %307 = vst.msk [vmem:[#allocation2 + $0xd0] sm:$0xf] %vm282_vm2, %v36871_v1  ;;  %310 = vst.msk [vmem:[#allocation2 + $0xe8] sm:$0xf] %vm282_vm2, %v36871_v1 }
  0x27   : > { %313 = vst.msk [vmem:[#allocation2 + $0x100] sm:$0xf] %vm282_vm2, %v36871_v1  ;;  %316 = vst.msk [vmem:[#allocation2 + $0x118] sm:$0xf] %vm282_vm2, %v36871_v1 }
  0x28   : > { %319 = vst.msk [vmem:[#allocation2 + $0x130] sm:$0xf] %vm282_vm2, %v36871_v1  ;;  %322 = vst.msk [vmem:[#allocation2 + $0x148] sm:$0xf] %vm282_vm2, %v36871_v1 }
  0x29   : > { %325 = vst.msk [vmem:[#allocation2 + $0x160] sm:$0xf] %vm282_vm2, %v36871_v1  ;;  %328 = vst.msk [vmem:[#allocation2 + $0x178] sm:$0xf] %vm282_vm2, %v36871_v1  ;;  %v1179_v33 = vld [vmem:[#allocation2 + $0xa] sm:$0xff] }
  0x2a   : > { %331 = vst.msk [vmem:[#allocation2 + $0x190] sm:$0xf] %vm282_vm2, %v36871_v1  ;;  %334 = vst.msk [vmem:[#allocation2 + $0x1a8] sm:$0xf] %vm282_vm2, %v36871_v1  ;;  %v31236_v44 = vld [vmem:[#allocation2 + $0x22] sm:$0xff] }
  0x2b   : > { %337 = vst.msk [vmem:[#allocation2 + $0x1c0] sm:$0xf] %vm282_vm2, %v36871_v1  ;;  %340 = vst.msk [vmem:[#allocation2 + $0x1d8] sm:$0xf] %vm282_vm2, %v36871_v1 }
  0x2c   : > { %430 = vst.msk [vmem:[#allocation2 + $0x32] sm:$0xff] %vm279_vm1, %v397_v3  ;;  %431 = vst.msk [vmem:[#allocation2 + $0x3a] sm:$0xff] %vm279_vm1, %v398_v4 }
  0x2d   : > { %432 = vst.msk [vmem:[#allocation2 + $0x4a] sm:$0xff] %vm279_vm1, %v399_v5  ;;  %433 = vst.msk [vmem:[#allocation2 + $0x52] sm:$0xff] %vm279_vm1, %v400_v6 }
  0x2e   : > { %434 = vst.msk [vmem:[#allocation2 + $0x62] sm:$0xff] %vm279_vm1, %v401_v7  ;;  %435 = vst.msk [vmem:[#allocation2 + $0x6a] sm:$0xff] %vm279_vm1, %v402_v8 }
  0x2f   : > { %436 = vst.msk [vmem:[#allocation2 + $0x7a] sm:$0xff] %vm279_vm1, %v403_v14  ;;  %437 = vst.msk [vmem:[#allocation2 + $0x82] sm:$0xff] %vm279_vm1, %v404_v15  ;;  %v31355_v14 = vld [vmem:[#allocation2 + $0x1b] sm:$0xff]  ;;  %v31360_v15 = vld [vmem:[%s36864_s1 + $0x14] sm:$0x7] }
  0x30   : > { %438 = vst.msk [vmem:[#allocation2 + $0x92] sm:$0xff] %vm279_vm1, %v405_v16  ;;  %439 = vst.msk [vmem:[#allocation2 + $0x9a] sm:$0xff] %vm279_vm1, %v406_v17  ;;  %v31367_v16 = vld [vmem:[#allocation2 + $0x23] sm:$0xff] }
  0x31   : > { %440 = vst.msk [vmem:[#allocation2 + $0xaa] sm:$0xff] %vm279_vm1, %v407_v18  ;;  %441 = vst.msk [vmem:[#allocation2 + $0xb2] sm:$0xff] %vm279_vm1, %v408_v19 }
  0x32   : > { %442 = vst.msk [vmem:[#allocation2 + $0xc2] sm:$0xff] %vm279_vm1, %v409_v20  ;;  %443 = vst.msk [vmem:[#allocation2 + $0xca] sm:$0xff] %vm279_vm1, %v410_v21 }
  0x33   : > { %v31180_v24 = vld [vmem:[#allocation2 + $0x30] sm:$0xff]  ;;  %444 = vst.msk [vmem:[#allocation2 + $0xda] sm:$0xff] %vm279_vm1, %v411_v22  ;;  %445 = vst.msk [vmem:[#allocation2 + $0xe2] sm:$0xff] %vm279_vm1, %v412_v23  ;;  %v31187_v25 = vld [vmem:[#allocation2 + $0x38] sm:$0xff] }
  0x34   : > { %25733 = vmatprep.mubr.msk.f32.mxu0 %vm279_vm1, %v31180_v24  ;;  %v31189_v26 = vld [vmem:[#allocation2 + $0x48] sm:$0xff]  ;;  %446 = vst.msk [vmem:[#allocation2 + $0xf2] sm:$0xff] %vm279_vm1, %v413_v27  ;;  %447 = vst.msk [vmem:[#allocation2 + $0xfa] sm:$0xff] %vm279_vm1, %v414_v28  ;;  %v31201_v31 = vld [vmem:[#allocation2 + $0x50] sm:$0xff] }
  0x35   : > { %25734 = vmatmul.mubr.msk.f32.gmra.mrb[4].mxu0 %vm279_vm1, %v31187_v25  ;;  %448 = vst.msk [vmem:[#allocation2 + $0x10a] sm:$0xff] %vm279_vm1, %v415_v29  ;;  %449 = vst.msk [vmem:[#allocation2 + $0x112] sm:$0xff] %vm279_vm1, %v416_v30  ;;  %v31238_v45 = vld [vmem:[#allocation2 + $0x32] sm:$0xff]  ;;  %v31246_v46 = vld [vmem:[#allocation2 + $0x3a] sm:$0xff] }
  0x36   : > { %25736 = vmatprep.mubr.msk.f32.mxu0 %vm279_vm1, %v31189_v26  ;;  %450 = vst.msk [vmem:[#allocation2 + $0x122] sm:$0xff] %vm279_vm1, %v417_v34  ;;  %451 = vst.msk [vmem:[#allocation2 + $0x12a] sm:$0xff] %vm279_vm1, %v418_v35  ;;  %v31248_v47 = vld [vmem:[#allocation2 + $0x4a] sm:$0xff]  ;;  %v31254_v48 = vld [vmem:[#allocation2 + $0x52] sm:$0xff] }
  0x37   : > { %452 = vst.msk [vmem:[#allocation2 + $0x13a] sm:$0xff] %vm279_vm1, %v419_v36  ;;  %453 = vst.msk [vmem:[#allocation2 + $0x142] sm:$0xff] %vm279_vm1, %v420_v37  ;;  %v31256_v49 = vld [vmem:[#allocation2 + $0x62] sm:$0xff]  ;;  %v31262_v50 = vld [vmem:[#allocation2 + $0x6a] sm:$0xff] }
  0x38   : > { %454 = vst.msk [vmem:[#allocation2 + $0x152] sm:$0xff] %vm279_vm1, %v421_v38  ;;  %455 = vst.msk [vmem:[#allocation2 + $0x15a] sm:$0xff] %vm279_vm1, %v422_v39  ;;  %v31264_v51 = vld [vmem:[#allocation2 + $0x7a] sm:$0xff]  ;;  %v31270_v52 = vld [vmem:[#allocation2 + $0x82] sm:$0xff] }
  0x39   : > { %25737 = vmatmul.mubr.msk.f32.gmra.mrb[6].mxu0 %vm279_vm1, %v31201_v31  ;;  %456 = vst.msk [vmem:[#allocation2 + $0x16a] sm:$0xff] %vm279_vm1, %v423_v41  ;;  %457 = vst.msk [vmem:[#allocation2 + $0x172] sm:$0xff] %vm279_vm1, %v424_v42  ;;  %v31272_v53 = vld [vmem:[#allocation2 + $0x92] sm:$0xff]  ;;  %v31278_v54 = vld [vmem:[#allocation2 + $0x9a] sm:$0xff] }
  0x3a   : > { %25777 = vmatprep.mubr.msk.f32.mxu0 %vm279_vm1, %v1178_v32  ;;  %v31280_v55 = vld [vmem:[#allocation2 + $0xaa] sm:$0xff]  ;;  %v31286_v56 = vld [vmem:[#allocation2 + $0xb2] sm:$0xff]  ;;  %v31288_v57 = vld [vmem:[#allocation2 + $0xc2] sm:$0xff] }
  0x3b   : > { %v31294_v58 = vld [vmem:[#allocation2 + $0xca] sm:$0xff]  ;;  %v31296_v59 = vld [vmem:[#allocation2 + $0xda] sm:$0xff]  ;;  %v31302_v60 = vld [vmem:[#allocation2 + $0xe2] sm:$0xff] }
  0x3c   : > { %v31304_v61 = vld [vmem:[#allocation2 + $0xf2] sm:$0xff]  ;;  %v31310_v62 = vld [vmem:[#allocation2 + $0xfa] sm:$0xff]  ;;  %v31312_v63 = vld [vmem:[#allocation2 + $0x10a] sm:$0xff] }
  0x3d   : > { %25778 = vmatmul.mubr.msk.f32.vlgmr.msra.gmra.mrb[0].mxu0 %vm279_vm1, %v1179_v33  ;;  %v31318_v0 = vld [vmem:[#allocation2 + $0x112] sm:$0xff]  ;;  %v31320_v2 = vld [vmem:[#allocation2 + $0x122] sm:$0xff]  ;;  %v31326_v3 = vld [vmem:[#allocation2 + $0x12a] sm:$0xff] }
  0x3e   : > { %25826 = vmatpush3.msk.msra.mxu0 %vm625_vm0, %v31151_v12  ;;  %25780 = vmatprep.mubr.msk.f32.mxu0 %vm279_vm1, %v31217_v40  ;;  %v31328_v4 = vld [vmem:[#allocation2 + $0x13a] sm:$0xff]  ;;  %v31334_v5 = vld [vmem:[#allocation2 + $0x142] sm:$0xff]  ;;  %v1569_v12 = vld [vmem:[#allocation2 + $0xb] sm:$0xff] }
  0x3f   : > { %25875 = vmatprep.subr.msk.mxu0 %vm625_vm0, %v31229_v43  ;;  %v31336_v6 = vld [vmem:[#allocation2 + $0x152] sm:$0xff]  ;;  %v31342_v7 = vld [vmem:[#allocation2 + $0x15a] sm:$0xff]  ;;  %v31387_v21 = vld [vmem:[#allocation2 + $0x63] sm:$0xff] }
  0x40   : > { %v31344_v8 = vld [vmem:[#allocation2 + $0x16a] sm:$0xff]  ;;  %v31350_v9 = vld [vmem:[#allocation2 + $0x172] sm:$0xff]  ;;  %v31377_v18 = vld [vmem:[#allocation2 + $0x3b] sm:$0xff] }
  0x41   : > { %25781 = vmatmul.mubr.msk.f32.gmra.mrb[2].mxu0 %vm279_vm1, %v31236_v44  ;;  %v31369_v17 = vld [vmem:[#allocation2 + $0x33] sm:$0xff]  ;;  %v31379_v19 = vld [vmem:[#allocation2 + $0x4b] sm:$0xff]  ;;  %v31395_v23 = vld [vmem:[#allocation2 + $0x7b] sm:$0xff] }
  0x42   : > { %25783 = vmatprep.mubr.msk.f32.mxu0 %vm279_vm1, %v31238_v45  ;;  %v31385_v20 = vld [vmem:[#allocation2 + $0x53] sm:$0xff]  ;;  %v31393_v22 = vld [vmem:[#allocation2 + $0x6b] sm:$0xff]  ;;  %v31401_v27 = vld [vmem:[#allocation2 + $0x83] sm:$0xff] }
  0x43   : > { %v31403_v28 = vld [vmem:[#allocation2 + $0x93] sm:$0xff]  ;;  %v31409_v29 = vld [vmem:[#allocation2 + $0x9b] sm:$0xff]  ;;  %v31411_v30 = vld [vmem:[#allocation2 + $0xab] sm:$0xff] }
  0x44   : > { %v31417_v32 = vld [vmem:[#allocation2 + $0xb3] sm:$0xff]  ;;  %v31419_v33 = vld [vmem:[#allocation2 + $0xc3] sm:$0xff]  ;;  %v31425_v34 = vld [vmem:[#allocation2 + $0xcb] sm:$0xff] }
  0x45   : > { %25784 = vmatmul.mubr.msk.f32.gmra.mrb[4].mxu0 %vm279_vm1, %v31246_v46  ;;  %v31427_v35 = vld [vmem:[#allocation2 + $0xdb] sm:$0xff]  ;;  %v31433_v36 = vld [vmem:[#allocation2 + $0xe3] sm:$0xff]  ;;  %v31435_v37 = vld [vmem:[#allocation2 + $0xf3] sm:$0xff] }
  0x46   : > { %25786 = vmatprep.mubr.msk.f32.mxu0 %vm279_vm1, %v31248_v47  ;;  %v31441_v38 = vld [vmem:[#allocation2 + $0xfb] sm:$0xff]  ;;  %v31443_v39 = vld [vmem:[#allocation2 + $0x10b] sm:$0xff]  ;;  %v31449_v41 = vld [vmem:[#allocation2 + $0x113] sm:$0xff] }
  0x47   : > { %37075 = vst [vmem:[#allocation5_spill] sm:$0xff] %v31443_v39  ;;  %37076 = vst [vmem:[#allocation6_spill] sm:$0xff] %v31449_v41  ;;  %v31451_v42 = vld [vmem:[#allocation2 + $0x123] sm:$0xff]  ;;  %v31467_v1 = vld [vmem:[#allocation2 + $0x153] sm:$0xff] }
  0x48   : > { %37077 = vst [vmem:[#allocation7_spill] sm:$0xff] %v31451_v42  ;;  %37081 = vst [vmem:[#allocation11_spill] sm:$0xff] %v31467_v1 }
  0x49   : > { %25787 = vmatmul.mubr.msk.f32.gmra.mrb[6].mxu0 %vm279_vm1, %v31254_v48 }
  0x4a   : > { %25789 = vmatprep.mubr.msk.f32.mxu0 %vm279_vm1, %v31256_v49 }
  0x4d   : > { %25790 = vmatmul.mubr.msk.f32.gmra.mrb[8].mxu0 %vm279_vm1, %v31262_v50 }
  0x4e   : > { %25792 = vmatprep.mubr.msk.f32.mxu0 %vm279_vm1, %v31264_v51 }
  0x51   : > { %25793 = vmatmul.mubr.msk.f32.gmra.mrb[10].mxu0 %vm279_vm1, %v31270_v52 }
  0x52   : > { %25795 = vmatprep.mubr.msk.f32.mxu0 %vm279_vm1, %v31272_v53 }
  0x55   : > { %25796 = vmatmul.mubr.msk.f32.gmra.mrb[12].mxu0 %vm279_vm1, %v31278_v54 }
  0x56   : > { %25798 = vmatprep.mubr.msk.f32.mxu0 %vm279_vm1, %v31280_v55 }
  0x59   : > { %25799 = vmatmul.mubr.msk.f32.gmra.mrb[14].mxu0 %vm279_vm1, %v31286_v56 }
  0x5a   : > { %25801 = vmatprep.mubr.msk.f32.mxu0 %vm279_vm1, %v31288_v57 }
  0x5d   : > { %25802 = vmatmul.mubr.msk.f32.gmra.mrb[16].mxu0 %vm279_vm1, %v31294_v58 }
  0x5e   : > { %25804 = vmatprep.mubr.msk.f32.mxu0 %vm279_vm1, %v31296_v59 }
  0x61   : > { %25805 = vmatmul.mubr.msk.f32.gmra.mrb[18].mxu0 %vm279_vm1, %v31302_v60 }
  0x62   : > { %25807 = vmatprep.mubr.msk.f32.mxu0 %vm279_vm1, %v31304_v61 }
  0x65   : > { %25808 = vmatmul.mubr.msk.f32.gmra.mrb[20].mxu0 %vm279_vm1, %v31310_v62 }
  0x66   : > { %25810 = vmatprep.mubr.msk.f32.mxu0 %vm279_vm1, %v31312_v63 }
  0x69   : > { %25811 = vmatmul.mubr.msk.f32.gmra.mrb[22].mxu0 %vm279_vm1, %v31318_v0 }
  0x6a   : > { %25813 = vmatprep.mubr.msk.f32.mxu0 %vm279_vm1, %v31320_v2 }
  0x6d   : > { %25814 = vmatmul.mubr.msk.f32.gmra.mrb[24].mxu0 %vm279_vm1, %v31326_v3 }
  0x6e   : > { %25816 = vmatprep.mubr.msk.f32.mxu0 %vm279_vm1, %v31328_v4 }
  0x71   : > { %25817 = vmatmul.mubr.msk.f32.gmra.mrb[26].mxu0 %vm279_vm1, %v31334_v5 }
  0x72   : > { %25819 = vmatprep.mubr.msk.f32.mxu0 %vm279_vm1, %v31336_v6 }
  0x75   : > { %25820 = vmatmul.mubr.msk.f32.gmra.mrb[28].mxu0 %vm279_vm1, %v31342_v7 }
  0x76   : > { %25822 = vmatprep.mubr.msk.f32.mxu0 %vm279_vm1, %v31344_v8 }
  0x79   : > { %25823 = vmatmul.mubr.msk.f32.gmra.mrb[30].mxu0 %vm279_vm1, %v31350_v9 }
  0x7a   : > { %25827 = vmatprep.mubr.msk.f32.mxu0 %vm279_vm1, %v1568_v10  ;;  %v31459_v10 = vld [vmem:[#allocation2 + $0x13b] sm:$0xff] }
  0x7b   : > { %37079 = vst [vmem:[#allocation9_spill] sm:$0xff] %v31459_v10 }
  0x7d   : > { %25828 = vmatmul.mubr.msk.f32.vlgmr.msra.gmra.mrb[0].mxu0 %vm279_vm1, %v1569_v12  ;;  %v31465_v12 = vld [vmem:[#allocation2 + $0x143] sm:$0xff] }
  0x7e   : > { %25876 = vmatpush3.msk.msra.mxu0 %vm625_vm0, %v31229_v43  ;;  %25830 = vmatprep.mubr.msk.f32.mxu0 %vm279_vm1, %v31355_v14  ;;  %v31457_v43 = vld [vmem:[#allocation2 + $0x12b] sm:$0xff]  ;;  %37080 = vst [vmem:[#allocation10_spill] sm:$0xff] %v31465_v12 }
  0x7f   : > { %25925 = vmatprep.subr.msk.mxu0 %vm625_vm0, %v31360_v15  ;;  %37078 = vst [vmem:[#allocation8_spill] sm:$0xff] %v31457_v43 }
  0x81   : > { %25831 = vmatmul.mubr.msk.f32.gmra.mrb[2].mxu0 %vm279_vm1, %v31367_v16 }
  0x82   : > { %25833 = vmatprep.mubr.msk.f32.mxu0 %vm279_vm1, %v31369_v17 }
  0x85   : > { %25834 = vmatmul.mubr.msk.f32.gmra.mrb[4].mxu0 %vm279_vm1, %v31377_v18 }
  0x86   : > { %25836 = vmatprep.mubr.msk.f32.mxu0 %vm279_vm1, %v31379_v19 }
  0x89   : > { %25837 = vmatmul.mubr.msk.f32.gmra.mrb[6].mxu0 %vm279_vm1, %v31385_v20 }
  0x8a   : > { %25839 = vmatprep.mubr.msk.f32.mxu0 %vm279_vm1, %v31387_v21 }
  0x8d   : > { %25840 = vmatmul.mubr.msk.f32.gmra.mrb[8].mxu0 %vm279_vm1, %v31393_v22 }
  0x8e   : > { %25842 = vmatprep.mubr.msk.f32.mxu0 %vm279_vm1, %v31395_v23 }
  0x91   : > { %25843 = vmatmul.mubr.msk.f32.gmra.mrb[10].mxu0 %vm279_vm1, %v31401_v27 }
  0x92   : > { %25845 = vmatprep.mubr.msk.f32.mxu0 %vm279_vm1, %v31403_v28 }
  0x95   : > { %25846 = vmatmul.mubr.msk.f32.gmra.mrb[12].mxu0 %vm279_vm1, %v31409_v29 }
  0x96   : > { %25848 = vmatprep.mubr.msk.f32.mxu0 %vm279_vm1, %v31411_v30 }
  0x99   : > { %25849 = vmatmul.mubr.msk.f32.gmra.mrb[14].mxu0 %vm279_vm1, %v31417_v32 }
  0x9a   : > { %25851 = vmatprep.mubr.msk.f32.mxu0 %vm279_vm1, %v31419_v33 }
  0x9d   : > { %25852 = vmatmul.mubr.msk.f32.gmra.mrb[16].mxu0 %vm279_vm1, %v31425_v34 }
  0x9e   : > { %25854 = vmatprep.mubr.msk.f32.mxu0 %vm279_vm1, %v31427_v35 }
  0xa1   : > { %25855 = vmatmul.mubr.msk.f32.gmra.mrb[18].mxu0 %vm279_vm1, %v31433_v36 }
  0xa2   : > { %25857 = vmatprep.mubr.msk.f32.mxu0 %vm279_vm1, %v31435_v37 }
  0xa5   : > { %25858 = vmatmul.mubr.msk.f32.gmra.mrb[20].mxu0 %vm279_vm1, %v31441_v38 }
  0xa6   : > { %25860 = vmatprep.mubr.msk.f32.mxu0 %vm279_vm1, %v31443_v39  ;;  %v425_v39 = vld [vmem:[%s31131_s11 + $0xe0] sm:$0xff] }
  0xa7   : > { %458 = vst.msk [vmem:[#allocation2 + $0x182] sm:$0xff] %vm279_vm1, %v425_v39  ;;  %v31485_v39 = vld [vmem:[#allocation2 + $0x173] sm:$0xff] }
  0xa8   : > { %37083 = vst [vmem:[#allocation13_spill] sm:$0xff] %v31485_v39 }
  0xa9   : > { %25861 = vmatmul.mubr.msk.f32.gmra.mrb[22].mxu0 %vm279_vm1, %v31449_v41  ;;  %v426_v41 = vld [vmem:[%s31131_s11 + $0xe8] sm:$0xff] }
  0xaa   : > { %25863 = vmatprep.mubr.msk.f32.mxu0 %vm279_vm1, %v31451_v42  ;;  %459 = vst.msk [vmem:[#allocation2 + $0x18a] sm:$0xff] %vm279_vm1, %v426_v41  ;;  %v31479_v42 = vld [vmem:[#allocation2 + $0x16b] sm:$0xff] }
  0xab   : > { %37082 = vst [vmem:[#allocation12_spill] sm:$0xff] %v31479_v42  ;;  %v1959_v41 = vld [vmem:[#allocation2 + $0xc] sm:$0xff] }
  0xad   : > { %25864 = vmatmul.mubr.msk.f32.gmra.mrb[24].mxu0 %vm279_vm1, %v31457_v43  ;;  %v31477_v43 = vld [vmem:[#allocation2 + $0x15b] sm:$0xff] }
  0xae   : > { %25866 = vmatprep.mubr.msk.f32.mxu0 %vm279_vm1, %v31459_v10  ;;  %v1958_v10 = vld [vmem:[#allocation2 + $0x4] sm:$0xff] }
  0xb1   : > { %25867 = vmatmul.mubr.msk.f32.gmra.mrb[26].mxu0 %vm279_vm1, %v31465_v12  ;;  %v31495_v12 = vld [vmem:[%s36864_s1 + $0x18] sm:$0x7] }
  0xb2   : > { %25869 = vmatprep.mubr.msk.f32.mxu0 %vm279_vm1, %v31467_v1  ;;  %v31490_v1 = vld [vmem:[#allocation2 + $0x1c] sm:$0xff] }
  0xb3   : > { %37084 = vst [vmem:[#allocation14_spill] sm:$0xff] %v31490_v1 }
  0xb5   : > { %25870 = vmatmul.mubr.msk.f32.gmra.mrb[28].mxu0 %vm279_vm1, %v31477_v43 }
  0xb6   : > { %25872 = vmatprep.mubr.msk.f32.mxu0 %vm279_vm1, %v31479_v42  ;;  %v31502_v42 = vld [vmem:[#allocation2 + $0x24] sm:$0xff] }
  0xb7   : > { %37085 = vst [vmem:[#allocation15_spill] sm:$0xff] %v31502_v42 }
  0xb9   : > { %25873 = vmatmul.mubr.msk.f32.gmra.mrb[30].mxu0 %vm279_vm1, %v31485_v39  ;;  %v31504_v39 = vld [vmem:[#allocation2 + $0x34] sm:$0xff] }
  0xba   : > { %25877 = vmatprep.mubr.msk.f32.mxu0 %vm279_vm1, %v1958_v10  ;;  %37086 = vst [vmem:[#allocation16_spill] sm:$0xff] %v31504_v39  ;;  %v31512_v10 = vld [vmem:[#allocation2 + $0x3c] sm:$0xff] }
  0xbb   : > { %37087 = vst [vmem:[#allocation17_spill] sm:$0xff] %v31512_v10 }
  0xbd   : > { %25878 = vmatmul.mubr.msk.f32.vlgmr.msra.gmra.mrb[0].mxu0 %vm279_vm1, %v1959_v41  ;;  %v31514_v41 = vld [vmem:[#allocation2 + $0x4c] sm:$0xff] }
  0xbe   : > { %25926 = vmatpush3.msk.msra.mxu0 %vm625_vm0, %v31360_v15  ;;  %25880 = vmatprep.mubr.msk.f32.mxu0 %vm279_vm1, %v31490_v1  ;;  %37088 = vst [vmem:[#allocation18_spill] sm:$0xff] %v31514_v41  ;;  %v31520_v15 = vld [vmem:[#allocation2 + $0x54] sm:$0xff]  ;;  %v31522_v1 = vld [vmem:[#allocation2 + $0x64] sm:$0xff] }
  0xbf   : > { %25975 = vmatprep.subr.msk.mxu0 %vm625_vm0, %v31495_v12  ;;  %37089 = vst [vmem:[#allocation19_spill] sm:$0xff] %v31520_v15  ;;  %37090 = vst [vmem:[#allocation20_spill] sm:$0xff] %v31522_v1 }
  0xc1   : > { %25881 = vmatmul.mubr.msk.f32.gmra.mrb[2].mxu0 %vm279_vm1, %v31502_v42  ;;  %v31530_v42 = vld [vmem:[#allocation2 + $0x7c] sm:$0xff] }
  0xc2   : > { %25883 = vmatprep.mubr.msk.f32.mxu0 %vm279_vm1, %v31504_v39  ;;  %v31528_v39 = vld [vmem:[#allocation2 + $0x6c] sm:$0xff]  ;;  %37092 = vst [vmem:[#allocation22_spill] sm:$0xff] %v31530_v42 }
  0xc3   : > { %37091 = vst [vmem:[#allocation21_spill] sm:$0xff] %v31528_v39 }
  0xc5   : > { %25884 = vmatmul.mubr.msk.f32.gmra.mrb[4].mxu0 %vm279_vm1, %v31512_v10  ;;  %v31538_v10 = vld [vmem:[#allocation2 + $0x94] sm:$0xff] }
  0xc6   : > { %25886 = vmatprep.mubr.msk.f32.mxu0 %vm279_vm1, %v31514_v41  ;;  %v31536_v41 = vld [vmem:[#allocation2 + $0x84] sm:$0xff]  ;;  %37094 = vst [vmem:[#allocation24_spill] sm:$0xff] %v31538_v10 }
  0xc7   : > { %37093 = vst [vmem:[#allocation23_spill] sm:$0xff] %v31536_v41 }
  0xc9   : > { %25887 = vmatmul.mubr.msk.f32.gmra.mrb[6].mxu0 %vm279_vm1, %v31520_v15  ;;  %v31546_v15 = vld [vmem:[#allocation2 + $0xac] sm:$0xff] }
  0xca   : > { %25889 = vmatprep.mubr.msk.f32.mxu0 %vm279_vm1, %v31522_v1  ;;  %v31544_v1 = vld [vmem:[#allocation2 + $0x9c] sm:$0xff]  ;;  %37096 = vst [vmem:[#allocation26_spill] sm:$0xff] %v31546_v15 }
  0xcb   : > { %37095 = vst [vmem:[#allocation25_spill] sm:$0xff] %v31544_v1 }
  0xcd   : > { %25890 = vmatmul.mubr.msk.f32.gmra.mrb[8].mxu0 %vm279_vm1, %v31528_v39  ;;  %v31554_v39 = vld [vmem:[#allocation2 + $0xc4] sm:$0xff] }
  0xce   : > { %25892 = vmatprep.mubr.msk.f32.mxu0 %vm279_vm1, %v31530_v42  ;;  %v31552_v42 = vld [vmem:[#allocation2 + $0xb4] sm:$0xff]  ;;  %37098 = vst [vmem:[#allocation28_spill] sm:$0xff] %v31554_v39 }
  0xcf   : > { %37097 = vst [vmem:[#allocation27_spill] sm:$0xff] %v31552_v42 }
  0xd1   : > { %25893 = vmatmul.mubr.msk.f32.gmra.mrb[10].mxu0 %vm279_vm1, %v31536_v41  ;;  %v31562_v41 = vld [vmem:[#allocation2 + $0xdc] sm:$0xff] }
  0xd2   : > { %25895 = vmatprep.mubr.msk.f32.mxu0 %vm279_vm1, %v31538_v10  ;;  %v31560_v10 = vld [vmem:[#allocation2 + $0xcc] sm:$0xff]  ;;  %37100 = vst [vmem:[#allocation30_spill] sm:$0xff] %v31562_v41 }
  0xd3   : > { %37099 = vst [vmem:[#allocation29_spill] sm:$0xff] %v31560_v10 }
  0xd5   : > { %25896 = vmatmul.mubr.msk.f32.gmra.mrb[12].mxu0 %vm279_vm1, %v31544_v1  ;;  %v31570_v1 = vld [vmem:[#allocation2 + $0xf4] sm:$0xff] }
  0xd6   : > { %25898 = vmatprep.mubr.msk.f32.mxu0 %vm279_vm1, %v31546_v15  ;;  %v31568_v15 = vld [vmem:[#allocation2 + $0xe4] sm:$0xff]  ;;  %37102 = vst [vmem:[#allocation32_spill] sm:$0xff] %v31570_v1 }
  0xd7   : > { %37101 = vst [vmem:[#allocation31_spill] sm:$0xff] %v31568_v15 }
  0xd9   : > { %25899 = vmatmul.mubr.msk.f32.gmra.mrb[14].mxu0 %vm279_vm1, %v31552_v42  ;;  %v31578_v42 = vld [vmem:[#allocation2 + $0x10c] sm:$0xff] }
  0xda   : > { %25901 = vmatprep.mubr.msk.f32.mxu0 %vm279_vm1, %v31554_v39  ;;  %v31576_v39 = vld [vmem:[#allocation2 + $0xfc] sm:$0xff]  ;;  %37104 = vst [vmem:[#allocation34_spill] sm:$0xff] %v31578_v42 }
  0xdb   : > { %37103 = vst [vmem:[#allocation33_spill] sm:$0xff] %v31576_v39 }
  0xdd   : > { %25902 = vmatmul.mubr.msk.f32.gmra.mrb[16].mxu0 %vm279_vm1, %v31560_v10  ;;  %v31586_v10 = vld [vmem:[#allocation2 + $0x124] sm:$0xff] }
  0xde   : > { %25904 = vmatprep.mubr.msk.f32.mxu0 %vm279_vm1, %v31562_v41  ;;  %v31584_v41 = vld [vmem:[#allocation2 + $0x114] sm:$0xff]  ;;  %37106 = vst [vmem:[#allocation36_spill] sm:$0xff] %v31586_v10 }
  0xdf   : > { %37105 = vst [vmem:[#allocation35_spill] sm:$0xff] %v31584_v41 }
  0xe1   : > { %25905 = vmatmul.mubr.msk.f32.gmra.mrb[18].mxu0 %vm279_vm1, %v31568_v15  ;;  %v31594_v15 = vld [vmem:[#allocation2 + $0x13c] sm:$0xff] }
  0xe2   : > { %25907 = vmatprep.mubr.msk.f32.mxu0 %vm279_vm1, %v31570_v1  ;;  %v31592_v1 = vld [vmem:[#allocation2 + $0x12c] sm:$0xff]  ;;  %37107 = vst [vmem:[#allocation37_spill] sm:$0xff] %v31594_v15 }
  0xe5   : > { %25908 = vmatmul.mubr.msk.f32.gmra.mrb[20].mxu0 %vm279_vm1, %v31576_v39  ;;  %v31602_v39 = vld [vmem:[#allocation2 + $0x154] sm:$0xff] }
  0xe6   : > { %25910 = vmatprep.mubr.msk.f32.mxu0 %vm279_vm1, %v31578_v42  ;;  %v31600_v42 = vld [vmem:[#allocation2 + $0x144] sm:$0xff]  ;;  %37108 = vst [vmem:[#allocation38_spill] sm:$0xff] %v31602_v39 }
  0xe9   : > { %25911 = vmatmul.mubr.msk.f32.gmra.mrb[22].mxu0 %vm279_vm1, %v31584_v41  ;;  %v31610_v41 = vld [vmem:[#allocation2 + $0x16c] sm:$0xff] }
  0xea   : > { %25913 = vmatprep.mubr.msk.f32.mxu0 %vm279_vm1, %v31586_v10  ;;  %v31608_v10 = vld [vmem:[#allocation2 + $0x15c] sm:$0xff] }
  0xed   : > { %25914 = vmatmul.mubr.msk.f32.gmra.mrb[24].mxu0 %vm279_vm1, %v31592_v1 }
  0xee   : > { %25916 = vmatprep.mubr.msk.f32.mxu0 %vm279_vm1, %v31594_v15  ;;  %v31616_v15 = vld [vmem:[#allocation2 + $0x174] sm:$0xff] }
  0xf1   : > { %25917 = vmatmul.mubr.msk.f32.gmra.mrb[26].mxu0 %vm279_vm1, %v31600_v42 }
  0xf2   : > { %25919 = vmatprep.mubr.msk.f32.mxu0 %vm279_vm1, %v31602_v39  ;;  %v31625_v39 = vld [vmem:[%s36864_s1 + $0x1c] sm:$0x7] }
  0xf5   : > { %25920 = vmatmul.mubr.msk.f32.gmra.mrb[28].mxu0 %vm279_vm1, %v31608_v10 }
  0xf6   : > { %25922 = vmatprep.mubr.msk.f32.mxu0 %vm279_vm1, %v31610_v41 }
  0xf9   : > { %25923 = vmatmul.mubr.msk.f32.gmra.mrb[30].mxu0 %vm279_vm1, %v31616_v15 }
  0xfa   : > { %25927 = vmatprep.mubr.msk.f32.mxu0 %vm279_vm1, %v31142_v11  ;;  %v31639_v11 = vld [vmem:[#allocation2 + $0x60] sm:$0xff] }
  0xfb   : > { %37109 = vst [vmem:[#allocation39_spill] sm:$0xff] %v31639_v11 }
  0xfd   : > { %25928 = vmatmul.mubr.msk.f32.vlgmr.msra.gmra.mrb[0].mxu0 %vm279_vm1, %v31154_v13  ;;  %v31645_v13 = vld [vmem:[#allocation2 + $0x68] sm:$0xff] }
  0xfe   : > { %25976 = vmatpush3.msk.msra.mxu0 %vm625_vm0, %v31495_v12  ;;  %25930 = vmatprep.mubr.msk.f32.mxu0 %vm279_vm1, %v31180_v24  ;;  %37110 = vst [vmem:[#allocation40_spill] sm:$0xff] %v31645_v13  ;;  %v31647_v24 = vld [vmem:[#allocation2 + $0x78] sm:$0xff]  ;;  %v31663_v12 = vld [vmem:[#allocation2 + $0xa8] sm:$0xff] }
  0xff   : > { %26025 = vmatprep.subr.msk.mxu0 %vm625_vm0, %v31625_v39  ;;  %37111 = vst [vmem:[#allocation41_spill] sm:$0xff] %v31647_v24  ;;  %37115 = vst [vmem:[#allocation45_spill] sm:$0xff] %v31663_v12 }
 0x101   : > { %25931 = vmatmul.mubr.msk.f32.gmra.mrb[2].mxu0 %vm279_vm1, %v31187_v25  ;;  %v31653_v25 = vld [vmem:[#allocation2 + $0x80] sm:$0xff] }
 0x102   : > { %25933 = vmatprep.mubr.msk.f32.mxu0 %vm279_vm1, %v31189_v26  ;;  %37112 = vst [vmem:[#allocation42_spill] sm:$0xff] %v31653_v25  ;;  %v31655_v26 = vld [vmem:[#allocation2 + $0x90] sm:$0xff] }
 0x103   : > { %37113 = vst [vmem:[#allocation43_spill] sm:$0xff] %v31655_v26 }
 0x105   : > { %25934 = vmatmul.mubr.msk.f32.gmra.mrb[4].mxu0 %vm279_vm1, %v31201_v31  ;;  %v31661_v31 = vld [vmem:[#allocation2 + $0x98] sm:$0xff] }
 0x106   : > { %25936 = vmatprep.mubr.msk.f32.mxu0 %vm279_vm1, %v31639_v11  ;;  %37114 = vst [vmem:[#allocation44_spill] sm:$0xff] %v31661_v31  ;;  %v31751_v11 = vld [vmem:[%s36864_s1 + $0x20] sm:$0x7] }
 0x109   : > { %25937 = vmatmul.mubr.msk.f32.gmra.mrb[6].mxu0 %vm279_vm1, %v31645_v13  ;;  %v31671_v13 = vld [vmem:[#allocation2 + $0xc0] sm:$0xff] }
 0x10a   : > { %25939 = vmatprep.mubr.msk.f32.mxu0 %vm279_vm1, %v31647_v24  ;;  %v31669_v24 = vld [vmem:[#allocation2 + $0xb0] sm:$0xff]  ;;  %37117 = vst [vmem:[#allocation47_spill] sm:$0xff] %v31671_v13 }
 0x10b   : > { %37116 = vst [vmem:[#allocation46_spill] sm:$0xff] %v31669_v24 }
 0x10d   : > { %25940 = vmatmul.mubr.msk.f32.gmra.mrb[8].mxu0 %vm279_vm1, %v31653_v25  ;;  %v31679_v25 = vld [vmem:[#allocation2 + $0xd8] sm:$0xff] }
 0x10e   : > { %25942 = vmatprep.mubr.msk.f32.mxu0 %vm279_vm1, %v31655_v26  ;;  %v31677_v26 = vld [vmem:[#allocation2 + $0xc8] sm:$0xff]  ;;  %37119 = vst [vmem:[#allocation49_spill] sm:$0xff] %v31679_v25 }
 0x10f   : > { %37118 = vst [vmem:[#allocation48_spill] sm:$0xff] %v31677_v26 }
 0x111   : > { %25943 = vmatmul.mubr.msk.f32.gmra.mrb[10].mxu0 %vm279_vm1, %v31661_v31  ;;  %v31687_v31 = vld [vmem:[#allocation2 + $0xf0] sm:$0xff] }
 0x112   : > { %25945 = vmatprep.mubr.msk.f32.mxu0 %vm279_vm1, %v31663_v12  ;;  %v31685_v12 = vld [vmem:[#allocation2 + $0xe0] sm:$0xff]  ;;  %37121 = vst [vmem:[#allocation51_spill] sm:$0xff] %v31687_v31 }
 0x113   : > { %37120 = vst [vmem:[#allocation50_spill] sm:$0xff] %v31685_v12 }
 0x115   : > { %25946 = vmatmul.mubr.msk.f32.gmra.mrb[12].mxu0 %vm279_vm1, %v31669_v24  ;;  %v31695_v24 = vld [vmem:[#allocation2 + $0x108] sm:$0xff] }
 0x116   : > { %25948 = vmatprep.mubr.msk.f32.mxu0 %vm279_vm1, %v31671_v13  ;;  %v31693_v13 = vld [vmem:[#allocation2 + $0xf8] sm:$0xff]  ;;  %37123 = vst [vmem:[#allocation53_spill] sm:$0xff] %v31695_v24 }
 0x117   : > { %37122 = vst [vmem:[#allocation52_spill] sm:$0xff] %v31693_v13 }
 0x119   : > { %25949 = vmatmul.mubr.msk.f32.gmra.mrb[14].mxu0 %vm279_vm1, %v31677_v26  ;;  %v31703_v26 = vld [vmem:[#allocation2 + $0x120] sm:$0xff] }
 0x11a   : > { %25951 = vmatprep.mubr.msk.f32.mxu0 %vm279_vm1, %v31679_v25  ;;  %v31701_v25 = vld [vmem:[#allocation2 + $0x110] sm:$0xff]  ;;  %37125 = vst [vmem:[#allocation55_spill] sm:$0xff] %v31703_v26 }
 0x11b   : > { %37124 = vst [vmem:[#allocation54_spill] sm:$0xff] %v31701_v25 }
 0x11d   : > { %25952 = vmatmul.mubr.msk.f32.gmra.mrb[16].mxu0 %vm279_vm1, %v31685_v12  ;;  %v31711_v12 = vld [vmem:[#allocation2 + $0x138] sm:$0xff] }
 0x11e   : > { %25954 = vmatprep.mubr.msk.f32.mxu0 %vm279_vm1, %v31687_v31  ;;  %v31709_v31 = vld [vmem:[#allocation2 + $0x128] sm:$0xff]  ;;  %37127 = vst [vmem:[#allocation57_spill] sm:$0xff] %v31711_v12 }
 0x11f   : > { %37126 = vst [vmem:[#allocation56_spill] sm:$0xff] %v31709_v31 }
 0x121   : > { %25955 = vmatmul.mubr.msk.f32.gmra.mrb[18].mxu0 %vm279_vm1, %v31693_v13  ;;  %v31719_v13 = vld [vmem:[#allocation2 + $0x150] sm:$0xff] }
 0x122   : > { %25957 = vmatprep.mubr.msk.f32.mxu0 %vm279_vm1, %v31695_v24  ;;  %v31717_v24 = vld [vmem:[#allocation2 + $0x140] sm:$0xff]  ;;  %37129 = vst [vmem:[#allocation59_spill] sm:$0xff] %v31719_v13 }
 0x123   : > { %37128 = vst [vmem:[#allocation58_spill] sm:$0xff] %v31717_v24 }
 0x125   : > { %25958 = vmatmul.mubr.msk.f32.gmra.mrb[20].mxu0 %vm279_vm1, %v31701_v25  ;;  %v31727_v25 = vld [vmem:[#allocation2 + $0x168] sm:$0xff] }
 0x126   : > { %25960 = vmatprep.mubr.msk.f32.mxu0 %vm279_vm1, %v31703_v26  ;;  %v31725_v26 = vld [vmem:[#allocation2 + $0x158] sm:$0xff]  ;;  %37131 = vst [vmem:[#allocation61_spill] sm:$0xff] %v31727_v25 }
 0x127   : > { %37130 = vst [vmem:[#allocation60_spill] sm:$0xff] %v31725_v26 }
 0x129   : > { %25961 = vmatmul.mubr.msk.f32.gmra.mrb[22].mxu0 %vm279_vm1, %v31709_v31  ;;  %v31735_v31 = vld [vmem:[#allocation2 + $0x180] sm:$0xff] }
 0x12a   : > { %25963 = vmatprep.mubr.msk.f32.mxu0 %vm279_vm1, %v31711_v12  ;;  %v31733_v12 = vld [vmem:[#allocation2 + $0x170] sm:$0xff]  ;;  %37132 = vst [vmem:[#allocation62_spill] sm:$0xff] %v31735_v31 }
 0x12d   : > { %25964 = vmatmul.mubr.msk.f32.gmra.mrb[24].mxu0 %vm279_vm1, %v31717_v24  ;;  %v2739_v24 = vld [vmem:[#allocation2 + $0x19] sm:$0xff] }
 0x12e   : > { %25966 = vmatprep.mubr.msk.f32.mxu0 %vm279_vm1, %v31719_v13  ;;  %v31741_v13 = vld [vmem:[#allocation2 + $0x188] sm:$0xff] }
 0x12f   : > { %37133 = vst [vmem:[#allocation63_spill] sm:$0xff] %v31741_v13 }
 0x131   : > { %25967 = vmatmul.mubr.msk.f32.gmra.mrb[26].mxu0 %vm279_vm1, %v31725_v26  ;;  %v2740_v26 = vld [vmem:[#allocation2 + $0x21] sm:$0xff] }
 0x132   : > { %25969 = vmatprep.mubr.msk.f32.mxu0 %vm279_vm1, %v31727_v25  ;;  %v31746_v25 = vld [vmem:[#allocation2 + $0x31] sm:$0xff] }
 0x133   : > { %37134 = vst [vmem:[#allocation64_spill] sm:$0xff] %v31746_v25 }
 0x135   : > { %25970 = vmatmul.mubr.msk.f32.gmra.mrb[28].mxu0 %vm279_vm1, %v31733_v12 }
 0x136   : > { %25972 = vmatprep.mubr.msk.f32.mxu0 %vm279_vm1, %v31735_v31  ;;  %v31758_v31 = vld [vmem:[#allocation2 + $0x39] sm:$0xff] }
 0x137   : > { %37135 = vst [vmem:[#allocation65_spill] sm:$0xff] %v31758_v31 }
 0x139   : > { %25973 = vmatmul.mubr.msk.f32.gmra.mrb[30].mxu0 %vm279_vm1, %v31741_v13  ;;  %v31760_v13 = vld [vmem:[#allocation2 + $0x49] sm:$0xff] }
 0x13a   : > { %25977 = vmatprep.mubr.msk.f32.mxu0 %vm279_vm1, %v2739_v24  ;;  %37136 = vst [vmem:[#allocation66_spill] sm:$0xff] %v31760_v13  ;;  %v31768_v24 = vld [vmem:[#allocation2 + $0x51] sm:$0xff] }
 0x13b   : > { %37137 = vst [vmem:[#allocation67_spill] sm:$0xff] %v31768_v24 }
 0x13d   : > { %25978 = vmatmul.mubr.msk.f32.vlgmr.msra.gmra.mrb[0].mxu0 %vm279_vm1, %v2740_v26  ;;  %v31770_v26 = vld [vmem:[#allocation2 + $0x61] sm:$0xff] }
 0x13e   : > { %26026 = vmatpush3.msk.msra.mxu0 %vm625_vm0, %v31625_v39  ;;  %25980 = vmatprep.mubr.msk.f32.mxu0 %vm279_vm1, %v31746_v25  ;;  %37138 = vst [vmem:[#allocation68_spill] sm:$0xff] %v31770_v26  ;;  %v31776_v39 = vld [vmem:[#allocation2 + $0x69] sm:$0xff]  ;;  %v31778_v25 = vld [vmem:[#allocation2 + $0x79] sm:$0xff] }
 0x13f   : > { %26075 = vmatprep.subr.msk.mxu0 %vm625_vm0, %v31751_v11  ;;  %37139 = vst [vmem:[#allocation69_spill] sm:$0xff] %v31776_v39  ;;  %37140 = vst [vmem:[#allocation70_spill] sm:$0xff] %v31778_v25 }
 0x141   : > { %25981 = vmatmul.mubr.msk.f32.gmra.mrb[2].mxu0 %vm279_vm1, %v31758_v31  ;;  %v31786_v31 = vld [vmem:[#allocation2 + $0x91] sm:$0xff] }
 0x142   : > { %25983 = vmatprep.mubr.msk.f32.mxu0 %vm279_vm1, %v31760_v13  ;;  %v31784_v13 = vld [vmem:[#allocation2 + $0x81] sm:$0xff]  ;;  %37142 = vst [vmem:[#allocation72_spill] sm:$0xff] %v31786_v31 }
 0x143   : > { %37141 = vst [vmem:[#allocation71_spill] sm:$0xff] %v31784_v13 }
 0x145   : > { %25984 = vmatmul.mubr.msk.f32.gmra.mrb[4].mxu0 %vm279_vm1, %v31768_v24  ;;  %v31794_v24 = vld [vmem:[#allocation2 + $0xa9] sm:$0xff] }
 0x146   : > { %25986 = vmatprep.mubr.msk.f32.mxu0 %vm279_vm1, %v31770_v26  ;;  %v31792_v26 = vld [vmem:[#allocation2 + $0x99] sm:$0xff]  ;;  %37144 = vst [vmem:[#allocation74_spill] sm:$0xff] %v31794_v24 }
 0x147   : > { %37143 = vst [vmem:[#allocation73_spill] sm:$0xff] %v31792_v26 }
 0x149   : > { %25987 = vmatmul.mubr.msk.f32.gmra.mrb[6].mxu0 %vm279_vm1, %v31776_v39  ;;  %v31802_v39 = vld [vmem:[#allocation2 + $0xc1] sm:$0xff] }
 0x14a   : > { %25989 = vmatprep.mubr.msk.f32.mxu0 %vm279_vm1, %v31778_v25  ;;  %v31800_v25 = vld [vmem:[#allocation2 + $0xb1] sm:$0xff]  ;;  %37146 = vst [vmem:[#allocation76_spill] sm:$0xff] %v31802_v39 }
 0x14b   : > { %37145 = vst [vmem:[#allocation75_spill] sm:$0xff] %v31800_v25 }
 0x14d   : > { %25990 = vmatmul.mubr.msk.f32.gmra.mrb[8].mxu0 %vm279_vm1, %v31784_v13  ;;  %v31810_v13 = vld [vmem:[#allocation2 + $0xd9] sm:$0xff] }
 0x14e   : > { %25992 = vmatprep.mubr.msk.f32.mxu0 %vm279_vm1, %v31786_v31  ;;  %v31808_v31 = vld [vmem:[#allocation2 + $0xc9] sm:$0xff]  ;;  %37148 = vst [vmem:[#allocation78_spill] sm:$0xff] %v31810_v13 }
 0x14f   : > { %37147 = vst [vmem:[#allocation77_spill] sm:$0xff] %v31808_v31 }
 0x151   : > { %25993 = vmatmul.mubr.msk.f32.gmra.mrb[10].mxu0 %vm279_vm1, %v31792_v26  ;;  %v31818_v26 = vld [vmem:[#allocation2 + $0xf1] sm:$0xff] }
 0x152   : > { %25995 = vmatprep.mubr.msk.f32.mxu0 %vm279_vm1, %v31794_v24  ;;  %v31816_v24 = vld [vmem:[#allocation2 + $0xe1] sm:$0xff]  ;;  %37150 = vst [vmem:[#allocation80_spill] sm:$0xff] %v31818_v26 }
 0x153   : > { %37149 = vst [vmem:[#allocation79_spill] sm:$0xff] %v31816_v24 }
 0x155   : > { %25996 = vmatmul.mubr.msk.f32.gmra.mrb[12].mxu0 %vm279_vm1, %v31800_v25  ;;  %v31826_v25 = vld [vmem:[#allocation2 + $0x109] sm:$0xff] }
 0x156   : > { %25998 = vmatprep.mubr.msk.f32.mxu0 %vm279_vm1, %v31802_v39  ;;  %v31824_v39 = vld [vmem:[#allocation2 + $0xf9] sm:$0xff]  ;;  %37152 = vst [vmem:[#allocation82_spill] sm:$0xff] %v31826_v25 }
 0x157   : > { %37151 = vst [vmem:[#allocation81_spill] sm:$0xff] %v31824_v39 }
 0x159   : > { %25999 = vmatmul.mubr.msk.f32.gmra.mrb[14].mxu0 %vm279_vm1, %v31808_v31  ;;  %v31834_v31 = vld [vmem:[#allocation2 + $0x121] sm:$0xff] }
 0x15a   : > { %26001 = vmatprep.mubr.msk.f32.mxu0 %vm279_vm1, %v31810_v13  ;;  %v31832_v13 = vld [vmem:[#allocation2 + $0x111] sm:$0xff]  ;;  %37154 = vst [vmem:[#allocation84_spill] sm:$0xff] %v31834_v31 }
 0x15b   : > { %37153 = vst [vmem:[#allocation83_spill] sm:$0xff] %v31832_v13 }
 0x15d   : > { %26002 = vmatmul.mubr.msk.f32.gmra.mrb[16].mxu0 %vm279_vm1, %v31816_v24  ;;  %v31842_v24 = vld [vmem:[#allocation2 + $0x139] sm:$0xff] }
 0x15e   : > { %26004 = vmatprep.mubr.msk.f32.mxu0 %vm279_vm1, %v31818_v26  ;;  %v31840_v26 = vld [vmem:[#allocation2 + $0x129] sm:$0xff]  ;;  %37156 = vst [vmem:[#allocation86_spill] sm:$0xff] %v31842_v24 }
 0x15f   : > { %37155 = vst [vmem:[#allocation85_spill] sm:$0xff] %v31840_v26 }
 0x161   : > { %26005 = vmatmul.mubr.msk.f32.gmra.mrb[18].mxu0 %vm279_vm1, %v31824_v39  ;;  %v31850_v39 = vld [vmem:[#allocation2 + $0x151] sm:$0xff] }
 0x162   : > { %26007 = vmatprep.mubr.msk.f32.mxu0 %vm279_vm1, %v31826_v25  ;;  %v31848_v25 = vld [vmem:[#allocation2 + $0x141] sm:$0xff]  ;;  %37157 = vst [vmem:[#allocation87_spill] sm:$0xff] %v31850_v39 }
 0x165   : > { %26008 = vmatmul.mubr.msk.f32.gmra.mrb[20].mxu0 %vm279_vm1, %v31832_v13  ;;  %v31858_v13 = vld [vmem:[#allocation2 + $0x169] sm:$0xff] }
 0x166   : > { %26010 = vmatprep.mubr.msk.f32.mxu0 %vm279_vm1, %v31834_v31  ;;  %v31856_v31 = vld [vmem:[#allocation2 + $0x159] sm:$0xff]  ;;  %37158 = vst [vmem:[#allocation88_spill] sm:$0xff] %v31858_v13 }
 0x169   : > { %26011 = vmatmul.mubr.msk.f32.gmra.mrb[22].mxu0 %vm279_vm1, %v31840_v26  ;;  %v31866_v26 = vld [vmem:[#allocation2 + $0x181] sm:$0xff] }
 0x16a   : > { %26013 = vmatprep.mubr.msk.f32.mxu0 %vm279_vm1, %v31842_v24  ;;  %v31864_v24 = vld [vmem:[#allocation2 + $0x171] sm:$0xff] }
 0x16d   : > { %26014 = vmatmul.mubr.msk.f32.gmra.mrb[24].mxu0 %vm279_vm1, %v31848_v25 }
 0x16e   : > { %26016 = vmatprep.mubr.msk.f32.mxu0 %vm279_vm1, %v31850_v39  ;;  %v31872_v39 = vld [vmem:[#allocation2 + $0x189] sm:$0xff] }
 0x171   : > { %26017 = vmatmul.mubr.msk.f32.gmra.mrb[26].mxu0 %vm279_vm1, %v31856_v31 }
 0x172   : > { %26019 = vmatprep.mubr.msk.f32.mxu0 %vm279_vm1, %v31858_v13  ;;  %v22156_v13 = vld [vmem:[%s36864_s1 + $0x24] sm:$0x7] }
 0x175   : > { %26020 = vmatmul.mubr.msk.f32.gmra.mrb[28].mxu0 %vm279_vm1, %v31864_v24 }
 0x176   : > { %26022 = vmatprep.mubr.msk.f32.mxu0 %vm279_vm1, %v31866_v26 }
 0x179   : > { %26023 = vmatmul.mubr.msk.f32.gmra.mrb[30].mxu0 %vm279_vm1, %v31872_v39 }
 0x17a   : > { %26027 = vmatprep.mubr.msk.f32.mxu0 %vm279_vm1, %v31217_v40  ;;  %v31940_v40 = vld [vmem:[#allocation2 + $0x182] sm:$0xff] }
 0x17d   : > { %26028 = vmatmul.mubr.msk.f32.vlgmr.msra.gmra.mrb[0].mxu0 %vm279_vm1, %v31236_v44  ;;  %v31946_v44 = vld [vmem:[#allocation2 + $0x18a] sm:$0xff] }
 0x17e   : > { %26076 = vmatpush3.msk.msra.mxu0 %vm625_vm0, %v31751_v11  ;;  %26030 = vmatprep.mubr.msk.f32.mxu0 %vm279_vm1, %v31238_v45  ;;  %v22190_v45 = vld [vmem:[%s36864_s1 + $0x28] sm:$0x7]  ;;  %v37200_v11 = vld [vmem:[#allocation46_spill] sm:$0xff] }
 0x17f   : > { %26125 = vmatprep.subr.msk.mxu0 %vm625_vm0, %v22156_v13 }
 0x181   : > { %26031 = vmatmul.mubr.msk.f32.gmra.mrb[2].mxu0 %vm279_vm1, %v31246_v46  ;;  %v37159_v46 = vld [vmem:[#allocation5_spill] sm:$0xff] }
 0x182   : > { %26033 = vmatprep.mubr.msk.f32.mxu0 %vm279_vm1, %v31248_v47  ;;  %v37160_v47 = vld [vmem:[#allocation6_spill] sm:$0xff] }
 0x185   : > { %26034 = vmatmul.mubr.msk.f32.gmra.mrb[4].mxu0 %vm279_vm1, %v31254_v48  ;;  %v37161_v48 = vld [vmem:[#allocation7_spill] sm:$0xff] }
 0x186   : > { %26036 = vmatprep.mubr.msk.f32.mxu0 %vm279_vm1, %v31256_v49  ;;  %v37162_v49 = vld [vmem:[#allocation8_spill] sm:$0xff] }
 0x189   : > { %26037 = vmatmul.mubr.msk.f32.gmra.mrb[6].mxu0 %vm279_vm1, %v31262_v50  ;;  %v37163_v50 = vld [vmem:[#allocation9_spill] sm:$0xff] }
 0x18a   : > { %26039 = vmatprep.mubr.msk.f32.mxu0 %vm279_vm1, %v31264_v51  ;;  %v37164_v51 = vld [vmem:[#allocation10_spill] sm:$0xff] }
 0x18d   : > { %26040 = vmatmul.mubr.msk.f32.gmra.mrb[8].mxu0 %vm279_vm1, %v31270_v52  ;;  %v37165_v52 = vld [vmem:[#allocation11_spill] sm:$0xff] }
 0x18e   : > { %26042 = vmatprep.mubr.msk.f32.mxu0 %vm279_vm1, %v31272_v53  ;;  %v427_v53 = vld [vmem:[%s31131_s11 + $0xf0] sm:$0xff] }
 0x18f   : > { %460 = vst.msk [vmem:[#allocation2 + $0x19a] sm:$0xff] %vm279_vm1, %v427_v53  ;;  %v37210_v53 = vld [vmem:[#allocation56_spill] sm:$0xff] }
 0x191   : > { %26043 = vmatmul.mubr.msk.f32.gmra.mrb[10].mxu0 %vm279_vm1, %v31278_v54  ;;  %v428_v54 = vld [vmem:[%s31131_s11 + $0xf8] sm:$0xff]  ;;  %s278_s11 = scalar_lea.vmem %s36870_s7, %s23773_s8 }
 0x192   : > { %26045 = vmatprep.mubr.msk.f32.mxu0 %vm279_vm1, %v31280_v55  ;;  %461 = vst.msk [vmem:[#allocation2 + $0x1a2] sm:$0xff] %vm279_vm1, %v428_v54  ;;  %v37166_v55 = vld [vmem:[#allocation12_spill] sm:$0xff]  ;;  %v37211_v54 = vld [vmem:[#allocation57_spill] sm:$0xff] }
 0x195   : > { %26046 = vmatmul.mubr.msk.f32.gmra.mrb[12].mxu0 %vm279_vm1, %v31286_v56  ;;  %v32017_v56 = vld [vmem:[#allocation2 + $0x183] sm:$0xff] }
 0x196   : > { %26048 = vmatprep.mubr.msk.f32.mxu0 %vm279_vm1, %v31288_v57  ;;  %v37167_v57 = vld [vmem:[#allocation13_spill] sm:$0xff] }
 0x199   : > { %26049 = vmatmul.mubr.msk.f32.gmra.mrb[14].mxu0 %vm279_vm1, %v31294_v58  ;;  %v32023_v58 = vld [vmem:[#allocation2 + $0x18b] sm:$0xff] }
 0x19a   : > { %26051 = vmatprep.mubr.msk.f32.mxu0 %vm279_vm1, %v31296_v59  ;;  %v37168_v59 = vld [vmem:[#allocation14_spill] sm:$0xff] }
 0x19d   : > { %26052 = vmatmul.mubr.msk.f32.gmra.mrb[16].mxu0 %vm279_vm1, %v31302_v60  ;;  %v22224_v60 = vld [vmem:[%s36864_s1 + $0x2c] sm:$0x7] }
 0x19e   : > { %26054 = vmatprep.mubr.msk.f32.mxu0 %vm279_vm1, %v31304_v61  ;;  %v37169_v61 = vld [vmem:[#allocation15_spill] sm:$0xff] }
 0x1a1   : > { %26055 = vmatmul.mubr.msk.f32.gmra.mrb[18].mxu0 %vm279_vm1, %v31310_v62  ;;  %v37170_v62 = vld [vmem:[#allocation16_spill] sm:$0xff] }
 0x1a2   : > { %26057 = vmatprep.mubr.msk.f32.mxu0 %vm279_vm1, %v31312_v63  ;;  %v37171_v63 = vld [vmem:[#allocation17_spill] sm:$0xff] }
 0x1a5   : > { %26058 = vmatmul.mubr.msk.f32.gmra.mrb[20].mxu0 %vm279_vm1, %v31318_v0  ;;  %v37172_v0 = vld [vmem:[#allocation18_spill] sm:$0xff] }
 0x1a6   : > { %26060 = vmatprep.mubr.msk.f32.mxu0 %vm279_vm1, %v31320_v2  ;;  %v37173_v2 = vld [vmem:[#allocation19_spill] sm:$0xff] }
 0x1a9   : > { %26061 = vmatmul.mubr.msk.f32.gmra.mrb[22].mxu0 %vm279_vm1, %v31326_v3  ;;  %v37174_v3 = vld [vmem:[#allocation20_spill] sm:$0xff] }
 0x1aa   : > { %26063 = vmatprep.mubr.msk.f32.mxu0 %vm279_vm1, %v31328_v4  ;;  %v37175_v4 = vld [vmem:[#allocation21_spill] sm:$0xff] }
 0x1ad   : > { %26064 = vmatmul.mubr.msk.f32.gmra.mrb[24].mxu0 %vm279_vm1, %v31334_v5  ;;  %v37176_v5 = vld [vmem:[#allocation22_spill] sm:$0xff] }
 0x1ae   : > { %26066 = vmatprep.mubr.msk.f32.mxu0 %vm279_vm1, %v31336_v6  ;;  %v37177_v6 = vld [vmem:[#allocation23_spill] sm:$0xff] }
 0x1b1   : > { %26067 = vmatmul.mubr.msk.f32.gmra.mrb[26].mxu0 %vm279_vm1, %v31342_v7  ;;  %v37178_v7 = vld [vmem:[#allocation24_spill] sm:$0xff] }
 0x1b2   : > { %26069 = vmatprep.mubr.msk.f32.mxu0 %vm279_vm1, %v31344_v8  ;;  %v37179_v8 = vld [vmem:[#allocation25_spill] sm:$0xff] }
 0x1b5   : > { %26070 = vmatmul.mubr.msk.f32.gmra.mrb[28].mxu0 %vm279_vm1, %v31350_v9  ;;  %v37180_v9 = vld [vmem:[#allocation26_spill] sm:$0xff] }
 0x1b6   : > { %26072 = vmatprep.mubr.msk.f32.mxu0 %vm279_vm1, %v31940_v40 }
 0x1b9   : > { %26073 = vmatmul.mubr.msk.f32.gmra.mrb[30].mxu0 %vm279_vm1, %v31946_v44 }
 0x1ba   : > { %26077 = vmatprep.mubr.msk.f32.mxu0 %vm279_vm1, %v31355_v14  ;;  %v37181_v14 = vld [vmem:[#allocation27_spill] sm:$0xff] }
 0x1bd   : > { %26078 = vmatmul.mubr.msk.f32.vlgmr.msra.gmra.mrb[0].mxu0 %vm279_vm1, %v31367_v16  ;;  %v37182_v16 = vld [vmem:[#allocation28_spill] sm:$0xff] }
 0x1be   : > { %26126 = vmatpush3.msk.msra.mxu0 %vm625_vm0, %v22156_v13  ;;  %26080 = vmatprep.mubr.msk.f32.mxu0 %vm279_vm1, %v31369_v17  ;;  %v37183_v17 = vld [vmem:[#allocation29_spill] sm:$0xff]  ;;  %v37201_v13 = vld [vmem:[#allocation47_spill] sm:$0xff] }
 0x1bf   : > { %26175 = vmatprep.subr.msk.mxu0 %vm625_vm0, %v22190_v45 }
 0x1c1   : > { %26081 = vmatmul.mubr.msk.f32.gmra.mrb[2].mxu0 %vm279_vm1, %v31377_v18  ;;  %v37184_v18 = vld [vmem:[#allocation30_spill] sm:$0xff] }
 0x1c2   : > { %26083 = vmatprep.mubr.msk.f32.mxu0 %vm279_vm1, %v31379_v19  ;;  %v37185_v19 = vld [vmem:[#allocation31_spill] sm:$0xff] }
 0x1c5   : > { %26084 = vmatmul.mubr.msk.f32.gmra.mrb[4].mxu0 %vm279_vm1, %v31385_v20  ;;  %v37186_v20 = vld [vmem:[#allocation32_spill] sm:$0xff] }
 0x1c6   : > { %26086 = vmatprep.mubr.msk.f32.mxu0 %vm279_vm1, %v31387_v21  ;;  %v37187_v21 = vld [vmem:[#allocation33_spill] sm:$0xff] }
 0x1c9   : > { %26087 = vmatmul.mubr.msk.f32.gmra.mrb[6].mxu0 %vm279_vm1, %v31393_v22  ;;  %v37188_v22 = vld [vmem:[#allocation34_spill] sm:$0xff] }
 0x1ca   : > { %26089 = vmatprep.mubr.msk.f32.mxu0 %vm279_vm1, %v31395_v23  ;;  %v37189_v23 = vld [vmem:[#allocation35_spill] sm:$0xff] }
 0x1cd   : > { %26090 = vmatmul.mubr.msk.f32.gmra.mrb[8].mxu0 %vm279_vm1, %v31401_v27  ;;  %v37190_v27 = vld [vmem:[#allocation36_spill] sm:$0xff] }
 0x1ce   : > { %26092 = vmatprep.mubr.msk.f32.mxu0 %vm279_vm1, %v31403_v28  ;;  %v37191_v28 = vld [vmem:[#allocation37_spill] sm:$0xff] }
 0x1d1   : > { %26093 = vmatmul.mubr.msk.f32.gmra.mrb[10].mxu0 %vm279_vm1, %v31409_v29  ;;  %v37192_v29 = vld [vmem:[#allocation38_spill] sm:$0xff] }
 0x1d2   : > { %26095 = vmatprep.mubr.msk.f32.mxu0 %vm279_vm1, %v31411_v30  ;;  %v32090_v30 = vld [vmem:[#allocation2 + $0x184] sm:$0xff] }
 0x1d5   : > { %26096 = vmatmul.mubr.msk.f32.gmra.mrb[12].mxu0 %vm279_vm1, %v31417_v32  ;;  %v4299_v32 = vld [vmem:[#allocation2 + $0x30] sm:$0xff] }
 0x1d6   : > { %26098 = vmatprep.mubr.msk.f32.mxu0 %vm279_vm1, %v31419_v33  ;;  %v4300_v33 = vld [vmem:[#allocation2 + $0x38] sm:$0xff] }
 0x1d9   : > { %26099 = vmatmul.mubr.msk.f32.gmra.mrb[14].mxu0 %vm279_vm1, %v31425_v34  ;;  %v32101_v34 = vld [vmem:[#allocation2 + $0x48] sm:$0xff] }
 0x1da   : > { %26101 = vmatprep.mubr.msk.f32.mxu0 %vm279_vm1, %v31427_v35  ;;  %v22258_v35 = vld [vmem:[%s36864_s1 + $0x30] sm:$0x7] }
 0x1dd   : > { %26102 = vmatmul.mubr.msk.f32.gmra.mrb[16].mxu0 %vm279_vm1, %v31433_v36  ;;  %v32110_v36 = vld [vmem:[#allocation2 + $0x50] sm:$0xff] }
 0x1de   : > { %26104 = vmatprep.mubr.msk.f32.mxu0 %vm279_vm1, %v31435_v37  ;;  %v37193_v37 = vld [vmem:[#allocation39_spill] sm:$0xff] }
 0x1e1   : > { %26105 = vmatmul.mubr.msk.f32.gmra.mrb[18].mxu0 %vm279_vm1, %v31441_v38  ;;  %v37194_v38 = vld [vmem:[#allocation40_spill] sm:$0xff] }
 0x1e2   : > { %26107 = vmatprep.mubr.msk.f32.mxu0 %vm279_vm1, %v37159_v46  ;;  %v37203_v46 = vld [vmem:[#allocation49_spill] sm:$0xff] }
 0x1e5   : > { %26108 = vmatmul.mubr.msk.f32.gmra.mrb[20].mxu0 %vm279_vm1, %v37160_v47  ;;  %v37204_v47 = vld [vmem:[#allocation50_spill] sm:$0xff] }
 0x1e6   : > { %26110 = vmatprep.mubr.msk.f32.mxu0 %vm279_vm1, %v37161_v48  ;;  %v37205_v48 = vld [vmem:[#allocation51_spill] sm:$0xff] }
 0x1e9   : > { %26111 = vmatmul.mubr.msk.f32.gmra.mrb[22].mxu0 %vm279_vm1, %v37162_v49  ;;  %v37206_v49 = vld [vmem:[#allocation52_spill] sm:$0xff] }
 0x1ea   : > { %26113 = vmatprep.mubr.msk.f32.mxu0 %vm279_vm1, %v37163_v50  ;;  %v37207_v50 = vld [vmem:[#allocation53_spill] sm:$0xff] }
 0x1ed   : > { %26114 = vmatmul.mubr.msk.f32.gmra.mrb[24].mxu0 %vm279_vm1, %v37164_v51  ;;  %v37208_v51 = vld [vmem:[#allocation54_spill] sm:$0xff] }
 0x1ee   : > { %26116 = vmatprep.mubr.msk.f32.mxu0 %vm279_vm1, %v37165_v52  ;;  %v37209_v52 = vld [vmem:[#allocation55_spill] sm:$0xff] }
 0x1f1   : > { %26117 = vmatmul.mubr.msk.f32.gmra.mrb[26].mxu0 %vm279_vm1, %v31477_v43  ;;  %v37196_v43 = vld [vmem:[#allocation42_spill] sm:$0xff] }
 0x1f2   : > { %26119 = vmatprep.mubr.msk.f32.mxu0 %vm279_vm1, %v37166_v55  ;;  %v37212_v55 = vld [vmem:[#allocation58_spill] sm:$0xff] }
 0x1f5   : > { %26120 = vmatmul.mubr.msk.f32.gmra.mrb[28].mxu0 %vm279_vm1, %v37167_v57  ;;  %v37213_v57 = vld [vmem:[#allocation59_spill] sm:$0xff] }
 0x1f6   : > { %26122 = vmatprep.mubr.msk.f32.mxu0 %vm279_vm1, %v32017_v56 }
 0x1f9   : > { %26123 = vmatmul.mubr.msk.f32.gmra.mrb[30].mxu0 %vm279_vm1, %v32023_v58 }
 0x1fa   : > { %26127 = vmatprep.mubr.msk.f32.mxu0 %vm279_vm1, %v37168_v59  ;;  %v37214_v59 = vld [vmem:[#allocation60_spill] sm:$0xff] }
 0x1fd   : > { %26128 = vmatmul.mubr.msk.f32.vlgmr.msra.gmra.mrb[0].mxu0 %vm279_vm1, %v37169_v61  ;;  %v37216_v61 = vld [vmem:[#allocation62_spill] sm:$0xff] }
 0x1fe   : > { %26176 = vmatpush3.msk.msra.mxu0 %vm625_vm0, %v22190_v45  ;;  %26130 = vmatprep.mubr.msk.f32.mxu0 %vm279_vm1, %v37170_v62  ;;  %v37202_v45 = vld [vmem:[#allocation48_spill] sm:$0xff]  ;;  %v32165_v62 = vld [vmem:[#allocation2 + $0x198] sm:$0xff] }
 0x1ff   : > { %26225 = vmatprep.subr.msk.mxu0 %vm625_vm0, %v22224_v60 }
 0x201   : > { %26131 = vmatmul.mubr.msk.f32.gmra.mrb[2].mxu0 %vm279_vm1, %v37171_v63  ;;  %v37217_v63 = vld [vmem:[#allocation63_spill] sm:$0xff] }
 0x202   : > { %26133 = vmatprep.mubr.msk.f32.mxu0 %vm279_vm1, %v37172_v0  ;;  %v32171_v0 = vld [vmem:[#allocation2 + $0x1a0] sm:$0xff] }
 0x205   : > { %26134 = vmatmul.mubr.msk.f32.gmra.mrb[4].mxu0 %vm279_vm1, %v37173_v2  ;;  %v37218_v2 = vld [vmem:[#allocation64_spill] sm:$0xff] }
 0x206   : > { %26136 = vmatprep.mubr.msk.f32.mxu0 %vm279_vm1, %v37174_v3  ;;  %v37219_v3 = vld [vmem:[#allocation65_spill] sm:$0xff] }
 0x209   : > { %26137 = vmatmul.mubr.msk.f32.gmra.mrb[6].mxu0 %vm279_vm1, %v37175_v4  ;;  %v37220_v4 = vld [vmem:[#allocation66_spill] sm:$0xff] }
 0x20a   : > { %26139 = vmatprep.mubr.msk.f32.mxu0 %vm279_vm1, %v37176_v5  ;;  %v37221_v5 = vld [vmem:[#allocation67_spill] sm:$0xff] }
 0x20d   : > { %26140 = vmatmul.mubr.msk.f32.gmra.mrb[8].mxu0 %vm279_vm1, %v37177_v6  ;;  %v37222_v6 = vld [vmem:[#allocation68_spill] sm:$0xff] }
 0x20e   : > { %26142 = vmatprep.mubr.msk.f32.mxu0 %vm279_vm1, %v37178_v7  ;;  %v37223_v7 = vld [vmem:[#allocation69_spill] sm:$0xff] }
 0x211   : > { %26143 = vmatmul.mubr.msk.f32.gmra.mrb[10].mxu0 %vm279_vm1, %v37179_v8  ;;  %v37224_v8 = vld [vmem:[#allocation70_spill] sm:$0xff] }
 0x212   : > { %26145 = vmatprep.mubr.msk.f32.mxu0 %vm279_vm1, %v37180_v9  ;;  %v37225_v9 = vld [vmem:[#allocation71_spill] sm:$0xff] }
 0x215   : > { %26146 = vmatmul.mubr.msk.f32.gmra.mrb[12].mxu0 %vm279_vm1, %v37181_v14  ;;  %v37226_v14 = vld [vmem:[#allocation72_spill] sm:$0xff] }
 0x216   : > { %26148 = vmatprep.mubr.msk.f32.mxu0 %vm279_vm1, %v37182_v16  ;;  %v37227_v16 = vld [vmem:[#allocation73_spill] sm:$0xff] }
 0x219   : > { %26149 = vmatmul.mubr.msk.f32.gmra.mrb[14].mxu0 %vm279_vm1, %v37183_v17  ;;  %v37228_v17 = vld [vmem:[#allocation74_spill] sm:$0xff] }
 0x21a   : > { %26151 = vmatprep.mubr.msk.f32.mxu0 %vm279_vm1, %v37184_v18  ;;  %v37229_v18 = vld [vmem:[#allocation75_spill] sm:$0xff] }
 0x21d   : > { %26152 = vmatmul.mubr.msk.f32.gmra.mrb[16].mxu0 %vm279_vm1, %v37185_v19  ;;  %v37230_v19 = vld [vmem:[#allocation76_spill] sm:$0xff] }
 0x21e   : > { %26154 = vmatprep.mubr.msk.f32.mxu0 %vm279_vm1, %v37186_v20  ;;  %v37231_v20 = vld [vmem:[#allocation77_spill] sm:$0xff] }
 0x221   : > { %26155 = vmatmul.mubr.msk.f32.gmra.mrb[18].mxu0 %vm279_vm1, %v37187_v21  ;;  %v37232_v21 = vld [vmem:[#allocation78_spill] sm:$0xff] }
 0x222   : > { %26157 = vmatprep.mubr.msk.f32.mxu0 %vm279_vm1, %v37188_v22  ;;  %v37233_v22 = vld [vmem:[#allocation79_spill] sm:$0xff] }
 0x225   : > { %26158 = vmatmul.mubr.msk.f32.gmra.mrb[20].mxu0 %vm279_vm1, %v37189_v23  ;;  %v37234_v23 = vld [vmem:[#allocation80_spill] sm:$0xff] }
 0x226   : > { %26160 = vmatprep.mubr.msk.f32.mxu0 %vm279_vm1, %v37190_v27  ;;  %v37235_v27 = vld [vmem:[#allocation81_spill] sm:$0xff] }
 0x229   : > { %26161 = vmatmul.mubr.msk.f32.gmra.mrb[22].mxu0 %vm279_vm1, %v31592_v1  ;;  %v32096_v1 = vld [vmem:[#allocation2 + $0x18c] sm:$0xff] }
 0x22a   : > { %26163 = vmatprep.mubr.msk.f32.mxu0 %vm279_vm1, %v37191_v28  ;;  %v37236_v28 = vld [vmem:[#allocation82_spill] sm:$0xff] }
 0x22d   : > { %26164 = vmatmul.mubr.msk.f32.gmra.mrb[24].mxu0 %vm279_vm1, %v31600_v42  ;;  %v37195_v42 = vld [vmem:[#allocation41_spill] sm:$0xff] }
 0x22e   : > { %26166 = vmatprep.mubr.msk.f32.mxu0 %vm279_vm1, %v37192_v29  ;;  %v37237_v29 = vld [vmem:[#allocation83_spill] sm:$0xff] }
 0x231   : > { %26167 = vmatmul.mubr.msk.f32.gmra.mrb[26].mxu0 %vm279_vm1, %v31608_v10  ;;  %v37197_v10 = vld [vmem:[#allocation43_spill] sm:$0xff] }
 0x232   : > { %26169 = vmatprep.mubr.msk.f32.mxu0 %vm279_vm1, %v31610_v41  ;;  %v37198_v41 = vld [vmem:[#allocation44_spill] sm:$0xff] }
 0x235   : > { %26170 = vmatmul.mubr.msk.f32.gmra.mrb[28].mxu0 %vm279_vm1, %v31616_v15  ;;  %v37199_v15 = vld [vmem:[#allocation45_spill] sm:$0xff] }
 0x236   : > { %26172 = vmatprep.mubr.msk.f32.mxu0 %vm279_vm1, %v32090_v30 }
 0x239   : > { %26173 = vmatmul.mubr.msk.f32.gmra.mrb[30].mxu0 %vm279_vm1, %v32096_v1 }
 0x23a   : > { %26177 = vmatprep.mubr.msk.f32.mxu0 %vm279_vm1, %v4299_v32  ;;  %v37238_v32 = vld [vmem:[#allocation84_spill] sm:$0xff] }
 0x23d   : > { %26178 = vmatmul.mubr.msk.f32.vlgmr.msra.gmra.mrb[0].mxu0 %vm279_vm1, %v4300_v33  ;;  %v37239_v33 = vld [vmem:[#allocation85_spill] sm:$0xff] }
 0x23e   : > { %26226 = vmatpush3.msk.msra.mxu0 %vm625_vm0, %v22224_v60  ;;  %26180 = vmatprep.mubr.msk.f32.mxu0 %vm279_vm1, %v32101_v34  ;;  %v37215_v60 = vld [vmem:[#allocation61_spill] sm:$0xff] }
 0x23f   : > { %26275 = vmatprep.subr.msk.mxu0 %vm625_vm0, %v22258_v35 }
 0x241   : > { %26181 = vmatmul.mubr.msk.f32.gmra.mrb[2].mxu0 %vm279_vm1, %v32110_v36 }
 0x242   : > { %26183 = vmatprep.mubr.msk.f32.mxu0 %vm279_vm1, %v37193_v37  ;;  %v37241_v37 = vld [vmem:[#allocation87_spill] sm:$0xff] }
 0x245   : > { %26184 = vmatmul.mubr.msk.f32.gmra.mrb[4].mxu0 %vm279_vm1, %v37194_v38  ;;  %v37242_v38 = vld [vmem:[#allocation88_spill] sm:$0xff] }
 0x246   : > { %26186 = vmatprep.mubr.msk.f32.mxu0 %vm279_vm1, %v37195_v42  ;;  %v32238_v42 = vld [vmem:[#allocation2 + $0x199] sm:$0xff] }
 0x249   : > { %26187 = vmatmul.mubr.msk.f32.gmra.mrb[6].mxu0 %vm279_vm1, %v37196_v43  ;;  %v32249_v43 = vld [vmem:[#allocation2 + $0x4a] sm:$0xff] }
 0x24a   : > { %26189 = vmatprep.mubr.msk.f32.mxu0 %vm279_vm1, %v37197_v10  ;;  %v32262_v10 = vld [vmem:[#allocation2 + $0x62] sm:$0xff] }
 0x24d   : > { %26190 = vmatmul.mubr.msk.f32.gmra.mrb[8].mxu0 %vm279_vm1, %v37198_v41  ;;  %v32270_v41 = vld [vmem:[#allocation2 + $0x6a] sm:$0xff] }
 0x24e   : > { %26192 = vmatprep.mubr.msk.f32.mxu0 %vm279_vm1, %v37199_v15  ;;  %v32272_v15 = vld [vmem:[#allocation2 + $0x7a] sm:$0xff] }
 0x251   : > { %26193 = vmatmul.mubr.msk.f32.gmra.mrb[10].mxu0 %vm279_vm1, %v37200_v11  ;;  %v32278_v11 = vld [vmem:[#allocation2 + $0x82] sm:$0xff] }
 0x252   : > { %26195 = vmatprep.mubr.msk.f32.mxu0 %vm279_vm1, %v37201_v13  ;;  %v32280_v13 = vld [vmem:[#allocation2 + $0x92] sm:$0xff] }
 0x255   : > { %26196 = vmatmul.mubr.msk.f32.gmra.mrb[12].mxu0 %vm279_vm1, %v37202_v45  ;;  %v32286_v45 = vld [vmem:[#allocation2 + $0x9a] sm:$0xff] }
 0x256   : > { %26198 = vmatprep.mubr.msk.f32.mxu0 %vm279_vm1, %v37203_v46  ;;  %v32288_v46 = vld [vmem:[#allocation2 + $0xaa] sm:$0xff] }
 0x259   : > { %26199 = vmatmul.mubr.msk.f32.gmra.mrb[14].mxu0 %vm279_vm1, %v37204_v47  ;;  %v32294_v47 = vld [vmem:[#allocation2 + $0xb2] sm:$0xff] }
 0x25a   : > { %26201 = vmatprep.mubr.msk.f32.mxu0 %vm279_vm1, %v37205_v48  ;;  %v32296_v48 = vld [vmem:[#allocation2 + $0xc2] sm:$0xff] }
 0x25d   : > { %26202 = vmatmul.mubr.msk.f32.gmra.mrb[16].mxu0 %vm279_vm1, %v37206_v49  ;;  %v32302_v49 = vld [vmem:[#allocation2 + $0xca] sm:$0xff] }
 0x25e   : > { %26204 = vmatprep.mubr.msk.f32.mxu0 %vm279_vm1, %v37207_v50  ;;  %v32304_v50 = vld [vmem:[#allocation2 + $0xda] sm:$0xff] }
 0x261   : > { %26205 = vmatmul.mubr.msk.f32.gmra.mrb[18].mxu0 %vm279_vm1, %v37208_v51  ;;  %v32310_v51 = vld [vmem:[#allocation2 + $0xe2] sm:$0xff] }
 0x262   : > { %26207 = vmatprep.mubr.msk.f32.mxu0 %vm279_vm1, %v37209_v52  ;;  %v32312_v52 = vld [vmem:[#allocation2 + $0xf2] sm:$0xff] }
 0x265   : > { %26208 = vmatmul.mubr.msk.f32.gmra.mrb[20].mxu0 %vm279_vm1, %v37210_v53  ;;  %v32318_v53 = vld [vmem:[#allocation2 + $0xfa] sm:$0xff] }
 0x266   : > { %26210 = vmatprep.mubr.msk.f32.mxu0 %vm279_vm1, %v37211_v54  ;;  %v32320_v54 = vld [vmem:[#allocation2 + $0x10a] sm:$0xff] }
 0x269   : > { %26211 = vmatmul.mubr.msk.f32.gmra.mrb[22].mxu0 %vm279_vm1, %v37212_v55  ;;  %v32326_v55 = vld [vmem:[#allocation2 + $0x112] sm:$0xff] }
 0x26a   : > { %26213 = vmatprep.mubr.msk.f32.mxu0 %vm279_vm1, %v37213_v57  ;;  %v32328_v57 = vld [vmem:[#allocation2 + $0x122] sm:$0xff] }
 0x26d   : > { %26214 = vmatmul.mubr.msk.f32.gmra.mrb[24].mxu0 %vm279_vm1, %v37214_v59  ;;  %v32334_v59 = vld [vmem:[#allocation2 + $0x12a] sm:$0xff] }
 0x26e   : > { %26216 = vmatprep.mubr.msk.f32.mxu0 %vm279_vm1, %v37215_v60  ;;  %v32336_v60 = vld [vmem:[#allocation2 + $0x13a] sm:$0xff] }
 0x271   : > { %26217 = vmatmul.mubr.msk.f32.gmra.mrb[26].mxu0 %vm279_vm1, %v31733_v12  ;;  %v22292_v12 = vld [vmem:[%s36864_s1 + $0x34] sm:$0x7] }
 0x272   : > { %26219 = vmatprep.mubr.msk.f32.mxu0 %vm279_vm1, %v37216_v61  ;;  %v32342_v61 = vld [vmem:[#allocation2 + $0x142] sm:$0xff] }
 0x275   : > { %26220 = vmatmul.mubr.msk.f32.gmra.mrb[28].mxu0 %vm279_vm1, %v37217_v63  ;;  %v32344_v63 = vld [vmem:[#allocation2 + $0x152] sm:$0xff] }
 0x276   : > { %26222 = vmatprep.mubr.msk.f32.mxu0 %vm279_vm1, %v32165_v62 }
 0x279   : > { %26223 = vmatmul.mubr.msk.f32.gmra.mrb[30].mxu0 %vm279_vm1, %v32171_v0 }
 0x27a   : > { %26227 = vmatprep.mubr.msk.f32.mxu0 %vm279_vm1, %v37218_v2  ;;  %v32350_v2 = vld [vmem:[#allocation2 + $0x15a] sm:$0xff] }
 0x27d   : > { %26228 = vmatmul.mubr.msk.f32.vlgmr.msra.gmra.mrb[0].mxu0 %vm279_vm1, %v37219_v3  ;;  %v32358_v3 = vld [vmem:[#allocation2 + $0x172] sm:$0xff] }
 0x27e   : > { %26276 = vmatpush3.msk.msra.mxu0 %vm625_vm0, %v22258_v35  ;;  %26230 = vmatprep.mubr.msk.f32.mxu0 %vm279_vm1, %v37220_v4  ;;  %v37240_v35 = vld [vmem:[#allocation86_spill] sm:$0xff] }
 0x27f   : > { %26325 = vmatprep.subr.msk.mxu0 %vm625_vm0, %v22292_v12  ;;  %v32364_v4 = vld [vmem:[#allocation2 + $0x19a] sm:$0xff] }
 0x281   : > { %26231 = vmatmul.mubr.msk.f32.gmra.mrb[2].mxu0 %vm279_vm1, %v37221_v5  ;;  %v32370_v5 = vld [vmem:[#allocation2 + $0x1a2] sm:$0xff] }
 0x282   : > { %26233 = vmatprep.mubr.msk.f32.mxu0 %vm279_vm1, %v37222_v6  ;;  %v5469_v6 = vld [vmem:[#allocation2 + $0x33] sm:$0xff] }
 0x285   : > { %26234 = vmatmul.mubr.msk.f32.gmra.mrb[4].mxu0 %vm279_vm1, %v37223_v7  ;;  %v5470_v7 = vld [vmem:[#allocation2 + $0x3b] sm:$0xff] }
 0x286   : > { %26236 = vmatprep.mubr.msk.f32.mxu0 %vm279_vm1, %v37224_v8  ;;  %v32375_v8 = vld [vmem:[#allocation2 + $0x4b] sm:$0xff] }
 0x289   : > { %26237 = vmatmul.mubr.msk.f32.gmra.mrb[6].mxu0 %vm279_vm1, %v37225_v9  ;;  %v32389_v9 = vld [vmem:[#allocation2 + $0x63] sm:$0xff] }
 0x28a   : > { %26239 = vmatprep.mubr.msk.f32.mxu0 %vm279_vm1, %v37226_v14  ;;  %v32397_v14 = vld [vmem:[#allocation2 + $0x6b] sm:$0xff] }
 0x28d   : > { %26240 = vmatmul.mubr.msk.f32.gmra.mrb[8].mxu0 %vm279_vm1, %v37227_v16  ;;  %v32399_v16 = vld [vmem:[#allocation2 + $0x7b] sm:$0xff] }
 0x28e   : > { %26242 = vmatprep.mubr.msk.f32.mxu0 %vm279_vm1, %v37228_v17  ;;  %v32405_v17 = vld [vmem:[#allocation2 + $0x83] sm:$0xff] }
 0x291   : > { %26243 = vmatmul.mubr.msk.f32.gmra.mrb[10].mxu0 %vm279_vm1, %v37229_v18  ;;  %v32407_v18 = vld [vmem:[#allocation2 + $0x93] sm:$0xff] }
 0x292   : > { %26245 = vmatprep.mubr.msk.f32.mxu0 %vm279_vm1, %v37230_v19  ;;  %v32413_v19 = vld [vmem:[#allocation2 + $0x9b] sm:$0xff] }
 0x295   : > { %26246 = vmatmul.mubr.msk.f32.gmra.mrb[12].mxu0 %vm279_vm1, %v37231_v20  ;;  %v32415_v20 = vld [vmem:[#allocation2 + $0xab] sm:$0xff] }
 0x296   : > { %26248 = vmatprep.mubr.msk.f32.mxu0 %vm279_vm1, %v37232_v21  ;;  %v32421_v21 = vld [vmem:[#allocation2 + $0xb3] sm:$0xff] }
 0x299   : > { %26249 = vmatmul.mubr.msk.f32.gmra.mrb[14].mxu0 %vm279_vm1, %v37233_v22  ;;  %v32423_v22 = vld [vmem:[#allocation2 + $0xc3] sm:$0xff] }
 0x29a   : > { %26251 = vmatprep.mubr.msk.f32.mxu0 %vm279_vm1, %v37234_v23  ;;  %v32429_v23 = vld [vmem:[#allocation2 + $0xcb] sm:$0xff] }
 0x29d   : > { %26252 = vmatmul.mubr.msk.f32.gmra.mrb[16].mxu0 %vm279_vm1, %v37235_v27  ;;  %v32431_v27 = vld [vmem:[#allocation2 + $0xdb] sm:$0xff] }
 0x29e   : > { %26254 = vmatprep.mubr.msk.f32.mxu0 %vm279_vm1, %v37236_v28  ;;  %v32437_v28 = vld [vmem:[#allocation2 + $0xe3] sm:$0xff] }
 0x2a1   : > { %26255 = vmatmul.mubr.msk.f32.gmra.mrb[18].mxu0 %vm279_vm1, %v37237_v29  ;;  %v32439_v29 = vld [vmem:[#allocation2 + $0xf3] sm:$0xff] }
 0x2a2   : > { %26257 = vmatprep.mubr.msk.f32.mxu0 %vm279_vm1, %v37238_v32  ;;  %v32445_v32 = vld [vmem:[#allocation2 + $0xfb] sm:$0xff] }
 0x2a5   : > { %26258 = vmatmul.mubr.msk.f32.gmra.mrb[20].mxu0 %vm279_vm1, %v37239_v33  ;;  %v32447_v33 = vld [vmem:[#allocation2 + $0x10b] sm:$0xff] }
 0x2a6   : > { %26260 = vmatprep.mubr.msk.f32.mxu0 %vm279_vm1, %v37240_v35  ;;  %v32453_v35 = vld [vmem:[#allocation2 + $0x113] sm:$0xff] }
 0x2a9   : > { %26261 = vmatmul.mubr.msk.f32.gmra.mrb[22].mxu0 %vm279_vm1, %v31848_v25  ;;  %v32244_v25 = vld [vmem:[#allocation2 + $0x1a1] sm:$0xff] }
 0x2aa   : > { %26263 = vmatprep.mubr.msk.f32.mxu0 %vm279_vm1, %v37241_v37  ;;  %v32455_v37 = vld [vmem:[#allocation2 + $0x123] sm:$0xff] }
 0x2ad   : > { %26264 = vmatmul.mubr.msk.f32.gmra.mrb[24].mxu0 %vm279_vm1, %v31856_v31  ;;  %v5079_v31 = vld [vmem:[#allocation2 + $0x32] sm:$0xff] }
 0x2ae   : > { %26266 = vmatprep.mubr.msk.f32.mxu0 %vm279_vm1, %v37242_v38  ;;  %v32461_v38 = vld [vmem:[#allocation2 + $0x12b] sm:$0xff] }
 0x2b1   : > { %26267 = vmatmul.mubr.msk.f32.gmra.mrb[26].mxu0 %vm279_vm1, %v31864_v24  ;;  %v5080_v24 = vld [vmem:[#allocation2 + $0x3a] sm:$0xff] }
 0x2b2   : > { %26269 = vmatprep.mubr.msk.f32.mxu0 %vm279_vm1, %v31866_v26  ;;  %v32254_v26 = vld [vmem:[%s36864_s1 + $0x38] sm:$0x7] }
 0x2b5   : > { %26270 = vmatmul.mubr.msk.f32.gmra.mrb[28].mxu0 %vm279_vm1, %v31872_v39  ;;  %v32260_v39 = vld [vmem:[#allocation2 + $0x52] sm:$0xff] }
 0x2b6   : > { %26272 = vmatprep.mubr.msk.f32.mxu0 %vm279_vm1, %v32238_v42 }
 0x2b9   : > { %26273 = vmatmul.mubr.msk.f32.gmra.mrb[30].mxu0 %vm279_vm1, %v32244_v25 }
 0x2ba   : > { %26277 = vmatprep.mubr.msk.f32.mxu0 %vm279_vm1, %v5079_v31  ;;  %v32463_v31 = vld [vmem:[#allocation2 + $0x13b] sm:$0xff] }
 0x2bb   : > { %37243 = vst [vmem:[#allocation5_spill] sm:$0xff] %v32463_v31 }
 0x2bd   : > { %26278 = vmatmul.mubr.msk.f32.vlgmr.msra.gmra.mrb[0].mxu0 %vm279_vm1, %v5080_v24  ;;  %v32469_v24 = vld [vmem:[#allocation2 + $0x143] sm:$0xff] }
 0x2be   : > { %26326 = vmatpush3.msk.msra.mxu0 %vm625_vm0, %v22292_v12  ;;  %26280 = vmatprep.mubr.msk.f32.mxu0 %vm279_vm1, %v32249_v43  ;;  %v32352_v12 = vld [vmem:[#allocation2 + $0x16a] sm:$0xff]  ;;  %37244 = vst [vmem:[#allocation6_spill] sm:$0xff] %v32469_v24 }
 0x2bf   : > { %26375 = vmatprep.subr.msk.mxu0 %vm625_vm0, %v32254_v26 }
 0x2c1   : > { %26281 = vmatmul.mubr.msk.f32.gmra.mrb[2].mxu0 %vm279_vm1, %v32260_v39 }
 0x2c2   : > { %26283 = vmatprep.mubr.msk.f32.mxu0 %vm279_vm1, %v32262_v10 }
 0x2c5   : > { %26284 = vmatmul.mubr.msk.f32.gmra.mrb[4].mxu0 %vm279_vm1, %v32270_v41 }
 0x2c6   : > { %26286 = vmatprep.mubr.msk.f32.mxu0 %vm279_vm1, %v32272_v15 }
 0x2c9   : > { %26287 = vmatmul.mubr.msk.f32.gmra.mrb[6].mxu0 %vm279_vm1, %v32278_v11 }
 0x2ca   : > { %26289 = vmatprep.mubr.msk.f32.mxu0 %vm279_vm1, %v32280_v13 }
 0x2cd   : > { %26290 = vmatmul.mubr.msk.f32.gmra.mrb[8].mxu0 %vm279_vm1, %v32286_v45 }
 0x2ce   : > { %26292 = vmatprep.mubr.msk.f32.mxu0 %vm279_vm1, %v32288_v46 }
 0x2d1   : > { %26293 = vmatmul.mubr.msk.f32.gmra.mrb[10].mxu0 %vm279_vm1, %v32294_v47 }
 0x2d2   : > { %26295 = vmatprep.mubr.msk.f32.mxu0 %vm279_vm1, %v32296_v48 }
 0x2d5   : > { %26296 = vmatmul.mubr.msk.f32.gmra.mrb[12].mxu0 %vm279_vm1, %v32302_v49 }
 0x2d6   : > { %26298 = vmatprep.mubr.msk.f32.mxu0 %vm279_vm1, %v32304_v50 }
 0x2d9   : > { %26299 = vmatmul.mubr.msk.f32.gmra.mrb[14].mxu0 %vm279_vm1, %v32310_v51 }
 0x2da   : > { %26301 = vmatprep.mubr.msk.f32.mxu0 %vm279_vm1, %v32312_v52 }
 0x2dd   : > { %26302 = vmatmul.mubr.msk.f32.gmra.mrb[16].mxu0 %vm279_vm1, %v32318_v53 }
 0x2de   : > { %26304 = vmatprep.mubr.msk.f32.mxu0 %vm279_vm1, %v32320_v54 }
 0x2e1   : > { %26305 = vmatmul.mubr.msk.f32.gmra.mrb[18].mxu0 %vm279_vm1, %v32326_v55 }
 0x2e2   : > { %26307 = vmatprep.mubr.msk.f32.mxu0 %vm279_vm1, %v32328_v57 }
 0x2e5   : > { %26308 = vmatmul.mubr.msk.f32.gmra.mrb[20].mxu0 %vm279_vm1, %v32334_v59 }
 0x2e6   : > { %26310 = vmatprep.mubr.msk.f32.mxu0 %vm279_vm1, %v32336_v60 }
 0x2e9   : > { %26311 = vmatmul.mubr.msk.f32.gmra.mrb[22].mxu0 %vm279_vm1, %v32342_v61 }
 0x2ea   : > { %26313 = vmatprep.mubr.msk.f32.mxu0 %vm279_vm1, %v32344_v63 }
 0x2ed   : > { %26314 = vmatmul.mubr.msk.f32.gmra.mrb[24].mxu0 %vm279_vm1, %v32350_v2 }
 0x2ee   : > { %26316 = vmatprep.mubr.msk.f32.mxu0 %vm279_vm1, %v32352_v12 }
 0x2f1   : > { %26317 = vmatmul.mubr.msk.f32.gmra.mrb[26].mxu0 %vm279_vm1, %v32358_v3 }
 0x2f2   : > { %26319 = vmatprep.mubr.msk.f32.mxu0 %vm279_vm1, %v31940_v40  ;;  %v32380_v40 = vld [vmem:[%s36864_s1 + $0x3c] sm:$0x7] }
 0x2f5   : > { %26320 = vmatmul.mubr.msk.f32.gmra.mrb[28].mxu0 %vm279_vm1, %v31946_v44  ;;  %v32387_v44 = vld [vmem:[#allocation2 + $0x53] sm:$0xff] }
 0x2f6   : > { %26322 = vmatprep.mubr.msk.f32.mxu0 %vm279_vm1, %v32364_v4 }
 0x2f9   : > { %26323 = vmatmul.mubr.msk.f32.gmra.mrb[30].mxu0 %vm279_vm1, %v32370_v5 }
 0x2fa   : > { %26327 = vmatprep.mubr.msk.f32.mxu0 %vm279_vm1, %v5469_v6  ;;  %v32477_v6 = vld [vmem:[#allocation2 + $0x15b] sm:$0xff] }
 0x2fb   : > { %37246 = vst [vmem:[#allocation8_spill] sm:$0xff] %v32477_v6 }
 0x2fd   : > { %26328 = vmatmul.mubr.msk.f32.vlgmr.msra.gmra.mrb[0].mxu0 %vm279_vm1, %v5470_v7  ;;  %v32479_v7 = vld [vmem:[#allocation2 + $0x16b] sm:$0xff] }
 0x2fe   : > { %26376 = vmatpush3.msk.msra.mxu0 %vm625_vm0, %v32254_v26  ;;  %26330 = vmatprep.mubr.msk.f32.mxu0 %vm279_vm1, %v32375_v8  ;;  %v32471_v26 = vld [vmem:[#allocation2 + $0x153] sm:$0xff]  ;;  %37247 = vst [vmem:[#allocation9_spill] sm:$0xff] %v32479_v7 }
 0x2ff   : > { %26425 = vmatprep.subr.msk.mxu0 %vm625_vm0, %v32380_v40  ;;  %37245 = vst [vmem:[#allocation7_spill] sm:$0xff] %v32471_v26 }
 0x301   : > { %26331 = vmatmul.mubr.msk.f32.gmra.mrb[2].mxu0 %vm279_vm1, %v32387_v44 }
 0x302   : > { %26333 = vmatprep.mubr.msk.f32.mxu0 %vm279_vm1, %v32389_v9 }
 0x305   : > { %26334 = vmatmul.mubr.msk.f32.gmra.mrb[4].mxu0 %vm279_vm1, %v32397_v14 }
 0x306   : > { %26336 = vmatprep.mubr.msk.f32.mxu0 %vm279_vm1, %v32399_v16 }
 0x309   : > { %26337 = vmatmul.mubr.msk.f32.gmra.mrb[6].mxu0 %vm279_vm1, %v32405_v17 }
 0x30a   : > { %26339 = vmatprep.mubr.msk.f32.mxu0 %vm279_vm1, %v32407_v18 }
 0x30d   : > { %26340 = vmatmul.mubr.msk.f32.gmra.mrb[8].mxu0 %vm279_vm1, %v32413_v19 }
 0x30e   : > { %26342 = vmatprep.mubr.msk.f32.mxu0 %vm279_vm1, %v32415_v20 }
 0x311   : > { %26343 = vmatmul.mubr.msk.f32.gmra.mrb[10].mxu0 %vm279_vm1, %v32421_v21 }
 0x312   : > { %26345 = vmatprep.mubr.msk.f32.mxu0 %vm279_vm1, %v32423_v22 }
 0x315   : > { %26346 = vmatmul.mubr.msk.f32.gmra.mrb[12].mxu0 %vm279_vm1, %v32429_v23 }
 0x316   : > { %26348 = vmatprep.mubr.msk.f32.mxu0 %vm279_vm1, %v32431_v27 }
 0x319   : > { %26349 = vmatmul.mubr.msk.f32.gmra.mrb[14].mxu0 %vm279_vm1, %v32437_v28 }
 0x31a   : > { %26351 = vmatprep.mubr.msk.f32.mxu0 %vm279_vm1, %v32439_v29 }
 0x31d   : > { %26352 = vmatmul.mubr.msk.f32.gmra.mrb[16].mxu0 %vm279_vm1, %v32445_v32 }
 0x31e   : > { %26354 = vmatprep.mubr.msk.f32.mxu0 %vm279_vm1, %v32447_v33 }
 0x321   : > { %26355 = vmatmul.mubr.msk.f32.gmra.mrb[18].mxu0 %vm279_vm1, %v32453_v35 }
 0x322   : > { %26357 = vmatprep.mubr.msk.f32.mxu0 %vm279_vm1, %v32455_v37 }
 0x325   : > { %26358 = vmatmul.mubr.msk.f32.gmra.mrb[20].mxu0 %vm279_vm1, %v32461_v38 }
 0x326   : > { %26360 = vmatprep.mubr.msk.f32.mxu0 %vm279_vm1, %v32463_v31  ;;  %v32485_v31 = vld [vmem:[#allocation2 + $0x173] sm:$0xff] }
 0x327   : > { %37248 = vst [vmem:[#allocation10_spill] sm:$0xff] %v32485_v31 }
 0x329   : > { %26361 = vmatmul.mubr.msk.f32.gmra.mrb[22].mxu0 %vm279_vm1, %v32469_v24  ;;  %v32491_v24 = vld [vmem:[#allocation2 + $0x19b] sm:$0xff] }
 0x32a   : > { %26363 = vmatprep.mubr.msk.f32.mxu0 %vm279_vm1, %v32471_v26  ;;  %v5859_v26 = vld [vmem:[#allocation2 + $0x34] sm:$0xff] }
 0x32d   : > { %26364 = vmatmul.mubr.msk.f32.gmra.mrb[24].mxu0 %vm279_vm1, %v32477_v6  ;;  %v32497_v6 = vld [vmem:[#allocation2 + $0x1a3] sm:$0xff] }
 0x32e   : > { %26366 = vmatprep.mubr.msk.f32.mxu0 %vm279_vm1, %v32479_v7  ;;  %37249 = vst [vmem:[#allocation11_spill] sm:$0xff] %v32497_v6  ;;  %v32502_v7 = vld [vmem:[#allocation2 + $0x4c] sm:$0xff] }
 0x32f   : > { %37250 = vst [vmem:[#allocation12_spill] sm:$0xff] %v32502_v7 }
 0x331   : > { %26367 = vmatmul.mubr.msk.f32.gmra.mrb[26].mxu0 %vm279_vm1, %v32485_v31  ;;  %v5860_v31 = vld [vmem:[#allocation2 + $0x3c] sm:$0xff] }
 0x332   : > { %26369 = vmatprep.mubr.msk.f32.mxu0 %vm279_vm1, %v32017_v56  ;;  %v32507_v56 = vld [vmem:[%s36864_s1 + $0x40] sm:$0x7] }
 0x335   : > { %26370 = vmatmul.mubr.msk.f32.gmra.mrb[28].mxu0 %vm279_vm1, %v32023_v58  ;;  %v32514_v58 = vld [vmem:[#allocation2 + $0x54] sm:$0xff] }
 0x336   : > { %26372 = vmatprep.mubr.msk.f32.mxu0 %vm279_vm1, %v32491_v24  ;;  %37251 = vst [vmem:[#allocation13_spill] sm:$0xff] %v32514_v58 }
 0x339   : > { %26373 = vmatmul.mubr.msk.f32.gmra.mrb[30].mxu0 %vm279_vm1, %v32497_v6  ;;  %v32516_v6 = vld [vmem:[#allocation2 + $0x64] sm:$0xff] }
 0x33a   : > { %26377 = vmatprep.mubr.msk.f32.mxu0 %vm279_vm1, %v5859_v26  ;;  %37252 = vst [vmem:[#allocation14_spill] sm:$0xff] %v32516_v6  ;;  %v32526_v26 = vld [vmem:[#allocation2 + $0x7c] sm:$0xff] }
 0x33b   : > { %37254 = vst [vmem:[#allocation16_spill] sm:$0xff] %v32526_v26 }
 0x33d   : > { %26378 = vmatmul.mubr.msk.f32.vlgmr.msra.gmra.mrb[0].mxu0 %vm279_vm1, %v5860_v31  ;;  %v32524_v31 = vld [vmem:[#allocation2 + $0x6c] sm:$0xff] }
 0x33e   : > { %26426 = vmatpush3.msk.msra.mxu0 %vm625_vm0, %v32380_v40  ;;  %26380 = vmatprep.mubr.msk.f32.mxu0 %vm279_vm1, %v32502_v7  ;;  %37253 = vst [vmem:[#allocation15_spill] sm:$0xff] %v32524_v31  ;;  %v32532_v40 = vld [vmem:[#allocation2 + $0x84] sm:$0xff]  ;;  %v32534_v7 = vld [vmem:[#allocation2 + $0x94] sm:$0xff] }
 0x33f   : > { %26475 = vmatprep.subr.msk.mxu0 %vm625_vm0, %v32507_v56  ;;  %37255 = vst [vmem:[#allocation17_spill] sm:$0xff] %v32532_v40  ;;  %37256 = vst [vmem:[#allocation18_spill] sm:$0xff] %v32534_v7 }
 0x341   : > { %26381 = vmatmul.mubr.msk.f32.gmra.mrb[2].mxu0 %vm279_vm1, %v32514_v58  ;;  %v32542_v58 = vld [vmem:[#allocation2 + $0xac] sm:$0xff] }
 0x342   : > { %26383 = vmatprep.mubr.msk.f32.mxu0 %vm279_vm1, %v32516_v6  ;;  %v32540_v6 = vld [vmem:[#allocation2 + $0x9c] sm:$0xff]  ;;  %37258 = vst [vmem:[#allocation20_spill] sm:$0xff] %v32542_v58 }
 0x343   : > { %37257 = vst [vmem:[#allocation19_spill] sm:$0xff] %v32540_v6 }
 0x345   : > { %26384 = vmatmul.mubr.msk.f32.gmra.mrb[4].mxu0 %vm279_vm1, %v32524_v31  ;;  %v32550_v31 = vld [vmem:[#allocation2 + $0xc4] sm:$0xff] }
 0x346   : > { %26386 = vmatprep.mubr.msk.f32.mxu0 %vm279_vm1, %v32526_v26  ;;  %v32548_v26 = vld [vmem:[#allocation2 + $0xb4] sm:$0xff]  ;;  %37260 = vst [vmem:[#allocation22_spill] sm:$0xff] %v32550_v31 }
 0x347   : > { %37259 = vst [vmem:[#allocation21_spill] sm:$0xff] %v32548_v26 }
 0x349   : > { %26387 = vmatmul.mubr.msk.f32.gmra.mrb[6].mxu0 %vm279_vm1, %v32532_v40  ;;  %v32558_v40 = vld [vmem:[#allocation2 + $0xdc] sm:$0xff] }
 0x34a   : > { %26389 = vmatprep.mubr.msk.f32.mxu0 %vm279_vm1, %v32534_v7  ;;  %v32556_v7 = vld [vmem:[#allocation2 + $0xcc] sm:$0xff]  ;;  %37262 = vst [vmem:[#allocation24_spill] sm:$0xff] %v32558_v40 }
 0x34b   : > { %37261 = vst [vmem:[#allocation23_spill] sm:$0xff] %v32556_v7 }
 0x34d   : > { %26390 = vmatmul.mubr.msk.f32.gmra.mrb[8].mxu0 %vm279_vm1, %v32540_v6  ;;  %v32566_v6 = vld [vmem:[#allocation2 + $0xf4] sm:$0xff] }
 0x34e   : > { %26392 = vmatprep.mubr.msk.f32.mxu0 %vm279_vm1, %v32542_v58  ;;  %v32564_v58 = vld [vmem:[#allocation2 + $0xe4] sm:$0xff]  ;;  %37264 = vst [vmem:[#allocation26_spill] sm:$0xff] %v32566_v6 }
 0x34f   : > { %37263 = vst [vmem:[#allocation25_spill] sm:$0xff] %v32564_v58 }
 0x351   : > { %26393 = vmatmul.mubr.msk.f32.gmra.mrb[10].mxu0 %vm279_vm1, %v32548_v26  ;;  %v32574_v26 = vld [vmem:[#allocation2 + $0x10c] sm:$0xff] }
 0x352   : > { %26395 = vmatprep.mubr.msk.f32.mxu0 %vm279_vm1, %v32550_v31  ;;  %v32572_v31 = vld [vmem:[#allocation2 + $0xfc] sm:$0xff]  ;;  %37266 = vst [vmem:[#allocation28_spill] sm:$0xff] %v32574_v26 }
 0x353   : > { %37265 = vst [vmem:[#allocation27_spill] sm:$0xff] %v32572_v31 }
 0x355   : > { %26396 = vmatmul.mubr.msk.f32.gmra.mrb[12].mxu0 %vm279_vm1, %v32556_v7  ;;  %v32582_v7 = vld [vmem:[#allocation2 + $0x124] sm:$0xff] }
 0x356   : > { %26398 = vmatprep.mubr.msk.f32.mxu0 %vm279_vm1, %v32558_v40  ;;  %v32580_v40 = vld [vmem:[#allocation2 + $0x114] sm:$0xff]  ;;  %37268 = vst [vmem:[#allocation30_spill] sm:$0xff] %v32582_v7 }
 0x357   : > { %37267 = vst [vmem:[#allocation29_spill] sm:$0xff] %v32580_v40 }
 0x359   : > { %26399 = vmatmul.mubr.msk.f32.gmra.mrb[14].mxu0 %vm279_vm1, %v32564_v58  ;;  %v32590_v58 = vld [vmem:[#allocation2 + $0x13c] sm:$0xff] }
 0x35a   : > { %26401 = vmatprep.mubr.msk.f32.mxu0 %vm279_vm1, %v32566_v6  ;;  %v32588_v6 = vld [vmem:[#allocation2 + $0x12c] sm:$0xff]  ;;  %37269 = vst [vmem:[#allocation31_spill] sm:$0xff] %v32590_v58 }
 0x35d   : > { %26402 = vmatmul.mubr.msk.f32.gmra.mrb[16].mxu0 %vm279_vm1, %v32572_v31  ;;  %v32598_v31 = vld [vmem:[#allocation2 + $0x154] sm:$0xff] }
 0x35e   : > { %26404 = vmatprep.mubr.msk.f32.mxu0 %vm279_vm1, %v32574_v26  ;;  %v32596_v26 = vld [vmem:[#allocation2 + $0x144] sm:$0xff] }
 0x35f   : > { %37270 = vst [vmem:[#allocation32_spill] sm:$0xff] %v32596_v26 }
 0x361   : > { %26405 = vmatmul.mubr.msk.f32.gmra.mrb[18].mxu0 %vm279_vm1, %v32580_v40  ;;  %v32606_v40 = vld [vmem:[#allocation2 + $0x16c] sm:$0xff] }
 0x362   : > { %26407 = vmatprep.mubr.msk.f32.mxu0 %vm279_vm1, %v32582_v7  ;;  %v32604_v7 = vld [vmem:[#allocation2 + $0x15c] sm:$0xff] }
 0x363   : > { %37271 = vst [vmem:[#allocation33_spill] sm:$0xff] %v32604_v7 }
 0x365   : > { %26408 = vmatmul.mubr.msk.f32.gmra.mrb[20].mxu0 %vm279_vm1, %v32588_v6 }
 0x366   : > { %26410 = vmatprep.mubr.msk.f32.mxu0 %vm279_vm1, %v32590_v58  ;;  %v32612_v58 = vld [vmem:[#allocation2 + $0x174] sm:$0xff] }
 0x367   : > { %37272 = vst [vmem:[#allocation34_spill] sm:$0xff] %v32612_v58 }
 0x369   : > { %26411 = vmatmul.mubr.msk.f32.gmra.mrb[22].mxu0 %vm279_vm1, %v32596_v26  ;;  %v32618_v26 = vld [vmem:[#allocation2 + $0x19c] sm:$0xff] }
 0x36a   : > { %26413 = vmatprep.mubr.msk.f32.mxu0 %vm279_vm1, %v32598_v31 }
 0x36d   : > { %26414 = vmatmul.mubr.msk.f32.gmra.mrb[24].mxu0 %vm279_vm1, %v32604_v7  ;;  %v32624_v7 = vld [vmem:[#allocation2 + $0x1a4] sm:$0xff] }
 0x36e   : > { %26416 = vmatprep.mubr.msk.f32.mxu0 %vm279_vm1, %v32606_v40  ;;  %37273 = vst [vmem:[#allocation35_spill] sm:$0xff] %v32624_v7 }
 0x371   : > { %26417 = vmatmul.mubr.msk.f32.gmra.mrb[26].mxu0 %vm279_vm1, %v32612_v58  ;;  %v32630_v58 = vld [vmem:[#allocation2 + $0x60] sm:$0xff] }
 0x372   : > { %26419 = vmatprep.mubr.msk.f32.mxu0 %vm279_vm1, %v32090_v30  ;;  %37274 = vst [vmem:[#allocation36_spill] sm:$0xff] %v32630_v58  ;;  %v32635_v30 = vld [vmem:[%s36864_s1 + $0x44] sm:$0x7] }
 0x375   : > { %26420 = vmatmul.mubr.msk.f32.gmra.mrb[28].mxu0 %vm279_vm1, %v32096_v1  ;;  %v32643_v1 = vld [vmem:[#allocation2 + $0x68] sm:$0xff] }
 0x376   : > { %26422 = vmatprep.mubr.msk.f32.mxu0 %vm279_vm1, %v32618_v26  ;;  %37275 = vst [vmem:[#allocation37_spill] sm:$0xff] %v32643_v1 }
 0x379   : > { %26423 = vmatmul.mubr.msk.f32.gmra.mrb[30].mxu0 %vm279_vm1, %v32624_v7  ;;  %v32645_v7 = vld [vmem:[#allocation2 + $0x78] sm:$0xff] }
 0x37a   : > { %26427 = vmatprep.mubr.msk.f32.mxu0 %vm279_vm1, %v32101_v34  ;;  %37276 = vst [vmem:[#allocation38_spill] sm:$0xff] %v32645_v7  ;;  %v32653_v34 = vld [vmem:[#allocation2 + $0x80] sm:$0xff] }
 0x37b   : > { %37277 = vst [vmem:[#allocation39_spill] sm:$0xff] %v32653_v34 }
 0x37d   : > { %26428 = vmatmul.mubr.msk.f32.vlgmr.msra.gmra.mrb[0].mxu0 %vm279_vm1, %v32110_v36  ;;  %v32655_v36 = vld [vmem:[#allocation2 + $0x90] sm:$0xff] }
 0x37e   : > { %26476 = vmatpush3.msk.msra.mxu0 %vm625_vm0, %v32507_v56  ;;  %26430 = vmatprep.mubr.msk.f32.mxu0 %vm279_vm1, %v32630_v58  ;;  %37278 = vst [vmem:[#allocation40_spill] sm:$0xff] %v32655_v36  ;;  %v32661_v56 = vld [vmem:[#allocation2 + $0x98] sm:$0xff]  ;;  %v32663_v58 = vld [vmem:[#allocation2 + $0xa8] sm:$0xff] }
 0x37f   : > { %26525 = vmatprep.subr.msk.mxu0 %vm625_vm0, %v32635_v30  ;;  %37279 = vst [vmem:[#allocation41_spill] sm:$0xff] %v32661_v56  ;;  %37280 = vst [vmem:[#allocation42_spill] sm:$0xff] %v32663_v58 }
 0x381   : > { %26431 = vmatmul.mubr.msk.f32.gmra.mrb[2].mxu0 %vm279_vm1, %v32643_v1  ;;  %v32671_v1 = vld [vmem:[#allocation2 + $0xc0] sm:$0xff] }
 0x382   : > { %26433 = vmatprep.mubr.msk.f32.mxu0 %vm279_vm1, %v32645_v7  ;;  %v32669_v7 = vld [vmem:[#allocation2 + $0xb0] sm:$0xff]  ;;  %37282 = vst [vmem:[#allocation44_spill] sm:$0xff] %v32671_v1 }
 0x383   : > { %37281 = vst [vmem:[#allocation43_spill] sm:$0xff] %v32669_v7 }
 0x385   : > { %26434 = vmatmul.mubr.msk.f32.gmra.mrb[4].mxu0 %vm279_vm1, %v32653_v34  ;;  %v32679_v34 = vld [vmem:[#allocation2 + $0xd8] sm:$0xff] }
 0x386   : > { %26436 = vmatprep.mubr.msk.f32.mxu0 %vm279_vm1, %v32655_v36  ;;  %v32677_v36 = vld [vmem:[#allocation2 + $0xc8] sm:$0xff]  ;;  %37284 = vst [vmem:[#allocation46_spill] sm:$0xff] %v32679_v34 }
 0x387   : > { %37283 = vst [vmem:[#allocation45_spill] sm:$0xff] %v32677_v36 }
 0x389   : > { %26437 = vmatmul.mubr.msk.f32.gmra.mrb[6].mxu0 %vm279_vm1, %v32661_v56  ;;  %v32687_v56 = vld [vmem:[#allocation2 + $0xf0] sm:$0xff] }
 0x38a   : > { %26439 = vmatprep.mubr.msk.f32.mxu0 %vm279_vm1, %v32663_v58  ;;  %v32685_v58 = vld [vmem:[#allocation2 + $0xe0] sm:$0xff]  ;;  %37286 = vst [vmem:[#allocation48_spill] sm:$0xff] %v32687_v56 }
 0x38b   : > { %37285 = vst [vmem:[#allocation47_spill] sm:$0xff] %v32685_v58 }
 0x38d   : > { %26440 = vmatmul.mubr.msk.f32.gmra.mrb[8].mxu0 %vm279_vm1, %v32669_v7  ;;  %v32695_v7 = vld [vmem:[#allocation2 + $0x108] sm:$0xff] }
 0x38e   : > { %26442 = vmatprep.mubr.msk.f32.mxu0 %vm279_vm1, %v32671_v1  ;;  %v32693_v1 = vld [vmem:[#allocation2 + $0xf8] sm:$0xff]  ;;  %37288 = vst [vmem:[#allocation50_spill] sm:$0xff] %v32695_v7 }
 0x38f   : > { %37287 = vst [vmem:[#allocation49_spill] sm:$0xff] %v32693_v1 }
 0x391   : > { %26443 = vmatmul.mubr.msk.f32.gmra.mrb[10].mxu0 %vm279_vm1, %v32677_v36  ;;  %v32703_v36 = vld [vmem:[#allocation2 + $0x120] sm:$0xff] }
 0x392   : > { %26445 = vmatprep.mubr.msk.f32.mxu0 %vm279_vm1, %v32679_v34  ;;  %v32701_v34 = vld [vmem:[#allocation2 + $0x110] sm:$0xff]  ;;  %37290 = vst [vmem:[#allocation52_spill] sm:$0xff] %v32703_v36 }
 0x393   : > { %37289 = vst [vmem:[#allocation51_spill] sm:$0xff] %v32701_v34 }
 0x395   : > { %26446 = vmatmul.mubr.msk.f32.gmra.mrb[12].mxu0 %vm279_vm1, %v32685_v58  ;;  %v32711_v58 = vld [vmem:[#allocation2 + $0x138] sm:$0xff] }
 0x396   : > { %26448 = vmatprep.mubr.msk.f32.mxu0 %vm279_vm1, %v32687_v56  ;;  %v32709_v56 = vld [vmem:[#allocation2 + $0x128] sm:$0xff]  ;;  %37292 = vst [vmem:[#allocation54_spill] sm:$0xff] %v32711_v58 }
 0x397   : > { %37291 = vst [vmem:[#allocation53_spill] sm:$0xff] %v32709_v56 }
 0x399   : > { %26449 = vmatmul.mubr.msk.f32.gmra.mrb[14].mxu0 %vm279_vm1, %v32693_v1  ;;  %v32719_v1 = vld [vmem:[#allocation2 + $0x150] sm:$0xff] }
 0x39a   : > { %26451 = vmatprep.mubr.msk.f32.mxu0 %vm279_vm1, %v32695_v7  ;;  %v32717_v7 = vld [vmem:[#allocation2 + $0x140] sm:$0xff]  ;;  %37293 = vst [vmem:[#allocation55_spill] sm:$0xff] %v32719_v1 }
 0x39d   : > { %26452 = vmatmul.mubr.msk.f32.gmra.mrb[16].mxu0 %vm279_vm1, %v32701_v34  ;;  %v32727_v34 = vld [vmem:[#allocation2 + $0x168] sm:$0xff] }
 0x39e   : > { %26454 = vmatprep.mubr.msk.f32.mxu0 %vm279_vm1, %v32703_v36  ;;  %v32725_v36 = vld [vmem:[#allocation2 + $0x158] sm:$0xff]  ;;  %37295 = vst [vmem:[#allocation57_spill] sm:$0xff] %v32727_v34 }
 0x39f   : > { %37294 = vst [vmem:[#allocation56_spill] sm:$0xff] %v32725_v36 }
 0x3a1   : > { %26455 = vmatmul.mubr.msk.f32.gmra.mrb[18].mxu0 %vm279_vm1, %v32709_v56  ;;  %v32735_v56 = vld [vmem:[#allocation2 + $0x180] sm:$0xff] }
 0x3a2   : > { %26457 = vmatprep.mubr.msk.f32.mxu0 %vm279_vm1, %v32711_v58  ;;  %v32733_v58 = vld [vmem:[#allocation2 + $0x170] sm:$0xff]  ;;  %37297 = vst [vmem:[#allocation59_spill] sm:$0xff] %v32735_v56 }
 0x3a3   : > { %37296 = vst [vmem:[#allocation58_spill] sm:$0xff] %v32733_v58 }
 0x3a5   : > { %26458 = vmatmul.mubr.msk.f32.gmra.mrb[20].mxu0 %vm279_vm1, %v32717_v7 }
 0x3a6   : > { %26460 = vmatprep.mubr.msk.f32.mxu0 %vm279_vm1, %v32719_v1  ;;  %v32741_v1 = vld [vmem:[#allocation2 + $0x188] sm:$0xff] }
 0x3a7   : > { %37298 = vst [vmem:[#allocation60_spill] sm:$0xff] %v32741_v1 }
 0x3a9   : > { %26461 = vmatmul.mubr.msk.f32.gmra.mrb[22].mxu0 %vm279_vm1, %v32725_v36  ;;  %v32747_v36 = vld [vmem:[#allocation2 + $0x1b0] sm:$0xff] }
 0x3aa   : > { %26463 = vmatprep.mubr.msk.f32.mxu0 %vm279_vm1, %v32727_v34  ;;  %37299 = vst [vmem:[#allocation61_spill] sm:$0xff] %v32747_v36  ;;  %v32755_v34 = vld [vmem:[#allocation2 + $0x49] sm:$0xff] }
 0x3ad   : > { %26464 = vmatmul.mubr.msk.f32.gmra.mrb[24].mxu0 %vm279_vm1, %v32733_v58  ;;  %v32753_v58 = vld [vmem:[#allocation2 + $0x1b8] sm:$0xff] }
 0x3ae   : > { %26466 = vmatprep.mubr.msk.f32.mxu0 %vm279_vm1, %v32735_v56  ;;  %37300 = vst [vmem:[#allocation62_spill] sm:$0xff] %v32753_v58  ;;  %v32786_v56 = vld [vmem:[#allocation2 + $0x81] sm:$0xff] }
 0x3af   : > { %37305 = vst [vmem:[#allocation67_spill] sm:$0xff] %v32786_v56 }
 0x3b1   : > { %26467 = vmatmul.mubr.msk.f32.gmra.mrb[26].mxu0 %vm279_vm1, %v32741_v1  ;;  %v32761_v1 = vld [vmem:[#allocation2 + $0x51] sm:$0xff] }
 0x3b2   : > { %26469 = vmatprep.mubr.msk.f32.mxu0 %vm279_vm1, %v32165_v62  ;;  %37301 = vst [vmem:[#allocation63_spill] sm:$0xff] %v32761_v1  ;;  %v32763_v62 = vld [vmem:[#allocation2 + $0x61] sm:$0xff] }
 0x3b3   : > { %37302 = vst [vmem:[#allocation64_spill] sm:$0xff] %v32763_v62 }
 0x3b5   : > { %26470 = vmatmul.mubr.msk.f32.gmra.mrb[28].mxu0 %vm279_vm1, %v32171_v0  ;;  %v32768_v0 = vld [vmem:[%s36864_s1 + $0x48] sm:$0x7] }
 0x3b6   : > { %26472 = vmatprep.mubr.msk.f32.mxu0 %vm279_vm1, %v32747_v36  ;;  %v32778_v36 = vld [vmem:[#allocation2 + $0x79] sm:$0xff] }
 0x3b7   : > { %37304 = vst [vmem:[#allocation66_spill] sm:$0xff] %v32778_v36 }
 0x3b9   : > { %26473 = vmatmul.mubr.msk.f32.gmra.mrb[30].mxu0 %vm279_vm1, %v32753_v58  ;;  %v32776_v58 = vld [vmem:[#allocation2 + $0x69] sm:$0xff] }
 0x3ba   : > { %26477 = vmatprep.mubr.msk.f32.mxu0 %vm279_vm1, %v32755_v34  ;;  %37303 = vst [vmem:[#allocation65_spill] sm:$0xff] %v32776_v58 }
 0x3bd   : > { %26478 = vmatmul.mubr.msk.f32.vlgmr.msra.gmra.mrb[0].mxu0 %vm279_vm1, %v32761_v1  ;;  %v32788_v1 = vld [vmem:[#allocation2 + $0x91] sm:$0xff] }
 0x3be   : > { %26526 = vmatpush3.msk.msra.mxu0 %vm625_vm0, %v32635_v30  ;;  %26480 = vmatprep.mubr.msk.f32.mxu0 %vm279_vm1, %v32763_v62  ;;  %37306 = vst [vmem:[#allocation68_spill] sm:$0xff] %v32788_v1  ;;  %v32794_v30 = vld [vmem:[#allocation2 + $0x99] sm:$0xff]  ;;  %v32796_v62 = vld [vmem:[#allocation2 + $0xa9] sm:$0xff] }
 0x3bf   : > { %26575 = vmatprep.subr.msk.mxu0 %vm625_vm0, %v32768_v0  ;;  %37307 = vst [vmem:[#allocation69_spill] sm:$0xff] %v32794_v30  ;;  %37308 = vst [vmem:[#allocation70_spill] sm:$0xff] %v32796_v62 }
 0x3c1   : > { %26481 = vmatmul.mubr.msk.f32.gmra.mrb[2].mxu0 %vm279_vm1, %v32776_v58  ;;  %v32804_v58 = vld [vmem:[#allocation2 + $0xc1] sm:$0xff] }
 0x3c2   : > { %26483 = vmatprep.mubr.msk.f32.mxu0 %vm279_vm1, %v32778_v36  ;;  %v32802_v36 = vld [vmem:[#allocation2 + $0xb1] sm:$0xff]  ;;  %37310 = vst [vmem:[#allocation72_spill] sm:$0xff] %v32804_v58 }
 0x3c3   : > { %37309 = vst [vmem:[#allocation71_spill] sm:$0xff] %v32802_v36 }
 0x3c5   : > { %26484 = vmatmul.mubr.msk.f32.gmra.mrb[4].mxu0 %vm279_vm1, %v32786_v56  ;;  %v32812_v56 = vld [vmem:[#allocation2 + $0xd9] sm:$0xff] }
 0x3c6   : > { %26486 = vmatprep.mubr.msk.f32.mxu0 %vm279_vm1, %v32788_v1  ;;  %v32810_v1 = vld [vmem:[#allocation2 + $0xc9] sm:$0xff]  ;;  %37312 = vst [vmem:[#allocation74_spill] sm:$0xff] %v32812_v56 }
 0x3c7   : > { %37311 = vst [vmem:[#allocation73_spill] sm:$0xff] %v32810_v1 }
 0x3c9   : > { %26487 = vmatmul.mubr.msk.f32.gmra.mrb[6].mxu0 %vm279_vm1, %v32794_v30  ;;  %v32820_v30 = vld [vmem:[#allocation2 + $0xf1] sm:$0xff] }
 0x3ca   : > { %26489 = vmatprep.mubr.msk.f32.mxu0 %vm279_vm1, %v32796_v62  ;;  %v32818_v62 = vld [vmem:[#allocation2 + $0xe1] sm:$0xff]  ;;  %37314 = vst [vmem:[#allocation76_spill] sm:$0xff] %v32820_v30 }
 0x3cb   : > { %37313 = vst [vmem:[#allocation75_spill] sm:$0xff] %v32818_v62 }
 0x3cd   : > { %26490 = vmatmul.mubr.msk.f32.gmra.mrb[8].mxu0 %vm279_vm1, %v32802_v36  ;;  %v32828_v36 = vld [vmem:[#allocation2 + $0x109] sm:$0xff] }
 0x3ce   : > { %26492 = vmatprep.mubr.msk.f32.mxu0 %vm279_vm1, %v32804_v58  ;;  %v32826_v58 = vld [vmem:[#allocation2 + $0xf9] sm:$0xff]  ;;  %37316 = vst [vmem:[#allocation78_spill] sm:$0xff] %v32828_v36 }
 0x3cf   : > { %37315 = vst [vmem:[#allocation77_spill] sm:$0xff] %v32826_v58 }
 0x3d1   : > { %26493 = vmatmul.mubr.msk.f32.gmra.mrb[10].mxu0 %vm279_vm1, %v32810_v1  ;;  %v32836_v1 = vld [vmem:[#allocation2 + $0x121] sm:$0xff] }
 0x3d2   : > { %26495 = vmatprep.mubr.msk.f32.mxu0 %vm279_vm1, %v32812_v56  ;;  %v32834_v56 = vld [vmem:[#allocation2 + $0x111] sm:$0xff]  ;;  %37318 = vst [vmem:[#allocation80_spill] sm:$0xff] %v32836_v1 }
 0x3d3   : > { %37317 = vst [vmem:[#allocation79_spill] sm:$0xff] %v32834_v56 }
 0x3d5   : > { %26496 = vmatmul.mubr.msk.f32.gmra.mrb[12].mxu0 %vm279_vm1, %v32818_v62  ;;  %v32844_v62 = vld [vmem:[#allocation2 + $0x139] sm:$0xff] }
 0x3d6   : > { %26498 = vmatprep.mubr.msk.f32.mxu0 %vm279_vm1, %v32820_v30  ;;  %v32842_v30 = vld [vmem:[#allocation2 + $0x129] sm:$0xff]  ;;  %37320 = vst [vmem:[#allocation82_spill] sm:$0xff] %v32844_v62 }
 0x3d7   : > { %37319 = vst [vmem:[#allocation81_spill] sm:$0xff] %v32842_v30 }
 0x3d9   : > { %26499 = vmatmul.mubr.msk.f32.gmra.mrb[14].mxu0 %vm279_vm1, %v32826_v58  ;;  %v32852_v58 = vld [vmem:[#allocation2 + $0x151] sm:$0xff] }
 0x3da   : > { %26501 = vmatprep.mubr.msk.f32.mxu0 %vm279_vm1, %v32828_v36  ;;  %v32850_v36 = vld [vmem:[#allocation2 + $0x141] sm:$0xff]  ;;  %37321 = vst [vmem:[#allocation83_spill] sm:$0xff] %v32852_v58 }
 0x3dd   : > { %26502 = vmatmul.mubr.msk.f32.gmra.mrb[16].mxu0 %vm279_vm1, %v32834_v56  ;;  %v32860_v56 = vld [vmem:[#allocation2 + $0x169] sm:$0xff] }
 0x3de   : > { %26504 = vmatprep.mubr.msk.f32.mxu0 %vm279_vm1, %v32836_v1  ;;  %v32858_v1 = vld [vmem:[#allocation2 + $0x159] sm:$0xff] }
 0x3df   : > { %37322 = vst [vmem:[#allocation84_spill] sm:$0xff] %v32858_v1 }
 0x3e1   : > { %26505 = vmatmul.mubr.msk.f32.gmra.mrb[18].mxu0 %vm279_vm1, %v32842_v30  ;;  %v32868_v30 = vld [vmem:[#allocation2 + $0x181] sm:$0xff] }
 0x3e2   : > { %26507 = vmatprep.mubr.msk.f32.mxu0 %vm279_vm1, %v32844_v62  ;;  %v32866_v62 = vld [vmem:[#allocation2 + $0x171] sm:$0xff] }
 0x3e3   : > { %37323 = vst [vmem:[#allocation85_spill] sm:$0xff] %v32866_v62 }
 0x3e5   : > { %26508 = vmatmul.mubr.msk.f32.gmra.mrb[20].mxu0 %vm279_vm1, %v32850_v36 }
 0x3e6   : > { %26510 = vmatprep.mubr.msk.f32.mxu0 %vm279_vm1, %v32852_v58  ;;  %v32874_v58 = vld [vmem:[#allocation2 + $0x189] sm:$0xff] }
 0x3e9   : > { %26511 = vmatmul.mubr.msk.f32.gmra.mrb[22].mxu0 %vm279_vm1, %v32858_v1  ;;  %v32880_v1 = vld [vmem:[#allocation2 + $0x1b1] sm:$0xff] }
 0x3ea   : > { %26513 = vmatprep.mubr.msk.f32.mxu0 %vm279_vm1, %v32860_v56 }
 0x3ed   : > { %26514 = vmatmul.mubr.msk.f32.gmra.mrb[24].mxu0 %vm279_vm1, %v32866_v62  ;;  %v32886_v62 = vld [vmem:[#allocation2 + $0x1b9] sm:$0xff] }
 0x3ee   : > { %26516 = vmatprep.mubr.msk.f32.mxu0 %vm279_vm1, %v32868_v30 }
 0x3f1   : > { %26517 = vmatmul.mubr.msk.f32.gmra.mrb[26].mxu0 %vm279_vm1, %v32874_v58 }
 0x3f2   : > { %26519 = vmatprep.mubr.msk.f32.mxu0 %vm279_vm1, %v32238_v42  ;;  %v22496_v42 = vld [vmem:[%s36864_s1 + $0x4c] sm:$0x7] }
 0x3f5   : > { %26520 = vmatmul.mubr.msk.f32.gmra.mrb[28].mxu0 %vm279_vm1, %v32244_v25  ;;  %v32946_v25 = vld [vmem:[#allocation2 + $0x182] sm:$0xff] }
 0x3f6   : > { %26522 = vmatprep.mubr.msk.f32.mxu0 %vm279_vm1, %v32880_v1 }
 0x3f9   : > { %26523 = vmatmul.mubr.msk.f32.gmra.mrb[30].mxu0 %vm279_vm1, %v32886_v62 }
 0x3fa   : > { %26527 = vmatprep.mubr.msk.f32.mxu0 %vm279_vm1, %v32249_v43  ;;  %v32952_v43 = vld [vmem:[#allocation2 + $0x18a] sm:$0xff] }
 0x3fd   : > { %26528 = vmatmul.mubr.msk.f32.vlgmr.msra.gmra.mrb[0].mxu0 %vm279_vm1, %v32260_v39  ;;  %v32958_v39 = vld [vmem:[#allocation2 + $0x1b2] sm:$0xff] }
 0x3fe   : > { %26576 = vmatpush3.msk.msra.mxu0 %vm625_vm0, %v32768_v0  ;;  %26530 = vmatprep.mubr.msk.f32.mxu0 %vm279_vm1, %v32262_v10  ;;  %v32964_v10 = vld [vmem:[#allocation2 + $0x1ba] sm:$0xff]  ;;  %v37363_v0 = vld [vmem:[#allocation44_spill] sm:$0xff] }
 0x3ff   : > { %26625 = vmatprep.subr.msk.mxu0 %vm625_vm0, %v22496_v42 }
 0x401   : > { %26531 = vmatmul.mubr.msk.f32.gmra.mrb[2].mxu0 %vm279_vm1, %v32270_v41  ;;  %v22530_v41 = vld [vmem:[%s36864_s1 + $0x50] sm:$0x7] }
 0x402   : > { %26533 = vmatprep.mubr.msk.f32.mxu0 %vm279_vm1, %v32272_v15  ;;  %v37324_v15 = vld [vmem:[#allocation5_spill] sm:$0xff] }
 0x405   : > { %26534 = vmatmul.mubr.msk.f32.gmra.mrb[4].mxu0 %vm279_vm1, %v32278_v11  ;;  %v37325_v11 = vld [vmem:[#allocation6_spill] sm:$0xff] }
 0x406   : > { %26536 = vmatprep.mubr.msk.f32.mxu0 %vm279_vm1, %v32280_v13  ;;  %v37326_v13 = vld [vmem:[#allocation7_spill] sm:$0xff] }
 0x409   : > { %26537 = vmatmul.mubr.msk.f32.gmra.mrb[6].mxu0 %vm279_vm1, %v32286_v45  ;;  %v37327_v45 = vld [vmem:[#allocation8_spill] sm:$0xff] }
 0x40a   : > { %26539 = vmatprep.mubr.msk.f32.mxu0 %vm279_vm1, %v32288_v46  ;;  %v37328_v46 = vld [vmem:[#allocation9_spill] sm:$0xff] }
 0x40d   : > { %26540 = vmatmul.mubr.msk.f32.gmra.mrb[8].mxu0 %vm279_vm1, %v32294_v47  ;;  %v33023_v47 = vld [vmem:[#allocation2 + $0x183] sm:$0xff] }
 0x40e   : > { %26542 = vmatprep.mubr.msk.f32.mxu0 %vm279_vm1, %v32296_v48  ;;  %v37329_v48 = vld [vmem:[#allocation10_spill] sm:$0xff] }
 0x411   : > { %26543 = vmatmul.mubr.msk.f32.gmra.mrb[10].mxu0 %vm279_vm1, %v32302_v49  ;;  %v33029_v49 = vld [vmem:[#allocation2 + $0x18b] sm:$0xff] }
 0x412   : > { %26545 = vmatprep.mubr.msk.f32.mxu0 %vm279_vm1, %v32304_v50  ;;  %v33035_v50 = vld [vmem:[#allocation2 + $0x1b3] sm:$0xff] }
 0x415   : > { %26546 = vmatmul.mubr.msk.f32.gmra.mrb[12].mxu0 %vm279_vm1, %v32310_v51  ;;  %v37330_v51 = vld [vmem:[#allocation11_spill] sm:$0xff] }
 0x416   : > { %26548 = vmatprep.mubr.msk.f32.mxu0 %vm279_vm1, %v32312_v52  ;;  %v33041_v52 = vld [vmem:[#allocation2 + $0x1bb] sm:$0xff] }
 0x419   : > { %26549 = vmatmul.mubr.msk.f32.gmra.mrb[14].mxu0 %vm279_vm1, %v32318_v53  ;;  %v37331_v53 = vld [vmem:[#allocation12_spill] sm:$0xff] }
 0x41a   : > { %26551 = vmatprep.mubr.msk.f32.mxu0 %vm279_vm1, %v32320_v54  ;;  %v22564_v54 = vld [vmem:[%s36864_s1 + $0x54] sm:$0x7] }
 0x41d   : > { %26552 = vmatmul.mubr.msk.f32.gmra.mrb[16].mxu0 %vm279_vm1, %v32326_v55  ;;  %v37332_v55 = vld [vmem:[#allocation13_spill] sm:$0xff] }
 0x41e   : > { %26554 = vmatprep.mubr.msk.f32.mxu0 %vm279_vm1, %v32328_v57  ;;  %v37333_v57 = vld [vmem:[#allocation14_spill] sm:$0xff] }
 0x421   : > { %26555 = vmatmul.mubr.msk.f32.gmra.mrb[18].mxu0 %vm279_vm1, %v32334_v59  ;;  %v37334_v59 = vld [vmem:[#allocation15_spill] sm:$0xff] }
 0x422   : > { %26557 = vmatprep.mubr.msk.f32.mxu0 %vm279_vm1, %v32336_v60  ;;  %v37335_v60 = vld [vmem:[#allocation16_spill] sm:$0xff] }
 0x425   : > { %26558 = vmatmul.mubr.msk.f32.gmra.mrb[20].mxu0 %vm279_vm1, %v32342_v61  ;;  %v37336_v61 = vld [vmem:[#allocation17_spill] sm:$0xff] }
 0x426   : > { %26560 = vmatprep.mubr.msk.f32.mxu0 %vm279_vm1, %v32344_v63  ;;  %v37337_v63 = vld [vmem:[#allocation18_spill] sm:$0xff] }
 0x429   : > { %26561 = vmatmul.mubr.msk.f32.gmra.mrb[22].mxu0 %vm279_vm1, %v32350_v2  ;;  %v37338_v2 = vld [vmem:[#allocation19_spill] sm:$0xff] }
 0x42a   : > { %26563 = vmatprep.mubr.msk.f32.mxu0 %vm279_vm1, %v32352_v12  ;;  %v37339_v12 = vld [vmem:[#allocation20_spill] sm:$0xff] }
 0x42d   : > { %26564 = vmatmul.mubr.msk.f32.gmra.mrb[24].mxu0 %vm279_vm1, %v32358_v3  ;;  %v37340_v3 = vld [vmem:[#allocation21_spill] sm:$0xff] }
 0x42e   : > { %26566 = vmatprep.mubr.msk.f32.mxu0 %vm279_vm1, %v32946_v25 }
 0x431   : > { %26567 = vmatmul.mubr.msk.f32.gmra.mrb[26].mxu0 %vm279_vm1, %v32952_v43 }
 0x432   : > { %26569 = vmatprep.mubr.msk.f32.mxu0 %vm279_vm1, %v32364_v4  ;;  %v37341_v4 = vld [vmem:[#allocation22_spill] sm:$0xff] }
 0x435   : > { %26570 = vmatmul.mubr.msk.f32.gmra.mrb[28].mxu0 %vm279_vm1, %v32370_v5  ;;  %v37342_v5 = vld [vmem:[#allocation23_spill] sm:$0xff] }
 0x436   : > { %26572 = vmatprep.mubr.msk.f32.mxu0 %vm279_vm1, %v32958_v39 }
 0x439   : > { %26573 = vmatmul.mubr.msk.f32.gmra.mrb[30].mxu0 %vm279_vm1, %v32964_v10 }
 0x43a   : > { %26577 = vmatprep.mubr.msk.f32.mxu0 %vm279_vm1, %v32375_v8  ;;  %v37343_v8 = vld [vmem:[#allocation24_spill] sm:$0xff] }
 0x43d   : > { %26578 = vmatmul.mubr.msk.f32.vlgmr.msra.gmra.mrb[0].mxu0 %vm279_vm1, %v32387_v44  ;;  %v37344_v44 = vld [vmem:[#allocation25_spill] sm:$0xff] }
 0x43e   : > { %26626 = vmatpush3.msk.msra.mxu0 %vm625_vm0, %v22496_v42  ;;  %26580 = vmatprep.mubr.msk.f32.mxu0 %vm279_vm1, %v32389_v9  ;;  %v37345_v9 = vld [vmem:[#allocation26_spill] sm:$0xff]  ;;  %v37364_v42 = vld [vmem:[#allocation45_spill] sm:$0xff] }
 0x43f   : > { %26675 = vmatprep.subr.msk.mxu0 %vm625_vm0, %v22530_v41 }
 0x441   : > { %26581 = vmatmul.mubr.msk.f32.gmra.mrb[2].mxu0 %vm279_vm1, %v32397_v14  ;;  %v37346_v14 = vld [vmem:[#allocation27_spill] sm:$0xff] }
 0x442   : > { %26583 = vmatprep.mubr.msk.f32.mxu0 %vm279_vm1, %v32399_v16  ;;  %v37347_v16 = vld [vmem:[#allocation28_spill] sm:$0xff] }
 0x445   : > { %26584 = vmatmul.mubr.msk.f32.gmra.mrb[4].mxu0 %vm279_vm1, %v32405_v17  ;;  %v37348_v17 = vld [vmem:[#allocation29_spill] sm:$0xff] }
 0x446   : > { %26586 = vmatprep.mubr.msk.f32.mxu0 %vm279_vm1, %v32407_v18  ;;  %v37349_v18 = vld [vmem:[#allocation30_spill] sm:$0xff] }
 0x449   : > { %26587 = vmatmul.mubr.msk.f32.gmra.mrb[6].mxu0 %vm279_vm1, %v32413_v19  ;;  %v37350_v19 = vld [vmem:[#allocation31_spill] sm:$0xff] }
 0x44a   : > { %26589 = vmatprep.mubr.msk.f32.mxu0 %vm279_vm1, %v32415_v20  ;;  %v37351_v20 = vld [vmem:[#allocation32_spill] sm:$0xff] }
 0x44d   : > { %26590 = vmatmul.mubr.msk.f32.gmra.mrb[8].mxu0 %vm279_vm1, %v32421_v21  ;;  %v37352_v21 = vld [vmem:[#allocation33_spill] sm:$0xff] }
 0x44e   : > { %26592 = vmatprep.mubr.msk.f32.mxu0 %vm279_vm1, %v32423_v22  ;;  %v33100_v22 = vld [vmem:[#allocation2 + $0x184] sm:$0xff] }
 0x451   : > { %26593 = vmatmul.mubr.msk.f32.gmra.mrb[10].mxu0 %vm279_vm1, %v32429_v23  ;;  %v37353_v23 = vld [vmem:[#allocation34_spill] sm:$0xff] }
 0x452   : > { %26595 = vmatprep.mubr.msk.f32.mxu0 %vm279_vm1, %v32431_v27  ;;  %v33106_v27 = vld [vmem:[#allocation2 + $0x18c] sm:$0xff] }
 0x455   : > { %26596 = vmatmul.mubr.msk.f32.gmra.mrb[12].mxu0 %vm279_vm1, %v32437_v28  ;;  %v33112_v28 = vld [vmem:[#allocation2 + $0x1b4] sm:$0xff] }
 0x456   : > { %26598 = vmatprep.mubr.msk.f32.mxu0 %vm279_vm1, %v32439_v29  ;;  %v37354_v29 = vld [vmem:[#allocation35_spill] sm:$0xff] }
 0x459   : > { %26599 = vmatmul.mubr.msk.f32.gmra.mrb[14].mxu0 %vm279_vm1, %v32445_v32  ;;  %v33118_v32 = vld [vmem:[#allocation2 + $0x1bc] sm:$0xff] }
 0x45a   : > { %26601 = vmatprep.mubr.msk.f32.mxu0 %vm279_vm1, %v32447_v33  ;;  %v37355_v33 = vld [vmem:[#allocation36_spill] sm:$0xff] }
 0x45d   : > { %26602 = vmatmul.mubr.msk.f32.gmra.mrb[16].mxu0 %vm279_vm1, %v32453_v35  ;;  %v33127_v35 = vld [vmem:[%s36864_s1 + $0x58] sm:$0x7] }
 0x45e   : > { %26604 = vmatprep.mubr.msk.f32.mxu0 %vm279_vm1, %v32455_v37  ;;  %v37356_v37 = vld [vmem:[#allocation37_spill] sm:$0xff] }
 0x461   : > { %26605 = vmatmul.mubr.msk.f32.gmra.mrb[18].mxu0 %vm279_vm1, %v32461_v38  ;;  %v37357_v38 = vld [vmem:[#allocation38_spill] sm:$0xff] }
 0x462   : > { %26607 = vmatprep.mubr.msk.f32.mxu0 %vm279_vm1, %v37324_v15  ;;  %v37366_v15 = vld [vmem:[#allocation47_spill] sm:$0xff] }
 0x465   : > { %26608 = vmatmul.mubr.msk.f32.gmra.mrb[20].mxu0 %vm279_vm1, %v37325_v11  ;;  %v37367_v11 = vld [vmem:[#allocation48_spill] sm:$0xff] }
 0x466   : > { %26610 = vmatprep.mubr.msk.f32.mxu0 %vm279_vm1, %v37326_v13  ;;  %v37368_v13 = vld [vmem:[#allocation49_spill] sm:$0xff] }
 0x469   : > { %26611 = vmatmul.mubr.msk.f32.gmra.mrb[22].mxu0 %vm279_vm1, %v37327_v45  ;;  %v37369_v45 = vld [vmem:[#allocation50_spill] sm:$0xff] }
 0x46a   : > { %26613 = vmatprep.mubr.msk.f32.mxu0 %vm279_vm1, %v37328_v46  ;;  %v37370_v46 = vld [vmem:[#allocation51_spill] sm:$0xff] }
 0x46d   : > { %26614 = vmatmul.mubr.msk.f32.gmra.mrb[24].mxu0 %vm279_vm1, %v37329_v48  ;;  %v21851_v48 = vld [vmem:[%s36864_s1 + $0x4] sm:$0x7] }
 0x46e   : > { %26616 = vmatprep.mubr.msk.f32.mxu0 %vm279_vm1, %v33023_v47  ;;  %25675 = vmatprep.subr.msk.mxu1 %vm625_vm0, %v21851_v48 }
 0x46f   : > { %25676 = vmatpush3.msk.msra.mxu1 %vm625_vm0, %v21851_v48  ;;  %v525_v48 = vld [vmem:[#allocation2 + $0x169] sm:$0xff] }
 0x471   : > { %26617 = vmatmul.mubr.msk.f32.gmra.mrb[26].mxu0 %vm279_vm1, %v33029_v49 }
 0x472   : > { %26619 = vmatprep.mubr.msk.f32.mxu0 %vm279_vm1, %v32491_v24  ;;  %v37358_v24 = vld [vmem:[#allocation39_spill] sm:$0xff] }
 0x475   : > { %26620 = vmatmul.mubr.msk.f32.gmra.mrb[28].mxu0 %vm279_vm1, %v37330_v51  ;;  %v495_v51 = vld [vmem:[#allocation2 + $0x1] sm:$0xff] }
 0x476   : > { %26622 = vmatprep.mubr.msk.f32.mxu0 %vm279_vm1, %v33035_v50  ;;  %25677 = vmatprep.mubr.msk.f32.mxu1 %vm279_vm1, %v495_v51  ;;  %v526_v51 = vld [vmem:[#allocation2 + $0x171] sm:$0xff] }
 0x479   : > { %26623 = vmatmul.mubr.msk.f32.gmra.mrb[30].mxu0 %vm279_vm1, %v33041_v52 }
 0x47a   : > { %26627 = vmatprep.mubr.msk.f32.mxu0 %vm279_vm1, %v37331_v53  ;;  %v496_v53 = vld [vmem:[#allocation2 + $0x9] sm:$0xff] }
 0x47b   : > { %25678 = vmatmul.mubr.msk.f32.vlgmr.msra.gmra.mrb[0].mxu1 %vm279_vm1, %v496_v53  ;;  %v470_v53 = vld [vmem:[#allocation2 + $0x60] sm:$0xff] }
 0x47d   : > { %26628 = vmatmul.mubr.msk.f32.vlgmr.msra.gmra.mrb[0].mxu0 %vm279_vm1, %v37332_v55  ;;  %v30928_v55 = vld [vmem:[%s36864_s1] sm:$0x7] }
 0x47e   : > { %26676 = vmatpush3.msk.msra.mxu0 %vm625_vm0, %v22530_v41  ;;  %26630 = vmatprep.mubr.msk.f32.mxu0 %vm279_vm1, %v37333_v57  ;;  %v37365_v41 = vld [vmem:[#allocation46_spill] sm:$0xff]  ;;  %v37372_v57 = vld [vmem:[#allocation53_spill] sm:$0xff] }
 0x47f   : > { %26725 = vmatprep.subr.msk.mxu0 %vm625_vm0, %v22564_v54  ;;  %29509 = vmatprep.subr.msk.mxu1 %vm625_vm0, %v30928_v55 }
 0x480   : > { %29510 = vmatpush3.msk.msra.mxu1 %vm625_vm0, %v30928_v55  ;;  %v472_v55 = vld [vmem:[#allocation2 + $0x78] sm:$0xff] }
 0x481   : > { %26631 = vmatmul.mubr.msk.f32.gmra.mrb[2].mxu0 %vm279_vm1, %v37334_v59  ;;  %v497_v59 = vld [vmem:[#allocation2 + $0x19] sm:$0xff] }
 0x482   : > { %26633 = vmatprep.mubr.msk.f32.mxu0 %vm279_vm1, %v37335_v60  ;;  %v498_v60 = vld [vmem:[#allocation2 + $0x21] sm:$0xff]  ;;  %25680 = vmatprep.mubr.msk.f32.mxu1 %vm279_vm1, %v497_v59  ;;  %v474_v59 = vld [vmem:[#allocation2 + $0x90] sm:$0xff] }
 0x483   : > { %25681 = vmatmul.mubr.msk.f32.gmra.mrb[2].mxu1 %vm279_vm1, %v498_v60  ;;  %v475_v60 = vld [vmem:[#allocation2 + $0x98] sm:$0xff] }
 0x485   : > { %26634 = vmatmul.mubr.msk.f32.gmra.mrb[4].mxu0 %vm279_vm1, %v37336_v61  ;;  %v37373_v61 = vld [vmem:[#allocation54_spill] sm:$0xff] }
 0x486   : > { %26636 = vmatprep.mubr.msk.f32.mxu0 %vm279_vm1, %v37337_v63  ;;  %v499_v63 = vld [vmem:[#allocation2 + $0x31] sm:$0xff] }
 0x487   : > { %25683 = vmatprep.mubr.msk.f32.mxu1 %vm279_vm1, %v499_v63  ;;  %v477_v63 = vld [vmem:[#allocation2 + $0xb0] sm:$0xff] }
 0x489   : > { %26637 = vmatmul.mubr.msk.f32.gmra.mrb[6].mxu0 %vm279_vm1, %v37338_v2  ;;  %v500_v2 = vld [vmem:[#allocation2 + $0x39] sm:$0xff] }
 0x48a   : > { %26639 = vmatprep.mubr.msk.f32.mxu0 %vm279_vm1, %v37339_v12  ;;  %v37374_v12 = vld [vmem:[#allocation55_spill] sm:$0xff]  ;;  %25684 = vmatmul.mubr.msk.f32.gmra.mrb[4].mxu1 %vm279_vm1, %v500_v2 }
 0x48b   : > { %25686 = vmatprep.mubr.msk.f32.mxu1 %vm279_vm1, %v32755_v34  ;;  %v37382_v34 = vld [vmem:[#allocation60_spill] sm:$0xff]  ;;  %v478_v2 = vld [vmem:[#allocation2 + $0xc0] sm:$0xff] }
 0x48d   : > { %26640 = vmatmul.mubr.msk.f32.gmra.mrb[8].mxu0 %vm279_vm1, %v37340_v3  ;;  %v37375_v3 = vld [vmem:[#allocation56_spill] sm:$0xff] }
 0x48e   : > { %26642 = vmatprep.mubr.msk.f32.mxu0 %vm279_vm1, %v37341_v4  ;;  %v37376_v4 = vld [vmem:[#allocation57_spill] sm:$0xff] }
 0x491   : > { %26643 = vmatmul.mubr.msk.f32.gmra.mrb[10].mxu0 %vm279_vm1, %v37342_v5  ;;  %v37377_v5 = vld [vmem:[#allocation63_spill] sm:$0xff] }
 0x492   : > { %26645 = vmatprep.mubr.msk.f32.mxu0 %vm279_vm1, %v37343_v8  ;;  %25687 = vmatmul.mubr.msk.f32.gmra.mrb[6].mxu1 %vm279_vm1, %v37377_v5  ;;  %v37379_v8 = vld [vmem:[#allocation64_spill] sm:$0xff] }
 0x493   : > { %25689 = vmatprep.mubr.msk.f32.mxu1 %vm279_vm1, %v37379_v8  ;;  %v8618_v5 = vld [vmem:[#allocation2 + $0x1a1] sm:$0xff] }
 0x495   : > { %26646 = vmatmul.mubr.msk.f32.gmra.mrb[12].mxu0 %vm279_vm1, %v37344_v44  ;;  %v37380_v44 = vld [vmem:[#allocation59_spill] sm:$0xff] }
 0x496   : > { %26648 = vmatprep.mubr.msk.f32.mxu0 %vm279_vm1, %v37345_v9  ;;  %v8227_v9 = vld [vmem:[#allocation2 + $0x198] sm:$0xff] }
 0x499   : > { %26649 = vmatmul.mubr.msk.f32.gmra.mrb[14].mxu0 %vm279_vm1, %v37346_v14  ;;  %v37381_v14 = vld [vmem:[#allocation65_spill] sm:$0xff] }
 0x49a   : > { %26651 = vmatprep.mubr.msk.f32.mxu0 %vm279_vm1, %v37347_v16  ;;  %25690 = vmatmul.mubr.msk.f32.gmra.mrb[8].mxu1 %vm279_vm1, %v37381_v14  ;;  %v37383_v16 = vld [vmem:[#allocation66_spill] sm:$0xff] }
 0x49b   : > { %25692 = vmatprep.mubr.msk.f32.mxu1 %vm279_vm1, %v37383_v16 }
 0x49d   : > { %26652 = vmatmul.mubr.msk.f32.gmra.mrb[16].mxu0 %vm279_vm1, %v37348_v17  ;;  %v8228_v17 = vld [vmem:[#allocation2 + $0x1a0] sm:$0xff] }
 0x49e   : > { %26654 = vmatprep.mubr.msk.f32.mxu0 %vm279_vm1, %v37349_v18  ;;  %v37384_v18 = vld [vmem:[#allocation67_spill] sm:$0xff] }
 0x49f   : > { %25693 = vmatmul.mubr.msk.f32.gmra.mrb[10].mxu1 %vm279_vm1, %v37384_v18 }
 0x4a1   : > { %26655 = vmatmul.mubr.msk.f32.gmra.mrb[18].mxu0 %vm279_vm1, %v32588_v6  ;;  %v37359_v6 = vld [vmem:[#allocation40_spill] sm:$0xff] }
 0x4a2   : > { %26657 = vmatprep.mubr.msk.f32.mxu0 %vm279_vm1, %v37350_v19  ;;  %v37385_v19 = vld [vmem:[#allocation68_spill] sm:$0xff] }
 0x4a3   : > { %25695 = vmatprep.mubr.msk.f32.mxu1 %vm279_vm1, %v37385_v19 }
 0x4a5   : > { %26658 = vmatmul.mubr.msk.f32.gmra.mrb[20].mxu0 %vm279_vm1, %v37351_v20  ;;  %v37386_v20 = vld [vmem:[#allocation61_spill] sm:$0xff] }
 0x4a6   : > { %26660 = vmatprep.mubr.msk.f32.mxu0 %vm279_vm1, %v32598_v31  ;;  %v37360_v31 = vld [vmem:[#allocation41_spill] sm:$0xff] }
 0x4a9   : > { %26661 = vmatmul.mubr.msk.f32.gmra.mrb[22].mxu0 %vm279_vm1, %v37352_v21  ;;  %v8231_v21 = vld [vmem:[#allocation2 + $0x1c8] sm:$0xff] }
 0x4aa   : > { %26663 = vmatprep.mubr.msk.f32.mxu0 %vm279_vm1, %v32606_v40  ;;  %v37362_v40 = vld [vmem:[#allocation43_spill] sm:$0xff] }
 0x4ad   : > { %26664 = vmatmul.mubr.msk.f32.gmra.mrb[24].mxu0 %vm279_vm1, %v37353_v23  ;;  %v37387_v23 = vld [vmem:[#allocation69_spill] sm:$0xff] }
 0x4ae   : > { %26666 = vmatprep.mubr.msk.f32.mxu0 %vm279_vm1, %v33100_v22  ;;  %25696 = vmatmul.mubr.msk.f32.gmra.mrb[12].mxu1 %vm279_vm1, %v37387_v23 }
 0x4b1   : > { %26667 = vmatmul.mubr.msk.f32.gmra.mrb[26].mxu0 %vm279_vm1, %v33106_v27 }
 0x4b2   : > { %26669 = vmatprep.mubr.msk.f32.mxu0 %vm279_vm1, %v32618_v26  ;;  %v37361_v26 = vld [vmem:[#allocation42_spill] sm:$0xff] }
 0x4b5   : > { %26670 = vmatmul.mubr.msk.f32.gmra.mrb[28].mxu0 %vm279_vm1, %v37354_v29  ;;  %v37388_v29 = vld [vmem:[#allocation62_spill] sm:$0xff] }
 0x4b6   : > { %26672 = vmatprep.mubr.msk.f32.mxu0 %vm279_vm1, %v33112_v28 }
 0x4b9   : > { %26673 = vmatmul.mubr.msk.f32.gmra.mrb[30].mxu0 %vm279_vm1, %v33118_v32 }
 0x4ba   : > { %26677 = vmatprep.mubr.msk.f32.mxu0 %vm279_vm1, %v37355_v33  ;;  %v37389_v33 = vld [vmem:[#allocation70_spill] sm:$0xff] }
 0x4bb   : > { %25698 = vmatprep.mubr.msk.f32.mxu1 %vm279_vm1, %v37389_v33 }
 0x4bd   : > { %26678 = vmatmul.mubr.msk.f32.vlgmr.msra.gmra.mrb[0].mxu0 %vm279_vm1, %v37356_v37  ;;  %v8232_v37 = vld [vmem:[#allocation2 + $0x1d0] sm:$0xff] }
 0x4be   : > { %26726 = vmatpush3.msk.msra.mxu0 %vm625_vm0, %v22564_v54  ;;  %26680 = vmatprep.mubr.msk.f32.mxu0 %vm279_vm1, %v37357_v38  ;;  %v37371_v54 = vld [vmem:[#allocation52_spill] sm:$0xff]  ;;  %v37390_v38 = vld [vmem:[#allocation71_spill] sm:$0xff] }
 0x4bf   : > { %26775 = vmatprep.subr.msk.mxu0 %vm625_vm0, %v33127_v35  ;;  %25699 = vmatmul.mubr.msk.f32.gmra.mrb[14].mxu1 %vm279_vm1, %v37390_v38 }
 0x4c1   : > { %26681 = vmatmul.mubr.msk.f32.gmra.mrb[2].mxu0 %vm279_vm1, %v37358_v24  ;;  %v37391_v24 = vld [vmem:[#allocation72_spill] sm:$0xff] }
 0x4c2   : > { %26683 = vmatprep.mubr.msk.f32.mxu0 %vm279_vm1, %v37359_v6  ;;  %25701 = vmatprep.mubr.msk.f32.mxu1 %vm279_vm1, %v37391_v24  ;;  %v33233_v6 = vld [vmem:[%s36864_s1 + $0x5c] sm:$0x7] }
 0x4c5   : > { %26684 = vmatmul.mubr.msk.f32.gmra.mrb[4].mxu0 %vm279_vm1, %v37360_v31  ;;  %v37392_v31 = vld [vmem:[#allocation73_spill] sm:$0xff] }
 0x4c6   : > { %26686 = vmatprep.mubr.msk.f32.mxu0 %vm279_vm1, %v37361_v26  ;;  %25702 = vmatmul.mubr.msk.f32.gmra.mrb[16].mxu1 %vm279_vm1, %v37392_v31  ;;  %v37393_v26 = vld [vmem:[#allocation74_spill] sm:$0xff] }
 0x4c7   : > { %25704 = vmatprep.mubr.msk.f32.mxu1 %vm279_vm1, %v37393_v26 }
 0x4c9   : > { %26687 = vmatmul.mubr.msk.f32.gmra.mrb[6].mxu0 %vm279_vm1, %v37362_v40  ;;  %v37394_v40 = vld [vmem:[#allocation75_spill] sm:$0xff] }
 0x4ca   : > { %26689 = vmatprep.mubr.msk.f32.mxu0 %vm279_vm1, %v37363_v0  ;;  %25705 = vmatmul.mubr.msk.f32.gmra.mrb[18].mxu1 %vm279_vm1, %v37394_v40  ;;  %v37395_v0 = vld [vmem:[#allocation76_spill] sm:$0xff] }
 0x4cb   : > { %25707 = vmatprep.mubr.msk.f32.mxu1 %vm279_vm1, %v37395_v0 }
 0x4cd   : > { %26690 = vmatmul.mubr.msk.f32.gmra.mrb[8].mxu0 %vm279_vm1, %v37364_v42  ;;  %v37396_v42 = vld [vmem:[#allocation77_spill] sm:$0xff] }
 0x4ce   : > { %26692 = vmatprep.mubr.msk.f32.mxu0 %vm279_vm1, %v37365_v41  ;;  %25708 = vmatmul.mubr.msk.f32.gmra.mrb[20].mxu1 %vm279_vm1, %v37396_v42  ;;  %v37398_v41 = vld [vmem:[#allocation79_spill] sm:$0xff] }
 0x4d1   : > { %26693 = vmatmul.mubr.msk.f32.gmra.mrb[10].mxu0 %vm279_vm1, %v37366_v15  ;;  %v37399_v15 = vld [vmem:[#allocation80_spill] sm:$0xff] }
 0x4d2   : > { %26695 = vmatprep.mubr.msk.f32.mxu0 %vm279_vm1, %v37367_v11  ;;  %v37400_v11 = vld [vmem:[#allocation81_spill] sm:$0xff] }
 0x4d5   : > { %26696 = vmatmul.mubr.msk.f32.gmra.mrb[12].mxu0 %vm279_vm1, %v37368_v13  ;;  %v37401_v13 = vld [vmem:[#allocation82_spill] sm:$0xff] }
 0x4d6   : > { %26698 = vmatprep.mubr.msk.f32.mxu0 %vm279_vm1, %v37369_v45  ;;  %v37402_v45 = vld [vmem:[#allocation83_spill] sm:$0xff] }
 0x4d9   : > { %26699 = vmatmul.mubr.msk.f32.gmra.mrb[14].mxu0 %vm279_vm1, %v37370_v46  ;;  %v37403_v46 = vld [vmem:[#allocation84_spill] sm:$0xff] }
 0x4da   : > { %26701 = vmatprep.mubr.msk.f32.mxu0 %vm279_vm1, %v37371_v54  ;;  %v471_v54 = vld [vmem:[#allocation2 + $0x68] sm:$0xff] }
 0x4dd   : > { %26702 = vmatmul.mubr.msk.f32.gmra.mrb[16].mxu0 %vm279_vm1, %v37372_v57  ;;  %v473_v57 = vld [vmem:[#allocation2 + $0x80] sm:$0xff] }
 0x4de   : > { %26704 = vmatprep.mubr.msk.f32.mxu0 %vm279_vm1, %v37373_v61  ;;  %v476_v61 = vld [vmem:[#allocation2 + $0xa8] sm:$0xff] }
 0x4e1   : > { %26705 = vmatmul.mubr.msk.f32.gmra.mrb[18].mxu0 %vm279_vm1, %v32717_v7  ;;  %v37378_v7 = vld [vmem:[#allocation58_spill] sm:$0xff] }
 0x4e2   : > { %26707 = vmatprep.mubr.msk.f32.mxu0 %vm279_vm1, %v37374_v12  ;;  %v479_v12 = vld [vmem:[#allocation2 + $0xc8] sm:$0xff] }
 0x4e5   : > { %26708 = vmatmul.mubr.msk.f32.gmra.mrb[20].mxu0 %vm279_vm1, %v37375_v3  ;;  %v8617_v3 = vld [vmem:[#allocation2 + $0x199] sm:$0xff] }
 0x4e6   : > { %26710 = vmatprep.mubr.msk.f32.mxu0 %vm279_vm1, %v37376_v4  ;;  %v481_v4 = vld [vmem:[#allocation2 + $0xe0] sm:$0xff] }
 0x4e9   : > { %26711 = vmatmul.mubr.msk.f32.gmra.mrb[22].mxu0 %vm279_vm1, %v37378_v7  ;;  %v483_v7 = vld [vmem:[#allocation2 + $0xf8] sm:$0xff] }
 0x4ea   : > { %26713 = vmatprep.mubr.msk.f32.mxu0 %vm279_vm1, %v37380_v44  ;;  %v485_v44 = vld [vmem:[#allocation2 + $0x110] sm:$0xff] }
 0x4ed   : > { %26714 = vmatmul.mubr.msk.f32.gmra.mrb[24].mxu0 %vm279_vm1, %v37382_v34  ;;  %v487_v34 = vld [vmem:[#allocation2 + $0x128] sm:$0xff] }
 0x4ee   : > { %26716 = vmatprep.mubr.msk.f32.mxu0 %vm279_vm1, %v8227_v9  ;;  %v8622_v9 = vld [vmem:[#allocation2 + $0x1d1] sm:$0xff] }
 0x4f1   : > { %26717 = vmatmul.mubr.msk.f32.gmra.mrb[26].mxu0 %vm279_vm1, %v8228_v17  ;;  %v33346_v17 = vld [vmem:[%s36864_s1 + $0x60] sm:$0x7] }
 0x4f2   : > { %26719 = vmatprep.mubr.msk.f32.mxu0 %vm279_vm1, %v37386_v20  ;;  %v8984_v20 = vld [vmem:[#allocation2 + $0x82] sm:$0xff] }
 0x4f5   : > { %26720 = vmatmul.mubr.msk.f32.gmra.mrb[28].mxu0 %vm279_vm1, %v37388_v29  ;;  %v491_v29 = vld [vmem:[#allocation2 + $0x158] sm:$0xff] }
 0x4f6   : > { %26722 = vmatprep.mubr.msk.f32.mxu0 %vm279_vm1, %v8231_v21  ;;  %v8985_v21 = vld [vmem:[#allocation2 + $0x92] sm:$0xff] }
 0x4f9   : > { %26723 = vmatmul.mubr.msk.f32.gmra.mrb[30].mxu0 %vm279_vm1, %v8232_v37  ;;  %v8987_v37 = vld [vmem:[#allocation2 + $0xaa] sm:$0xff] }
 0x4fa   : > { %26727 = vmatprep.mubr.msk.f32.mxu0 %vm279_vm1, %v37379_v8  ;;  %v8621_v8 = vld [vmem:[#allocation2 + $0x1c9] sm:$0xff] }
 0x4fd   : > { %26728 = vmatmul.mubr.msk.f32.vlgmr.msra.gmra.mrb[0].mxu0 %vm279_vm1, %v37381_v14  ;;  %v8981_v14 = vld [vmem:[#allocation2 + $0x62] sm:$0xff] }
 0x4fe   : > { %26776 = vmatpush3.msk.msra.mxu0 %vm625_vm0, %v33127_v35  ;;  %26730 = vmatprep.mubr.msk.f32.mxu0 %vm279_vm1, %v37383_v16  ;;  %v37397_v35 = vld [vmem:[#allocation78_spill] sm:$0xff]  ;;  %v8982_v16 = vld [vmem:[#allocation2 + $0x6a] sm:$0xff] }
 0x4ff   : > { %26825 = vmatprep.subr.msk.mxu0 %vm625_vm0, %v33233_v6  ;;  %25710 = vmatprep.mubr.msk.f32.mxu1 %vm279_vm1, %v37397_v35 }
 0x500   : > { %25711 = vmatmul.mubr.msk.f32.gmra.mrb[22].mxu1 %vm279_vm1, %v37398_v41 }
 0x501   : > { %26731 = vmatmul.mubr.msk.f32.gmra.mrb[2].mxu0 %vm279_vm1, %v37384_v18  ;;  %25713 = vmatprep.mubr.msk.f32.mxu1 %vm279_vm1, %v37399_v15  ;;  %v488_v18 = vld [vmem:[#allocation2 + $0x138] sm:$0xff] }
 0x502   : > { %26733 = vmatprep.mubr.msk.f32.mxu0 %vm279_vm1, %v37385_v19  ;;  %v489_v19 = vld [vmem:[#allocation2 + $0x140] sm:$0xff] }
 0x504   : > { %25714 = vmatmul.mubr.msk.f32.gmra.mrb[24].mxu1 %vm279_vm1, %v37400_v11 }
 0x505   : > { %26734 = vmatmul.mubr.msk.f32.gmra.mrb[4].mxu0 %vm279_vm1, %v37387_v23  ;;  %25716 = vmatprep.mubr.msk.f32.mxu1 %vm279_vm1, %v37401_v13  ;;  %v490_v23 = vld [vmem:[#allocation2 + $0x150] sm:$0xff] }
 0x506   : > { %26736 = vmatprep.mubr.msk.f32.mxu0 %vm279_vm1, %v37389_v33  ;;  %v8986_v33 = vld [vmem:[#allocation2 + $0x9a] sm:$0xff] }
 0x508   : > { %25717 = vmatmul.mubr.msk.f32.gmra.mrb[26].mxu1 %vm279_vm1, %v32850_v36 }
 0x509   : > { %26737 = vmatmul.mubr.msk.f32.gmra.mrb[6].mxu0 %vm279_vm1, %v37390_v38  ;;  %25719 = vmatprep.mubr.msk.f32.mxu1 %vm279_vm1, %v37402_v45  ;;  %v492_v38 = vld [vmem:[#allocation2 + $0x168] sm:$0xff] }
 0x50a   : > { %26739 = vmatprep.mubr.msk.f32.mxu0 %vm279_vm1, %v37391_v24  ;;  %v493_v24 = vld [vmem:[#allocation2 + $0x170] sm:$0xff] }
 0x50c   : > { %25720 = vmatmul.mubr.msk.f32.gmra.mrb[28].mxu1 %vm279_vm1, %v37403_v46 }
 0x50d   : > { %26740 = vmatmul.mubr.msk.f32.gmra.mrb[8].mxu0 %vm279_vm1, %v37392_v31  ;;  %25722 = vmatprep.mubr.msk.f32.mxu1 %vm279_vm1, %v525_v48  ;;  %v8989_v31 = vld [vmem:[#allocation2 + $0xc2] sm:$0xff]  ;;  %v9001_v48 = vld [vmem:[#allocation2 + $0x152] sm:$0xff] }
 0x50e   : > { %26742 = vmatprep.mubr.msk.f32.mxu0 %vm279_vm1, %v37393_v26  ;;  %v8990_v26 = vld [vmem:[#allocation2 + $0xca] sm:$0xff] }
 0x510   : > { %25723 = vmatmul.mubr.msk.f32.gmra.mrb[30].mxu1 %vm279_vm1, %v526_v51  ;;  %v9002_v51 = vld [vmem:[#allocation2 + $0x15a] sm:$0xff] }
 0x511   : > { %26743 = vmatmul.mubr.msk.f32.gmra.mrb[10].mxu0 %vm279_vm1, %v37394_v40  ;;  %25739 = vmatprep.mubr.msk.f32.mxu1 %vm279_vm1, %v470_v53  ;;  %v8991_v40 = vld [vmem:[#allocation2 + $0xda] sm:$0xff]  ;;  %v9003_v53 = vld [vmem:[#allocation2 + $0x16a] sm:$0xff] }
 0x512   : > { %26745 = vmatprep.mubr.msk.f32.mxu0 %vm279_vm1, %v37395_v0  ;;  %v8992_v0 = vld [vmem:[#allocation2 + $0xe2] sm:$0xff] }
 0x514   : > { %25740 = vmatmul.mubr.msk.f32.vlgmr.msra.gmra.mrb[8].mxu1 %vm279_vm1, %v471_v54  ;;  %v9004_v54 = vld [vmem:[#allocation2 + $0x172] sm:$0xff] }
 0x515   : > { %26746 = vmatmul.mubr.msk.f32.gmra.mrb[12].mxu0 %vm279_vm1, %v37396_v42  ;;  %25742 = vmatprep.mubr.msk.f32.mxu1 %vm279_vm1, %v472_v55  ;;  %v8993_v42 = vld [vmem:[#allocation2 + $0xf2] sm:$0xff]  ;;  %v9007_v55 = vld [vmem:[#allocation2 + $0x19a] sm:$0xff] }
 0x516   : > { %26748 = vmatprep.mubr.msk.f32.mxu0 %vm279_vm1, %v37397_v35  ;;  %v8994_v35 = vld [vmem:[#allocation2 + $0xfa] sm:$0xff] }
 0x518   : > { %25743 = vmatmul.mubr.msk.f32.gmra.mrb[10].mxu1 %vm279_vm1, %v473_v57  ;;  %v9008_v57 = vld [vmem:[#allocation2 + $0x1a2] sm:$0xff] }
 0x519   : > { %26749 = vmatmul.mubr.msk.f32.gmra.mrb[14].mxu0 %vm279_vm1, %v37398_v41  ;;  %25745 = vmatprep.mubr.msk.f32.mxu1 %vm279_vm1, %v474_v59  ;;  %v8995_v41 = vld [vmem:[#allocation2 + $0x10a] sm:$0xff] }
 0x51a   : > { %26751 = vmatprep.mubr.msk.f32.mxu0 %vm279_vm1, %v37399_v15  ;;  %v8996_v15 = vld [vmem:[#allocation2 + $0x112] sm:$0xff]  ;;  %v9011_v59 = vld [vmem:[#allocation2 + $0x1ca] sm:$0xff] }
 0x51c   : > { %25746 = vmatmul.mubr.msk.f32.gmra.mrb[12].mxu1 %vm279_vm1, %v475_v60  ;;  %v9012_v60 = vld [vmem:[#allocation2 + $0x1d2] sm:$0xff] }
 0x51d   : > { %26752 = vmatmul.mubr.msk.f32.gmra.mrb[16].mxu0 %vm279_vm1, %v37400_v11  ;;  %25748 = vmatprep.mubr.msk.f32.mxu1 %vm279_vm1, %v476_v61  ;;  %v8997_v11 = vld [vmem:[#allocation2 + $0x122] sm:$0xff] }
 0x51e   : > { %26754 = vmatprep.mubr.msk.f32.mxu0 %vm279_vm1, %v37401_v13  ;;  %v8998_v13 = vld [vmem:[#allocation2 + $0x12a] sm:$0xff]  ;;  %v9373_v61 = vld [vmem:[#allocation2 + $0x7b] sm:$0xff] }
 0x520   : > { %25749 = vmatmul.mubr.msk.f32.gmra.mrb[14].mxu1 %vm279_vm1, %v477_v63  ;;  %v9375_v63 = vld [vmem:[#allocation2 + $0x93] sm:$0xff] }
 0x521   : > { %26755 = vmatmul.mubr.msk.f32.gmra.mrb[18].mxu0 %vm279_vm1, %v32850_v36  ;;  %v37404_v36 = vld [vmem:[#allocation85_spill] sm:$0xff]  ;;  %25751 = vmatprep.mubr.msk.f32.mxu1 %vm279_vm1, %v478_v2 }
 0x522   : > { %26757 = vmatprep.mubr.msk.f32.mxu0 %vm279_vm1, %v37402_v45  ;;  %v8999_v45 = vld [vmem:[#allocation2 + $0x13a] sm:$0xff] }
 0x523   : > { %v9378_v2 = vld [vmem:[#allocation2 + $0xb3] sm:$0xff] }
 0x524   : > { %25752 = vmatmul.mubr.msk.f32.gmra.mrb[16].mxu1 %vm279_vm1, %v479_v12  ;;  %v9379_v12 = vld [vmem:[#allocation2 + $0xc3] sm:$0xff] }
 0x525   : > { %26758 = vmatmul.mubr.msk.f32.gmra.mrb[20].mxu0 %vm279_vm1, %v37403_v46  ;;  %v9000_v46 = vld [vmem:[#allocation2 + $0x142] sm:$0xff] }
 0x526   : > { %26760 = vmatprep.mubr.msk.f32.mxu0 %vm279_vm1, %v32860_v56  ;;  %v480_v56 = vld [vmem:[#allocation2 + $0xd8] sm:$0xff] }
 0x527   : > { %25754 = vmatprep.mubr.msk.f32.mxu1 %vm279_vm1, %v480_v56  ;;  %v22702_v56 = vld [vmem:[%s36866_s3 + $0x28] sm:$0xff] }
 0x528   : > { %25755 = vmatmul.mubr.msk.f32.gmra.mrb[18].mxu1 %vm279_vm1, %v481_v4 }
 0x529   : > { %26761 = vmatmul.mubr.msk.f32.gmra.mrb[22].mxu0 %vm279_vm1, %v37404_v36  ;;  %v9377_v36 = vld [vmem:[#allocation2 + $0xab] sm:$0xff] }
 0x52a   : > { %26763 = vmatprep.mubr.msk.f32.mxu0 %vm279_vm1, %v32868_v30  ;;  %v482_v30 = vld [vmem:[#allocation2 + $0xf0] sm:$0xff] }
 0x52b   : > { %25757 = vmatprep.mubr.msk.f32.mxu1 %vm279_vm1, %v482_v30  ;;  %v9381_v30 = vld [vmem:[#allocation2 + $0xdb] sm:$0xff] }
 0x52c   : > { %25758 = vmatmul.mubr.msk.f32.gmra.mrb[20].mxu1 %vm279_vm1, %v483_v7  ;;  %v9382_v7 = vld [vmem:[#allocation2 + $0xe3] sm:$0xff] }
 0x52d   : > { %26764 = vmatmul.mubr.msk.f32.gmra.mrb[24].mxu0 %vm279_vm1, %v32874_v58  ;;  %v484_v58 = vld [vmem:[#allocation2 + $0x108] sm:$0xff] }
 0x52e   : > { %26766 = vmatprep.mubr.msk.f32.mxu0 %vm279_vm1, %v8617_v3  ;;  %25760 = vmatprep.mubr.msk.f32.mxu1 %vm279_vm1, %v484_v58  ;;  %v22701_v3 = vld [vmem:[%s36866_s3 + $0x20] sm:$0xff]  ;;  %v37405_v58 = vmov 0.0  }
 0x52f   : > { %v28733_v4 = vpack.c.bf16 %v22702_v56, %v22701_v3  ;;  %342 = vst.msk [vmem:[#allocation3] sm:$0xff] %vm341_vm3, %v37405_v58  ;;  %343 = vst.msk [vmem:[#allocation3 + $0x8] sm:$0xff] %vm341_vm3, %v37405_v58 }
 0x530   : > { %25761 = vmatmul.mubr.msk.f32.gmra.mrb[22].mxu1 %vm279_vm1, %v485_v44  ;;  %344 = vst.msk [vmem:[#allocation3 + $0x10] sm:$0xff] %vm341_vm3, %v37405_v58  ;;  %345 = vst.msk [vmem:[#allocation3 + $0x18] sm:$0xff] %vm341_vm3, %v37405_v58  ;;  %v9384_v44 = vld [vmem:[#allocation2 + $0xfb] sm:$0xff] }
 0x531   : > { %26767 = vmatmul.mubr.msk.f32.gmra.mrb[26].mxu0 %vm279_vm1, %v8618_v5  ;;  %v9380_v5 = vld [vmem:[#allocation2 + $0xcb] sm:$0xff]  ;;  %28734 = vmatprep.subr.bf16.mxu1 %v28733_v4  ;;  %346 = vst.msk [vmem:[#allocation3 + $0x20] sm:$0xff] %vm341_vm3, %v37405_v58  ;;  %347 = vst.msk [vmem:[#allocation3 + $0x28] sm:$0xff] %vm341_vm3, %v37405_v58 }
 0x532   : > { %26769 = vmatprep.mubr.msk.f32.mxu0 %vm279_vm1, %v32880_v1  ;;  %v486_v1 = vld [vmem:[#allocation2 + $0x120] sm:$0xff]  ;;  %28736 = vmatpush3.bf16.msra.mxu1 %v28733_v4  ;;  %348 = vst.msk [vmem:[#allocation3 + $0x30] sm:$0xff] %vm341_vm3, %v37405_v58  ;;  %349 = vst.msk [vmem:[#allocation3 + $0x38] sm:$0xff] %vm341_vm3, %v37405_v58 }
 0x533   : > { %25763 = vmatprep.mubr.msk.f32.mxu1 %vm279_vm1, %v486_v1  ;;  %350 = vst.msk [vmem:[#allocation3 + $0x40] sm:$0xff] %vm341_vm3, %v37405_v58  ;;  %351 = vst.msk [vmem:[#allocation3 + $0x48] sm:$0xff] %vm341_vm3, %v37405_v58  ;;  %v9387_v1 = vld [vmem:[#allocation2 + $0x123] sm:$0xff] }
 0x534   : > { %25764 = vmatmul.mubr.msk.f32.gmra.mrb[24].mxu1 %vm279_vm1, %v487_v34  ;;  %352 = vst.msk [vmem:[#allocation3 + $0x50] sm:$0xff] %vm341_vm3, %v37405_v58  ;;  %353 = vst.msk [vmem:[#allocation3 + $0x58] sm:$0xff] %vm341_vm3, %v37405_v58  ;;  %v9388_v34 = vld [vmem:[#allocation2 + $0x12b] sm:$0xff] }
 0x535   : > { %26770 = vmatmul.mubr.msk.f32.gmra.mrb[28].mxu0 %vm279_vm1, %v32886_v62  ;;  %v8983_v62 = vld [vmem:[#allocation2 + $0x7a] sm:$0xff]  ;;  %25766 = vmatprep.mubr.msk.f32.mxu1 %vm279_vm1, %v488_v18  ;;  %354 = vst.msk [vmem:[#allocation3 + $0x60] sm:$0xff] %vm341_vm3, %v37405_v58  ;;  %355 = vst.msk [vmem:[#allocation3 + $0x68] sm:$0xff] %vm341_vm3, %v37405_v58 }
 0x536   : > { %26772 = vmatprep.mubr.msk.f32.mxu0 %vm279_vm1, %v8621_v8  ;;  %v9383_v8 = vld [vmem:[#allocation2 + $0xf3] sm:$0xff]  ;;  %356 = vst.msk [vmem:[#allocation3 + $0x70] sm:$0xff] %vm341_vm3, %v37405_v58  ;;  %357 = vst.msk [vmem:[#allocation3 + $0x78] sm:$0xff] %vm341_vm3, %v37405_v58  ;;  %v9392_v18 = vld [vmem:[#allocation2 + $0x15b] sm:$0xff] }
 0x537   : > { %358 = vst.msk [vmem:[#allocation3 + $0x80] sm:$0xff] %vm341_vm3, %v37405_v58  ;;  %359 = vst.msk [vmem:[#allocation3 + $0x88] sm:$0xff] %vm341_vm3, %v37405_v58 }
 0x538   : > { %25767 = vmatmul.mubr.msk.f32.gmra.mrb[26].mxu1 %vm279_vm1, %v489_v19  ;;  %360 = vst.msk [vmem:[#allocation3 + $0x90] sm:$0xff] %vm341_vm3, %v37405_v58  ;;  %361 = vst.msk [vmem:[#allocation3 + $0x98] sm:$0xff] %vm341_vm3, %v37405_v58  ;;  %v9393_v19 = vld [vmem:[#allocation2 + $0x16b] sm:$0xff] }
 0x539   : > { %26773 = vmatmul.mubr.msk.f32.gmra.mrb[30].mxu0 %vm279_vm1, %v8622_v9  ;;  %25769 = vmatprep.mubr.msk.f32.mxu1 %vm279_vm1, %v490_v23  ;;  %362 = vst.msk [vmem:[#allocation3 + $0xa0] sm:$0xff] %vm341_vm3, %v37405_v58  ;;  %363 = vst.msk [vmem:[#allocation3 + $0xa8] sm:$0xff] %vm341_vm3, %v37405_v58  ;;  %v9385_v9 = vld [vmem:[#allocation2 + $0x10b] sm:$0xff]  ;;  %v9398_v23 = vld [vmem:[#allocation2 + $0x1a3] sm:$0xff] }
 0x53a   : > { %26777 = vmatprep.mubr.msk.f32.mxu0 %vm279_vm1, %v8981_v14  ;;  %364 = vst.msk [vmem:[#allocation3 + $0xb0] sm:$0xff] %vm341_vm3, %v37405_v58  ;;  %365 = vst.msk [vmem:[#allocation3 + $0xb8] sm:$0xff] %vm341_vm3, %v37405_v58  ;;  %v9386_v14 = vld [vmem:[#allocation2 + $0x113] sm:$0xff] }
 0x53b   : > { %366 = vst.msk [vmem:[#allocation3 + $0xc0] sm:$0xff] %vm341_vm3, %v37405_v58  ;;  %367 = vst.msk [vmem:[#allocation3 + $0xc8] sm:$0xff] %vm341_vm3, %v37405_v58 }
 0x53c   : > { %25770 = vmatmul.mubr.msk.f32.gmra.mrb[28].mxu1 %vm279_vm1, %v491_v29  ;;  %368 = vst.msk [vmem:[#allocation3 + $0xd0] sm:$0xff] %vm341_vm3, %v37405_v58  ;;  %369 = vst.msk [vmem:[#allocation3 + $0xd8] sm:$0xff] %vm341_vm3, %v37405_v58 }
 0x53d   : > { %26778 = vmatmul.mubr.msk.f32.vlgmr.msra.gmra.mrb[0].mxu0 %vm279_vm1, %v8982_v16  ;;  %25772 = vmatprep.mubr.msk.f32.mxu1 %vm279_vm1, %v492_v38  ;;  %370 = vst.msk [vmem:[#allocation3 + $0xe0] sm:$0xff] %vm341_vm3, %v37405_v58  ;;  %371 = vst.msk [vmem:[#allocation3 + $0xe8] sm:$0xff] %vm341_vm3, %v37405_v58  ;;  %v9389_v16 = vld [vmem:[#allocation2 + $0x13b] sm:$0xff] }
 0x53e   : > { %26826 = vmatpush3.msk.msra.mxu0 %vm625_vm0, %v33233_v6  ;;  %26780 = vmatprep.mubr.msk.f32.mxu0 %vm279_vm1, %v8983_v62  ;;  %v8988_v6 = vld [vmem:[#allocation2 + $0xb2] sm:$0xff]  ;;  %372 = vst.msk [vmem:[#allocation3 + $0xf0] sm:$0xff] %vm341_vm3, %v37405_v58  ;;  %373 = vst.msk [vmem:[#allocation3 + $0xf8] sm:$0xff] %vm341_vm3, %v37405_v58  ;;  %v9390_v62 = vld [vmem:[#allocation2 + $0x143] sm:$0xff] }
 0x53f   : > { %26875 = vmatprep.subr.msk.mxu0 %vm625_vm0, %v33346_v17  ;;  %374 = vst.msk [vmem:[#allocation3 + $0x100] sm:$0xff] %vm341_vm3, %v37405_v58  ;;  %375 = vst.msk [vmem:[#allocation3 + $0x108] sm:$0xff] %vm341_vm3, %v37405_v58 }
 0x540   : > { %25773 = vmatmul.mubr.msk.f32.gmra.mrb[30].mxu1 %vm279_vm1, %v493_v24  ;;  %376 = vst.msk [vmem:[#allocation3 + $0x110] sm:$0xff] %vm341_vm3, %v37405_v58  ;;  %377 = vst.msk [vmem:[#allocation3 + $0x118] sm:$0xff] %vm341_vm3, %v37405_v58  ;;  %v9761_v24 = vld [vmem:[#allocation2 + $0x64] sm:$0xff] }
 0x541   : > { %26781 = vmatmul.mubr.msk.f32.gmra.mrb[2].mxu0 %vm279_vm1, %v8984_v20  ;;  %v9394_v20 = vld [vmem:[#allocation2 + $0x173] sm:$0xff]  ;;  %v22818_v58 = vld [vmem:[%s36866_s3 + $0xc8] sm:$0xff] }
 0x542   : > { %26783 = vmatprep.mubr.msk.f32.mxu0 %vm279_vm1, %v8985_v21  ;;  %v9397_v21 = vld [vmem:[#allocation2 + $0x19b] sm:$0xff] }
 0x545   : > { %26784 = vmatmul.mubr.msk.f32.gmra.mrb[4].mxu0 %vm279_vm1, %v8986_v33 }
 0x546   : > { %26786 = vmatprep.mubr.msk.f32.mxu0 %vm279_vm1, %v8987_v37  ;;  %v9401_v37 = vld [vmem:[#allocation2 + $0x1cb] sm:$0xff] }
 0x549   : > { %26787 = vmatmul.mubr.msk.f32.gmra.mrb[6].mxu0 %vm279_vm1, %v8988_v6 }
 0x54a   : > { %26789 = vmatprep.mubr.msk.f32.mxu0 %vm279_vm1, %v8989_v31 }
 0x54d   : > { %26790 = vmatmul.mubr.msk.f32.gmra.mrb[8].mxu0 %vm279_vm1, %v8990_v26  ;;  %v9763_v26 = vld [vmem:[#allocation2 + $0x7c] sm:$0xff] }
 0x54e   : > { %26792 = vmatprep.mubr.msk.f32.mxu0 %vm279_vm1, %v8991_v40  ;;  %v33503_v29 = vpop.f32.mrb[0].mxu1 }
 0x54f   : > { %v33505_v33 = vpop.f32.mrb[1].mxu1 }
 0x551   : > { %26793 = vmatmul.mubr.msk.f32.gmra.mrb[10].mxu0 %vm279_vm1, %v8992_v0 }
 0x552   : > { %26795 = vmatprep.mubr.msk.f32.mxu0 %vm279_vm1, %v8993_v42  ;;  %v9765_v42 = vld [vmem:[#allocation2 + $0x94] sm:$0xff] }
 0x555   : > { %26796 = vmatmul.mubr.msk.f32.gmra.mrb[12].mxu0 %vm279_vm1, %v8994_v35  ;;  %v9766_v35 = vld [vmem:[#allocation2 + $0x9c] sm:$0xff] }
 0x556   : > { %26798 = vmatprep.mubr.msk.f32.mxu0 %vm279_vm1, %v8995_v41  ;;  %v33510_v38 = vpop.f32.mrb[2].mxu1  ;;  %v9767_v41 = vld [vmem:[#allocation2 + $0xac] sm:$0xff] }
 0x559   : > { %26799 = vmatmul.mubr.msk.f32.gmra.mrb[14].mxu0 %vm279_vm1, %v8996_v15  ;;  %v9768_v15 = vld [vmem:[#allocation2 + $0xb4] sm:$0xff] }
 0x55a   : > { %26801 = vmatprep.mubr.msk.f32.mxu0 %vm279_vm1, %v8997_v11  ;;  %v9769_v11 = vld [vmem:[#allocation2 + $0xc4] sm:$0xff] }
 0x55d   : > { %26802 = vmatmul.mubr.msk.f32.gmra.mrb[16].mxu0 %vm279_vm1, %v8998_v13  ;;  %v9770_v13 = vld [vmem:[#allocation2 + $0xcc] sm:$0xff] }
 0x55e   : > { %26804 = vmatprep.mubr.msk.f32.mxu0 %vm279_vm1, %v8999_v45  ;;  %v9771_v45 = vld [vmem:[#allocation2 + $0xdc] sm:$0xff] }
 0x561   : > { %26805 = vmatmul.mubr.msk.f32.gmra.mrb[18].mxu0 %vm279_vm1, %v9000_v46  ;;  %v9772_v46 = vld [vmem:[#allocation2 + $0xe4] sm:$0xff] }
 0x562   : > { %26807 = vmatprep.mubr.msk.f32.mxu0 %vm279_vm1, %v9001_v48  ;;  %v9773_v48 = vld [vmem:[#allocation2 + $0xf4] sm:$0xff] }
 0x565   : > { %26808 = vmatmul.mubr.msk.f32.gmra.mrb[20].mxu0 %vm279_vm1, %v9002_v51  ;;  %v9774_v51 = vld [vmem:[#allocation2 + $0xfc] sm:$0xff] }
 0x566   : > { %26810 = vmatprep.mubr.msk.f32.mxu0 %vm279_vm1, %v9003_v53  ;;  %v9775_v53 = vld [vmem:[#allocation2 + $0x10c] sm:$0xff] }
 0x569   : > { %26811 = vmatmul.mubr.msk.f32.gmra.mrb[22].mxu0 %vm279_vm1, %v9004_v54  ;;  %v9776_v54 = vld [vmem:[#allocation2 + $0x114] sm:$0xff] }
 0x56a   : > { %26813 = vmatprep.mubr.msk.f32.mxu0 %vm279_vm1, %v32946_v25  ;;  %v9371_v25 = vld [vmem:[#allocation2 + $0x63] sm:$0xff] }
 0x56d   : > { %26814 = vmatmul.mubr.msk.f32.gmra.mrb[24].mxu0 %vm279_vm1, %v32952_v43  ;;  %v9372_v43 = vld [vmem:[#allocation2 + $0x6b] sm:$0xff] }
 0x56e   : > { %26816 = vmatprep.mubr.msk.f32.mxu0 %vm279_vm1, %v9007_v55  ;;  %v9777_v55 = vld [vmem:[#allocation2 + $0x124] sm:$0xff] }
 0x571   : > { %26817 = vmatmul.mubr.msk.f32.gmra.mrb[26].mxu0 %vm279_vm1, %v9008_v57  ;;  %v9778_v57 = vld [vmem:[#allocation2 + $0x12c] sm:$0xff] }
 0x572   : > { %26819 = vmatprep.mubr.msk.f32.mxu0 %vm279_vm1, %v32958_v39  ;;  %v9374_v39 = vld [vmem:[#allocation2 + $0x83] sm:$0xff] }
 0x575   : > { %26820 = vmatmul.mubr.msk.f32.gmra.mrb[28].mxu0 %vm279_vm1, %v32964_v10  ;;  %v9376_v10 = vld [vmem:[#allocation2 + $0x9b] sm:$0xff] }
 0x576   : > { %26822 = vmatprep.mubr.msk.f32.mxu0 %vm279_vm1, %v9011_v59  ;;  %v9779_v59 = vld [vmem:[#allocation2 + $0x13c] sm:$0xff] }
 0x579   : > { %26823 = vmatmul.mubr.msk.f32.gmra.mrb[30].mxu0 %vm279_vm1, %v9012_v60  ;;  %v9780_v60 = vld [vmem:[#allocation2 + $0x144] sm:$0xff] }
 0x57a   : > { %26827 = vmatprep.mubr.msk.f32.mxu0 %vm279_vm1, %v9371_v25  ;;  %v9781_v25 = vld [vmem:[#allocation2 + $0x154] sm:$0xff] }
 0x57d   : > { %26828 = vmatmul.mubr.msk.f32.vlgmr.msra.gmra.mrb[0].mxu0 %vm279_vm1, %v9372_v43  ;;  %v9782_v43 = vld [vmem:[#allocation2 + $0x15c] sm:$0xff] }
 0x57e   : > { %26876 = vmatpush3.msk.msra.mxu0 %vm625_vm0, %v33346_v17  ;;  %26830 = vmatprep.mubr.msk.f32.mxu0 %vm279_vm1, %v9373_v61  ;;  %v9391_v17 = vld [vmem:[#allocation2 + $0x153] sm:$0xff] }
 0x57f   : > { %v9783_v61 = vld [vmem:[#allocation2 + $0x16c] sm:$0xff] }
 0x581   : > { %26831 = vmatmul.mubr.msk.f32.gmra.mrb[2].mxu0 %vm279_vm1, %v9374_v39  ;;  %v9784_v39 = vld [vmem:[#allocation2 + $0x174] sm:$0xff] }
 0x582   : > { %26833 = vmatprep.mubr.msk.f32.mxu0 %vm279_vm1, %v9375_v63  ;;  %v9787_v63 = vld [vmem:[#allocation2 + $0x19c] sm:$0xff] }
 0x585   : > { %26834 = vmatmul.mubr.msk.f32.gmra.mrb[4].mxu0 %vm279_vm1, %v9376_v10  ;;  %v9788_v10 = vld [vmem:[#allocation2 + $0x1a4] sm:$0xff] }
 0x586   : > { %26836 = vmatprep.mubr.msk.f32.mxu0 %vm279_vm1, %v9377_v36 }
 0x589   : > { %26837 = vmatmul.mubr.msk.f32.gmra.mrb[6].mxu0 %vm279_vm1, %v9378_v2 }
 0x58a   : > { %26839 = vmatprep.mubr.msk.f32.mxu0 %vm279_vm1, %v9379_v12  ;;  %v9791_v12 = vld [vmem:[#allocation2 + $0x1cc] sm:$0xff] }
 0x58d   : > { %26840 = vmatmul.mubr.msk.f32.gmra.mrb[8].mxu0 %vm279_vm1, %v9380_v5 }
 0x58e   : > { %26842 = vmatprep.mubr.msk.f32.mxu0 %vm279_vm1, %v9381_v30 }
 0x591   : > { %26843 = vmatmul.mubr.msk.f32.gmra.mrb[10].mxu0 %vm279_vm1, %v9382_v7 }
 0x592   : > { %26845 = vmatprep.mubr.msk.f32.mxu0 %vm279_vm1, %v9383_v8 }
 0x595   : > { %26846 = vmatmul.mubr.msk.f32.gmra.mrb[12].mxu0 %vm279_vm1, %v9384_v44 }
 0x596   : > { %26848 = vmatprep.mubr.msk.f32.mxu0 %vm279_vm1, %v9385_v9 }
 0x599   : > { %26849 = vmatmul.mubr.msk.f32.gmra.mrb[14].mxu0 %vm279_vm1, %v9386_v14 }
 0x59a   : > { %26851 = vmatprep.mubr.msk.f32.mxu0 %vm279_vm1, %v9387_v1 }
 0x59d   : > { %26852 = vmatmul.mubr.msk.f32.gmra.mrb[16].mxu0 %vm279_vm1, %v9388_v34 }
 0x59e   : > { %26854 = vmatprep.mubr.msk.f32.mxu0 %vm279_vm1, %v9389_v16 }
 0x5a1   : > { %26855 = vmatmul.mubr.msk.f32.gmra.mrb[18].mxu0 %vm279_vm1, %v9390_v62 }
 0x5a2   : > { %26857 = vmatprep.mubr.msk.f32.mxu0 %vm279_vm1, %v9391_v17 }
 0x5a5   : > { %26858 = vmatmul.mubr.msk.f32.gmra.mrb[20].mxu0 %vm279_vm1, %v9392_v18 }
 0x5a6   : > { %26860 = vmatprep.mubr.msk.f32.mxu0 %vm279_vm1, %v9393_v19 }
 0x5a9   : > { %26861 = vmatmul.mubr.msk.f32.gmra.mrb[22].mxu0 %vm279_vm1, %v9394_v20 }
 0x5aa   : > { %26863 = vmatprep.mubr.msk.f32.mxu0 %vm279_vm1, %v33023_v47  ;;  %v33512_v47 = vpop.f32.mrb[3].mxu1 }
 0x5ab   : > { %v33517_v6 = vpop.f32.mrb[4].mxu1 }
 0x5ac   : > { %v33519_v31 = vpop.f32.mrb[5].mxu1 }
 0x5ad   : > { %26864 = vmatmul.mubr.msk.f32.gmra.mrb[24].mxu0 %vm279_vm1, %v33029_v49  ;;  %v9402_v49 = vld [vmem:[#allocation2 + $0x1d3] sm:$0xff]  ;;  %v33523_v40 = vpop.f32.mrb[6].mxu1 }
 0x5ae   : > { %26866 = vmatprep.mubr.msk.f32.mxu0 %vm279_vm1, %v9397_v21  ;;  %v33525_v0 = vpop.f32.mrb[7].mxu1 }
 0x5b1   : > { %26867 = vmatmul.mubr.msk.f32.gmra.mrb[26].mxu0 %vm279_vm1, %v9398_v23  ;;  %v22703_v23 = vld [vmem:[%s36866_s3 + $0x30] sm:$0xff] }
 0x5b2   : > { %26869 = vmatprep.mubr.msk.f32.mxu0 %vm279_vm1, %v33035_v50  ;;  %v9762_v50 = vld [vmem:[#allocation2 + $0x6c] sm:$0xff] }
 0x5b5   : > { %26870 = vmatmul.mubr.msk.f32.gmra.mrb[28].mxu0 %vm279_vm1, %v33041_v52  ;;  %v9764_v52 = vld [vmem:[#allocation2 + $0x84] sm:$0xff] }
 0x5b6   : > { %26872 = vmatprep.mubr.msk.f32.mxu0 %vm279_vm1, %v9401_v37  ;;  %v22704_v37 = vld [vmem:[%s36866_s3 + $0x38] sm:$0xff] }
 0x5b9   : > { %26873 = vmatmul.mubr.msk.f32.gmra.mrb[30].mxu0 %vm279_vm1, %v9402_v49  ;;  %v28737_v49 = vpack.c.bf16 %v22704_v37, %v22703_v23 }
 0x5ba   : > { %26877 = vmatprep.mubr.msk.f32.mxu0 %vm279_vm1, %v9761_v24  ;;  %v10381_v24 = vld [vmem:[#allocation3 + $0x2] sm:$0xff] }
 0x5bb   : > { %28738 = vmatprep.subr.bf16.mxu1 %v28737_v49  ;;  %26933 = vmatprep.mubr.msk.f32.mxu1 %vm341_vm3, %v10381_v24 }
 0x5bc   : > { %28740 = vmatpush3.bf16.msra.mxu1 %v28737_v49 }
 0x5bd   : > { %26878 = vmatmul.mubr.msk.f32.vlgmr.msra.gmra.mrb[0].mxu0 %vm279_vm1, %v9762_v50  ;;  %v10382_v50 = vld [vmem:[#allocation3 + $0xa] sm:$0xff] }
 0x5be   : > { %26880 = vmatprep.mubr.msk.f32.mxu0 %vm279_vm1, %v9763_v26  ;;  %v33618_v26 = vld [vmem:[#allocation3 + $0x1a] sm:$0xff] }
 0x5bf   : > { %26934 = vmatmul.mubr.msk.f32.vlgmr.msra.gmra.mrb[32].mxu1 %vm341_vm3, %v10382_v50 }
 0x5c0   : > { %26936 = vmatprep.mubr.msk.f32.mxu1 %vm341_vm3, %v33618_v26 }
 0x5c1   : > { %26881 = vmatmul.mubr.msk.f32.gmra.mrb[2].mxu0 %vm279_vm1, %v9764_v52  ;;  %v33622_v52 = vld [vmem:[#allocation3 + $0x22] sm:$0xff] }
 0x5c2   : > { %26883 = vmatprep.mubr.msk.f32.mxu0 %vm279_vm1, %v9765_v42  ;;  %v10377_v42 = vld [vmem:[%s36866_s3] sm:$0xff] }
 0x5c3   : > { %26937 = vmatmul.mubr.msk.f32.gmra.mrb[34].mxu1 %vm341_vm3, %v33622_v52 }
 0x5c5   : > { %26884 = vmatmul.mubr.msk.f32.gmra.mrb[4].mxu0 %vm279_vm1, %v9766_v35  ;;  %v10378_v35 = vld [vmem:[%s36866_s3 + $0x8] sm:$0xff] }
 0x5c6   : > { %26886 = vmatprep.mubr.msk.f32.mxu0 %vm279_vm1, %v9767_v41  ;;  %v28741_v41 = vpack.c.bf16 %v10378_v35, %v10377_v42 }
 0x5c8   : > { %28742 = vmatprep.subr.bf16.mxu1 %v28741_v41 }
 0x5c9   : > { %26887 = vmatmul.mubr.msk.f32.gmra.mrb[6].mxu0 %vm279_vm1, %v9768_v15  ;;  %28744 = vmatpush3.bf16.msra.mxu1 %v28741_v41  ;;  %v10379_v15 = vld [vmem:[%s36866_s3 + $0x10] sm:$0xff] }
 0x5ca   : > { %26889 = vmatprep.mubr.msk.f32.mxu0 %vm279_vm1, %v9769_v11  ;;  %v10380_v11 = vld [vmem:[%s36866_s3 + $0x18] sm:$0xff] }
 0x5cd   : > { %26890 = vmatmul.mubr.msk.f32.gmra.mrb[8].mxu0 %vm279_vm1, %v9770_v13  ;;  %v28745_v13 = vpack.c.bf16 %v10380_v11, %v10379_v15 }
 0x5ce   : > { %26892 = vmatprep.mubr.msk.f32.mxu0 %vm279_vm1, %v9771_v45  ;;  %v22737_v45 = vld [vmem:[%s36866_s3 + $0x40] sm:$0xff] }
 0x5cf   : > { %28746 = vmatprep.subr.bf16.mxu1 %v28745_v13 }
 0x5d0   : > { %28748 = vmatpush3.bf16.msra.mxu1 %v28745_v13 }
 0x5d1   : > { %26893 = vmatmul.mubr.msk.f32.gmra.mrb[10].mxu0 %vm279_vm1, %v9772_v46  ;;  %v22738_v46 = vld [vmem:[%s36866_s3 + $0x48] sm:$0xff] }
 0x5d2   : > { %26895 = vmatprep.mubr.msk.f32.mxu0 %vm279_vm1, %v9773_v48  ;;  %v33644_v48 = vpack.c.bf16 %v22738_v46, %v22737_v45 }
 0x5d4   : > { %28750 = vmatprep.subr.bf16.mxu1 %v33644_v48 }
 0x5d5   : > { %26896 = vmatmul.mubr.msk.f32.gmra.mrb[12].mxu0 %vm279_vm1, %v9774_v51 }
 0x5d6   : > { %26898 = vmatprep.mubr.msk.f32.mxu0 %vm279_vm1, %v9775_v53  ;;  %v33650_v53 = vld [vmem:[%s36865_s2] ss:$0 sm:$0xff] }
 0x5d9   : > { %26899 = vmatmul.mubr.msk.f32.gmra.mrb[14].mxu0 %vm279_vm1, %v9776_v54 }
 0x5da   : > { %26901 = vmatprep.mubr.msk.f32.mxu0 %vm279_vm1, %v9777_v55 }
 0x5dd   : > { %26902 = vmatmul.mubr.msk.f32.gmra.mrb[16].mxu0 %vm279_vm1, %v9778_v57 }
 0x5de   : > { %26904 = vmatprep.mubr.msk.f32.mxu0 %vm279_vm1, %v9779_v59 }
 0x5e1   : > { %26905 = vmatmul.mubr.msk.f32.gmra.mrb[18].mxu0 %vm279_vm1, %v9780_v60 }
 0x5e2   : > { %26907 = vmatprep.mubr.msk.f32.mxu0 %vm279_vm1, %v9781_v25 }
 0x5e5   : > { %26908 = vmatmul.mubr.msk.f32.gmra.mrb[20].mxu0 %vm279_vm1, %v9782_v43 }
 0x5e6   : > { %26910 = vmatprep.mubr.msk.f32.mxu0 %vm279_vm1, %v9783_v61 }
 0x5e7   : > { %v33555_v36 = vpop.f32.mrb[8].mxu1 }
 0x5e8   : > { %v33557_v2 = vpop.f32.mrb[9].mxu1 }
 0x5e9   : > { %26911 = vmatmul.mubr.msk.f32.gmra.mrb[22].mxu0 %vm279_vm1, %v9784_v39 }
 0x5ea   : > { %26913 = vmatprep.mubr.msk.f32.mxu0 %vm279_vm1, %v33100_v22 }
 0x5eb   : > { %v33562_v3 = vpop.f32.mrb[10].mxu1 }
 0x5ec   : > { %v33564_v22 = vpop.f32.mrb[11].mxu1 }
 0x5ed   : > { %26914 = vmatmul.mubr.msk.f32.gmra.mrb[24].mxu0 %vm279_vm1, %v33106_v27  ;;  %v9792_v27 = vld [vmem:[#allocation2 + $0x1d4] sm:$0xff] }
 0x5ee   : > { %26916 = vmatprep.mubr.msk.f32.mxu0 %vm279_vm1, %v9787_v63 }
 0x5ef   : > { %v33569_v56 = vpop.f32.mrb[12].mxu1 }
 0x5f0   : > { %v33571_v4 = vpop.f32.mrb[13].mxu1 }
 0x5f1   : > { %26917 = vmatmul.mubr.msk.f32.gmra.mrb[26].mxu0 %vm279_vm1, %v9788_v10 }
 0x5f2   : > { %26919 = vmatprep.mubr.msk.f32.mxu0 %vm279_vm1, %v33112_v28 }
 0x5f3   : > { %v33574_v5 = vpop.f32.mrb[14].mxu1 }
 0x5f4   : > { %v33576_v28 = vpop.f32.mrb[15].mxu1 }
 0x5f5   : > { %26920 = vmatmul.mubr.msk.f32.gmra.mrb[28].mxu0 %vm279_vm1, %v33118_v32 }
 0x5f6   : > { %26922 = vmatprep.mubr.msk.f32.mxu0 %vm279_vm1, %v9791_v12 }
 0x5f7   : > { %v33578_v30 = vpop.f32.mrb[16].mxu1 }
 0x5f8   : > { %v33580_v7 = vpop.f32.mrb[17].mxu1 }
 0x5f9   : > { %26923 = vmatmul.mubr.msk.f32.gmra.mrb[30].mxu0 %vm279_vm1, %v9792_v27 }
 0x5fb   : > { %v33582_v8 = vpop.f32.mrb[18].mxu1 }
 0x5fc   : > { %v33584_v32 = vpop.f32.mrb[19].mxu1 }
 0x5ff   : > { %v33586_v44 = vpop.f32.mrb[20].mxu1 }
 0x600   : > { %v33588_v9 = vpop.f32.mrb[21].mxu1 }
 0x603   : > { %v33590_v14 = vpop.f32.mrb[22].mxu1 }
 0x604   : > { %v33592_v1 = vpop.f32.mrb[23].mxu1 }
 0x607   : > { %v33594_v34 = vpop.f32.mrb[24].mxu1 }
 0x608   : > { %v33596_v16 = vpop.f32.mrb[25].mxu1 }
 0x60b   : > { %v33598_v62 = vpop.f32.mrb[26].mxu1 }
 0x60c   : > { %v33600_v17 = vpop.f32.mrb[27].mxu1 }
 0x60f   : > { %v33602_v18 = vpop.f32.mrb[28].mxu1 }
 0x610   : > { %v33604_v19 = vpop.f32.mrb[29].mxu1 }
 0x613   : > { %v33606_v20 = vpop.f32.mrb[30].mxu1 }
 0x614   : > { %v33608_v21 = vpop.f32.mrb[31].mxu1 }
 0x690   : > { %v26879_v51 = vpop.f32.mrb[0].mxu0 }
 0x691   : > { %v29511_v54 = vadd.f32 %v26879_v51, %v33503_v29  ;;  %v9960_v55 = vpop.f32.mrb[1].mxu0 }
 0x692   : > { %v29512_v57 = vadd.f32 %v9960_v55, %v33505_v33 }
 0x693   : > { %v10159_v59 = vadd.f32 %v29511_v54, %v33650_v53 }
 0x694   : > { %v10158_v60 = vadd.f32 %v29512_v57, %v33650_v53  ;;  %v26882_v25 = vpop.f32.mrb[2].mxu0 }
 0x695   : > { %v29513_v43 = vadd.f32 %v26882_v25, %v33510_v38  ;;  %v9970_v61 = vpop.f32.mrb[3].mxu0  ;;  %v10191_v63 = vmax.f32 %v10159_v59, 0.0 }
 0x696   : > { %v29514_v39 = vadd.f32 %v9970_v61, %v33512_v47  ;;  %v10190_v12 = vmax.f32 %v10158_v60, 0.0 }
 0x697   : > { %v10161_v10 = vadd.f32 %v29513_v43, %v33650_v53  ;;  %v10225_v50 = vsel %vm341_vm3, %v10191_v63, -inf }
 0x698   : > { %v10160_v27 = vadd.f32 %v29514_v39, %v33650_v53  ;;  %v26885_v29 = vpop.f32.mrb[4].mxu0  ;;  %v10222_v42 = vsel %vm341_vm3, %v10190_v12, -inf }
 0x699   : > { %v10193_v23 = vmax.f32 %v10161_v10, 0.0  ;;  %v29515_v33 = vadd.f32 %v26885_v29, %v33517_v6  ;;  %v9980_v37 = vpop.f32.mrb[5].mxu0 }
 0x69a   : > { %v10192_v49 = vmax.f32 %v10160_v27, 0.0  ;;  %v29516_v24 = vadd.f32 %v9980_v37, %v33519_v31 }
 0x69b   : > { %v10226_v38 = vsel %vm341_vm3, %v10193_v23, -inf  ;;  %v10163_v47 = vadd.f32 %v29515_v33, %v33650_v53 }
 0x69c   : > { %v10227_v35 = vmax.f32 %v10225_v50, %v10226_v38  ;;  %v10223_v41 = vsel %vm341_vm3, %v10192_v49, -inf  ;;  %v10162_v15 = vadd.f32 %v29516_v24, %v33650_v53  ;;  %v26888_v11 = vpop.f32.mrb[6].mxu0 }
 0x69d   : > { %v10224_v13 = vmax.f32 %v10222_v42, %v10223_v41  ;;  %v29517_v6 = vadd.f32 %v26888_v11, %v33523_v40  ;;  %v9990_v45 = vpop.f32.mrb[7].mxu0  ;;  %v10195_v54 = vmax.f32 %v10163_v47, 0.0 }
 0x69e   : > { %v10288_v46 = vrot.slane %v10227_v35, 1  ;;  %v29518_v31 = vadd.f32 %v9990_v45, %v33525_v0  ;;  %v10194_v59 = vmax.f32 %v10162_v15, 0.0 }
 0x69f   : > { %v10287_v51 = vrot.slane %v10224_v13, 1  ;;  %v10165_v55 = vadd.f32 %v29517_v6, %v33650_v53  ;;  %v10231_v12 = vsel %vm341_vm3, %v10195_v54, -inf }
 0x6a0   : > { %v10328_v57 = vmax.f32 %v10227_v35, %v10288_v46  ;;  %v10164_v60 = vadd.f32 %v29518_v31, %v33650_v53  ;;  %v26891_v25 = vpop.f32.mrb[8].mxu0  ;;  %v10228_v23 = vsel %vm341_vm3, %v10194_v59, -inf }
 0x6a1   : > { %v10289_v43 = vsel %vm10286_vm4, %v10287_v51, %v10288_v46  ;;  %v10197_v61 = vmax.f32 %v10165_v55, 0.0  ;;  %v29519_v40 = vadd.f32 %v26891_v25, %v33555_v36  ;;  %v10000_v39 = vpop.f32.mrb[9].mxu0 }
 0x6a2   : > { %10346 = vst.msk [vmem:[#allocation3 + $0x3c] sm:$0x7f] %vm10345_vm5, %v10328_v57  ;;  %v10327_v63 = vmax.f32 %v10224_v13, %v10289_v43  ;;  %v10196_v0 = vmax.f32 %v10164_v60, 0.0  ;;  %v29520_v10 = vadd.f32 %v10000_v39, %v33557_v2 }
 0x6a3   : > { %v10232_v27 = vsel %vm341_vm3, %v10197_v61, -inf  ;;  %v10167_v29 = vadd.f32 %v29519_v40, %v33650_v53 }
 0x6a4   : > { %10344 = vst.msk [vmem:[#allocation3 + $0x34] sm:$0xff] %vm341_vm3, %v10327_v63  ;;  %v10233_v33 = vmax.f32 %v10231_v12, %v10232_v27  ;;  %v10229_v36 = vsel %vm341_vm3, %v10196_v0, -inf  ;;  %v10166_v37 = vadd.f32 %v29520_v10, %v33650_v53  ;;  %v26894_v49 = vpop.f32.mrb[10].mxu0 }
 0x6a5   : > { %v10230_v24 = vmax.f32 %v10228_v23, %v10229_v36  ;;  %v29521_v50 = vadd.f32 %v26894_v49, %v33562_v3  ;;  %v10010_v2 = vpop.f32.mrb[11].mxu0  ;;  %v10199_v35 = vmax.f32 %v10167_v29, 0.0 }
 0x6a6   : > { %v10291_v38 = vrot.slane %v10233_v33, 1  ;;  %v29522_v47 = vadd.f32 %v10010_v2, %v33564_v22  ;;  %v10198_v11 = vmax.f32 %v10166_v37, 0.0 }
 0x6a7   : > { %v10290_v42 = vrot.slane %v10230_v24, 1  ;;  %v10169_v41 = vadd.f32 %v29521_v50, %v33650_v53  ;;  %v10237_v55 = vsel %vm341_vm3, %v10199_v35, -inf }
 0x6a8   : > { %v10330_v15 = vmax.f32 %v10233_v33, %v10291_v38  ;;  %v10168_v13 = vadd.f32 %v29522_v47, %v33650_v53  ;;  %v26897_v6 = vpop.f32.mrb[12].mxu0 }
 0x6a9   : > { %v10292_v45 = vsel %vm10286_vm4, %v10290_v42, %v10291_v38  ;;  %v10201_v46 = vmax.f32 %v10169_v41, 0.0  ;;  %v29523_v31 = vadd.f32 %v26897_v6, %v33569_v56  ;;  %v10020_v51 = vpop.f32.mrb[13].mxu0  ;;  %v10234_v56 = vsel %vm341_vm3, %v10198_v11, -inf }
 0x6aa   : > { %10348 = vst.msk [vmem:[#allocation3 + $0x54] sm:$0x7f] %vm10345_vm5, %v10330_v15  ;;  %v10329_v3 = vmax.f32 %v10230_v24, %v10292_v45  ;;  %v10200_v54 = vmax.f32 %v10168_v13, 0.0  ;;  %v29524_v22 = vadd.f32 %v10020_v51, %v33571_v4 }
 0x6ab   : > { %v10238_v57 = vsel %vm341_vm3, %v10201_v46, -inf  ;;  %v10171_v59 = vadd.f32 %v29523_v31, %v33650_v53  ;;  %v33694_v60 = vld [vmem:[#allocation3 + $0x32] sm:$0xff]  ;;  %v33696_v25 = vld [vmem:[#allocation3 + $0x3a] sm:$0xff] }
 0x6ac   : > { %10347 = vst.msk [vmem:[#allocation3 + $0x4c] sm:$0xff] %vm341_vm3, %v10329_v3  ;;  %v10239_v43 = vmax.f32 %v10237_v55, %v10238_v57  ;;  %v10235_v61 = vsel %vm341_vm3, %v10200_v54, -inf  ;;  %v10170_v40 = vadd.f32 %v29524_v22, %v33650_v53  ;;  %v26900_v4 = vpop.f32.mrb[14].mxu0  ;;  %26939 = vmatprep.mubr.msk.f32.mxu1 %vm341_vm3, %v33694_v60 }
 0x6ad   : > { %v10236_v39 = vmax.f32 %v10234_v56, %v10235_v61  ;;  %v29525_v63 = vadd.f32 %v26900_v4, %v33574_v5  ;;  %v10030_v0 = vpop.f32.mrb[15].mxu0  ;;  %26940 = vmatmul.mubr.msk.f32.gmra.mrb[36].mxu1 %vm341_vm3, %v33696_v25  ;;  %v10203_v29 = vmax.f32 %v10171_v59, 0.0 }
 0x6ae   : > { %v10294_v10 = vrot.slane %v10239_v43, 1  ;;  %v29526_v12 = vadd.f32 %v10030_v0, %v33576_v28  ;;  %v10202_v36 = vmax.f32 %v10170_v40, 0.0 }
 0x6af   : > { %v10293_v27 = vrot.slane %v10236_v39, 1  ;;  %v10173_v23 = vadd.f32 %v29525_v63, %v33650_v53  ;;  %v10243_v42 = vsel %vm341_vm3, %v10203_v29, -inf }
 0x6b0   : > { %v10332_v33 = vmax.f32 %v10239_v43, %v10294_v10  ;;  %v10172_v37 = vadd.f32 %v29526_v12, %v33650_v53  ;;  %v26903_v49 = vpop.f32.mrb[16].mxu0 }
 0x6b1   : > { %v10295_v24 = vsel %vm10286_vm4, %v10293_v27, %v10294_v10  ;;  %v10205_v50 = vmax.f32 %v10173_v23, 0.0  ;;  %v29527_v5 = vadd.f32 %v26903_v49, %v33578_v30  ;;  %v10040_v2 = vpop.f32.mrb[17].mxu0  ;;  %v10240_v30 = vsel %vm341_vm3, %v10202_v36, -inf }
 0x6b2   : > { %10350 = vst.msk [vmem:[#allocation3 + $0x6c] sm:$0x7f] %vm10345_vm5, %v10332_v33  ;;  %v10331_v38 = vmax.f32 %v10236_v39, %v10295_v24  ;;  %v10204_v47 = vmax.f32 %v10172_v37, 0.0  ;;  %v29528_v28 = vadd.f32 %v10040_v2, %v33580_v7 }
 0x6b3   : > { %v10244_v35 = vsel %vm341_vm3, %v10205_v50, -inf  ;;  %v10175_v41 = vadd.f32 %v29527_v5, %v33650_v53  ;;  %v33717_v15 = vld [vmem:[#allocation3 + $0x4a] sm:$0xff]  ;;  %v33719_v11 = vld [vmem:[#allocation3 + $0x52] sm:$0xff] }
 0x6b4   : > { %10349 = vst.msk [vmem:[#allocation3 + $0x64] sm:$0xff] %vm341_vm3, %v10331_v38  ;;  %v10245_v13 = vmax.f32 %v10243_v42, %v10244_v35  ;;  %v10241_v6 = vsel %vm341_vm3, %v10204_v47, -inf  ;;  %v10174_v45 = vadd.f32 %v29528_v28, %v33650_v53  ;;  %v26906_v7 = vpop.f32.mrb[18].mxu0  ;;  %26942 = vmatprep.mubr.msk.f32.mxu1 %vm341_vm3, %v33717_v15 }
 0x6b5   : > { %v10242_v46 = vmax.f32 %v10240_v30, %v10241_v6  ;;  %v29529_v31 = vadd.f32 %v26906_v7, %v33582_v8  ;;  %v10050_v51 = vpop.f32.mrb[19].mxu0  ;;  %26943 = vmatmul.mubr.msk.f32.gmra.mrb[38].mxu1 %vm341_vm3, %v33719_v11  ;;  %v10207_v55 = vmax.f32 %v10175_v41, 0.0 }
 0x6b6   : > { %v10297_v3 = vrot.slane %v10245_v13, 1  ;;  %v29530_v54 = vadd.f32 %v10050_v51, %v33584_v32  ;;  %v10206_v56 = vmax.f32 %v10174_v45, 0.0 }
 0x6b7   : > { %v10296_v22 = vrot.slane %v10242_v46, 1  ;;  %v10177_v57 = vadd.f32 %v29529_v31, %v33650_v53  ;;  %v10249_v10 = vsel %vm341_vm3, %v10207_v55, -inf }
 0x6b8   : > { %v10334_v59 = vmax.f32 %v10245_v13, %v10297_v3  ;;  %v10176_v43 = vadd.f32 %v29530_v54, %v33650_v53  ;;  %v26909_v61 = vpop.f32.mrb[20].mxu0 }
 0x6b9   : > { %v10298_v40 = vsel %vm10286_vm4, %v10296_v22, %v10297_v3  ;;  %v10209_v4 = vmax.f32 %v10177_v57, 0.0  ;;  %v29531_v8 = vadd.f32 %v26909_v61, %v33586_v44  ;;  %v10060_v39 = vpop.f32.mrb[21].mxu0  ;;  %v10246_v44 = vsel %vm341_vm3, %v10206_v56, -inf }
 0x6ba   : > { %10352 = vst.msk [vmem:[#allocation3 + $0x84] sm:$0x7f] %vm10345_vm5, %v10334_v59  ;;  %v10333_v63 = vmax.f32 %v10242_v46, %v10298_v40  ;;  %v10208_v0 = vmax.f32 %v10176_v43, 0.0  ;;  %v29532_v32 = vadd.f32 %v10060_v39, %v33588_v9 }
 0x6bb   : > { %v10250_v12 = vsel %vm341_vm3, %v10209_v4, -inf  ;;  %v10179_v27 = vadd.f32 %v29531_v8, %v33650_v53  ;;  %v33740_v29 = vld [vmem:[#allocation3 + $0x62] sm:$0xff]  ;;  %v33742_v23 = vld [vmem:[#allocation3 + $0x6a] sm:$0xff] }
 0x6bc   : > { %10351 = vst.msk [vmem:[#allocation3 + $0x7c] sm:$0xff] %vm341_vm3, %v10333_v63  ;;  %v10251_v33 = vmax.f32 %v10249_v10, %v10250_v12  ;;  %v10247_v36 = vsel %vm341_vm3, %v10208_v0, -inf  ;;  %v10178_v37 = vadd.f32 %v29532_v32, %v33650_v53  ;;  %v26912_v9 = vpop.f32.mrb[22].mxu0  ;;  %26945 = vmatprep.mubr.msk.f32.mxu1 %vm341_vm3, %v33740_v29 }
 0x6bd   : > { %v10248_v49 = vmax.f32 %v10246_v44, %v10247_v36  ;;  %v29533_v24 = vadd.f32 %v26912_v9, %v33590_v14  ;;  %v10070_v50 = vpop.f32.mrb[23].mxu0  ;;  %26946 = vmatmul.mubr.msk.f32.gmra.mrb[40].mxu1 %vm341_vm3, %v33742_v23  ;;  %v10211_v47 = vmax.f32 %v10179_v27, 0.0 }
 0x6be   : > { %v10300_v5 = vrot.slane %v10251_v33, 1  ;;  %v29534_v2 = vadd.f32 %v10070_v50, %v33592_v1  ;;  %v10210_v35 = vmax.f32 %v10178_v37, 0.0 }
 0x6bf   : > { %v10299_v38 = vrot.slane %v10248_v49, 1  ;;  %v10181_v28 = vadd.f32 %v29533_v24, %v33650_v53  ;;  %v10255_v31 = vsel %vm341_vm3, %v10211_v47, -inf }
 0x6c0   : > { %v10336_v42 = vmax.f32 %v10251_v33, %v10300_v5  ;;  %v10180_v41 = vadd.f32 %v29534_v2, %v33650_v53  ;;  %v26915_v30 = vpop.f32.mrb[24].mxu0 }
 0x6c1   : > { %v10301_v13 = vsel %vm10286_vm4, %v10299_v38, %v10300_v5  ;;  %v10213_v6 = vmax.f32 %v10181_v28, 0.0  ;;  %v29535_v14 = vadd.f32 %v26915_v30, %v33594_v34  ;;  %v10080_v45 = vpop.f32.mrb[25].mxu0  ;;  %v10252_v34 = vsel %vm341_vm3, %v10210_v35, -inf }
 0x6c2   : > { %10354 = vst.msk [vmem:[#allocation3 + $0x9c] sm:$0x7f] %vm10345_vm5, %v10336_v42  ;;  %v10335_v7 = vmax.f32 %v10248_v49, %v10301_v13  ;;  %v10212_v46 = vmax.f32 %v10180_v41, 0.0  ;;  %v29536_v1 = vadd.f32 %v10080_v45, %v33596_v16 }
 0x6c3   : > { %v10256_v51 = vsel %vm341_vm3, %v10213_v6, -inf  ;;  %v10183_v3 = vadd.f32 %v29535_v14, %v33650_v53  ;;  %v33763_v54 = vld [vmem:[#allocation3 + $0x7a] sm:$0xff]  ;;  %v33765_v22 = vld [vmem:[#allocation3 + $0x82] sm:$0xff] }
 0x6c4   : > { %10353 = vst.msk [vmem:[#allocation3 + $0x94] sm:$0xff] %vm341_vm3, %v10335_v7  ;;  %v10257_v55 = vmax.f32 %v10255_v31, %v10256_v51  ;;  %v10253_v57 = vsel %vm341_vm3, %v10212_v46, -inf  ;;  %v10182_v59 = vadd.f32 %v29536_v1, %v33650_v53  ;;  %v26918_v16 = vpop.f32.mrb[26].mxu0  ;;  %26948 = vmatprep.mubr.msk.f32.mxu1 %vm341_vm3, %v33763_v54 }
 0x6c5   : > { %v10254_v56 = vmax.f32 %v10252_v34, %v10253_v57  ;;  %v29537_v43 = vadd.f32 %v26918_v16, %v33598_v62  ;;  %v10090_v61 = vpop.f32.mrb[27].mxu0  ;;  %26949 = vmatmul.mubr.msk.f32.gmra.mrb[42].mxu1 %vm341_vm3, %v33765_v22  ;;  %v10215_v39 = vmax.f32 %v10183_v3, 0.0  ;;  %v10361_v57 = vld [vmem:[#allocation3] sm:$0xff] }
 0x6c6   : > { %v10303_v40 = vrot.slane %v10257_v55, 1  ;;  %v29538_v4 = vadd.f32 %v10090_v61, %v33600_v17  ;;  %v10214_v32 = vmax.f32 %v10182_v59, 0.0 }
 0x6c7   : > { %v10302_v8 = vrot.slane %v10254_v56, 1  ;;  %v10185_v63 = vadd.f32 %v29537_v43, %v33650_v53  ;;  %v10261_v9 = vsel %vm341_vm3, %v10215_v39, -inf  ;;  %v22740_v43 = vld [vmem:[%s36866_s3 + $0x58] sm:$0xff] }
 0x6c8   : > { %v10338_v0 = vmax.f32 %v10257_v55, %v10303_v40  ;;  %v10184_v10 = vadd.f32 %v29538_v4, %v33650_v53  ;;  %v26921_v12 = vpop.f32.mrb[28].mxu0  ;;  %v33824_v4 = vld [vmem:[#allocation3 + $0x8] sm:$0xff]  ;;  %v33826_v39 = vld [vmem:[#allocation3 + $0x18] sm:$0xff] }
 0x6c9   : > { %v10304_v27 = vsel %vm10286_vm4, %v10302_v8, %v10303_v40  ;;  %v10217_v44 = vmax.f32 %v10185_v63, 0.0  ;;  %v29539_v62 = vadd.f32 %v26921_v12, %v33602_v18  ;;  %v10100_v33 = vpop.f32.mrb[29].mxu0  ;;  %v10258_v18 = vsel %vm341_vm3, %v10214_v32, -inf  ;;  %v22757_v32 = vld [vmem:[%s36866_s3 + $0x60] sm:$0xff] }
 0x6ca   : > { %10356 = vst.msk [vmem:[#allocation3 + $0xb4] sm:$0x7f] %vm10345_vm5, %v10338_v0  ;;  %v10337_v36 = vmax.f32 %v10254_v56, %v10304_v27  ;;  %v10216_v37 = vmax.f32 %v10184_v10, 0.0  ;;  %v29540_v17 = vadd.f32 %v10100_v33, %v33604_v19  ;;  %v22739_v56 = vld [vmem:[%s36866_s3 + $0x50] sm:$0xff]  ;;  %v22758_v10 = vld [vmem:[%s36866_s3 + $0x68] sm:$0xff] }
 0x6cb   : > { %v10262_v49 = vsel %vm341_vm3, %v10217_v44, -inf  ;;  %v10187_v24 = vadd.f32 %v29539_v62, %v33650_v53  ;;  %v33786_v50 = vld [vmem:[#allocation3 + $0x92] sm:$0xff]  ;;  %v33788_v5 = vld [vmem:[#allocation3 + $0x9a] sm:$0xff]  ;;  %v28753_v63 = vpack.c.bf16 %v22740_v43, %v22739_v56  ;;  %v28757_v62 = vpack.c.bf16 %v22758_v10, %v22757_v32  ;;  %v22798_v32 = vld [vmem:[%s36866_s3 + $0xa8] sm:$0xff] }
 0x6cc   : > { %10355 = vst.msk [vmem:[#allocation3 + $0xac] sm:$0xff] %vm341_vm3, %v10337_v36  ;;  %v10263_v2 = vmax.f32 %v10261_v9, %v10262_v49  ;;  %v10259_v38 = vsel %vm341_vm3, %v10216_v37, -inf  ;;  %v10186_v47 = vadd.f32 %v29540_v17, %v33650_v53  ;;  %v26924_v19 = vpop.f32.mrb[30].mxu0  ;;  %26951 = vmatprep.mubr.msk.f32.mxu1 %vm341_vm3, %v33786_v50  ;;  %v33841_v44 = vld [vmem:[#allocation3 + $0x20] sm:$0xff]  ;;  %v33846_v33 = vld [vmem:[#allocation3 + $0x30] sm:$0xff]  ;;  %v33854_v36 = vld [vmem:[#allocation3 + $0x48] sm:$0xff] }
 0x6cd   : > { %v10260_v28 = vmax.f32 %v10258_v18, %v10259_v38  ;;  %v29541_v42 = vadd.f32 %v26924_v19, %v33606_v20  ;;  %v10110_v35 = vpop.f32.mrb[31].mxu0  ;;  %26952 = vmatmul.mubr.msk.f32.gmra.mrb[44].mxu1 %vm341_vm3, %v33788_v5  ;;  %v10219_v6 = vmax.f32 %v10187_v24, 0.0  ;;  %v33858_v37 = vld [vmem:[#allocation3 + $0x50] sm:$0xff]  ;;  %v33862_v17 = vld [vmem:[#allocation3 + $0x60] sm:$0xff]  ;;  %v33866_v9 = vld [vmem:[#allocation3 + $0x68] sm:$0xff] }
 0x6ce   : > { %v10306_v41 = vrot.slane %v10263_v2, 1  ;;  %v29542_v30 = vadd.f32 %v10110_v35, %v33608_v21  ;;  %v10218_v7 = vmax.f32 %v10186_v47, 0.0  ;;  %v33870_v49 = vld [vmem:[#allocation3 + $0x78] sm:$0xff]  ;;  %v33874_v24 = vld [vmem:[#allocation3 + $0x80] sm:$0xff]  ;;  %v33878_v18 = vld [vmem:[#allocation3 + $0x90] sm:$0xff] }
 0x6cf   : > { %v10305_v13 = vrot.slane %v10260_v28, 1  ;;  %v10189_v14 = vadd.f32 %v29541_v42, %v33650_v53  ;;  %v10267_v3 = vsel %vm341_vm3, %v10219_v6, -inf  ;;  %v10788_v47 = vld [vmem:[#allocation3 + $0x4] sm:$0xff]  ;;  %v22760_v42 = vld [vmem:[%s36866_s3 + $0x78] sm:$0xff]  ;;  %v10789_v35 = vld [vmem:[#allocation3 + $0xc] sm:$0xff] }
 0x6d0   : > { %v10340_v45 = vmax.f32 %v10263_v2, %v10306_v41  ;;  %v10188_v46 = vadd.f32 %v29542_v30, %v33650_v53  ;;  %v10264_v53 = vsel %vm341_vm3, %v10218_v7, -inf  ;;  %v33882_v2 = vld [vmem:[#allocation3 + $0x98] sm:$0xff]  ;;  %v22778_v6 = vld [vmem:[%s36866_s3 + $0x88] sm:$0xff]  ;;  %v22779_v43 = vld [vmem:[%s36866_s3 + $0x90] sm:$0xff] }
 0x6d1   : > { %v10307_v1 = vsel %vm10286_vm4, %v10305_v13, %v10306_v41  ;;  %v10221_v31 = vmax.f32 %v10189_v14, 0.0  ;;  %v33901_v41 = vld [vmem:[#allocation3 + $0x1c] sm:$0xff]  ;;  %v33912_v14 = vld [vmem:[#allocation3 + $0x24] sm:$0xff]  ;;  %v33916_v7 = vld [vmem:[#allocation3 + $0x34] sm:$0xff] }
 0x6d2   : > { %10358 = vst.msk [vmem:[#allocation3 + $0xcc] sm:$0x7f] %vm10345_vm5, %v10340_v45  ;;  %v10339_v20 = vmax.f32 %v10260_v28, %v10307_v1  ;;  %v10220_v51 = vmax.f32 %v10188_v46, 0.0  ;;  %v22759_v28 = vld [vmem:[%s36866_s3 + $0x70] sm:$0xff]  ;;  %v22777_v13 = vld [vmem:[%s36866_s3 + $0x80] sm:$0xff] }
 0x6d3   : > { %v10268_v34 = vsel %vm341_vm3, %v10221_v31, -inf  ;;  %v33806_v21 = vld [vmem:[#allocation3 + $0xaa] sm:$0xff]  ;;  %v33808_v55 = vld [vmem:[#allocation3 + $0xb2] sm:$0xff]  ;;  %v28761_v30 = vpack.c.bf16 %v22760_v42, %v22759_v28  ;;  %v28765_v45 = vpack.c.bf16 %v22778_v6, %v22777_v13  ;;  %v33920_v46 = vld [vmem:[#allocation3 + $0x3c] sm:$0xff] }
 0x6d4   : > { %10357 = vst.msk [vmem:[#allocation3 + $0xc4] sm:$0xff] %vm341_vm3, %v10339_v20  ;;  %v10269_v59 = vmax.f32 %v10267_v3, %v10268_v34  ;;  %v10265_v16 = vsel %vm341_vm3, %v10220_v51, -inf  ;;  %26954 = vmatprep.mubr.msk.f32.mxu1 %vm341_vm3, %v33806_v21  ;;  %v33886_v38 = vld [vmem:[#allocation3 + $0xa8] sm:$0xff]  ;;  %v33890_v19 = vld [vmem:[#allocation3 + $0xb0] sm:$0xff]  ;;  %v33940_v3 = vld [vmem:[#allocation3 + $0x7c] sm:$0xff] }
 0x6d5   : > { %v10266_v61 = vmax.f32 %v10264_v53, %v10265_v16  ;;  %26955 = vmatmul.mubr.msk.f32.gmra.mrb[46].mxu1 %vm341_vm3, %v33808_v55  ;;  %v33924_v1 = vld [vmem:[#allocation3 + $0x4c] sm:$0xff]  ;;  %v33928_v31 = vld [vmem:[#allocation3 + $0x54] sm:$0xff]  ;;  %v33932_v20 = vld [vmem:[#allocation3 + $0x64] sm:$0xff] }
 0x6d6   : > { %v10309_v40 = vrot.slane %v10269_v59, 1  ;;  %26965 = vmatprep.mubr.msk.f32.mxu1 %vm341_vm3, %v10361_v57  ;;  %v33936_v51 = vld [vmem:[#allocation3 + $0x6c] sm:$0xff]  ;;  %v33944_v34 = vld [vmem:[#allocation3 + $0x84] sm:$0xff]  ;;  %v33948_v57 = vld [vmem:[#allocation3 + $0x94] sm:$0xff] }
 0x6d7   : > { %v10308_v8 = vrot.slane %v10266_v61, 1  ;;  %v33952_v53 = vld [vmem:[#allocation3 + $0x9c] sm:$0xff]  ;;  %v11018_v16 = vld [vmem:[#allocation3 + $0x6] sm:$0xff]  ;;  %v33960_v56 = vld [vmem:[#allocation3 + $0xb4] sm:$0xff] }
 0x6d8   : > { %v10342_v0 = vmax.f32 %v10269_v59, %v10309_v40  ;;  %v33956_v59 = vld [vmem:[#allocation3 + $0xac] sm:$0xff]  ;;  %v33998_v28 = vld [vmem:[#allocation3 + $0x56] sm:$0xff] }
 0x6d9   : > { %v10310_v12 = vsel %vm10286_vm4, %v10308_v8, %v10309_v40  ;;  %26966 = vmatmul.mubr.msk.f32.vlgmr.msra.gmra.mrb[32].mxu1 %vm341_vm3, %v33824_v4  ;;  %v11019_v40 = vld [vmem:[#allocation3 + $0xe] sm:$0xff]  ;;  %v33971_v8 = vld [vmem:[#allocation3 + $0x1e] sm:$0xff]  ;;  %v33982_v10 = vld [vmem:[#allocation3 + $0x26] sm:$0xff] }
 0x6da   : > { %10360 = vst.msk [vmem:[#allocation3 + $0xe4] sm:$0x7f] %vm10345_vm5, %v10342_v0  ;;  %v10341_v27 = vmax.f32 %v10266_v61, %v10310_v12  ;;  %28752 = vmatpush3.bf16.msra.mxu1 %v33644_v48  ;;  %26968 = vmatprep.mubr.msk.f32.mxu1 %vm341_vm3, %v33826_v39  ;;  %v33850_v48 = vld [vmem:[#allocation3 + $0x38] sm:$0xff]  ;;  %v22797_v0 = vld [vmem:[%s36866_s3 + $0xa0] sm:$0xff] }
 0x6db   : > { %28754 = vmatprep.subr.bf16.mxu1 %v28753_v63  ;;  %v22780_v61 = vld [vmem:[%s36866_s3 + $0x98] sm:$0xff]  ;;  %v28773_v12 = vpack.c.bf16 %v22798_v32, %v22797_v0  ;;  %v34002_v42 = vld [vmem:[#allocation3 + $0x66] sm:$0xff] }
 0x6dc   : > { %10359 = vst.msk [vmem:[#allocation3 + $0xdc] sm:$0xff] %vm341_vm3, %v10341_v27  ;;  %v33986_v27 = vld [vmem:[#allocation3 + $0x36] sm:$0xff]  ;;  %v34014_v13 = vld [vmem:[#allocation3 + $0x86] sm:$0xff] }
 0x6dd   : > { %26969 = vmatmul.mubr.msk.f32.gmra.mrb[34].mxu1 %vm341_vm3, %v33841_v44  ;;  %v34018_v6 = vld [vmem:[#allocation3 + $0x96] sm:$0xff]  ;;  %v22817_v32 = vld [vmem:[%s36866_s3 + $0xc0] sm:$0xff] }
 0x6de   : > { %26971 = vmatprep.mubr.msk.f32.mxu1 %vm341_vm3, %v33846_v33  ;;  %28756 = vmatpush3.bf16.msra.mxu1 %v28753_v63  ;;  %v28769_v63 = vpack.c.bf16 %v22780_v61, %v22779_v43  ;;  %v34030_v43 = vld [vmem:[#allocation3 + $0xb6] sm:$0xff] }
 0x6df   : > { %28758 = vmatprep.subr.bf16.mxu1 %v28757_v62  ;;  %37406 = vst [vmem:[#allocation86_spill] sm:$0xff] %v34030_v43  ;;  %v22799_v61 = vld [vmem:[%s36866_s3 + $0xb0] sm:$0xff] }
 0x6e1   : > { %26972 = vmatmul.mubr.msk.f32.gmra.mrb[36].mxu1 %vm341_vm3, %v33850_v48 }
 0x6e2   : > { %26974 = vmatprep.mubr.msk.f32.mxu1 %vm341_vm3, %v33854_v36 }
 0x6e5   : > { %26975 = vmatmul.mubr.msk.f32.gmra.mrb[38].mxu1 %vm341_vm3, %v33858_v37 }
 0x6e6   : > { %26977 = vmatprep.mubr.msk.f32.mxu1 %vm341_vm3, %v33862_v17 }
 0x6e9   : > { %26978 = vmatmul.mubr.msk.f32.gmra.mrb[40].mxu1 %vm341_vm3, %v33866_v9 }
 0x6ea   : > { %26980 = vmatprep.mubr.msk.f32.mxu1 %vm341_vm3, %v33870_v49 }
 0x6ed   : > { %26981 = vmatmul.mubr.msk.f32.gmra.mrb[42].mxu1 %vm341_vm3, %v33874_v24 }
 0x6ee   : > { %26983 = vmatprep.mubr.msk.f32.mxu1 %vm341_vm3, %v33878_v18 }
 0x6f1   : > { %26984 = vmatmul.mubr.msk.f32.gmra.mrb[44].mxu1 %vm341_vm3, %v33882_v2 }
 0x6f2   : > { %26986 = vmatprep.mubr.msk.f32.mxu1 %vm341_vm3, %v33886_v38 }
 0x6f5   : > { %26987 = vmatmul.mubr.msk.f32.gmra.mrb[46].mxu1 %vm341_vm3, %v33890_v19 }
 0x6f6   : > { %26997 = vmatprep.mubr.msk.f32.mxu1 %vm341_vm3, %v10788_v47  ;;  %v33994_v47 = vld [vmem:[#allocation3 + $0x4e] sm:$0xff] }
 0x6f9   : > { %26998 = vmatmul.mubr.msk.f32.vlgmr.msra.gmra.mrb[32].mxu1 %vm341_vm3, %v10789_v35  ;;  %v34006_v35 = vld [vmem:[#allocation3 + $0x6e] sm:$0xff] }
 0x6fa   : > { %28760 = vmatpush3.bf16.msra.mxu1 %v28757_v62  ;;  %27000 = vmatprep.mubr.msk.f32.mxu1 %vm341_vm3, %v33901_v41  ;;  %v33990_v62 = vld [vmem:[#allocation3 + $0x3e] sm:$0xff] }
 0x6fb   : > { %28762 = vmatprep.subr.bf16.mxu1 %v28761_v30 }
 0x6fd   : > { %27001 = vmatmul.mubr.msk.f32.gmra.mrb[34].mxu1 %vm341_vm3, %v33912_v14 }
 0x6fe   : > { %27003 = vmatprep.mubr.msk.f32.mxu1 %vm341_vm3, %v33916_v7  ;;  %28764 = vmatpush3.bf16.msra.mxu1 %v28761_v30  ;;  %v34010_v30 = vld [vmem:[#allocation3 + $0x7e] sm:$0xff] }
 0x6ff   : > { %28766 = vmatprep.subr.bf16.mxu1 %v28765_v45 }
 0x701   : > { %27004 = vmatmul.mubr.msk.f32.gmra.mrb[36].mxu1 %vm341_vm3, %v33920_v46 }
 0x702   : > { %27006 = vmatprep.mubr.msk.f32.mxu1 %vm341_vm3, %v33924_v1 }
 0x705   : > { %27007 = vmatmul.mubr.msk.f32.gmra.mrb[38].mxu1 %vm341_vm3, %v33928_v31 }
 0x706   : > { %27009 = vmatprep.mubr.msk.f32.mxu1 %vm341_vm3, %v33932_v20 }
 0x709   : > { %27010 = vmatmul.mubr.msk.f32.gmra.mrb[40].mxu1 %vm341_vm3, %v33936_v51 }
 0x70a   : > { %27012 = vmatprep.mubr.msk.f32.mxu1 %vm341_vm3, %v33940_v3 }
 0x70d   : > { %27013 = vmatmul.mubr.msk.f32.gmra.mrb[42].mxu1 %vm341_vm3, %v33944_v34 }
 0x70e   : > { %27015 = vmatprep.mubr.msk.f32.mxu1 %vm341_vm3, %v33948_v57 }
 0x711   : > { %27016 = vmatmul.mubr.msk.f32.gmra.mrb[44].mxu1 %vm341_vm3, %v33952_v53 }
 0x712   : > { %27018 = vmatprep.mubr.msk.f32.mxu1 %vm341_vm3, %v33956_v59 }
 0x715   : > { %27019 = vmatmul.mubr.msk.f32.gmra.mrb[46].mxu1 %vm341_vm3, %v33960_v56 }
 0x716   : > { %27029 = vmatprep.mubr.msk.f32.mxu1 %vm341_vm3, %v11018_v16  ;;  %v34026_v16 = vld [vmem:[#allocation3 + $0xae] sm:$0xff] }
 0x719   : > { %27030 = vmatmul.mubr.msk.f32.vlgmr.msra.gmra.mrb[32].mxu1 %vm341_vm3, %v11019_v40  ;;  %v22800_v40 = vld [vmem:[%s36866_s3 + $0xb8] sm:$0xff] }
 0x71a   : > { %28768 = vmatpush3.bf16.msra.mxu1 %v28765_v45  ;;  %27032 = vmatprep.mubr.msk.f32.mxu1 %vm341_vm3, %v33971_v8  ;;  %v34022_v45 = vld [vmem:[#allocation3 + $0x9e] sm:$0xff]  ;;  %v28777_v0 = vpack.c.bf16 %v22800_v40, %v22799_v61  ;;  %v34075_v40 = vld [vmem:[#allocation3 + $0x88] sm:$0xff] }
 0x71b   : > { %28770 = vmatprep.subr.bf16.mxu1 %v28769_v63  ;;  %v34057_v61 = vld [vmem:[#allocation3 + $0x40] sm:$0xff]  ;;  %37409 = vst [vmem:[#allocation5_spill] sm:$0xff] %v34075_v40 }
 0x71d   : > { %27033 = vmatmul.mubr.msk.f32.gmra.mrb[34].mxu1 %vm341_vm3, %v33982_v10 }
 0x71e   : > { %27035 = vmatprep.mubr.msk.f32.mxu1 %vm341_vm3, %v33986_v27  ;;  %28772 = vmatpush3.bf16.msra.mxu1 %v28769_v63  ;;  %v11249_v63 = vld [vmem:[#allocation3 + $0x10] sm:$0xff] }
 0x71f   : > { %28774 = vmatprep.subr.bf16.mxu1 %v28773_v12 }
 0x721   : > { %27036 = vmatmul.mubr.msk.f32.gmra.mrb[36].mxu1 %vm341_vm3, %v33990_v62 }
 0x722   : > { %27038 = vmatprep.mubr.msk.f32.mxu1 %vm341_vm3, %v33994_v47 }
 0x725   : > { %27039 = vmatmul.mubr.msk.f32.gmra.mrb[38].mxu1 %vm341_vm3, %v33998_v28 }
 0x726   : > { %27041 = vmatprep.mubr.msk.f32.mxu1 %vm341_vm3, %v34002_v42 }
 0x729   : > { %27042 = vmatmul.mubr.msk.f32.gmra.mrb[40].mxu1 %vm341_vm3, %v34006_v35 }
 0x72a   : > { %27044 = vmatprep.mubr.msk.f32.mxu1 %vm341_vm3, %v34010_v30 }
 0x72d   : > { %27045 = vmatmul.mubr.msk.f32.gmra.mrb[42].mxu1 %vm341_vm3, %v34014_v13 }
 0x72e   : > { %27047 = vmatprep.mubr.msk.f32.mxu1 %vm341_vm3, %v34018_v6 }
 0x731   : > { %27048 = vmatmul.mubr.msk.f32.gmra.mrb[44].mxu1 %vm341_vm3, %v34022_v45 }
 0x732   : > { %27050 = vmatprep.mubr.msk.f32.mxu1 %vm341_vm3, %v34026_v16 }
 0x735   : > { %27051 = vmatmul.mubr.msk.f32.gmra.mrb[46].mxu1 %vm341_vm3, %v34030_v43  ;;  %v34051_v43 = vld [vmem:[#allocation3 + $0x28] sm:$0xff] }
 0x736   : > { %27061 = vmatprep.mubr.msk.f32.mxu1 %vm341_vm3, %v33824_v4  ;;  %v28781_v4 = vpack.c.bf16 %v22818_v58, %v22817_v32  ;;  %v34069_v58 = vld [vmem:[#allocation3 + $0x70] sm:$0xff] }
 0x737   : > { %37408 = vst [vmem:[#allocation88_spill] sm:$0xff] %v34069_v58  ;;  %v22819_v32 = vld [vmem:[%s36866_s3 + $0xd0] sm:$0xff] }
 0x739   : > { %27062 = vmatmul.mubr.msk.f32.vlgmr.msra.gmra.mrb[32].mxu1 %vm341_vm3, %v11249_v63  ;;  %v34081_v63 = vld [vmem:[#allocation3 + $0xa0] sm:$0xff] }
 0x73a   : > { %28776 = vmatpush3.bf16.msra.mxu1 %v28773_v12  ;;  %27064 = vmatprep.mubr.msk.f32.mxu1 %vm341_vm3, %v33841_v44  ;;  %v34063_v12 = vld [vmem:[#allocation3 + $0x58] sm:$0xff]  ;;  %37410 = vst [vmem:[#allocation6_spill] sm:$0xff] %v34081_v63 }
 0x73b   : > { %28778 = vmatprep.subr.bf16.mxu1 %v28777_v0  ;;  %37407 = vst [vmem:[#allocation87_spill] sm:$0xff] %v34063_v12 }
 0x73d   : > { %27065 = vmatmul.mubr.msk.f32.gmra.mrb[34].mxu1 %vm341_vm3, %v34051_v43 }
 0x73e   : > { %27067 = vmatprep.mubr.msk.f32.mxu1 %vm341_vm3, %v33850_v48  ;;  %28780 = vmatpush3.bf16.msra.mxu1 %v28777_v0  ;;  %v34087_v0 = vld [vmem:[#allocation3 + $0xb8] sm:$0xff] }
 0x73f   : > { %28782 = vmatprep.subr.bf16.mxu1 %v28781_v4  ;;  %37411 = vst [vmem:[#allocation7_spill] sm:$0xff] %v34087_v0 }
 0x741   : > { %27068 = vmatmul.mubr.msk.f32.gmra.mrb[36].mxu1 %vm341_vm3, %v34057_v61 }
 0x742   : > { %27070 = vmatprep.mubr.msk.f32.mxu1 %vm341_vm3, %v33858_v37 }
 0x745   : > { %27071 = vmatmul.mubr.msk.f32.gmra.mrb[38].mxu1 %vm341_vm3, %v34063_v12  ;;  %v22838_v12 = vld [vmem:[%s36866_s3 + $0xe8] sm:$0xff] }
 0x746   : > { %27073 = vmatprep.mubr.msk.f32.mxu1 %vm341_vm3, %v33866_v9 }
 0x749   : > { %27074 = vmatmul.mubr.msk.f32.gmra.mrb[40].mxu1 %vm341_vm3, %v34069_v58  ;;  %v22837_v58 = vld [vmem:[%s36866_s3 + $0xe0] sm:$0xff] }
 0x74a   : > { %27076 = vmatprep.mubr.msk.f32.mxu1 %vm341_vm3, %v33874_v24 }
 0x74d   : > { %27077 = vmatmul.mubr.msk.f32.gmra.mrb[42].mxu1 %vm341_vm3, %v34075_v40  ;;  %v22820_v40 = vld [vmem:[%s36866_s3 + $0xd8] sm:$0xff] }
 0x74e   : > { %27079 = vmatprep.mubr.msk.f32.mxu1 %vm341_vm3, %v33882_v2 }
 0x751   : > { %27080 = vmatmul.mubr.msk.f32.gmra.mrb[44].mxu1 %vm341_vm3, %v34081_v63  ;;  %v28785_v63 = vpack.c.bf16 %v22820_v40, %v22819_v32  ;;  %v22858_v32 = vld [vmem:[%s36866_s3 + $0x108] sm:$0xff] }
 0x752   : > { %27082 = vmatprep.mubr.msk.f32.mxu1 %vm341_vm3, %v33890_v19 }
 0x755   : > { %27083 = vmatmul.mubr.msk.f32.gmra.mrb[46].mxu1 %vm341_vm3, %v34087_v0  ;;  %v28789_v0 = vpack.c.bf16 %v22838_v12, %v22837_v58  ;;  %v22839_v12 = vld [vmem:[%s36866_s3 + $0xf0] sm:$0xff]  ;;  %v22840_v58 = vld [vmem:[%s36866_s3 + $0xf8] sm:$0xff] }
 0x756   : > { %27093 = vmatprep.mubr.msk.f32.mxu1 %vm341_vm3, %v33826_v39  ;;  %v34131_v39 = vld [vmem:[#allocation3 + $0xc0] sm:$0xff]  ;;  %v28793_v40 = vpack.c.bf16 %v22840_v58, %v22839_v12  ;;  %v22880_v12 = vld [vmem:[%s36866_s3 + $0x138] sm:$0xff] }
 0x757   : > { %37412 = vst [vmem:[#allocation8_spill] sm:$0xff] %v34131_v39 }
 0x759   : > { %27094 = vmatmul.mubr.msk.f32.vlgmr.msra.gmra.mrb[32].mxu1 %vm341_vm3, %v33841_v44 }
 0x75a   : > { %28784 = vmatpush3.bf16.msra.mxu1 %v28781_v4  ;;  %27096 = vmatprep.mubr.msk.f32.mxu1 %vm341_vm3, %v33846_v33  ;;  %v34135_v4 = vld [vmem:[#allocation3 + $0xc8] sm:$0xff] }
 0x75b   : > { %28786 = vmatprep.subr.bf16.mxu1 %v28785_v63 }
 0x75d   : > { %27097 = vmatmul.mubr.msk.f32.gmra.mrb[34].mxu1 %vm341_vm3, %v33850_v48 }
 0x75e   : > { %27099 = vmatprep.mubr.msk.f32.mxu1 %vm341_vm3, %v33854_v36  ;;  %28788 = vmatpush3.bf16.msra.mxu1 %v28785_v63  ;;  %v22857_v63 = vld [vmem:[%s36866_s3 + $0x100] sm:$0xff] }
 0x75f   : > { %28790 = vmatprep.subr.bf16.mxu1 %v28789_v0 }
 0x761   : > { %27100 = vmatmul.mubr.msk.f32.gmra.mrb[36].mxu1 %vm341_vm3, %v33858_v37 }
 0x762   : > { %27102 = vmatprep.mubr.msk.f32.mxu1 %vm341_vm3, %v33862_v17 }
 0x765   : > { %27103 = vmatmul.mubr.msk.f32.gmra.mrb[38].mxu1 %vm341_vm3, %v33866_v9 }
 0x766   : > { %27105 = vmatprep.mubr.msk.f32.mxu1 %vm341_vm3, %v33870_v49 }
 0x769   : > { %27106 = vmatmul.mubr.msk.f32.gmra.mrb[40].mxu1 %vm341_vm3, %v33874_v24 }
 0x76a   : > { %27108 = vmatprep.mubr.msk.f32.mxu1 %vm341_vm3, %v33878_v18 }
 0x76d   : > { %27109 = vmatmul.mubr.msk.f32.gmra.mrb[42].mxu1 %vm341_vm3, %v33882_v2 }
 0x76e   : > { %27111 = vmatprep.mubr.msk.f32.mxu1 %vm341_vm3, %v33886_v38 }
 0x771   : > { %27112 = vmatmul.mubr.msk.f32.gmra.mrb[44].mxu1 %vm341_vm3, %v33890_v19 }
 0x772   : > { %27114 = vmatprep.mubr.msk.f32.mxu1 %vm341_vm3, %v34131_v39  ;;  %v28797_v39 = vpack.c.bf16 %v22858_v32, %v22857_v63  ;;  %v22898_v63 = vld [vmem:[%s36866_s3 + $0x148] sm:$0xff] }
 0x775   : > { %27115 = vmatmul.mubr.msk.f32.gmra.mrb[46].mxu1 %vm341_vm3, %v34135_v4 }
 0x776   : > { %27125 = vmatprep.mubr.msk.f32.mxu1 %vm341_vm3, %v33618_v26  ;;  %v34179_v26 = vld [vmem:[#allocation3 + $0xc2] sm:$0xff] }
 0x779   : > { %27126 = vmatmul.mubr.msk.f32.vlgmr.msra.gmra.mrb[32].mxu1 %vm341_vm3, %v33622_v52  ;;  %v34183_v52 = vld [vmem:[#allocation3 + $0xca] sm:$0xff] }
 0x77a   : > { %28792 = vmatpush3.bf16.msra.mxu1 %v28789_v0  ;;  %27128 = vmatprep.mubr.msk.f32.mxu1 %vm341_vm3, %v33694_v60  ;;  %v22859_v60 = vld [vmem:[%s36866_s3 + $0x110] sm:$0xff] }
 0x77b   : > { %28794 = vmatprep.subr.bf16.mxu1 %v28793_v40 }
 0x77d   : > { %27129 = vmatmul.mubr.msk.f32.gmra.mrb[34].mxu1 %vm341_vm3, %v33696_v25  ;;  %v22860_v25 = vld [vmem:[%s36866_s3 + $0x118] sm:$0xff] }
 0x77e   : > { %27131 = vmatprep.mubr.msk.f32.mxu1 %vm341_vm3, %v33717_v15  ;;  %28796 = vmatpush3.bf16.msra.mxu1 %v28793_v40  ;;  %v28801_v15 = vpack.c.bf16 %v22860_v25, %v22859_v60  ;;  %v22897_v40 = vld [vmem:[%s36866_s3 + $0x140] sm:$0xff]  ;;  %v34279_v60 = vld [vmem:[#allocation3 + $0xce] sm:$0xff] }
 0x77f   : > { %28798 = vmatprep.subr.bf16.mxu1 %v28797_v39  ;;  %v28813_v32 = vpack.c.bf16 %v22898_v63, %v22897_v40  ;;  %v22899_v25 = vld [vmem:[%s36866_s3 + $0x150] sm:$0xff]  ;;  %v37418_v40 = vld [vmem:[#allocation7_spill] sm:$0xff] }
 0x780   : > { %v34325_v63 = vld [vmem:[#allocation3 + $0xd0] sm:$0xff] }
 0x781   : > { %27132 = vmatmul.mubr.msk.f32.gmra.mrb[36].mxu1 %vm341_vm3, %v33719_v11  ;;  %v22877_v11 = vld [vmem:[%s36866_s3 + $0x120] sm:$0xff] }
 0x782   : > { %27134 = vmatprep.mubr.msk.f32.mxu1 %vm341_vm3, %v33740_v29  ;;  %v22878_v29 = vld [vmem:[%s36866_s3 + $0x128] sm:$0xff] }
 0x783   : > { %v28805_v0 = vpack.c.bf16 %v22878_v29, %v22877_v11  ;;  %v22917_v29 = vld [vmem:[%s36866_s3 + $0x160] sm:$0xff] }
 0x785   : > { %27135 = vmatmul.mubr.msk.f32.gmra.mrb[38].mxu1 %vm341_vm3, %v33742_v23 }
 0x786   : > { %27137 = vmatprep.mubr.msk.f32.mxu1 %vm341_vm3, %v33763_v54 }
 0x789   : > { %27138 = vmatmul.mubr.msk.f32.gmra.mrb[40].mxu1 %vm341_vm3, %v33765_v22 }
 0x78a   : > { %27140 = vmatprep.mubr.msk.f32.mxu1 %vm341_vm3, %v33786_v50 }
 0x78d   : > { %27141 = vmatmul.mubr.msk.f32.gmra.mrb[42].mxu1 %vm341_vm3, %v33788_v5 }
 0x78e   : > { %27143 = vmatprep.mubr.msk.f32.mxu1 %vm341_vm3, %v33806_v21 }
 0x791   : > { %27144 = vmatmul.mubr.msk.f32.gmra.mrb[44].mxu1 %vm341_vm3, %v33808_v55 }
 0x792   : > { %27146 = vmatprep.mubr.msk.f32.mxu1 %vm341_vm3, %v34179_v26 }
 0x795   : > { %27147 = vmatmul.mubr.msk.f32.gmra.mrb[46].mxu1 %vm341_vm3, %v34183_v52 }
 0x796   : > { %27157 = vmatprep.mubr.msk.f32.mxu1 %vm341_vm3, %v33901_v41  ;;  %v34227_v41 = vld [vmem:[#allocation3 + $0xc4] sm:$0xff] }
 0x799   : > { %27158 = vmatmul.mubr.msk.f32.vlgmr.msra.gmra.mrb[32].mxu1 %vm341_vm3, %v33912_v14  ;;  %v34231_v14 = vld [vmem:[#allocation3 + $0xcc] sm:$0xff] }
 0x79a   : > { %28800 = vmatpush3.bf16.msra.mxu1 %v28797_v39  ;;  %27160 = vmatprep.mubr.msk.f32.mxu1 %vm341_vm3, %v33916_v7  ;;  %v22879_v39 = vld [vmem:[%s36866_s3 + $0x130] sm:$0xff] }
 0x79b   : > { %28802 = vmatprep.subr.bf16.mxu1 %v28801_v15  ;;  %v28809_v58 = vpack.c.bf16 %v22880_v12, %v22879_v39  ;;  %v37416_v12 = vld [vmem:[#allocation5_spill] sm:$0xff] }
 0x79d   : > { %27161 = vmatmul.mubr.msk.f32.gmra.mrb[34].mxu1 %vm341_vm3, %v33920_v46 }
 0x79e   : > { %27163 = vmatprep.mubr.msk.f32.mxu1 %vm341_vm3, %v33924_v1  ;;  %28804 = vmatpush3.bf16.msra.mxu1 %v28801_v15  ;;  %v22900_v15 = vld [vmem:[%s36866_s3 + $0x158] sm:$0xff] }
 0x79f   : > { %28806 = vmatprep.subr.bf16.mxu1 %v28805_v0  ;;  %v28817_v11 = vpack.c.bf16 %v22900_v15, %v22899_v25  ;;  %v22920_v25 = vld [vmem:[%s36866_s3 + $0x178] sm:$0xff] }
 0x7a1   : > { %27164 = vmatmul.mubr.msk.f32.gmra.mrb[36].mxu1 %vm341_vm3, %v33928_v31 }
 0x7a2   : > { %27166 = vmatprep.mubr.msk.f32.mxu1 %vm341_vm3, %v33932_v20 }
 0x7a5   : > { %27167 = vmatmul.mubr.msk.f32.gmra.mrb[38].mxu1 %vm341_vm3, %v33936_v51 }
 0x7a6   : > { %27169 = vmatprep.mubr.msk.f32.mxu1 %vm341_vm3, %v33940_v3 }
 0x7a9   : > { %27170 = vmatmul.mubr.msk.f32.gmra.mrb[40].mxu1 %vm341_vm3, %v33944_v34 }
 0x7aa   : > { %27172 = vmatprep.mubr.msk.f32.mxu1 %vm341_vm3, %v33948_v57 }
 0x7ad   : > { %27173 = vmatmul.mubr.msk.f32.gmra.mrb[42].mxu1 %vm341_vm3, %v33952_v53 }
 0x7ae   : > { %27175 = vmatprep.mubr.msk.f32.mxu1 %vm341_vm3, %v33956_v59 }
 0x7b1   : > { %27176 = vmatmul.mubr.msk.f32.gmra.mrb[44].mxu1 %vm341_vm3, %v33960_v56 }
 0x7b2   : > { %27178 = vmatprep.mubr.msk.f32.mxu1 %vm341_vm3, %v34227_v41 }
 0x7b5   : > { %27179 = vmatmul.mubr.msk.f32.gmra.mrb[46].mxu1 %vm341_vm3, %v34231_v14 }
 0x7b6   : > { %27189 = vmatprep.mubr.msk.f32.mxu1 %vm341_vm3, %v33971_v8  ;;  %v37413_v8 = vld [vmem:[#allocation86_spill] sm:$0xff] }
 0x7b9   : > { %27190 = vmatmul.mubr.msk.f32.vlgmr.msra.gmra.mrb[32].mxu1 %vm341_vm3, %v33982_v10  ;;  %v34275_v10 = vld [vmem:[#allocation3 + $0xc6] sm:$0xff] }
 0x7ba   : > { %28808 = vmatpush3.bf16.msra.mxu1 %v28805_v0  ;;  %27192 = vmatprep.mubr.msk.f32.mxu1 %vm341_vm3, %v33986_v27  ;;  %v22918_v0 = vld [vmem:[%s36866_s3 + $0x168] sm:$0xff] }
 0x7bb   : > { %28810 = vmatprep.subr.bf16.mxu1 %v28809_v58  ;;  %v28821_v39 = vpack.c.bf16 %v22918_v0, %v22917_v29  ;;  %v22938_v29 = vld [vmem:[%s36866_s3 + $0x188] sm:$0xff] }
 0x7bd   : > { %27193 = vmatmul.mubr.msk.f32.gmra.mrb[34].mxu1 %vm341_vm3, %v33990_v62 }
 0x7be   : > { %27195 = vmatprep.mubr.msk.f32.mxu1 %vm341_vm3, %v33994_v47  ;;  %28812 = vmatpush3.bf16.msra.mxu1 %v28809_v58  ;;  %v37417_v58 = vld [vmem:[#allocation6_spill] sm:$0xff] }
 0x7bf   : > { %28814 = vmatprep.subr.bf16.mxu1 %v28813_v32 }
 0x7c1   : > { %27196 = vmatmul.mubr.msk.f32.gmra.mrb[36].mxu1 %vm341_vm3, %v33998_v28 }
 0x7c2   : > { %27198 = vmatprep.mubr.msk.f32.mxu1 %vm341_vm3, %v34002_v42 }
 0x7c5   : > { %27199 = vmatmul.mubr.msk.f32.gmra.mrb[38].mxu1 %vm341_vm3, %v34006_v35 }
 0x7c6   : > { %27201 = vmatprep.mubr.msk.f32.mxu1 %vm341_vm3, %v34010_v30 }
 0x7c9   : > { %27202 = vmatmul.mubr.msk.f32.gmra.mrb[40].mxu1 %vm341_vm3, %v34014_v13 }
 0x7ca   : > { %27204 = vmatprep.mubr.msk.f32.mxu1 %vm341_vm3, %v34018_v6 }
 0x7cd   : > { %27205 = vmatmul.mubr.msk.f32.gmra.mrb[42].mxu1 %vm341_vm3, %v34022_v45 }
 0x7ce   : > { %27207 = vmatprep.mubr.msk.f32.mxu1 %vm341_vm3, %v34026_v16 }
 0x7d1   : > { %27208 = vmatmul.mubr.msk.f32.gmra.mrb[44].mxu1 %vm341_vm3, %v37413_v8 }
 0x7d2   : > { %27210 = vmatprep.mubr.msk.f32.mxu1 %vm341_vm3, %v34275_v10 }
 0x7d5   : > { %27211 = vmatmul.mubr.msk.f32.gmra.mrb[46].mxu1 %vm341_vm3, %v34279_v60 }
 0x7d6   : > { %27221 = vmatprep.mubr.msk.f32.mxu1 %vm341_vm3, %v33841_v44  ;;  %v37414_v44 = vld [vmem:[#allocation87_spill] sm:$0xff] }
 0x7d9   : > { %27222 = vmatmul.mubr.msk.f32.vlgmr.msra.gmra.mrb[32].mxu1 %vm341_vm3, %v34051_v43  ;;  %v37415_v43 = vld [vmem:[#allocation88_spill] sm:$0xff] }
 0x7da   : > { %28816 = vmatpush3.bf16.msra.mxu1 %v28813_v32  ;;  %27224 = vmatprep.mubr.msk.f32.mxu1 %vm341_vm3, %v33850_v48  ;;  %v22919_v32 = vld [vmem:[%s36866_s3 + $0x170] sm:$0xff] }
 0x7db   : > { %28818 = vmatprep.subr.bf16.mxu1 %v28817_v11  ;;  %v28825_v15 = vpack.c.bf16 %v22920_v25, %v22919_v32  ;;  %v34399_v32 = vld [vmem:[#allocation3 + $0x62] sm:$0xff] }
 0x7dd   : > { %27225 = vmatmul.mubr.msk.f32.gmra.mrb[34].mxu1 %vm341_vm3, %v34057_v61 }
 0x7de   : > { %27227 = vmatprep.mubr.msk.f32.mxu1 %vm341_vm3, %v33858_v37  ;;  %28820 = vmatpush3.bf16.msra.mxu1 %v28817_v11  ;;  %v22937_v11 = vld [vmem:[%s36866_s3 + $0x180] sm:$0xff] }
 0x7df   : > { %28822 = vmatprep.subr.bf16.mxu1 %v28821_v39  ;;  %v28829_v0 = vpack.c.bf16 %v22938_v29, %v22937_v11  ;;  %v34601_v11 = vld [vmem:[#allocation3 + $0x78] sm:$0xff]  ;;  %v34607_v29 = vld [vmem:[#allocation3 + $0x90] sm:$0xff] }
 0x7e1   : > { %27228 = vmatmul.mubr.msk.f32.gmra.mrb[36].mxu1 %vm341_vm3, %v37414_v44 }
 0x7e2   : > { %27230 = vmatprep.mubr.msk.f32.mxu1 %vm341_vm3, %v33866_v9 }
 0x7e5   : > { %27231 = vmatmul.mubr.msk.f32.gmra.mrb[38].mxu1 %vm341_vm3, %v37415_v43 }
 0x7e6   : > { %27233 = vmatprep.mubr.msk.f32.mxu1 %vm341_vm3, %v33874_v24 }
 0x7e9   : > { %27234 = vmatmul.mubr.msk.f32.gmra.mrb[40].mxu1 %vm341_vm3, %v37416_v12 }
 0x7ea   : > { %27236 = vmatprep.mubr.msk.f32.mxu1 %vm341_vm3, %v33882_v2 }
 0x7ed   : > { %27237 = vmatmul.mubr.msk.f32.gmra.mrb[42].mxu1 %vm341_vm3, %v37417_v58 }
 0x7ee   : > { %27239 = vmatprep.mubr.msk.f32.mxu1 %vm341_vm3, %v33890_v19 }
 0x7f1   : > { %27240 = vmatmul.mubr.msk.f32.gmra.mrb[44].mxu1 %vm341_vm3, %v37418_v40 }
 0x7f2   : > { %27242 = vmatprep.mubr.msk.f32.mxu1 %vm341_vm3, %v34135_v4 }
 0x7f5   : > { %27243 = vmatmul.mubr.msk.f32.gmra.mrb[46].mxu1 %vm341_vm3, %v34325_v63 }
 0x7f6   : > { %27253 = vmatprep.mubr.msk.f32.mxu1 %vm341_vm3, %v33846_v33  ;;  %v37419_v33 = vld [vmem:[#allocation8_spill] sm:$0xff] }
 0x7f9   : > { %27254 = vmatmul.mubr.msk.f32.vlgmr.msra.gmra.mrb[32].mxu1 %vm341_vm3, %v33850_v48  ;;  %v34369_v48 = vld [vmem:[#allocation3 + $0xd8] sm:$0xff] }
 0x7fa   : > { %28824 = vmatpush3.bf16.msra.mxu1 %v28821_v39  ;;  %27256 = vmatprep.mubr.msk.f32.mxu1 %vm341_vm3, %v33854_v36  ;;  %v34373_v36 = vld [vmem:[#allocation3 + $0xe0] sm:$0xff]  ;;  %v34395_v39 = vld [vmem:[#allocation3 + $0x52] sm:$0xff] }
 0x7fb   : > { %28826 = vmatprep.subr.bf16.mxu1 %v28825_v15 }
 0x7fd   : > { %27257 = vmatmul.mubr.msk.f32.gmra.mrb[34].mxu1 %vm341_vm3, %v33858_v37  ;;  %v22939_v37 = vld [vmem:[%s36866_s3 + $0x190] sm:$0xff] }
 0x7fe   : > { %27259 = vmatprep.mubr.msk.f32.mxu1 %vm341_vm3, %v33862_v17  ;;  %28828 = vmatpush3.bf16.msra.mxu1 %v28825_v15  ;;  %v22940_v17 = vld [vmem:[%s36866_s3 + $0x198] sm:$0xff] }
 0x7ff   : > { %28830 = vmatprep.subr.bf16.mxu1 %v28829_v0 }
 0x801   : > { %27260 = vmatmul.mubr.msk.f32.gmra.mrb[36].mxu1 %vm341_vm3, %v33866_v9  ;;  %v12859_v9 = vld [vmem:[#allocation3 + $0x32] sm:$0xff] }
 0x802   : > { %27262 = vmatprep.mubr.msk.f32.mxu1 %vm341_vm3, %v33870_v49  ;;  %v28833_v49 = vpack.c.bf16 %v22940_v17, %v22939_v37  ;;  %v34625_v37 = vld [vmem:[#allocation3 + $0xf0] sm:$0xff]  ;;  %v34631_v17 = vld [vmem:[#allocation3 + $0xf8] sm:$0xff] }
 0x805   : > { %27263 = vmatmul.mubr.msk.f32.gmra.mrb[38].mxu1 %vm341_vm3, %v33874_v24  ;;  %v12860_v24 = vld [vmem:[#allocation3 + $0x3a] sm:$0xff] }
 0x806   : > { %27265 = vmatprep.mubr.msk.f32.mxu1 %vm341_vm3, %v33878_v18  ;;  %v22957_v18 = vld [vmem:[%s36866_s3 + $0x1a0] sm:$0xff] }
 0x809   : > { %27266 = vmatmul.mubr.msk.f32.gmra.mrb[40].mxu1 %vm341_vm3, %v33882_v2  ;;  %v22958_v2 = vld [vmem:[%s36866_s3 + $0x1a8] sm:$0xff] }
 0x80a   : > { %27268 = vmatprep.mubr.msk.f32.mxu1 %vm341_vm3, %v33886_v38  ;;  %v34391_v38 = vld [vmem:[#allocation3 + $0x4a] sm:$0xff] }
 0x80d   : > { %27269 = vmatmul.mubr.msk.f32.gmra.mrb[42].mxu1 %vm341_vm3, %v33890_v19  ;;  %v28837_v19 = vpack.c.bf16 %v22958_v2, %v22957_v18  ;;  %v34653_v2 = vld [vmem:[#allocation3 + $0x6a] sm:$0xff] }
 0x80e   : > { %27271 = vmatprep.mubr.msk.f32.mxu1 %vm341_vm3, %v37419_v33 }
 0x811   : > { %27272 = vmatmul.mubr.msk.f32.gmra.mrb[44].mxu1 %vm341_vm3, %v34135_v4 }
 0x812   : > { %27274 = vmatprep.mubr.msk.f32.mxu1 %vm341_vm3, %v34369_v48 }
 0x815   : > { %27275 = vmatmul.mubr.msk.f32.gmra.mrb[46].mxu1 %vm341_vm3, %v34373_v36 }
 0x816   : > { %27285 = vmatprep.mubr.msk.f32.mxu1 %vm341_vm3, %v12859_v9 }
 0x819   : > { %27286 = vmatmul.mubr.msk.f32.vlgmr.msra.gmra.mrb[32].mxu1 %vm341_vm3, %v12860_v24  ;;  %v23058_v24 = vld [vmem:[%s36866_s3 + $0x248] sm:$0xff] }
 0x81a   : > { %28832 = vmatpush3.bf16.msra.mxu1 %v28829_v0  ;;  %27288 = vmatprep.mubr.msk.f32.mxu1 %vm341_vm3, %v34391_v38  ;;  %v34613_v0 = vld [vmem:[#allocation3 + $0xa8] sm:$0xff] }
 0x81b   : > { %28834 = vmatprep.subr.bf16.mxu1 %v28833_v49 }
 0x81d   : > { %27289 = vmatmul.mubr.msk.f32.gmra.mrb[34].mxu1 %vm341_vm3, %v34395_v39 }
 0x81e   : > { %27291 = vmatprep.mubr.msk.f32.mxu1 %vm341_vm3, %v34399_v32  ;;  %28836 = vmatpush3.bf16.msra.mxu1 %v28833_v49  ;;  %v23057_v49 = vld [vmem:[%s36866_s3 + $0x240] sm:$0xff] }
 0x81f   : > { %28838 = vmatprep.subr.bf16.mxu1 %v28837_v19  ;;  %v28877_v18 = vpack.c.bf16 %v23058_v24, %v23057_v49  ;;  %v34781_v49 = vld [vmem:[#allocation3 + $0x7e] sm:$0xff]  ;;  %v34785_v24 = vld [vmem:[#allocation3 + $0x86] sm:$0xff] }
 0x821   : > { %27292 = vmatmul.mubr.msk.f32.gmra.mrb[36].mxu1 %vm341_vm3, %v33742_v23  ;;  %v34421_v23 = vld [vmem:[#allocation3 + $0xda] sm:$0xff] }
 0x822   : > { %27294 = vmatprep.mubr.msk.f32.mxu1 %vm341_vm3, %v33763_v54  ;;  %v34425_v54 = vld [vmem:[#allocation3 + $0xe2] sm:$0xff] }
 0x825   : > { %27295 = vmatmul.mubr.msk.f32.gmra.mrb[38].mxu1 %vm341_vm3, %v33765_v22  ;;  %v22959_v22 = vld [vmem:[%s36866_s3 + $0x1b0] sm:$0xff] }
 0x826   : > { %27297 = vmatprep.mubr.msk.f32.mxu1 %vm341_vm3, %v33786_v50  ;;  %v22960_v50 = vld [vmem:[%s36866_s3 + $0x1b8] sm:$0xff] }
 0x829   : > { %27298 = vmatmul.mubr.msk.f32.gmra.mrb[40].mxu1 %vm341_vm3, %v33788_v5  ;;  %v28841_v5 = vpack.c.bf16 %v22960_v50, %v22959_v22  ;;  %v34669_v22 = vld [vmem:[#allocation3 + $0x9a] sm:$0xff]  ;;  %v34673_v50 = vld [vmem:[#allocation3 + $0xaa] sm:$0xff] }
 0x82a   : > { %27300 = vmatprep.mubr.msk.f32.mxu1 %vm341_vm3, %v33806_v21  ;;  %v22977_v21 = vld [vmem:[%s36866_s3 + $0x1c0] sm:$0xff] }
 0x82d   : > { %27301 = vmatmul.mubr.msk.f32.gmra.mrb[42].mxu1 %vm341_vm3, %v33808_v55  ;;  %v22978_v55 = vld [vmem:[%s36866_s3 + $0x1c8] sm:$0xff] }
 0x82e   : > { %27303 = vmatprep.mubr.msk.f32.mxu1 %vm341_vm3, %v34179_v26  ;;  %v28845_v25 = vpack.c.bf16 %v22978_v55, %v22977_v21  ;;  %v34687_v21 = vld [vmem:[#allocation3 + $0xf2] sm:$0xff]  ;;  %v34693_v55 = vld [vmem:[#allocation3 + $0xfa] sm:$0xff] }
 0x831   : > { %27304 = vmatmul.mubr.msk.f32.gmra.mrb[44].mxu1 %vm341_vm3, %v34183_v52 }
 0x832   : > { %27306 = vmatprep.mubr.msk.f32.mxu1 %vm341_vm3, %v34421_v23 }
 0x835   : > { %27307 = vmatmul.mubr.msk.f32.gmra.mrb[46].mxu1 %vm341_vm3, %v34425_v54 }
 0x836   : > { %27317 = vmatprep.mubr.msk.f32.mxu1 %vm341_vm3, %v33916_v7  ;;  %v34469_v7 = vld [vmem:[#allocation3 + $0xdc] sm:$0xff] }
 0x839   : > { %27318 = vmatmul.mubr.msk.f32.vlgmr.msra.gmra.mrb[32].mxu1 %vm341_vm3, %v33920_v46  ;;  %v34473_v46 = vld [vmem:[#allocation3 + $0xe4] sm:$0xff] }
 0x83a   : > { %28840 = vmatpush3.bf16.msra.mxu1 %v28837_v19  ;;  %27320 = vmatprep.mubr.msk.f32.mxu1 %vm341_vm3, %v33924_v1  ;;  %v22979_v1 = vld [vmem:[%s36866_s3 + $0x1d0] sm:$0xff]  ;;  %v34661_v19 = vld [vmem:[#allocation3 + $0x82] sm:$0xff] }
 0x83b   : > { %28842 = vmatprep.subr.bf16.mxu1 %v28841_v5 }
 0x83d   : > { %27321 = vmatmul.mubr.msk.f32.gmra.mrb[34].mxu1 %vm341_vm3, %v33928_v31  ;;  %v22980_v31 = vld [vmem:[%s36866_s3 + $0x1d8] sm:$0xff] }
 0x83e   : > { %27323 = vmatprep.mubr.msk.f32.mxu1 %vm341_vm3, %v33932_v20  ;;  %28844 = vmatpush3.bf16.msra.mxu1 %v28841_v5  ;;  %v28849_v20 = vpack.c.bf16 %v22980_v31, %v22979_v1  ;;  %v34677_v5 = vld [vmem:[#allocation3 + $0xb2] sm:$0xff] }
 0x83f   : > { %28846 = vmatprep.subr.bf16.mxu1 %v28845_v25  ;;  %v14241_v31 = vld [vmem:[#allocation3 + $0x54] sm:$0xff] }
 0x841   : > { %27324 = vmatmul.mubr.msk.f32.gmra.mrb[36].mxu1 %vm341_vm3, %v33936_v51  ;;  %v22997_v51 = vld [vmem:[%s36866_s3 + $0x1e0] sm:$0xff] }
 0x842   : > { %27326 = vmatprep.mubr.msk.f32.mxu1 %vm341_vm3, %v33940_v3  ;;  %v22998_v3 = vld [vmem:[%s36866_s3 + $0x1e8] sm:$0xff] }
 0x845   : > { %27327 = vmatmul.mubr.msk.f32.gmra.mrb[38].mxu1 %vm341_vm3, %v33944_v34  ;;  %v28853_v34 = vpack.c.bf16 %v22998_v3, %v22997_v51  ;;  %v23078_v51 = vld [vmem:[%s36866_s3 + $0x268] sm:$0xff] }
 0x846   : > { %27329 = vmatprep.mubr.msk.f32.mxu1 %vm341_vm3, %v33948_v57  ;;  %v34517_v57 = vld [vmem:[#allocation3 + $0xde] sm:$0xff] }
 0x847   : > { %v34711_v3 = vld [vmem:[#allocation3 + $0x64] sm:$0xff] }
 0x849   : > { %27330 = vmatmul.mubr.msk.f32.gmra.mrb[40].mxu1 %vm341_vm3, %v33952_v53  ;;  %v34521_v53 = vld [vmem:[#allocation3 + $0xe6] sm:$0xff] }
 0x84a   : > { %27332 = vmatprep.mubr.msk.f32.mxu1 %vm341_vm3, %v33956_v59  ;;  %v22999_v59 = vld [vmem:[%s36866_s3 + $0x1f0] sm:$0xff] }
 0x84d   : > { %27333 = vmatmul.mubr.msk.f32.gmra.mrb[42].mxu1 %vm341_vm3, %v33960_v56  ;;  %v23000_v56 = vld [vmem:[%s36866_s3 + $0x1f8] sm:$0xff] }
 0x84e   : > { %27335 = vmatprep.mubr.msk.f32.mxu1 %vm341_vm3, %v34227_v41 }
 0x851   : > { %27336 = vmatmul.mubr.msk.f32.gmra.mrb[44].mxu1 %vm341_vm3, %v34231_v14 }
 0x852   : > { %27338 = vmatprep.mubr.msk.f32.mxu1 %vm341_vm3, %v34469_v7 }
 0x855   : > { %27339 = vmatmul.mubr.msk.f32.gmra.mrb[46].mxu1 %vm341_vm3, %v34473_v46 }
 0x856   : > { %27349 = vmatprep.mubr.msk.f32.mxu1 %vm341_vm3, %v33986_v27  ;;  %v13549_v27 = vld [vmem:[#allocation3 + $0x38] sm:$0xff] }
 0x859   : > { %27350 = vmatmul.mubr.msk.f32.vlgmr.msra.gmra.mrb[32].mxu1 %vm341_vm3, %v33990_v62  ;;  %v28857_v62 = vpack.c.bf16 %v23000_v56, %v22999_v59  ;;  %v34715_v59 = vld [vmem:[#allocation3 + $0x6c] sm:$0xff]  ;;  %v34719_v56 = vld [vmem:[#allocation3 + $0x7c] sm:$0xff] }
 0x85a   : > { %28848 = vmatpush3.bf16.msra.mxu1 %v28845_v25  ;;  %27352 = vmatprep.mubr.msk.f32.mxu1 %vm341_vm3, %v33994_v47  ;;  %v23017_v47 = vld [vmem:[%s36866_s3 + $0x200] sm:$0xff]  ;;  %v14240_v25 = vld [vmem:[#allocation3 + $0x4c] sm:$0xff] }
 0x85b   : > { %28850 = vmatprep.subr.bf16.mxu1 %v28849_v20 }
 0x85d   : > { %27353 = vmatmul.mubr.msk.f32.gmra.mrb[34].mxu1 %vm341_vm3, %v33998_v28  ;;  %v23018_v28 = vld [vmem:[%s36866_s3 + $0x208] sm:$0xff] }
 0x85e   : > { %27355 = vmatprep.mubr.msk.f32.mxu1 %vm341_vm3, %v34002_v42  ;;  %28852 = vmatpush3.bf16.msra.mxu1 %v28849_v20  ;;  %v34540_v42 = vld [vmem:[#allocation3 + $0x50] sm:$0xff]  ;;  %v23077_v20 = vld [vmem:[%s36866_s3 + $0x260] sm:$0xff] }
 0x85f   : > { %28854 = vmatprep.subr.bf16.mxu1 %v28853_v34 }
 0x861   : > { %27356 = vmatmul.mubr.msk.f32.gmra.mrb[36].mxu1 %vm341_vm3, %v34006_v35  ;;  %v28861_v35 = vpack.c.bf16 %v23018_v28, %v23017_v47  ;;  %v34731_v47 = vld [vmem:[#allocation3 + $0x9c] sm:$0xff]  ;;  %v34735_v28 = vld [vmem:[#allocation3 + $0xac] sm:$0xff] }
 0x862   : > { %27358 = vmatprep.mubr.msk.f32.mxu1 %vm341_vm3, %v34010_v30  ;;  %v34546_v30 = vld [vmem:[#allocation3 + $0x68] sm:$0xff] }
 0x865   : > { %27359 = vmatmul.mubr.msk.f32.gmra.mrb[38].mxu1 %vm341_vm3, %v34014_v13  ;;  %v34552_v13 = vld [vmem:[#allocation3 + $0x80] sm:$0xff] }
 0x866   : > { %27361 = vmatprep.mubr.msk.f32.mxu1 %vm341_vm3, %v34018_v6  ;;  %v34558_v6 = vld [vmem:[#allocation3 + $0x98] sm:$0xff] }
 0x869   : > { %27362 = vmatmul.mubr.msk.f32.gmra.mrb[40].mxu1 %vm341_vm3, %v34022_v45  ;;  %v34564_v45 = vld [vmem:[#allocation3 + $0xb0] sm:$0xff] }
 0x86a   : > { %27364 = vmatprep.mubr.msk.f32.mxu1 %vm341_vm3, %v34026_v16  ;;  %v34576_v16 = vld [vmem:[#allocation3 + $0xe8] sm:$0xff] }
 0x86d   : > { %27365 = vmatmul.mubr.msk.f32.gmra.mrb[42].mxu1 %vm341_vm3, %v37413_v8  ;;  %v23020_v8 = vld [vmem:[%s36866_s3 + $0x218] sm:$0xff] }
 0x86e   : > { %27367 = vmatprep.mubr.msk.f32.mxu1 %vm341_vm3, %v34275_v10 }
 0x871   : > { %27368 = vmatmul.mubr.msk.f32.gmra.mrb[44].mxu1 %vm341_vm3, %v34279_v60 }
 0x872   : > { %27370 = vmatprep.mubr.msk.f32.mxu1 %vm341_vm3, %v34517_v57 }
 0x875   : > { %27371 = vmatmul.mubr.msk.f32.gmra.mrb[46].mxu1 %vm341_vm3, %v34521_v53 }
 0x876   : > { %27381 = vmatprep.mubr.msk.f32.mxu1 %vm341_vm3, %v13549_v27  ;;  %v34723_v27 = vld [vmem:[#allocation3 + $0x84] sm:$0xff] }
 0x879   : > { %27382 = vmatmul.mubr.msk.f32.vlgmr.msra.gmra.mrb[32].mxu1 %vm341_vm3, %v34057_v61  ;;  %v23019_v61 = vld [vmem:[%s36866_s3 + $0x210] sm:$0xff] }
 0x87a   : > { %28856 = vmatpush3.bf16.msra.mxu1 %v28853_v34  ;;  %27384 = vmatprep.mubr.msk.f32.mxu1 %vm341_vm3, %v34540_v42  ;;  %v28885_v34 = vpack.c.bf16 %v23078_v51, %v23077_v20  ;;  %v14701_v51 = vld [vmem:[#allocation3 + $0x58] sm:$0xff] }
 0x87b   : > { %28858 = vmatprep.subr.bf16.mxu1 %v28857_v62 }
 0x87d   : > { %27385 = vmatmul.mubr.msk.f32.gmra.mrb[34].mxu1 %vm341_vm3, %v37414_v44  ;;  %v13780_v44 = vld [vmem:[#allocation3 + $0x48] sm:$0xff] }
 0x87e   : > { %27387 = vmatprep.mubr.msk.f32.mxu1 %vm341_vm3, %v34546_v30  ;;  %28860 = vmatpush3.bf16.msra.mxu1 %v28857_v62  ;;  %v34727_v62 = vld [vmem:[#allocation3 + $0x94] sm:$0xff] }
 0x87f   : > { %28862 = vmatprep.subr.bf16.mxu1 %v28861_v35 }
 0x881   : > { %27388 = vmatmul.mubr.msk.f32.gmra.mrb[36].mxu1 %vm341_vm3, %v37415_v43  ;;  %v28865_v43 = vpack.c.bf16 %v23020_v8, %v23019_v61  ;;  %v34749_v61 = vld [vmem:[#allocation3 + $0xf4] sm:$0xff]  ;;  %v34755_v8 = vld [vmem:[#allocation3 + $0xfc] sm:$0xff] }
 0x882   : > { %27390 = vmatprep.mubr.msk.f32.mxu1 %vm341_vm3, %v34552_v13 }
 0x885   : > { %27391 = vmatmul.mubr.msk.f32.gmra.mrb[38].mxu1 %vm341_vm3, %v37416_v12  ;;  %v23037_v12 = vld [vmem:[%s36866_s3 + $0x220] sm:$0xff] }
 0x886   : > { %27393 = vmatprep.mubr.msk.f32.mxu1 %vm341_vm3, %v34558_v6 }
 0x889   : > { %27394 = vmatmul.mubr.msk.f32.gmra.mrb[40].mxu1 %vm341_vm3, %v37417_v58  ;;  %v23038_v58 = vld [vmem:[%s36866_s3 + $0x228] sm:$0xff] }
 0x88a   : > { %27396 = vmatprep.mubr.msk.f32.mxu1 %vm341_vm3, %v34564_v45  ;;  %v28869_v15 = vpack.c.bf16 %v23038_v58, %v23037_v12  ;;  %v14471_v12 = vld [vmem:[#allocation3 + $0x56] sm:$0xff]  ;;  %v23097_v58 = vld [vmem:[%s36866_s3 + $0x280] sm:$0xff] }
 0x88d   : > { %27397 = vmatmul.mubr.msk.f32.gmra.mrb[42].mxu1 %vm341_vm3, %v37418_v40  ;;  %v34595_v40 = vld [vmem:[#allocation3 + $0x60] sm:$0xff] }
 0x88e   : > { %27399 = vmatprep.mubr.msk.f32.mxu1 %vm341_vm3, %v34135_v4 }
 0x891   : > { %27400 = vmatmul.mubr.msk.f32.gmra.mrb[44].mxu1 %vm341_vm3, %v34325_v63 }
 0x892   : > { %27402 = vmatprep.mubr.msk.f32.mxu1 %vm341_vm3, %v34373_v36 }
 0x895   : > { %27403 = vmatmul.mubr.msk.f32.gmra.mrb[46].mxu1 %vm341_vm3, %v34576_v16 }
 0x896   : > { %27413 = vmatprep.mubr.msk.f32.mxu1 %vm341_vm3, %v13780_v44  ;;  %v14470_v44 = vld [vmem:[#allocation3 + $0x4e] sm:$0xff] }
 0x899   : > { %27414 = vmatmul.mubr.msk.f32.vlgmr.msra.gmra.mrb[32].mxu1 %vm341_vm3, %v34540_v42 }
 0x89a   : > { %28864 = vmatpush3.bf16.msra.mxu1 %v28861_v35  ;;  %27416 = vmatprep.mubr.msk.f32.mxu1 %vm341_vm3, %v34595_v40  ;;  %v34739_v35 = vld [vmem:[#allocation3 + $0xb4] sm:$0xff] }
 0x89b   : > { %28866 = vmatprep.subr.bf16.mxu1 %v28865_v43 }
 0x89d   : > { %27417 = vmatmul.mubr.msk.f32.gmra.mrb[34].mxu1 %vm341_vm3, %v34546_v30 }
 0x89e   : > { %27419 = vmatprep.mubr.msk.f32.mxu1 %vm341_vm3, %v34601_v11  ;;  %28868 = vmatpush3.bf16.msra.mxu1 %v28865_v43 }
 0x89f   : > { %28870 = vmatprep.subr.bf16.mxu1 %v28869_v15 }
 0x8a1   : > { %27420 = vmatmul.mubr.msk.f32.gmra.mrb[36].mxu1 %vm341_vm3, %v34552_v13 }
 0x8a2   : > { %27422 = vmatprep.mubr.msk.f32.mxu1 %vm341_vm3, %v34607_v29 }
 0x8a5   : > { %27423 = vmatmul.mubr.msk.f32.gmra.mrb[38].mxu1 %vm341_vm3, %v34558_v6 }
 0x8a6   : > { %27425 = vmatprep.mubr.msk.f32.mxu1 %vm341_vm3, %v34613_v0 }
 0x8a9   : > { %27426 = vmatmul.mubr.msk.f32.gmra.mrb[40].mxu1 %vm341_vm3, %v34564_v45 }
 0x8aa   : > { %27428 = vmatprep.mubr.msk.f32.mxu1 %vm341_vm3, %v37419_v33  ;;  %v23039_v33 = vld [vmem:[%s36866_s3 + $0x230] sm:$0xff] }
 0x8ad   : > { %27429 = vmatmul.mubr.msk.f32.gmra.mrb[42].mxu1 %vm341_vm3, %v34135_v4  ;;  %v23040_v4 = vld [vmem:[%s36866_s3 + $0x238] sm:$0xff] }
 0x8ae   : > { %27431 = vmatprep.mubr.msk.f32.mxu1 %vm341_vm3, %v34369_v48  ;;  %v28873_v9 = vpack.c.bf16 %v23040_v4, %v23039_v33  ;;  %v34773_v33 = vld [vmem:[#allocation3 + $0x66] sm:$0xff] }
 0x8b1   : > { %27432 = vmatmul.mubr.msk.f32.gmra.mrb[44].mxu1 %vm341_vm3, %v34373_v36 }
 0x8b2   : > { %27434 = vmatprep.mubr.msk.f32.mxu1 %vm341_vm3, %v34625_v37 }
 0x8b5   : > { %27435 = vmatmul.mubr.msk.f32.gmra.mrb[46].mxu1 %vm341_vm3, %v34631_v17 }
 0x8b6   : > { %27445 = vmatprep.mubr.msk.f32.mxu1 %vm341_vm3, %v34391_v38  ;;  %v34657_v38 = vld [vmem:[#allocation3 + $0x7a] sm:$0xff] }
 0x8b9   : > { %27446 = vmatmul.mubr.msk.f32.vlgmr.msra.gmra.mrb[32].mxu1 %vm341_vm3, %v34395_v39  ;;  %v34665_v39 = vld [vmem:[#allocation3 + $0x92] sm:$0xff] }
 0x8ba   : > { %28872 = vmatpush3.bf16.msra.mxu1 %v28869_v15  ;;  %27448 = vmatprep.mubr.msk.f32.mxu1 %vm341_vm3, %v34399_v32  ;;  %v23098_v15 = vld [vmem:[%s36866_s3 + $0x288] sm:$0xff] }
 0x8bb   : > { %28874 = vmatprep.subr.bf16.mxu1 %v28873_v9  ;;  %v28893_v4 = vpack.c.bf16 %v23098_v15, %v23097_v58  ;;  %v34860_v58 = vld [vmem:[#allocation3 + $0xc8] sm:$0xff]  ;;  %v34872_v15 = vld [vmem:[#allocation3 + $0x100] sm:$0xff] }
 0x8bd   : > { %27449 = vmatmul.mubr.msk.f32.gmra.mrb[34].mxu1 %vm341_vm3, %v34653_v2 }
 0x8be   : > { %27451 = vmatprep.mubr.msk.f32.mxu1 %vm341_vm3, %v34657_v38  ;;  %28876 = vmatpush3.bf16.msra.mxu1 %v28873_v9  ;;  %v34777_v9 = vld [vmem:[#allocation3 + $0x6e] sm:$0xff] }
 0x8bf   : > { %28878 = vmatprep.subr.bf16.mxu1 %v28877_v18 }
 0x8c1   : > { %27452 = vmatmul.mubr.msk.f32.gmra.mrb[36].mxu1 %vm341_vm3, %v34661_v19 }
 0x8c2   : > { %27454 = vmatprep.mubr.msk.f32.mxu1 %vm341_vm3, %v34665_v39 }
 0x8c5   : > { %27455 = vmatmul.mubr.msk.f32.gmra.mrb[38].mxu1 %vm341_vm3, %v34669_v22 }
 0x8c6   : > { %27457 = vmatprep.mubr.msk.f32.mxu1 %vm341_vm3, %v34673_v50 }
 0x8c9   : > { %27458 = vmatmul.mubr.msk.f32.gmra.mrb[40].mxu1 %vm341_vm3, %v34677_v5 }
 0x8ca   : > { %27460 = vmatprep.mubr.msk.f32.mxu1 %vm341_vm3, %v34179_v26  ;;  %v23059_v26 = vld [vmem:[%s36866_s3 + $0x250] sm:$0xff] }
 0x8cd   : > { %27461 = vmatmul.mubr.msk.f32.gmra.mrb[42].mxu1 %vm341_vm3, %v34183_v52  ;;  %v23060_v52 = vld [vmem:[%s36866_s3 + $0x258] sm:$0xff] }
 0x8ce   : > { %27463 = vmatprep.mubr.msk.f32.mxu1 %vm341_vm3, %v34421_v23  ;;  %v28881_v1 = vpack.c.bf16 %v23060_v52, %v23059_v26  ;;  %v34793_v26 = vld [vmem:[#allocation3 + $0x9e] sm:$0xff]  ;;  %v34797_v52 = vld [vmem:[#allocation3 + $0xae] sm:$0xff] }
 0x8d1   : > { %27464 = vmatmul.mubr.msk.f32.gmra.mrb[44].mxu1 %vm341_vm3, %v34425_v54 }
 0x8d2   : > { %27466 = vmatprep.mubr.msk.f32.mxu1 %vm341_vm3, %v34687_v21 }
 0x8d5   : > { %27467 = vmatmul.mubr.msk.f32.gmra.mrb[46].mxu1 %vm341_vm3, %v34693_v55 }
 0x8d6   : > { %27477 = vmatprep.mubr.msk.f32.mxu1 %vm341_vm3, %v14240_v25  ;;  %v34801_v25 = vld [vmem:[#allocation3 + $0xb6] sm:$0xff] }
 0x8d9   : > { %27478 = vmatmul.mubr.msk.f32.vlgmr.msra.gmra.mrb[32].mxu1 %vm341_vm3, %v14241_v31  ;;  %v34817_v31 = vld [vmem:[#allocation3 + $0xfe] sm:$0xff] }
 0x8da   : > { %28880 = vmatpush3.bf16.msra.mxu1 %v28877_v18  ;;  %27480 = vmatprep.mubr.msk.f32.mxu1 %vm341_vm3, %v34711_v3  ;;  %v34789_v18 = vld [vmem:[#allocation3 + $0x96] sm:$0xff] }
 0x8db   : > { %28882 = vmatprep.subr.bf16.mxu1 %v28881_v1 }
 0x8dd   : > { %27481 = vmatmul.mubr.msk.f32.gmra.mrb[34].mxu1 %vm341_vm3, %v34715_v59 }
 0x8de   : > { %27483 = vmatprep.mubr.msk.f32.mxu1 %vm341_vm3, %v34719_v56  ;;  %28884 = vmatpush3.bf16.msra.mxu1 %v28881_v1  ;;  %v34811_v1 = vld [vmem:[#allocation3 + $0xf6] sm:$0xff] }
 0x8df   : > { %28886 = vmatprep.subr.bf16.mxu1 %v28885_v34 }
 0x8e1   : > { %27484 = vmatmul.mubr.msk.f32.gmra.mrb[36].mxu1 %vm341_vm3, %v34723_v27 }
 0x8e2   : > { %27486 = vmatprep.mubr.msk.f32.mxu1 %vm341_vm3, %v34727_v62 }
 0x8e5   : > { %27487 = vmatmul.mubr.msk.f32.gmra.mrb[38].mxu1 %vm341_vm3, %v34731_v47 }
 0x8e6   : > { %27489 = vmatprep.mubr.msk.f32.mxu1 %vm341_vm3, %v34735_v28 }
 0x8e9   : > { %27490 = vmatmul.mubr.msk.f32.gmra.mrb[40].mxu1 %vm341_vm3, %v34739_v35 }
 0x8ea   : > { %27492 = vmatprep.mubr.msk.f32.mxu1 %vm341_vm3, %v34227_v41  ;;  %v23079_v41 = vld [vmem:[%s36866_s3 + $0x270] sm:$0xff] }
 0x8ed   : > { %27493 = vmatmul.mubr.msk.f32.gmra.mrb[42].mxu1 %vm341_vm3, %v34231_v14  ;;  %v23080_v14 = vld [vmem:[%s36866_s3 + $0x278] sm:$0xff] }
 0x8ee   : > { %27495 = vmatprep.mubr.msk.f32.mxu1 %vm341_vm3, %v34469_v7  ;;  %v28889_v43 = vpack.c.bf16 %v23080_v14, %v23079_v41  ;;  %v23118_v41 = vld [vmem:[%s36866_s3 + $0x2a8] sm:$0xff] }
 0x8f1   : > { %27496 = vmatmul.mubr.msk.f32.gmra.mrb[44].mxu1 %vm341_vm3, %v34473_v46 }
 0x8f2   : > { %27498 = vmatprep.mubr.msk.f32.mxu1 %vm341_vm3, %v34749_v61 }
 0x8f5   : > { %27499 = vmatmul.mubr.msk.f32.gmra.mrb[46].mxu1 %vm341_vm3, %v34755_v8 }
 0x8f6   : > { %27509 = vmatprep.mubr.msk.f32.mxu1 %vm341_vm3, %v14470_v44  ;;  %v34838_v44 = vld [vmem:[#allocation3 + $0x70] sm:$0xff] }
 0x8f9   : > { %27510 = vmatmul.mubr.msk.f32.vlgmr.msra.gmra.mrb[32].mxu1 %vm341_vm3, %v14471_v12  ;;  %v34856_v12 = vld [vmem:[#allocation3 + $0xb8] sm:$0xff] }
 0x8fa   : > { %28888 = vmatpush3.bf16.msra.mxu1 %v28885_v34  ;;  %27512 = vmatprep.mubr.msk.f32.mxu1 %vm341_vm3, %v34773_v33  ;;  %v23117_v34 = vld [vmem:[%s36866_s3 + $0x2a0] sm:$0xff] }
 0x8fb   : > { %28890 = vmatprep.subr.bf16.mxu1 %v28889_v43  ;;  %v28901_v14 = vpack.c.bf16 %v23118_v41, %v23117_v34  ;;  %v23158_v34 = vld [vmem:[%s36866_s3 + $0x2e8] sm:$0xff] }
 0x8fd   : > { %27513 = vmatmul.mubr.msk.f32.gmra.mrb[34].mxu1 %vm341_vm3, %v34777_v9 }
 0x8fe   : > { %27515 = vmatprep.mubr.msk.f32.mxu1 %vm341_vm3, %v34781_v49  ;;  %28892 = vmatpush3.bf16.msra.mxu1 %v28889_v43  ;;  %v34850_v43 = vld [vmem:[#allocation3 + $0xa0] sm:$0xff] }
 0x8ff   : > { %28894 = vmatprep.subr.bf16.mxu1 %v28893_v4 }
 0x901   : > { %27516 = vmatmul.mubr.msk.f32.gmra.mrb[36].mxu1 %vm341_vm3, %v34785_v24 }
 0x902   : > { %27518 = vmatprep.mubr.msk.f32.mxu1 %vm341_vm3, %v34789_v18 }
 0x905   : > { %27519 = vmatmul.mubr.msk.f32.gmra.mrb[38].mxu1 %vm341_vm3, %v34793_v26 }
 0x906   : > { %27521 = vmatprep.mubr.msk.f32.mxu1 %vm341_vm3, %v34797_v52 }
 0x909   : > { %27522 = vmatmul.mubr.msk.f32.gmra.mrb[40].mxu1 %vm341_vm3, %v34801_v25 }
 0x90a   : > { %27524 = vmatprep.mubr.msk.f32.mxu1 %vm341_vm3, %v34275_v10  ;;  %v23099_v10 = vld [vmem:[%s36866_s3 + $0x290] sm:$0xff] }
 0x90d   : > { %27525 = vmatmul.mubr.msk.f32.gmra.mrb[42].mxu1 %vm341_vm3, %v34279_v60  ;;  %v23100_v60 = vld [vmem:[%s36866_s3 + $0x298] sm:$0xff] }
 0x90e   : > { %27527 = vmatprep.mubr.msk.f32.mxu1 %vm341_vm3, %v34517_v57  ;;  %v28897_v20 = vpack.c.bf16 %v23100_v60, %v23099_v10  ;;  %v23120_v10 = vld [vmem:[%s36866_s3 + $0x2b8] sm:$0xff]  ;;  %v23137_v60 = vld [vmem:[%s36866_s3 + $0x2c0] sm:$0xff] }
 0x911   : > { %27528 = vmatmul.mubr.msk.f32.gmra.mrb[44].mxu1 %vm341_vm3, %v34521_v53 }
 0x912   : > { %27530 = vmatprep.mubr.msk.f32.mxu1 %vm341_vm3, %v34811_v1 }
 0x915   : > { %27531 = vmatmul.mubr.msk.f32.gmra.mrb[46].mxu1 %vm341_vm3, %v34817_v31 }
 0x916   : > { %27541 = vmatprep.mubr.msk.f32.mxu1 %vm341_vm3, %v34540_v42  ;;  %v34844_v42 = vld [vmem:[#allocation3 + $0x88] sm:$0xff] }
 0x919   : > { %27542 = vmatmul.mubr.msk.f32.vlgmr.msra.gmra.mrb[32].mxu1 %vm341_vm3, %v14701_v51 }
 0x91a   : > { %28896 = vmatpush3.bf16.msra.mxu1 %v28893_v4  ;;  %27544 = vmatprep.mubr.msk.f32.mxu1 %vm341_vm3, %v34546_v30  ;;  %v23119_v4 = vld [vmem:[%s36866_s3 + $0x2b0] sm:$0xff] }
 0x91b   : > { %28898 = vmatprep.subr.bf16.mxu1 %v28897_v20 }
 0x91d   : > { %27545 = vmatmul.mubr.msk.f32.gmra.mrb[34].mxu1 %vm341_vm3, %v34838_v44 }
 0x91e   : > { %27547 = vmatprep.mubr.msk.f32.mxu1 %vm341_vm3, %v34552_v13  ;;  %28900 = vmatpush3.bf16.msra.mxu1 %v28897_v20  ;;  %v23138_v20 = vld [vmem:[%s36866_s3 + $0x2c8] sm:$0xff] }
 0x91f   : > { %28902 = vmatprep.subr.bf16.mxu1 %v28901_v14  ;;  %v28909_v51 = vpack.c.bf16 %v23138_v20, %v23137_v60  ;;  %v23223_v60 = vld [vmem:[%s36868_s5 + $0x88] sm:$0xff] }
 0x921   : > { %27548 = vmatmul.mubr.msk.f32.gmra.mrb[36].mxu1 %vm341_vm3, %v34844_v42 }
 0x922   : > { %27550 = vmatprep.mubr.msk.f32.mxu1 %vm341_vm3, %v34558_v6 }
 0x925   : > { %27551 = vmatmul.mubr.msk.f32.gmra.mrb[38].mxu1 %vm341_vm3, %v34850_v43 }
 0x926   : > { %27553 = vmatprep.mubr.msk.f32.mxu1 %vm341_vm3, %v34564_v45 }
 0x929   : > { %27554 = vmatmul.mubr.msk.f32.gmra.mrb[40].mxu1 %vm341_vm3, %v34856_v12 }
 0x92a   : > { %27556 = vmatprep.mubr.msk.f32.mxu1 %vm341_vm3, %v34860_v58 }
 0x92d   : > { %27557 = vmatmul.mubr.msk.f32.gmra.mrb[42].mxu1 %vm341_vm3, %v34325_v63  ;;  %v28905_v63 = vpack.c.bf16 %v23120_v10, %v23119_v4  ;;  %v16214_v4 = vld [vmem:[%s36868_s5 + $0x38] sm:$0xff] }
 0x92e   : > { %27559 = vmatprep.mubr.msk.f32.mxu1 %vm341_vm3, %v34373_v36 }
 0x931   : > { %27560 = vmatmul.mubr.msk.f32.gmra.mrb[44].mxu1 %vm341_vm3, %v34576_v16 }
 0x932   : > { %27562 = vmatprep.mubr.msk.f32.mxu1 %vm341_vm3, %v34631_v17 }
 0x935   : > { %27563 = vmatmul.mubr.msk.f32.gmra.mrb[46].mxu1 %vm341_vm3, %v34872_v15 }
 0x936   : > { %27573 = vmatprep.mubr.msk.f32.mxu1 %vm341_vm3, %v34595_v40  ;;  %v14939_v40 = vld [vmem:[#allocation3 + $0xc0] sm:$0xff] }
 0x939   : > { %27574 = vmatmul.mubr.msk.f32.vlgmr.msra.gmra.mrb[32].mxu1 %vm341_vm3, %v34546_v30 }
 0x93a   : > { %28904 = vmatpush3.bf16.msra.mxu1 %v28901_v14  ;;  %27576 = vmatprep.mubr.msk.f32.mxu1 %vm341_vm3, %v34601_v11  ;;  %v14945_v11 = vld [vmem:[#allocation3 + $0x108] sm:$0xff]  ;;  %v16209_v14 = vld [vmem:[%s36868_s5 + $0x10] sm:$0xff] }
 0x93b   : > { %28906 = vmatprep.subr.bf16.mxu1 %v28905_v63 }
 0x93d   : > { %27577 = vmatmul.mubr.msk.f32.gmra.mrb[34].mxu1 %vm341_vm3, %v34552_v13 }
 0x93e   : > { %27579 = vmatprep.mubr.msk.f32.mxu1 %vm341_vm3, %v34607_v29  ;;  %28908 = vmatpush3.bf16.msra.mxu1 %v28905_v63  ;;  %v34916_v29 = vld [vmem:[#allocation3 + $0x110] sm:$0xff]  ;;  %v23222_v63 = vld [vmem:[%s36868_s5 + $0x80] sm:$0xff] }
 0x93f   : > { %28910 = vmatprep.subr.bf16.mxu1 %v28909_v51  ;;  %v35161_v20 = vpack.c.bf16 %v23223_v60, %v23222_v63 }
 0x941   : > { %27580 = vmatmul.mubr.msk.f32.gmra.mrb[36].mxu1 %vm341_vm3, %v34558_v6 }
 0x942   : > { %27582 = vmatprep.mubr.msk.f32.mxu1 %vm341_vm3, %v34613_v0  ;;  %v23139_v0 = vld [vmem:[%s36866_s3 + $0x2d0] sm:$0xff] }
 0x945   : > { %27583 = vmatmul.mubr.msk.f32.gmra.mrb[38].mxu1 %vm341_vm3, %v34564_v45 }
 0x946   : > { %27585 = vmatprep.mubr.msk.f32.mxu1 %vm341_vm3, %v14939_v40 }
 0x949   : > { %27586 = vmatmul.mubr.msk.f32.gmra.mrb[40].mxu1 %vm341_vm3, %v34860_v58 }
 0x94a   : > { %27588 = vmatprep.mubr.msk.f32.mxu1 %vm341_vm3, %v34369_v48  ;;  %v23140_v48 = vld [vmem:[%s36866_s3 + $0x2d8] sm:$0xff] }
 0x94d   : > { %27589 = vmatmul.mubr.msk.f32.gmra.mrb[42].mxu1 %vm341_vm3, %v34373_v36  ;;  %v37420_v36 = vmov 0.0  }
 0x94e   : > { %27591 = vmatprep.mubr.msk.f32.mxu1 %vm341_vm3, %v34625_v37  ;;  %379 = vst.msk [vmem:[#allocation4] sm:$0xff] %vm378_vm6, %v37420_v36  ;;  %380 = vst.msk [vmem:[#allocation4 + $0x8] sm:$0xff] %vm378_vm6, %v37420_v36  ;;  %v23157_v37 = vld [vmem:[%s36866_s3 + $0x2e0] sm:$0xff] }
 0x94f   : > { %381 = vst.msk [vmem:[#allocation4 + $0x10] sm:$0xff] %vm378_vm6, %v37420_v36  ;;  %382 = vst.msk [vmem:[#allocation4 + $0x18] sm:$0xff] %vm378_vm6, %v37420_v36  ;;  %v28917_v41 = vpack.c.bf16 %v23158_v34, %v23157_v37 }
 0x950   : > { %383 = vst.msk [vmem:[#allocation4 + $0x20] sm:$0xff] %vm378_vm6, %v37420_v36  ;;  %384 = vst.msk [vmem:[#allocation4 + $0x28] sm:$0xff] %vm378_vm6, %v37420_v36 }
 0x951   : > { %27592 = vmatmul.mubr.msk.f32.gmra.mrb[44].mxu1 %vm341_vm3, %v34631_v17  ;;  %385 = vst.msk [vmem:[#allocation4 + $0x30] sm:$0xff] %vm378_vm6, %v37420_v36  ;;  %386 = vst.msk [vmem:[#allocation4 + $0x38] sm:$0xff] %vm378_vm6, %v37420_v36 }
 0x952   : > { %27594 = vmatprep.mubr.msk.f32.mxu1 %vm341_vm3, %v14945_v11  ;;  %387 = vst.msk [vmem:[#allocation4 + $0x40] sm:$0xff] %vm378_vm6, %v37420_v36  ;;  %388 = vst.msk [vmem:[#allocation4 + $0x48] sm:$0xff] %vm378_vm6, %v37420_v36 }
 0x953   : > { %389 = vst.msk [vmem:[#allocation4 + $0x50] sm:$0xff] %vm378_vm6, %v37420_v36  ;;  %390 = vst.msk [vmem:[#allocation4 + $0x58] sm:$0xff] %vm378_vm6, %v37420_v36 }
 0x954   : > { %391 = vst.msk [vmem:[#allocation4 + $0x60] sm:$0xff] %vm378_vm6, %v37420_v36  ;;  %392 = vst.msk [vmem:[#allocation4 + $0x68] sm:$0xff] %vm378_vm6, %v37420_v36 }
 0x955   : > { %27595 = vmatmul.mubr.msk.f32.gmra.mrb[46].mxu1 %vm341_vm3, %v34916_v29  ;;  %393 = vst.msk [vmem:[#allocation4 + $0x70] sm:$0xff] %vm378_vm6, %v37420_v36  ;;  %394 = vst.msk [vmem:[#allocation4 + $0x78] sm:$0xff] %vm378_vm6, %v37420_v36 }
 0x956   : > { %27605 = vmatprep.mubr.msk.f32.mxu1 %vm341_vm3, %v34399_v32  ;;  %395 = vst.msk [vmem:[#allocation4 + $0x80] sm:$0xff] %vm378_vm6, %v37420_v36  ;;  %396 = vst.msk [vmem:[#allocation4 + $0x88] sm:$0xff] %vm378_vm6, %v37420_v36  ;;  %v28913_v32 = vpack.c.bf16 %v23140_v48, %v23139_v0 }
 0x959   : > { %27606 = vmatmul.mubr.msk.f32.vlgmr.msra.gmra.mrb[32].mxu1 %vm341_vm3, %v34653_v2  ;;  %v15169_v2 = vld [vmem:[#allocation3 + $0xc2] sm:$0xff] }
 0x95a   : > { %28912 = vmatpush3.bf16.msra.mxu1 %v28909_v51  ;;  %27608 = vmatprep.mubr.msk.f32.mxu1 %vm341_vm3, %v34657_v38  ;;  %v15170_v38 = vld [vmem:[#allocation3 + $0xca] sm:$0xff]  ;;  %v35167_v51 = vld [vmem:[%s36867_s4] ss:$0 sm:$0xff] }
 0x95b   : > { %28914 = vmatprep.subr.bf16.mxu1 %v28913_v32 }
 0x95d   : > { %27609 = vmatmul.mubr.msk.f32.gmra.mrb[34].mxu1 %vm341_vm3, %v34661_v19  ;;  %v15175_v19 = vld [vmem:[#allocation3 + $0x10a] sm:$0xff] }
 0x95e   : > { %27611 = vmatprep.mubr.msk.f32.mxu1 %vm341_vm3, %v34665_v39  ;;  %28916 = vmatpush3.bf16.msra.mxu1 %v28913_v32  ;;  %v15176_v39 = vld [vmem:[#allocation3 + $0x112] sm:$0xff] }
 0x95f   : > { %28918 = vmatprep.subr.bf16.mxu1 %v28917_v41 }
 0x961   : > { %27612 = vmatmul.mubr.msk.f32.gmra.mrb[36].mxu1 %vm341_vm3, %v34669_v22  ;;  %v23159_v22 = vld [vmem:[%s36866_s3 + $0x2f0] sm:$0xff] }
 0x962   : > { %27614 = vmatprep.mubr.msk.f32.mxu1 %vm341_vm3, %v34673_v50  ;;  %v23177_v50 = vld [vmem:[%s36866_s3 + $0x300] sm:$0xff] }
 0x965   : > { %27615 = vmatmul.mubr.msk.f32.gmra.mrb[38].mxu1 %vm341_vm3, %v34677_v5  ;;  %v23178_v5 = vld [vmem:[%s36866_s3 + $0x308] sm:$0xff] }
 0x966   : > { %27617 = vmatprep.mubr.msk.f32.mxu1 %vm341_vm3, %v15169_v2 }
 0x969   : > { %27618 = vmatmul.mubr.msk.f32.gmra.mrb[40].mxu1 %vm341_vm3, %v15170_v38 }
 0x96a   : > { %27620 = vmatprep.mubr.msk.f32.mxu1 %vm341_vm3, %v34421_v23  ;;  %v23160_v23 = vld [vmem:[%s36866_s3 + $0x2f8] sm:$0xff] }
 0x96d   : > { %27621 = vmatmul.mubr.msk.f32.gmra.mrb[42].mxu1 %vm341_vm3, %v34425_v54  ;;  %v28921_v54 = vpack.c.bf16 %v23160_v23, %v23159_v22 }
 0x96e   : > { %27623 = vmatprep.mubr.msk.f32.mxu1 %vm341_vm3, %v34687_v21  ;;  %v28925_v21 = vpack.c.bf16 %v23178_v5, %v23177_v50 }
 0x971   : > { %27624 = vmatmul.mubr.msk.f32.gmra.mrb[44].mxu1 %vm341_vm3, %v34693_v55  ;;  %v15399_v55 = vld [vmem:[#allocation3 + $0xc4] sm:$0xff] }
 0x972   : > { %27626 = vmatprep.mubr.msk.f32.mxu1 %vm341_vm3, %v15175_v19 }
 0x975   : > { %27627 = vmatmul.mubr.msk.f32.gmra.mrb[46].mxu1 %vm341_vm3, %v15176_v39 }
 0x976   : > { %27637 = vmatprep.mubr.msk.f32.mxu1 %vm341_vm3, %v34711_v3  ;;  %v15400_v3 = vld [vmem:[#allocation3 + $0xcc] sm:$0xff] }
 0x979   : > { %27638 = vmatmul.mubr.msk.f32.vlgmr.msra.gmra.mrb[32].mxu1 %vm341_vm3, %v34715_v59  ;;  %v15405_v59 = vld [vmem:[#allocation3 + $0x10c] sm:$0xff] }
 0x97a   : > { %28920 = vmatpush3.bf16.msra.mxu1 %v28917_v41  ;;  %27640 = vmatprep.mubr.msk.f32.mxu1 %vm341_vm3, %v34719_v56  ;;  %v15406_v56 = vld [vmem:[#allocation3 + $0x114] sm:$0xff] }
 0x97b   : > { %28922 = vmatprep.subr.bf16.mxu1 %v28921_v54 }
 0x97d   : > { %27641 = vmatmul.mubr.msk.f32.gmra.mrb[34].mxu1 %vm341_vm3, %v34723_v27  ;;  %v23179_v27 = vld [vmem:[%s36866_s3 + $0x310] sm:$0xff] }
 0x97e   : > { %27643 = vmatprep.mubr.msk.f32.mxu1 %vm341_vm3, %v34727_v62  ;;  %28924 = vmatpush3.bf16.msra.mxu1 %v28921_v54  ;;  %v23198_v62 = vld [vmem:[%s36868_s5 + $0x40] sm:$0xff] }
 0x97f   : > { %28926 = vmatprep.subr.bf16.mxu1 %v28925_v21 }
 0x981   : > { %27644 = vmatmul.mubr.msk.f32.gmra.mrb[36].mxu1 %vm341_vm3, %v34731_v47  ;;  %v23199_v47 = vld [vmem:[%s36868_s5 + $0x48] sm:$0xff] }
 0x982   : > { %27646 = vmatprep.mubr.msk.f32.mxu1 %vm341_vm3, %v34735_v28  ;;  %v28933_v28 = vpack.c.bf16 %v23199_v47, %v23198_v62 }
 0x985   : > { %27647 = vmatmul.mubr.msk.f32.gmra.mrb[38].mxu1 %vm341_vm3, %v34739_v35  ;;  %v15629_v35 = vld [vmem:[#allocation3 + $0xc6] sm:$0xff] }
 0x986   : > { %27649 = vmatprep.mubr.msk.f32.mxu1 %vm341_vm3, %v15399_v55 }
 0x989   : > { %27650 = vmatmul.mubr.msk.f32.gmra.mrb[40].mxu1 %vm341_vm3, %v15400_v3 }
 0x98a   : > { %27652 = vmatprep.mubr.msk.f32.mxu1 %vm341_vm3, %v34469_v7  ;;  %v23180_v7 = vld [vmem:[%s36866_s3 + $0x318] sm:$0xff] }
 0x98d   : > { %27653 = vmatmul.mubr.msk.f32.gmra.mrb[42].mxu1 %vm341_vm3, %v34473_v46  ;;  %v28929_v46 = vpack.c.bf16 %v23180_v7, %v23179_v27 }
 0x98e   : > { %27655 = vmatprep.mubr.msk.f32.mxu1 %vm341_vm3, %v34749_v61  ;;  %v15630_v61 = vld [vmem:[#allocation3 + $0xce] sm:$0xff] }
 0x991   : > { %27656 = vmatmul.mubr.msk.f32.gmra.mrb[44].mxu1 %vm341_vm3, %v34755_v8  ;;  %v15635_v8 = vld [vmem:[#allocation3 + $0x10e] sm:$0xff] }
 0x992   : > { %27658 = vmatprep.mubr.msk.f32.mxu1 %vm341_vm3, %v15405_v59 }
 0x995   : > { %27659 = vmatmul.mubr.msk.f32.gmra.mrb[46].mxu1 %vm341_vm3, %v15406_v56 }
 0x996   : > { %27669 = vmatprep.mubr.msk.f32.mxu1 %vm341_vm3, %v34773_v33  ;;  %v15636_v33 = vld [vmem:[#allocation3 + $0x116] sm:$0xff] }
 0x999   : > { %27670 = vmatmul.mubr.msk.f32.vlgmr.msra.gmra.mrb[32].mxu1 %vm341_vm3, %v34777_v9 }
 0x99a   : > { %28928 = vmatpush3.bf16.msra.mxu1 %v28925_v21  ;;  %27672 = vmatprep.mubr.msk.f32.mxu1 %vm341_vm3, %v34781_v49  ;;  %v23204_v49 = vld [vmem:[%s36868_s5 + $0x70] sm:$0xff] }
 0x99b   : > { %28930 = vmatprep.subr.bf16.mxu1 %v28929_v46 }
 0x99d   : > { %27673 = vmatmul.mubr.msk.f32.gmra.mrb[34].mxu1 %vm341_vm3, %v34785_v24  ;;  %v23205_v24 = vld [vmem:[%s36868_s5 + $0x78] sm:$0xff] }
 0x99e   : > { %27675 = vmatprep.mubr.msk.f32.mxu1 %vm341_vm3, %v34789_v18  ;;  %28932 = vmatpush3.bf16.msra.mxu1 %v28929_v46  ;;  %v28945_v18 = vpack.c.bf16 %v23205_v24, %v23204_v49 }
 0x99f   : > { %28934 = vmatprep.subr.bf16.mxu1 %v28933_v28 }
 0x9a1   : > { %27676 = vmatmul.mubr.msk.f32.gmra.mrb[36].mxu1 %vm341_vm3, %v34793_v26  ;;  %v35123_v26 = vld [vmem:[#allocation4 + $0x4] sm:$0xff] }
 0x9a2   : > { %27678 = vmatprep.mubr.msk.f32.mxu1 %vm341_vm3, %v34797_v52  ;;  %v35127_v52 = vld [vmem:[#allocation4 + $0xc] sm:$0xff] }
 0x9a5   : > { %27679 = vmatmul.mubr.msk.f32.gmra.mrb[38].mxu1 %vm341_vm3, %v34801_v25  ;;  %v16207_v25 = vld [vmem:[%s36868_s5] sm:$0xff] }
 0x9a6   : > { %27681 = vmatprep.mubr.msk.f32.mxu1 %vm341_vm3, %v15629_v35 }
 0x9a9   : > { %27682 = vmatmul.mubr.msk.f32.gmra.mrb[40].mxu1 %vm341_vm3, %v15630_v61 }
 0x9aa   : > { %27684 = vmatprep.mubr.msk.f32.mxu1 %vm341_vm3, %v34517_v57  ;;  %v15860_v57 = vld [vmem:[#allocation3 + $0xd0] sm:$0xff] }
 0x9ad   : > { %27685 = vmatmul.mubr.msk.f32.gmra.mrb[42].mxu1 %vm341_vm3, %v34521_v53  ;;  %v15861_v53 = vld [vmem:[#allocation3 + $0xe0] sm:$0xff] }
 0x9ae   : > { %27687 = vmatprep.mubr.msk.f32.mxu1 %vm341_vm3, %v34811_v1  ;;  %v16208_v1 = vld [vmem:[%s36868_s5 + $0x8] sm:$0xff] }
 0x9b1   : > { %27688 = vmatmul.mubr.msk.f32.gmra.mrb[44].mxu1 %vm341_vm3, %v34817_v31  ;;  %v28949_v31 = vpack.c.bf16 %v16208_v1, %v16207_v25 }
 0x9b2   : > { %27690 = vmatprep.mubr.msk.f32.mxu1 %vm341_vm3, %v15635_v8 }
 0x9b5   : > { %27691 = vmatmul.mubr.msk.f32.gmra.mrb[46].mxu1 %vm341_vm3, %v15636_v33 }
 0x9b6   : > { %27701 = vmatprep.mubr.msk.f32.mxu1 %vm341_vm3, %v34546_v30  ;;  %v15866_v30 = vld [vmem:[#allocation3 + $0x118] sm:$0xff] }
 0x9b9   : > { %27702 = vmatmul.mubr.msk.f32.vlgmr.msra.gmra.mrb[32].mxu1 %vm341_vm3, %v34838_v44  ;;  %v16210_v44 = vld [vmem:[%s36868_s5 + $0x18] sm:$0xff] }
 0x9ba   : > { %27704 = vmatprep.mubr.msk.f32.mxu1 %vm341_vm3, %v34552_v13  ;;  %28936 = vmatpush3.bf16.msra.mxu1 %v28933_v28  ;;  %v23200_v13 = vld [vmem:[%s36868_s5 + $0x50] sm:$0xff] }
 0x9bd   : > { %27705 = vmatmul.mubr.msk.f32.gmra.mrb[34].mxu1 %vm341_vm3, %v34844_v42  ;;  %v28953_v42 = vpack.c.bf16 %v16210_v44, %v16209_v14 }
 0x9be   : > { %27707 = vmatprep.mubr.msk.f32.mxu1 %vm341_vm3, %v34558_v6  ;;  %v23201_v6 = vld [vmem:[%s36868_s5 + $0x58] sm:$0xff] }
 0x9c1   : > { %27708 = vmatmul.mubr.msk.f32.gmra.mrb[36].mxu1 %vm341_vm3, %v34850_v43  ;;  %v16211_v43 = vld [vmem:[%s36868_s5 + $0x20] sm:$0xff] }
 0x9c2   : > { %27710 = vmatprep.mubr.msk.f32.mxu1 %vm341_vm3, %v34564_v45  ;;  %v28937_v45 = vpack.c.bf16 %v23201_v6, %v23200_v13 }
 0x9c4   : > { %28938 = vmatprep.subr.bf16.mxu1 %v28937_v45 }
 0x9c5   : > { %27711 = vmatmul.mubr.msk.f32.gmra.mrb[38].mxu1 %vm341_vm3, %v34856_v12  ;;  %v16212_v12 = vld [vmem:[%s36868_s5 + $0x28] sm:$0xff] }
 0x9c6   : > { %27713 = vmatprep.mubr.msk.f32.mxu1 %vm341_vm3, %v34860_v58  ;;  %28940 = vmatpush3.bf16.msra.mxu1 %v28937_v45  ;;  %v16213_v58 = vld [vmem:[%s36868_s5 + $0x30] sm:$0xff] }
 0x9c7   : > { %v28961_v10 = vpack.c.bf16 %v16214_v4, %v16213_v58 }
 0x9c9   : > { %27714 = vmatmul.mubr.msk.f32.gmra.mrb[40].mxu1 %vm341_vm3, %v15860_v57 }
 0x9ca   : > { %27716 = vmatprep.mubr.msk.f32.mxu1 %vm341_vm3, %v15861_v53 }
 0x9cd   : > { %27717 = vmatmul.mubr.msk.f32.gmra.mrb[42].mxu1 %vm341_vm3, %v34576_v16  ;;  %v23202_v16 = vld [vmem:[%s36868_s5 + $0x60] sm:$0xff] }
 0x9ce   : > { %27719 = vmatprep.mubr.msk.f32.mxu1 %vm341_vm3, %v34631_v17  ;;  %v23203_v17 = vld [vmem:[%s36868_s5 + $0x68] sm:$0xff] }
 0x9cf   : > { %v28941_v9 = vpack.c.bf16 %v23203_v17, %v23202_v16 }
 0x9d1   : > { %27720 = vmatmul.mubr.msk.f32.gmra.mrb[44].mxu1 %vm341_vm3, %v34872_v15  ;;  %28942 = vmatprep.subr.bf16.mxu1 %v28941_v9  ;;  %v28957_v15 = vpack.c.bf16 %v16212_v12, %v16211_v43 }
 0x9d2   : > { %27722 = vmatprep.mubr.msk.f32.mxu1 %vm341_vm3, %v34916_v29  ;;  %28944 = vmatpush3.bf16.msra.mxu1 %v28941_v9 }
 0x9d3   : > { %28946 = vmatprep.subr.bf16.mxu1 %v28945_v18 }
 0x9d5   : > { %27723 = vmatmul.mubr.msk.f32.gmra.mrb[46].mxu1 %vm341_vm3, %v15866_v30 }
 0x9d6   : > { %28948 = vmatpush3.bf16.msra.mxu1 %v28945_v18  ;;  %27741 = vmatprep.mubr.msk.f32.mxu1 %vm378_vm6, %v35123_v26 }
 0x9d7   : > { %28950 = vmatprep.subr.bf16.mxu1 %v28949_v31 }
 0x9d9   : > { %27742 = vmatmul.mubr.msk.f32.vlgmr.msra.gmra.mrb[48].mxu1 %vm378_vm6, %v35127_v52 }
 0x9da   : > { %28952 = vmatpush3.bf16.msra.mxu1 %v28949_v31 }
 0x9db   : > { %28954 = vmatprep.subr.bf16.mxu1 %v28953_v42 }
 0x9de   : > { %28956 = vmatpush3.bf16.msra.mxu1 %v28953_v42 }
 0x9df   : > { %28958 = vmatprep.subr.bf16.mxu1 %v28957_v15 }
 0x9e2   : > { %28960 = vmatpush3.bf16.msra.mxu1 %v28957_v15 }
 0x9e3   : > { %28962 = vmatprep.subr.bf16.mxu1 %v28961_v10 }
 0x9e6   : > { %28964 = vmatpush3.bf16.msra.mxu1 %v28961_v10 }
 0x9e7   : > { %28966 = vmatprep.subr.bf16.mxu1 %v35161_v20 }
 0xa8c   : > { %v27703_v40 = vpop.f32.mrb[32].mxu1 }
 0xa8d   : > { %v16089_v11 = vadd.f32 %v27703_v40, %v35167_v51  ;;  %v15986_v29 = vpop.f32.mrb[33].mxu1 }
 0xa8e   : > { %v16088_v0 = vadd.f32 %v35167_v51, %v15986_v29 }
 0xa8f   : > { %v16105_v36 = vmax.f32 %v16089_v11, 0.0 }
 0xa90   : > { %v27706_v48 = vpop.f32.mrb[34].mxu1  ;;  %v16104_v34 = vmax.f32 %v16088_v0, 0.0 }
 0xa91   : > { %v16091_v32 = vadd.f32 %v27706_v48, %v35167_v51  ;;  %v15996_v37 = vpop.f32.mrb[35].mxu1  ;;  %v16123_v39 = vsel %vm378_vm6, %v16105_v36, -inf }
 0xa92   : > { %v16090_v41 = vadd.f32 %v35167_v51, %v15996_v37  ;;  %v16120_v50 = vsel %vm378_vm6, %v16104_v34, -inf }
 0xa93   : > { %v16107_v2 = vmax.f32 %v16091_v32, 0.0 }
 0xa94   : > { %v16106_v38 = vmax.f32 %v16090_v41, 0.0  ;;  %v27709_v19 = vpop.f32.mrb[36].mxu1 }
 0xa95   : > { %v16124_v22 = vsel %vm378_vm6, %v16107_v2, -inf  ;;  %v16093_v23 = vadd.f32 %v27709_v19, %v35167_v51  ;;  %v16006_v54 = vpop.f32.mrb[37].mxu1 }
 0xa96   : > { %v16125_v5 = vmax.f32 %v16123_v39, %v16124_v22  ;;  %v16121_v21 = vsel %vm378_vm6, %v16106_v38, -inf  ;;  %v16092_v55 = vadd.f32 %v35167_v51, %v16006_v54 }
 0xa97   : > { %v16122_v3 = vmax.f32 %v16120_v50, %v16121_v21  ;;  %v16109_v7 = vmax.f32 %v16093_v23, 0.0 }
 0xa98   : > { %v16154_v59 = vrot.slane %v16125_v5, 2  ;;  %v27712_v56 = vpop.f32.mrb[38].mxu1  ;;  %v16108_v28 = vmax.f32 %v16092_v55, 0.0 }
 0xa99   : > { %v16153_v27 = vrot.slane %v16122_v3, 2  ;;  %v16095_v46 = vadd.f32 %v27712_v56, %v35167_v51  ;;  %v16016_v62 = vpop.f32.mrb[39].mxu1  ;;  %v16129_v30 = vsel %vm378_vm6, %v16109_v7, -inf }
 0xa9a   : > { %v16174_v47 = vmax.f32 %v16125_v5, %v16154_v59  ;;  %v16094_v35 = vadd.f32 %v35167_v51, %v16016_v62  ;;  %v16126_v16 = vsel %vm378_vm6, %v16108_v28, -inf }
 0xa9b   : > { %v16155_v61 = vsel %vm16152_vm7, %v16153_v27, %v16154_v59  ;;  %v16111_v8 = vmax.f32 %v16095_v46, 0.0 }
 0xa9c   : > { %16184 = vst.msk [vmem:[#allocation4 + $0x24] sm:$0x3f] %vm16183_vm8, %v16174_v47  ;;  %v16173_v33 = vmax.f32 %v16122_v3, %v16155_v61  ;;  %v16110_v57 = vmax.f32 %v16094_v35, 0.0  ;;  %v27715_v53 = vpop.f32.mrb[40].mxu1 }
 0xa9d   : > { %v16130_v13 = vsel %vm378_vm6, %v16111_v8, -inf  ;;  %v16097_v6 = vadd.f32 %v27715_v53, %v35167_v51  ;;  %v16026_v45 = vpop.f32.mrb[41].mxu1 }
 0xa9e   : > { %16182 = vst.msk [vmem:[#allocation4 + $0x1c] sm:$0xff] %vm378_vm6, %v16173_v33  ;;  %v16131_v17 = vmax.f32 %v16129_v30, %v16130_v13  ;;  %v16127_v9 = vsel %vm378_vm6, %v16110_v57, -inf  ;;  %v16096_v49 = vadd.f32 %v35167_v51, %v16026_v45  ;;  %v35230_v30 = vld [vmem:[#allocation4] sm:$0xff]  ;;  %v23225_v45 = vld [vmem:[%s36868_s5 + $0x98] sm:$0xff] }
 0xa9f   : > { %v16128_v24 = vmax.f32 %v16126_v16, %v16127_v9  ;;  %v16113_v31 = vmax.f32 %v16097_v6, 0.0  ;;  %v23224_v6 = vld [vmem:[%s36868_s5 + $0x90] sm:$0xff]  ;;  %v35247_v16 = vld [vmem:[#allocation4 + $0x8] sm:$0xff]  ;;  %v23226_v9 = vld [vmem:[%s36868_s5 + $0xa0] sm:$0xff] }
 0xaa0   : > { %v16157_v18 = vrot.slane %v16131_v17, 2  ;;  %v27718_v25 = vpop.f32.mrb[42].mxu1  ;;  %v16112_v43 = vmax.f32 %v16096_v49, 0.0  ;;  %v23227_v49 = vld [vmem:[%s36868_s5 + $0xa8] sm:$0xff] }
 0xaa1   : > { %v16156_v1 = vrot.slane %v16128_v24, 2  ;;  %v16099_v14 = vadd.f32 %v27718_v25, %v35167_v51  ;;  %v16036_v44 = vpop.f32.mrb[43].mxu1  ;;  %v16135_v60 = vsel %vm378_vm6, %v16113_v31, -inf  ;;  %v23229_v31 = vld [vmem:[%s36868_s5 + $0xb8] sm:$0xff] }
 0xaa2   : > { %v16176_v42 = vmax.f32 %v16131_v17, %v16157_v18  ;;  %v16098_v12 = vadd.f32 %v35167_v51, %v16036_v44  ;;  %v16132_v48 = vsel %vm378_vm6, %v16112_v43, -inf  ;;  %v28969_v17 = vpack.c.bf16 %v23225_v45, %v23224_v6  ;;  %v23239_v43 = vld [vmem:[%s36868_s5 + $0xc8] sm:$0xff]  ;;  %v23276_v6 = vld [vmem:[%s36868_s5 + $0x170] sm:$0xff]  ;;  %v23277_v45 = vld [vmem:[%s36868_s5 + $0x178] sm:$0xff] }
 0xaa3   : > { %v16158_v58 = vsel %vm16152_vm7, %v16156_v1, %v16157_v18  ;;  %v16115_v15 = vmax.f32 %v16099_v14, 0.0  ;;  %v35205_v34 = vld [vmem:[#allocation4 + $0x24] sm:$0xff]  ;;  %v28973_v18 = vpack.c.bf16 %v23227_v49, %v23226_v9  ;;  %v23228_v1 = vld [vmem:[%s36868_s5 + $0xb0] sm:$0xff] }
 0xaa4   : > { %16186 = vst.msk [vmem:[#allocation4 + $0x3c] sm:$0x3f] %vm16183_vm8, %v16176_v42  ;;  %v16175_v4 = vmax.f32 %v16128_v24, %v16158_v58  ;;  %v16114_v10 = vmax.f32 %v16098_v12, 0.0  ;;  %v27721_v63 = vpop.f32.mrb[44].mxu1  ;;  %v23238_v42 = vld [vmem:[%s36868_s5 + $0xc0] sm:$0xff]  ;;  %v23287_v49 = vld [vmem:[%s36868_s5 + $0x188] sm:$0xff] }
 0xaa5   : > { %v16136_v40 = vsel %vm378_vm6, %v16115_v15, -inf  ;;  %v16101_v11 = vadd.f32 %v27721_v63, %v35167_v51  ;;  %v16046_v29 = vpop.f32.mrb[45].mxu1  ;;  %v35197_v0 = vld [vmem:[#allocation4 + $0x1c] sm:$0xff]  ;;  %v28981_v58 = vpack.c.bf16 %v23239_v43, %v23238_v42  ;;  %v35299_v63 = vld [vmem:[#allocation4 + $0x10] sm:$0xff] }
 0xaa6   : > { %16185 = vst.msk [vmem:[#allocation4 + $0x34] sm:$0xff] %vm378_vm6, %v16175_v4  ;;  %v16137_v36 = vmax.f32 %v16135_v60, %v16136_v40  ;;  %v16133_v32 = vsel %vm378_vm6, %v16114_v10, -inf  ;;  %v16100_v37 = vadd.f32 %v35167_v51, %v16046_v29  ;;  %27744 = vmatprep.mubr.msk.f32.mxu1 %vm378_vm6, %v35197_v0  ;;  %v16201_v24 = vld [vmem:[#allocation4 + $0x18] sm:$0xff]  ;;  %v35259_v25 = vld [vmem:[#allocation4 + $0x20] sm:$0xff]  ;;  %v23240_v4 = vld [vmem:[%s36868_s5 + $0xd0] sm:$0xff] }
 0xaa7   : > { %v16134_v41 = vmax.f32 %v16132_v48, %v16133_v32  ;;  %27745 = vmatmul.mubr.msk.f32.gmra.mrb[50].mxu1 %vm378_vm6, %v35205_v34  ;;  %v16117_v39 = vmax.f32 %v16101_v11, 0.0  ;;  %v23241_v10 = vld [vmem:[%s36868_s5 + $0xd8] sm:$0xff]  ;;  %v23242_v40 = vld [vmem:[%s36868_s5 + $0xe0] sm:$0xff]  ;;  %v23243_v11 = vld [vmem:[%s36868_s5 + $0xe8] sm:$0xff] }
 0xaa8   : > { %v16160_v2 = vrot.slane %v16137_v36, 2  ;;  %v27724_v38 = vpop.f32.mrb[46].mxu1  ;;  %v16116_v50 = vmax.f32 %v16100_v37, 0.0  ;;  %v28985_v60 = vpack.c.bf16 %v23241_v10, %v23240_v4  ;;  %v28989_v29 = vpack.c.bf16 %v23243_v11, %v23242_v40  ;;  %v35311_v48 = vld [vmem:[#allocation4 + $0x28] sm:$0xff]  ;;  %v23245_v32 = vld [vmem:[%s36868_s5 + $0xf8] sm:$0xff]  ;;  %v23286_v9 = vld [vmem:[%s36868_s5 + $0x180] sm:$0xff] }
 0xaa9   : > { %v16159_v19 = vrot.slane %v16134_v41, 2  ;;  %v16103_v22 = vadd.f32 %v27724_v38, %v35167_v51  ;;  %v16056_v23 = vpop.f32.mrb[47].mxu1  ;;  %v16141_v56 = vsel %vm378_vm6, %v16117_v39, -inf  ;;  %v23255_v38 = vld [vmem:[%s36868_s5 + $0x108] sm:$0xff]  ;;  %v23290_v43 = vld [vmem:[%s36868_s5 + $0x1a0] sm:$0xff]  ;;  %v23293_v10 = vld [vmem:[%s36868_s5 + $0x1b8] sm:$0xff] }
 0xaaa   : > { %v16178_v54 = vmax.f32 %v16137_v36, %v16160_v2  ;;  %v16102_v5 = vadd.f32 %v35167_v51, %v16056_v23  ;;  %v16138_v46 = vsel %vm378_vm6, %v16116_v50, -inf  ;;  %v23244_v36 = vld [vmem:[%s36868_s5 + $0xf0] sm:$0xff]  ;;  %v23257_v23 = vld [vmem:[%s36868_s5 + $0x118] sm:$0xff]  ;;  %v23258_v50 = vld [vmem:[%s36868_s5 + $0x120] sm:$0xff] }
 0xaab   : > { %v16161_v21 = vsel %vm16152_vm7, %v16159_v19, %v16160_v2  ;;  %v16119_v55 = vmax.f32 %v16103_v22, 0.0  ;;  %v35222_v47 = vld [vmem:[#allocation4 + $0x3c] sm:$0xff]  ;;  %v28993_v37 = vpack.c.bf16 %v23245_v32, %v23244_v36  ;;  %v23256_v22 = vld [vmem:[%s36868_s5 + $0x110] sm:$0xff]  ;;  %v23303_v11 = vld [vmem:[%s36868_s5 + $0x1c8] sm:$0xff] }
 0xaac   : > { %16188 = vst.msk [vmem:[#allocation4 + $0x54] sm:$0x3f] %vm16183_vm8, %v16178_v54  ;;  %v16177_v3 = vmax.f32 %v16134_v41, %v16161_v21  ;;  %v16118_v59 = vmax.f32 %v16102_v5, 0.0  ;;  %v35323_v41 = vld [vmem:[#allocation4 + $0x40] sm:$0xff]  ;;  %v29001_v54 = vpack.c.bf16 %v23257_v23, %v23256_v22  ;;  %v23259_v5 = vld [vmem:[%s36868_s5 + $0x128] sm:$0xff]  ;;  %v23304_v36 = vld [vmem:[%s36868_s5 + $0x1d0] sm:$0xff] }
 0xaad   : > { %v16142_v27 = vsel %vm378_vm6, %v16119_v55, -inf  ;;  %v35215_v7 = vld [vmem:[#allocation4 + $0x34] sm:$0xff]  ;;  %v23254_v2 = vld [vmem:[%s36868_s5 + $0x100] sm:$0xff]  ;;  %v29005_v21 = vpack.c.bf16 %v23259_v5, %v23258_v50  ;;  %v23319_v50 = vld [vmem:[%s36868_s5 + $0x208] sm:$0xff] }
 0xaae   : > { %16187 = vst.msk [vmem:[#allocation4 + $0x4c] sm:$0xff] %vm378_vm6, %v16177_v3  ;;  %v16143_v62 = vmax.f32 %v16141_v56, %v16142_v27  ;;  %v16139_v51 = vsel %vm378_vm6, %v16118_v59, -inf  ;;  %27747 = vmatprep.mubr.msk.f32.mxu1 %vm378_vm6, %v35215_v7  ;;  %v35269_v14 = vld [vmem:[#allocation4 + $0x30] sm:$0xff]  ;;  %v35273_v44 = vld [vmem:[#allocation4 + $0x38] sm:$0xff]  ;;  %v28997_v19 = vpack.c.bf16 %v23255_v38, %v23254_v2  ;;  %v23270_v56 = vld [vmem:[%s36868_s5 + $0x140] sm:$0xff] }
 0xaaf   : > { %v16140_v28 = vmax.f32 %v16138_v46, %v16139_v51  ;;  %27748 = vmatmul.mubr.msk.f32.gmra.mrb[52].mxu1 %vm378_vm6, %v35222_v47  ;;  %v23260_v55 = vld [vmem:[%s36868_s5 + $0x130] sm:$0xff]  ;;  %v23261_v3 = vld [vmem:[%s36868_s5 + $0x138] sm:$0xff]  ;;  %v23271_v27 = vld [vmem:[%s36868_s5 + $0x148] sm:$0xff] }
 0xab0   : > { %v16163_v35 = vrot.slane %v16143_v62, 2  ;;  %v29009_v59 = vpack.c.bf16 %v23261_v3, %v23260_v55  ;;  %v23302_v40 = vld [vmem:[%s36868_s5 + $0x1c0] sm:$0xff]  ;;  %v23305_v32 = vld [vmem:[%s36868_s5 + $0x1d8] sm:$0xff]  ;;  %v23307_v38 = vld [vmem:[%s36868_s5 + $0x1e8] sm:$0xff] }
 0xab1   : > { %v16162_v61 = vrot.slane %v16140_v28, 2  ;;  %v23306_v2 = vld [vmem:[%s36868_s5 + $0x1e0] sm:$0xff]  ;;  %v23309_v22 = vld [vmem:[%s36868_s5 + $0x1f8] sm:$0xff]  ;;  %v23320_v55 = vld [vmem:[%s36868_s5 + $0x210] sm:$0xff] }
 0xab2   : > { %v16180_v8 = vmax.f32 %v16143_v62, %v16163_v35  ;;  %v29013_v62 = vpack.c.bf16 %v23271_v27, %v23270_v56  ;;  %v35496_v23 = vld [vmem:[#allocation4 + $0x78] sm:$0xff]  ;;  %v35508_v5 = vld [vmem:[#allocation4 + $0x80] sm:$0xff]  ;;  %v23323_v27 = vld [vmem:[%s36868_s5 + $0x228] sm:$0xff] }
 0xab3   : > { %v16164_v33 = vsel %vm16152_vm7, %v16162_v61, %v16163_v35  ;;  %v35235_v13 = vld [vmem:[#allocation4 + $0x54] sm:$0xff]  ;;  %v23322_v56 = vld [vmem:[%s36868_s5 + $0x220] sm:$0xff] }
 0xab4   : > { %16190 = vst.msk [vmem:[#allocation4 + $0x6c] sm:$0x3f] %vm16183_vm8, %v16180_v8  ;;  %v16179_v57 = vmax.f32 %v16140_v28, %v16164_v33  ;;  %v35335_v39 = vld [vmem:[#allocation4 + $0x58] sm:$0xff]  ;;  %v23272_v28 = vld [vmem:[%s36868_s5 + $0x150] sm:$0xff]  ;;  %v23274_v8 = vld [vmem:[%s36868_s5 + $0x160] sm:$0xff] }
 0xab5   : > { %v35228_v53 = vld [vmem:[#allocation4 + $0x4c] sm:$0xff]  ;;  %v23273_v35 = vld [vmem:[%s36868_s5 + $0x158] sm:$0xff] }
 0xab6   : > { %16189 = vst.msk [vmem:[#allocation4 + $0x64] sm:$0xff] %vm378_vm6, %v16179_v57  ;;  %27750 = vmatprep.mubr.msk.f32.mxu1 %vm378_vm6, %v35228_v53  ;;  %v35283_v12 = vld [vmem:[#allocation4 + $0x48] sm:$0xff]  ;;  %v35287_v15 = vld [vmem:[#allocation4 + $0x50] sm:$0xff]  ;;  %v29017_v61 = vpack.c.bf16 %v23273_v35, %v23272_v28  ;;  %v23321_v3 = vld [vmem:[%s36868_s5 + $0x218] sm:$0xff] }
 0xab7   : > { %27751 = vmatmul.mubr.msk.f32.gmra.mrb[54].mxu1 %vm378_vm6, %v35235_v13  ;;  %v23275_v33 = vld [vmem:[%s36868_s5 + $0x168] sm:$0xff]  ;;  %v23325_v28 = vld [vmem:[%s36868_s5 + $0x238] sm:$0xff] }
 0xab8   : > { %27769 = vmatprep.mubr.msk.f32.mxu1 %vm378_vm6, %v35230_v30  ;;  %v29021_v57 = vpack.c.bf16 %v23275_v33, %v23274_v8  ;;  %v35540_v35 = vld [vmem:[#allocation4 + $0x7c] sm:$0xff]  ;;  %v23344_v33 = vld [vmem:[%s36868_s5 + $0x288] sm:$0xff] }
 0xab9   : > { %v23343_v8 = vld [vmem:[%s36868_s5 + $0x280] sm:$0xff] }
 0xabb   : > { %27770 = vmatmul.mubr.msk.f32.vlgmr.msra.gmra.mrb[48].mxu1 %vm378_vm6, %v35247_v16 }
 0xabc   : > { %28968 = vmatpush3.bf16.msra.mxu1 %v35161_v20  ;;  %27772 = vmatprep.mubr.msk.f32.mxu1 %vm378_vm6, %v16201_v24  ;;  %v28977_v20 = vpack.c.bf16 %v23229_v31, %v23228_v1  ;;  %v35422_v1 = vld [vmem:[#allocation4 + $0x6c] sm:$0xff] }
 0xabd   : > { %28970 = vmatprep.subr.bf16.mxu1 %v28969_v17  ;;  %v35374_v46 = vld [vmem:[#allocation4 + $0x60] sm:$0xff]  ;;  %v35378_v51 = vld [vmem:[#allocation4 + $0x68] sm:$0xff]  ;;  %v23288_v31 = vld [vmem:[%s36868_s5 + $0x190] sm:$0xff] }
 0xabf   : > { %27773 = vmatmul.mubr.msk.f32.gmra.mrb[50].mxu1 %vm378_vm6, %v35259_v25 }
 0xac0   : > { %28972 = vmatpush3.bf16.msra.mxu1 %v28969_v17  ;;  %27775 = vmatprep.mubr.msk.f32.mxu1 %vm378_vm6, %v35269_v14  ;;  %v29025_v17 = vpack.c.bf16 %v23277_v45, %v23276_v6  ;;  %v29077_v6 = vpack.c.bf16 %v23344_v33, %v23343_v8  ;;  %v23345_v45 = vld [vmem:[%s36868_s5 + $0x290] sm:$0xff] }
 0xac1   : > { %28974 = vmatprep.subr.bf16.mxu1 %v28973_v18 }
 0xac3   : > { %27776 = vmatmul.mubr.msk.f32.gmra.mrb[52].mxu1 %vm378_vm6, %v35273_v44 }
 0xac4   : > { %28976 = vmatpush3.bf16.msra.mxu1 %v28973_v18  ;;  %27778 = vmatprep.mubr.msk.f32.mxu1 %vm378_vm6, %v35283_v12  ;;  %v29029_v18 = vpack.c.bf16 %v23287_v49, %v23286_v9  ;;  %v23350_v49 = vld [vmem:[%s36868_s5 + $0x2b8] sm:$0xff] }
 0xac5   : > { %28978 = vmatprep.subr.bf16.mxu1 %v28977_v20 }
 0xac7   : > { %27779 = vmatmul.mubr.msk.f32.gmra.mrb[54].mxu1 %vm378_vm6, %v35287_v15 }
 0xac8   : > { %28980 = vmatpush3.bf16.msra.mxu1 %v28977_v20  ;;  %27797 = vmatprep.mubr.msk.f32.mxu1 %vm378_vm6, %v35247_v16  ;;  %v23289_v20 = vld [vmem:[%s36868_s5 + $0x198] sm:$0xff] }
 0xac9   : > { %28982 = vmatprep.subr.bf16.mxu1 %v28981_v58  ;;  %v29033_v42 = vpack.c.bf16 %v23289_v20, %v23288_v31  ;;  %v23336_v31 = vld [vmem:[%s36868_s5 + $0x248] sm:$0xff] }
 0xacb   : > { %27798 = vmatmul.mubr.msk.f32.vlgmr.msra.gmra.mrb[48].mxu1 %vm378_vm6, %v35299_v63 }
 0xacc   : > { %28984 = vmatpush3.bf16.msra.mxu1 %v28981_v58  ;;  %27800 = vmatprep.mubr.msk.f32.mxu1 %vm378_vm6, %v35259_v25  ;;  %v23291_v58 = vld [vmem:[%s36868_s5 + $0x1a8] sm:$0xff] }
 0xacd   : > { %28986 = vmatprep.subr.bf16.mxu1 %v28985_v60  ;;  %v29037_v4 = vpack.c.bf16 %v23291_v58, %v23290_v43  ;;  %v23338_v43 = vld [vmem:[%s36868_s5 + $0x258] sm:$0xff]  ;;  %v23339_v58 = vld [vmem:[%s36868_s5 + $0x260] sm:$0xff] }
 0xacf   : > { %27801 = vmatmul.mubr.msk.f32.gmra.mrb[50].mxu1 %vm378_vm6, %v35311_v48 }
 0xad0   : > { %28988 = vmatpush3.bf16.msra.mxu1 %v28985_v60  ;;  %27803 = vmatprep.mubr.msk.f32.mxu1 %vm378_vm6, %v35273_v44 }
 0xad1   : > { %28990 = vmatprep.subr.bf16.mxu1 %v28989_v29 }
 0xad3   : > { %27804 = vmatmul.mubr.msk.f32.gmra.mrb[52].mxu1 %vm378_vm6, %v35323_v41 }
 0xad4   : > { %28992 = vmatpush3.bf16.msra.mxu1 %v28989_v29  ;;  %27806 = vmatprep.mubr.msk.f32.mxu1 %vm378_vm6, %v35287_v15  ;;  %v29045_v29 = vpack.c.bf16 %v23303_v11, %v23302_v40  ;;  %v23367_v11 = vld [vmem:[%s36868_s5 + $0x2c0] sm:$0xff] }
 0xad5   : > { %28994 = vmatprep.subr.bf16.mxu1 %v28993_v37 }
 0xad7   : > { %27807 = vmatmul.mubr.msk.f32.gmra.mrb[54].mxu1 %vm378_vm6, %v35335_v39 }
 0xad8   : > { %28996 = vmatpush3.bf16.msra.mxu1 %v28993_v37  ;;  %27825 = vmatprep.mubr.msk.f32.mxu1 %vm378_vm6, %v16201_v24  ;;  %v35418_v24 = vld [vmem:[#allocation4 + $0x64] sm:$0xff]  ;;  %v29049_v37 = vpack.c.bf16 %v23305_v32, %v23304_v36  ;;  %v23334_v36 = vld [vmem:[%s36869_s6] ss:$0 sm:$0xff] }
 0xad9   : > { %28998 = vmatprep.subr.bf16.mxu1 %v28997_v19 }
 0xadb   : > { %27826 = vmatmul.mubr.msk.f32.vlgmr.msra.gmra.mrb[48].mxu1 %vm378_vm6, %v35259_v25 }
 0xadc   : > { %29000 = vmatpush3.bf16.msra.mxu1 %v28997_v19  ;;  %27828 = vmatprep.mubr.msk.f32.mxu1 %vm378_vm6, %v35269_v14  ;;  %v29053_v19 = vpack.c.bf16 %v23307_v38, %v23306_v2 }
 0xadd   : > { %29002 = vmatprep.subr.bf16.mxu1 %v29001_v54 }
 0xadf   : > { %27829 = vmatmul.mubr.msk.f32.gmra.mrb[50].mxu1 %vm378_vm6, %v35273_v44 }
 0xae0   : > { %29004 = vmatpush3.bf16.msra.mxu1 %v29001_v54  ;;  %27831 = vmatprep.mubr.msk.f32.mxu1 %vm378_vm6, %v35283_v12  ;;  %v23318_v54 = vld [vmem:[%s36868_s5 + $0x200] sm:$0xff] }
 0xae1   : > { %29006 = vmatprep.subr.bf16.mxu1 %v29005_v21 }
 0xae3   : > { %27832 = vmatmul.mubr.msk.f32.gmra.mrb[52].mxu1 %vm378_vm6, %v35287_v15 }
 0xae4   : > { %29008 = vmatpush3.bf16.msra.mxu1 %v29005_v21  ;;  %27834 = vmatprep.mubr.msk.f32.mxu1 %vm378_vm6, %v35374_v46  ;;  %v29061_v21 = vpack.c.bf16 %v23319_v50, %v23318_v54 }
 0xae5   : > { %29010 = vmatprep.subr.bf16.mxu1 %v29009_v59 }
 0xae7   : > { %27835 = vmatmul.mubr.msk.f32.gmra.mrb[54].mxu1 %vm378_vm6, %v35378_v51 }
 0xae8   : > { %29012 = vmatpush3.bf16.msra.mxu1 %v29009_v59  ;;  %27853 = vmatprep.mubr.msk.f32.mxu1 %vm378_vm6, %v35197_v0  ;;  %v29065_v59 = vpack.c.bf16 %v23321_v3, %v23320_v55 }
 0xae9   : > { %29014 = vmatprep.subr.bf16.mxu1 %v29013_v62 }
 0xaeb   : > { %27854 = vmatmul.mubr.msk.f32.vlgmr.msra.gmra.mrb[48].mxu1 %vm378_vm6, %v35205_v34 }
 0xaec   : > { %29016 = vmatpush3.bf16.msra.mxu1 %v29013_v62  ;;  %27856 = vmatprep.mubr.msk.f32.mxu1 %vm378_vm6, %v35215_v7  ;;  %v23324_v62 = vld [vmem:[%s36868_s5 + $0x230] sm:$0xff] }
 0xaed   : > { %29018 = vmatprep.subr.bf16.mxu1 %v29017_v61 }
 0xaef   : > { %27857 = vmatmul.mubr.msk.f32.gmra.mrb[50].mxu1 %vm378_vm6, %v35222_v47 }
 0xaf0   : > { %29020 = vmatpush3.bf16.msra.mxu1 %v29017_v61  ;;  %27859 = vmatprep.mubr.msk.f32.mxu1 %vm378_vm6, %v35228_v53  ;;  %v29073_v61 = vpack.c.bf16 %v23325_v28, %v23324_v62 }
 0xaf1   : > { %29022 = vmatprep.subr.bf16.mxu1 %v29021_v57 }
 0xaf3   : > { %27860 = vmatmul.mubr.msk.f32.gmra.mrb[52].mxu1 %vm378_vm6, %v35235_v13 }
 0xaf4   : > { %29024 = vmatpush3.bf16.msra.mxu1 %v29021_v57  ;;  %27862 = vmatprep.mubr.msk.f32.mxu1 %vm378_vm6, %v35418_v24  ;;  %v35552_v57 = vld [vmem:[#allocation4 + $0x84] sm:$0xff] }
 0xaf5   : > { %29026 = vmatprep.subr.bf16.mxu1 %v29025_v17 }
 0xaf7   : > { %27863 = vmatmul.mubr.msk.f32.gmra.mrb[54].mxu1 %vm378_vm6, %v35422_v1 }
 0xaf8   : > { %29028 = vmatpush3.bf16.msra.mxu1 %v29025_v17  ;;  %27881 = vmatprep.mubr.msk.f32.mxu1 %vm378_vm6, %v35259_v25  ;;  %v23292_v25 = vld [vmem:[%s36868_s5 + $0x1b0] sm:$0xff]  ;;  %v23346_v17 = vld [vmem:[%s36868_s5 + $0x298] sm:$0xff] }
 0xaf9   : > { %29030 = vmatprep.subr.bf16.mxu1 %v29029_v18  ;;  %v29041_v60 = vpack.c.bf16 %v23293_v10, %v23292_v25  ;;  %v29081_v9 = vpack.c.bf16 %v23346_v17, %v23345_v45  ;;  %v23340_v25 = vld [vmem:[%s36868_s5 + $0x268] sm:$0xff] }
 0xafa   : > { %v29101_v10 = vpack.c.bf16 %v23340_v25, %v23339_v58 }
 0xafb   : > { %27882 = vmatmul.mubr.msk.f32.vlgmr.msra.gmra.mrb[48].mxu1 %vm378_vm6, %v35311_v48  ;;  %v35464_v48 = vld [vmem:[#allocation4 + $0x70] sm:$0xff] }
 0xafc   : > { %29032 = vmatpush3.bf16.msra.mxu1 %v29029_v18  ;;  %27884 = vmatprep.mubr.msk.f32.mxu1 %vm378_vm6, %v35273_v44  ;;  %v23335_v18 = vld [vmem:[%s36868_s5 + $0x240] sm:$0xff] }
 0xafd   : > { %29034 = vmatprep.subr.bf16.mxu1 %v29033_v42  ;;  %v29093_v20 = vpack.c.bf16 %v23336_v31, %v23335_v18  ;;  %v23371_v31 = vld [vmem:[%s36868_s5 + $0x2e0] sm:$0xff] }
 0xaff   : > { %27885 = vmatmul.mubr.msk.f32.gmra.mrb[50].mxu1 %vm378_vm6, %v35323_v41 }
 0xb00   : > { %29036 = vmatpush3.bf16.msra.mxu1 %v29033_v42  ;;  %27887 = vmatprep.mubr.msk.f32.mxu1 %vm378_vm6, %v35287_v15  ;;  %v23337_v42 = vld [vmem:[%s36868_s5 + $0x250] sm:$0xff] }
 0xb01   : > { %29038 = vmatprep.subr.bf16.mxu1 %v29037_v4 }
 0xb03   : > { %27888 = vmatmul.mubr.msk.f32.gmra.mrb[52].mxu1 %vm378_vm6, %v35335_v39 }
 0xb04   : > { %29040 = vmatpush3.bf16.msra.mxu1 %v29037_v4  ;;  %27890 = vmatprep.mubr.msk.f32.mxu1 %vm378_vm6, %v35378_v51  ;;  %v29097_v4 = vpack.c.bf16 %v23338_v43, %v23337_v42 }
 0xb05   : > { %29042 = vmatprep.subr.bf16.mxu1 %v29041_v60 }
 0xb07   : > { %27891 = vmatmul.mubr.msk.f32.gmra.mrb[54].mxu1 %vm378_vm6, %v35464_v48 }
 0xb08   : > { %29044 = vmatpush3.bf16.msra.mxu1 %v29041_v60  ;;  %27909 = vmatprep.mubr.msk.f32.mxu1 %vm378_vm6, %v35269_v14  ;;  %v23308_v14 = vld [vmem:[%s36868_s5 + $0x1f0] sm:$0xff]  ;;  %v23342_v60 = vld [vmem:[%s36868_s5 + $0x278] sm:$0xff] }
 0xb09   : > { %29046 = vmatprep.subr.bf16.mxu1 %v29045_v29 }
 0xb0b   : > { %27910 = vmatmul.mubr.msk.f32.vlgmr.msra.gmra.mrb[48].mxu1 %vm378_vm6, %v35273_v44 }
 0xb0c   : > { %29048 = vmatpush3.bf16.msra.mxu1 %v29045_v29  ;;  %27912 = vmatprep.mubr.msk.f32.mxu1 %vm378_vm6, %v35283_v12  ;;  %v29057_v12 = vpack.c.bf16 %v23309_v22, %v23308_v14  ;;  %v23368_v29 = vld [vmem:[%s36868_s5 + $0x2c8] sm:$0xff] }
 0xb0d   : > { %29050 = vmatprep.subr.bf16.mxu1 %v29049_v37 }
 0xb0f   : > { %27913 = vmatmul.mubr.msk.f32.gmra.mrb[50].mxu1 %vm378_vm6, %v35287_v15 }
 0xb10   : > { %29052 = vmatpush3.bf16.msra.mxu1 %v29049_v37  ;;  %27915 = vmatprep.mubr.msk.f32.mxu1 %vm378_vm6, %v35374_v46  ;;  %v29069_v46 = vpack.c.bf16 %v23323_v27, %v23322_v56 }
 0xb11   : > { %29054 = vmatprep.subr.bf16.mxu1 %v29053_v19 }
 0xb13   : > { %27916 = vmatmul.mubr.msk.f32.gmra.mrb[52].mxu1 %vm378_vm6, %v35378_v51 }
 0xb14   : > { %29056 = vmatpush3.bf16.msra.mxu1 %v29053_v19  ;;  %27918 = vmatprep.mubr.msk.f32.mxu1 %vm378_vm6, %v35496_v23 }
 0xb15   : > { %29058 = vmatprep.subr.bf16.mxu1 %v29057_v12 }
 0xb17   : > { %27919 = vmatmul.mubr.msk.f32.gmra.mrb[54].mxu1 %vm378_vm6, %v35508_v5 }
 0xb18   : > { %29060 = vmatpush3.bf16.msra.mxu1 %v29057_v12  ;;  %27937 = vmatprep.mubr.msk.f32.mxu1 %vm378_vm6, %v35215_v7 }
 0xb19   : > { %29062 = vmatprep.subr.bf16.mxu1 %v29061_v21 }
 0xb1b   : > { %27938 = vmatmul.mubr.msk.f32.vlgmr.msra.gmra.mrb[48].mxu1 %vm378_vm6, %v35222_v47 }
 0xb1c   : > { %29064 = vmatpush3.bf16.msra.mxu1 %v29061_v21  ;;  %27940 = vmatprep.mubr.msk.f32.mxu1 %vm378_vm6, %v35228_v53 }
 0xb1d   : > { %29066 = vmatprep.subr.bf16.mxu1 %v29065_v59 }
 0xb1f   : > { %27941 = vmatmul.mubr.msk.f32.gmra.mrb[50].mxu1 %vm378_vm6, %v35235_v13 }
 0xb20   : > { %29068 = vmatpush3.bf16.msra.mxu1 %v29065_v59  ;;  %27943 = vmatprep.mubr.msk.f32.mxu1 %vm378_vm6, %v35418_v24 }
 0xb21   : > { %29070 = vmatprep.subr.bf16.mxu1 %v29069_v46 }
 0xb23   : > { %27944 = vmatmul.mubr.msk.f32.gmra.mrb[52].mxu1 %vm378_vm6, %v35422_v1 }
 0xb24   : > { %29072 = vmatpush3.bf16.msra.mxu1 %v29069_v46  ;;  %27946 = vmatprep.mubr.msk.f32.mxu1 %vm378_vm6, %v35540_v35 }
 0xb25   : > { %29074 = vmatprep.subr.bf16.mxu1 %v29073_v61 }
 0xb27   : > { %27947 = vmatmul.mubr.msk.f32.gmra.mrb[54].mxu1 %vm378_vm6, %v35552_v57 }
 0xb28   : > { %29076 = vmatpush3.bf16.msra.mxu1 %v29073_v61  ;;  %27965 = vmatprep.mubr.msk.f32.mxu1 %vm378_vm6, %v35273_v44  ;;  %v35576_v44 = vld [vmem:[#allocation4 + $0x88] sm:$0xff] }
 0xb29   : > { %29078 = vmatprep.subr.bf16.mxu1 %v29077_v6 }
 0xb2b   : > { %27966 = vmatmul.mubr.msk.f32.vlgmr.msra.gmra.mrb[48].mxu1 %vm378_vm6, %v35323_v41  ;;  %v23348_v41 = vld [vmem:[%s36868_s5 + $0x2a8] sm:$0xff] }
 0xb2c   : > { %27968 = vmatprep.mubr.msk.f32.mxu1 %vm378_vm6, %v35287_v15  ;;  %29080 = vmatpush3.bf16.msra.mxu1 %v29077_v6  ;;  %v23347_v15 = vld [vmem:[%s36868_s5 + $0x2a0] sm:$0xff] }
 0xb2d   : > { %29082 = vmatprep.subr.bf16.mxu1 %v29081_v9 }
 0xb2f   : > { %27969 = vmatmul.mubr.msk.f32.gmra.mrb[50].mxu1 %vm378_vm6, %v35335_v39  ;;  %v29085_v39 = vpack.c.bf16 %v23348_v41, %v23347_v15 }
 0xb30   : > { %27971 = vmatprep.mubr.msk.f32.mxu1 %vm378_vm6, %v35378_v51  ;;  %29084 = vmatpush3.bf16.msra.mxu1 %v29081_v9  ;;  %v23349_v51 = vld [vmem:[%s36868_s5 + $0x2b0] sm:$0xff] }
 0xb31   : > { %29086 = vmatprep.subr.bf16.mxu1 %v29085_v39 }
 0xb33   : > { %27972 = vmatmul.mubr.msk.f32.gmra.mrb[52].mxu1 %vm378_vm6, %v35464_v48  ;;  %v29109_v48 = vpack.c.bf16 %v23368_v29, %v23367_v11 }
 0xb34   : > { %27974 = vmatprep.mubr.msk.f32.mxu1 %vm378_vm6, %v35508_v5  ;;  %29088 = vmatpush3.bf16.msra.mxu1 %v29085_v39 }
 0xb37   : > { %27975 = vmatmul.mubr.msk.f32.gmra.mrb[54].mxu1 %vm378_vm6, %v35576_v44 }
 0xb38   : > { %27993 = vmatprep.mubr.msk.f32.mxu1 %vm378_vm6, %v35123_v26  ;;  %v29089_v26 = vpack.c.bf16 %v23350_v49, %v23349_v51  ;;  %v23369_v49 = vld [vmem:[%s36868_s5 + $0x2d0] sm:$0xff] }
 0xb3a   : > { %29090 = vmatprep.subr.bf16.mxu1 %v29089_v26 }
 0xb3b   : > { %29092 = vmatpush3.bf16.msra.mxu1 %v29089_v26  ;;  %v23370_v26 = vld [vmem:[%s36868_s5 + $0x2d8] sm:$0xff] }
 0xb3c   : > { %29094 = vmatprep.subr.bf16.mxu1 %v29093_v20  ;;  %v29113_v18 = vpack.c.bf16 %v23370_v26, %v23369_v49 }
 0xb3e   : > { %27994 = vmatmul.mubr.msk.f32.vlgmr.msra.gmra.mrb[56].mxu1 %vm378_vm6, %v35127_v52  ;;  %v23341_v52 = vld [vmem:[%s36868_s5 + $0x270] sm:$0xff] }
 0xb3f   : > { %29096 = vmatpush3.bf16.msra.mxu1 %v29093_v20  ;;  %v29105_v40 = vpack.c.bf16 %v23342_v60, %v23341_v52  ;;  %v23372_v20 = vld [vmem:[%s36868_s5 + $0x2e8] sm:$0xff]  ;;  %v23383_v60 = vld [vmem:[%s36868_s5 + $0x300] sm:$0xff] }
 0xb40   : > { %29098 = vmatprep.subr.bf16.mxu1 %v29097_v4  ;;  %v29117_v43 = vpack.c.bf16 %v23372_v20, %v23371_v31  ;;  %v23418_v31 = vld [vmem:[%s36868_s5 + $0x398] sm:$0xff] }
 0xb43   : > { %29100 = vmatpush3.bf16.msra.mxu1 %v29097_v4  ;;  %v23374_v4 = vld [vmem:[%s36868_s5 + $0x2f8] sm:$0xff] }
 0xb44   : > { %29102 = vmatprep.subr.bf16.mxu1 %v29101_v10 }
 0xb47   : > { %29104 = vmatpush3.bf16.msra.mxu1 %v29101_v10 }
 0xb48   : > { %29106 = vmatprep.subr.bf16.mxu1 %v29105_v40 }
 0xb4b   : > { %29108 = vmatpush3.bf16.msra.mxu1 %v29105_v40  ;;  %v23384_v40 = vld [vmem:[%s36868_s5 + $0x308] sm:$0xff] }
 0xb4c   : > { %29110 = vmatprep.subr.bf16.mxu1 %v29109_v48  ;;  %v29125_v29 = vpack.c.bf16 %v23384_v40, %v23383_v60  ;;  %v23432_v60 = vld [vmem:[%s36868_s5 + $0x3c8] sm:$0xff] }
 0xbfe   : > { %v27967_v32 = vpop.f32.mrb[48].mxu1 }
 0xbff   : > { %v17567_v37 = vadd.f32 %v27967_v32, %v23334_v36  ;;  %v17514_v2 = vpop.f32.mrb[49].mxu1  ;;  %v23386_v32 = vld [vmem:[%s36868_s5 + $0x318] sm:$0xff] }
 0xc00   : > { %v17566_v38 = vadd.f32 %v23334_v36, %v17514_v2  ;;  %v23387_v2 = vld [vmem:[%s36868_s5 + $0x320] sm:$0xff] }
 0xc01   : > { %v17575_v19 = vmax.f32 %v17567_v37, 0.0 }
 0xc02   : > { %v17574_v14 = vmax.f32 %v17566_v38, 0.0  ;;  %v27970_v22 = vpop.f32.mrb[50].mxu1  ;;  %v23388_v38 = vld [vmem:[%s36868_s5 + $0x328] sm:$0xff] }
 0xc03   : > { %17583 = vst.msk [vmem:[#allocation4 + $0x24] sm:$0xff] %vm378_vm6, %v17575_v19  ;;  %v17569_v12 = vadd.f32 %v27970_v22, %v23334_v36  ;;  %v17524_v54 = vpop.f32.mrb[51].mxu1  ;;  %v29133_v19 = vpack.c.bf16 %v23388_v38, %v23387_v2  ;;  %v23390_v22 = vld [vmem:[%s36868_s5 + $0x338] sm:$0xff]  ;;  %v23435_v38 = vld [vmem:[%s36868_s5 + $0x3e0] sm:$0xff] }
 0xc04   : > { %17582 = vst.msk [vmem:[#allocation4 + $0x1c] sm:$0xff] %vm378_vm6, %v17574_v14  ;;  %v17568_v50 = vadd.f32 %v23334_v36, %v17524_v54  ;;  %v23389_v14 = vld [vmem:[%s36868_s5 + $0x330] sm:$0xff]  ;;  %v23399_v54 = vld [vmem:[%s36868_s5 + $0x340] sm:$0xff] }
 0xc05   : > { %v17577_v21 = vmax.f32 %v17569_v12, 0.0 }
 0xc06   : > { %v17576_v55 = vmax.f32 %v17568_v50, 0.0  ;;  %v27973_v3 = vpop.f32.mrb[52].mxu1  ;;  %v23400_v50 = vld [vmem:[%s36868_s5 + $0x348] sm:$0xff] }
 0xc07   : > { %17585 = vst.msk [vmem:[#allocation4 + $0x3c] sm:$0xff] %vm378_vm6, %v17577_v21  ;;  %v17571_v59 = vadd.f32 %v27973_v3, %v23334_v36  ;;  %v17534_v56 = vpop.f32.mrb[53].mxu1  ;;  %v29141_v21 = vpack.c.bf16 %v23400_v50, %v23399_v54  ;;  %v23401_v3 = vld [vmem:[%s36868_s5 + $0x350] sm:$0xff]  ;;  %v23448_v54 = vld [vmem:[%s36868_s5 + $0x408] sm:$0xff] }
 0xc08   : > { %17584 = vst.msk [vmem:[#allocation4 + $0x34] sm:$0xff] %vm378_vm6, %v17576_v55  ;;  %v17570_v27 = vadd.f32 %v23334_v36, %v17534_v56 }
 0xc09   : > { %v17579_v46 = vmax.f32 %v17571_v59, 0.0  ;;  %v23402_v59 = vld [vmem:[%s36868_s5 + $0x358] sm:$0xff] }
 0xc0a   : > { %v17578_v62 = vmax.f32 %v17570_v27, 0.0  ;;  %v27976_v28 = vpop.f32.mrb[54].mxu1  ;;  %v35639_v45 = vld [vmem:[#allocation4 + $0x24] sm:$0xff]  ;;  %v29145_v56 = vpack.c.bf16 %v23402_v59, %v23401_v3  ;;  %v23449_v3 = vld [vmem:[%s36868_s5 + $0x410] sm:$0xff]  ;;  %v23450_v59 = vld [vmem:[%s36868_s5 + $0x418] sm:$0xff] }
 0xc0b   : > { %17587 = vst.msk [vmem:[#allocation4 + $0x54] sm:$0xff] %vm378_vm6, %v17579_v46  ;;  %v17573_v61 = vadd.f32 %v27976_v28, %v23334_v36  ;;  %v17544_v8 = vpop.f32.mrb[55].mxu1  ;;  %v35634_v33 = vld [vmem:[#allocation4 + $0x1c] sm:$0xff]  ;;  %v23404_v46 = vld [vmem:[%s36868_s5 + $0x368] sm:$0xff]  ;;  %v23405_v28 = vld [vmem:[%s36868_s5 + $0x370] sm:$0xff] }
 0xc0c   : > { %17586 = vst.msk [vmem:[#allocation4 + $0x4c] sm:$0xff] %vm378_vm6, %v17578_v62  ;;  %v17572_v6 = vadd.f32 %v23334_v36, %v17544_v8  ;;  %27996 = vmatprep.mubr.msk.f32.mxu1 %vm378_vm6, %v35634_v33  ;;  %v17592_v42 = vld [vmem:[#allocation4 + $0x18] sm:$0xff]  ;;  %v35678_v58 = vld [vmem:[#allocation4 + $0x20] sm:$0xff]  ;;  %v23385_v36 = vld [vmem:[%s36868_s5 + $0x310] sm:$0xff] }
 0xc0d   : > { %v17581_v17 = vmax.f32 %v17573_v61, 0.0  ;;  %27997 = vmatmul.mubr.msk.f32.gmra.mrb[58].mxu1 %vm378_vm6, %v35639_v45  ;;  %v29129_v37 = vpack.c.bf16 %v23386_v32, %v23385_v36  ;;  %v23403_v27 = vld [vmem:[%s36868_s5 + $0x360] sm:$0xff]  ;;  %v23406_v61 = vld [vmem:[%s36868_s5 + $0x378] sm:$0xff]  ;;  %v23433_v32 = vld [vmem:[%s36868_s5 + $0x3d0] sm:$0xff] }
 0xc0e   : > { %v17580_v9 = vmax.f32 %v17572_v6, 0.0  ;;  %v35649_v41 = vld [vmem:[#allocation4 + $0x3c] sm:$0xff]  ;;  %v29149_v62 = vpack.c.bf16 %v23404_v46, %v23403_v27  ;;  %v29153_v8 = vpack.c.bf16 %v23406_v61, %v23405_v28  ;;  %v23452_v46 = vld [vmem:[%s36868_s5 + $0x428] sm:$0xff] }
 0xc0f   : > { %17589 = vst.msk [vmem:[#allocation4 + $0x6c] sm:$0xff] %vm378_vm6, %v17581_v17  ;;  %v35644_v15 = vld [vmem:[#allocation4 + $0x34] sm:$0xff]  ;;  %v35740_v12 = vld [vmem:[#allocation4 + $0x40] sm:$0xff]  ;;  %v23416_v17 = vld [vmem:[%s36868_s5 + $0x388] sm:$0xff] }
 0xc10   : > { %17588 = vst.msk [vmem:[#allocation4 + $0x64] sm:$0xff] %vm378_vm6, %v17580_v9  ;;  %27999 = vmatprep.mubr.msk.f32.mxu1 %vm378_vm6, %v35644_v15  ;;  %v35688_v25 = vld [vmem:[#allocation4 + $0x30] sm:$0xff]  ;;  %v35692_v52 = vld [vmem:[#allocation4 + $0x38] sm:$0xff]  ;;  %v23415_v6 = vld [vmem:[%s36868_s5 + $0x380] sm:$0xff] }
 0xc11   : > { %28000 = vmatmul.mubr.msk.f32.gmra.mrb[60].mxu1 %vm378_vm6, %v35649_v41  ;;  %v29157_v49 = vpack.c.bf16 %v23416_v17, %v23415_v6  ;;  %v23451_v27 = vld [vmem:[%s36868_s5 + $0x420] sm:$0xff]  ;;  %v23454_v28 = vld [vmem:[%s36868_s5 + $0x438] sm:$0xff]  ;;  %v23465_v17 = vld [vmem:[%s36868_s5 + $0x450] sm:$0xff] }
 0xc12   : > { %v35657_v51 = vld [vmem:[#allocation4 + $0x54] sm:$0xff] }
 0xc13   : > { %v35653_v39 = vld [vmem:[#allocation4 + $0x4c] sm:$0xff]  ;;  %v35752_v55 = vld [vmem:[#allocation4 + $0x58] sm:$0xff] }
 0xc14   : > { %28002 = vmatprep.mubr.msk.f32.mxu1 %vm378_vm6, %v35653_v39  ;;  %v35702_v11 = vld [vmem:[#allocation4 + $0x48] sm:$0xff] }
 0xc15   : > { %28003 = vmatmul.mubr.msk.f32.gmra.mrb[62].mxu1 %vm378_vm6, %v35657_v51 }
 0xc16   : > { %28021 = vmatprep.mubr.msk.f32.mxu1 %vm378_vm6, %v35230_v30  ;;  %v23373_v30 = vld [vmem:[%s36868_s5 + $0x2f0] sm:$0xff] }
 0xc17   : > { %v29121_v10 = vpack.c.bf16 %v23374_v4, %v23373_v30  ;;  %v35791_v9 = vld [vmem:[#allocation4 + $0x60] sm:$0xff]  ;;  %v35795_v26 = vld [vmem:[#allocation4 + $0x68] sm:$0xff]  ;;  %v23422_v4 = vld [vmem:[%s36868_s5 + $0x3b8] sm:$0xff] }
 0xc18   : > { %v35835_v40 = vld [vmem:[#allocation4 + $0x64] sm:$0xff]  ;;  %v35839_v36 = vld [vmem:[#allocation4 + $0x6c] sm:$0xff] }
 0xc19   : > { %28022 = vmatmul.mubr.msk.f32.vlgmr.msra.gmra.mrb[56].mxu1 %vm378_vm6, %v35247_v16 }
 0xc1a   : > { %29112 = vmatpush3.bf16.msra.mxu1 %v29109_v48  ;;  %28024 = vmatprep.mubr.msk.f32.mxu1 %vm378_vm6, %v17592_v42  ;;  %v35706_v48 = vld [vmem:[#allocation4 + $0x50] sm:$0xff] }
 0xc1b   : > { %29114 = vmatprep.subr.bf16.mxu1 %v29113_v18 }
 0xc1d   : > { %28025 = vmatmul.mubr.msk.f32.gmra.mrb[58].mxu1 %vm378_vm6, %v35678_v58 }
 0xc1e   : > { %29116 = vmatpush3.bf16.msra.mxu1 %v29113_v18  ;;  %28027 = vmatprep.mubr.msk.f32.mxu1 %vm378_vm6, %v35688_v25  ;;  %v23417_v18 = vld [vmem:[%s36868_s5 + $0x390] sm:$0xff] }
 0xc1f   : > { %29118 = vmatprep.subr.bf16.mxu1 %v29117_v43  ;;  %v29161_v20 = vpack.c.bf16 %v23418_v31, %v23417_v18  ;;  %v23468_v18 = vld [vmem:[%s36868_s5 + $0x468] sm:$0xff] }
 0xc21   : > { %28028 = vmatmul.mubr.msk.f32.gmra.mrb[60].mxu1 %vm378_vm6, %v35692_v52 }
 0xc22   : > { %29120 = vmatpush3.bf16.msra.mxu1 %v29117_v43  ;;  %28030 = vmatprep.mubr.msk.f32.mxu1 %vm378_vm6, %v35702_v11  ;;  %v23420_v43 = vld [vmem:[%s36868_s5 + $0x3a8] sm:$0xff] }
 0xc23   : > { %29122 = vmatprep.subr.bf16.mxu1 %v29121_v10 }
 0xc25   : > { %28031 = vmatmul.mubr.msk.f32.gmra.mrb[62].mxu1 %vm378_vm6, %v35706_v48 }
 0xc26   : > { %29124 = vmatpush3.bf16.msra.mxu1 %v29121_v10  ;;  %28049 = vmatprep.mubr.msk.f32.mxu1 %vm378_vm6, %v35247_v16  ;;  %v35728_v16 = vld [vmem:[#allocation4 + $0x28] sm:$0xff]  ;;  %v23431_v10 = vld [vmem:[%s36868_s5 + $0x3c0] sm:$0xff] }
 0xc27   : > { %29126 = vmatprep.subr.bf16.mxu1 %v29125_v29 }
 0xc29   : > { %28050 = vmatmul.mubr.msk.f32.vlgmr.msra.gmra.mrb[56].mxu1 %vm378_vm6, %v35299_v63  ;;  %v29137_v63 = vpack.c.bf16 %v23390_v22, %v23389_v14  ;;  %v23438_v22 = vld [vmem:[%s36868_s5 + $0x3f8] sm:$0xff] }
 0xc2a   : > { %29128 = vmatpush3.bf16.msra.mxu1 %v29125_v29  ;;  %28052 = vmatprep.mubr.msk.f32.mxu1 %vm378_vm6, %v35678_v58  ;;  %v29173_v29 = vpack.c.bf16 %v23432_v60, %v23431_v10  ;;  %v23482_v10 = vld [vmem:[%s36868_s5 + $0x490] sm:$0xff]  ;;  %v23483_v60 = vld [vmem:[%s36868_s5 + $0x498] sm:$0xff] }
 0xc2b   : > { %29130 = vmatprep.subr.bf16.mxu1 %v29129_v37 }
 0xc2d   : > { %28053 = vmatmul.mubr.msk.f32.gmra.mrb[58].mxu1 %vm378_vm6, %v35728_v16 }
 0xc2e   : > { %29132 = vmatpush3.bf16.msra.mxu1 %v29129_v37  ;;  %28055 = vmatprep.mubr.msk.f32.mxu1 %vm378_vm6, %v35692_v52  ;;  %v23434_v37 = vld [vmem:[%s36868_s5 + $0x3d8] sm:$0xff] }
 0xc2f   : > { %29134 = vmatprep.subr.bf16.mxu1 %v29133_v19  ;;  %v29177_v2 = vpack.c.bf16 %v23434_v37, %v23433_v32  ;;  %v23486_v37 = vld [vmem:[%s36868_s5 + $0x4b0] sm:$0xff] }
 0xc31   : > { %28056 = vmatmul.mubr.msk.f32.gmra.mrb[60].mxu1 %vm378_vm6, %v35740_v12 }
 0xc32   : > { %29136 = vmatpush3.bf16.msra.mxu1 %v29133_v19  ;;  %28058 = vmatprep.mubr.msk.f32.mxu1 %vm378_vm6, %v35706_v48  ;;  %v23436_v19 = vld [vmem:[%s36868_s5 + $0x3e8] sm:$0xff] }
 0xc33   : > { %29138 = vmatprep.subr.bf16.mxu1 %v29137_v63  ;;  %v29181_v14 = vpack.c.bf16 %v23436_v19, %v23435_v38  ;;  %v23512_v19 = vld [vmem:[%s36868_s5 + $0x500] sm:$0xff] }
 0xc35   : > { %28059 = vmatmul.mubr.msk.f32.gmra.mrb[62].mxu1 %vm378_vm6, %v35752_v55 }
 0xc36   : > { %29140 = vmatpush3.bf16.msra.mxu1 %v29137_v63  ;;  %28077 = vmatprep.mubr.msk.f32.mxu1 %vm378_vm6, %v17592_v42  ;;  %v23419_v42 = vld [vmem:[%s36868_s5 + $0x3a0] sm:$0xff] }
 0xc37   : > { %29142 = vmatprep.subr.bf16.mxu1 %v29141_v21  ;;  %v29165_v30 = vpack.c.bf16 %v23420_v43, %v23419_v42  ;;  %v23447_v63 = vld [vmem:[%s36868_s5 + $0x400] sm:$0xff]  ;;  %v23489_v42 = vld [vmem:[%s36868_s5 + $0x4c8] sm:$0xff]  ;;  %v23490_v43 = vld [vmem:[%s36868_s5 + $0x4d0] sm:$0xff] }
 0xc38   : > { %v29189_v50 = vpack.c.bf16 %v23448_v54, %v23447_v63 }
 0xc39   : > { %28078 = vmatmul.mubr.msk.f32.vlgmr.msra.gmra.mrb[56].mxu1 %vm378_vm6, %v35678_v58 }
 0xc3a   : > { %29144 = vmatpush3.bf16.msra.mxu1 %v29141_v21  ;;  %28080 = vmatprep.mubr.msk.f32.mxu1 %vm378_vm6, %v35688_v25  ;;  %v35881_v21 = vld [vmem:[#allocation4 + $0x70] sm:$0xff] }
 0xc3b   : > { %29146 = vmatprep.subr.bf16.mxu1 %v29145_v56 }
 0xc3d   : > { %28081 = vmatmul.mubr.msk.f32.gmra.mrb[58].mxu1 %vm378_vm6, %v35692_v52 }
 0xc3e   : > { %29148 = vmatpush3.bf16.msra.mxu1 %v29145_v56  ;;  %28083 = vmatprep.mubr.msk.f32.mxu1 %vm378_vm6, %v35702_v11  ;;  %v29193_v56 = vpack.c.bf16 %v23450_v59, %v23449_v3 }
 0xc3f   : > { %29150 = vmatprep.subr.bf16.mxu1 %v29149_v62 }
 0xc41   : > { %28084 = vmatmul.mubr.msk.f32.gmra.mrb[60].mxu1 %vm378_vm6, %v35706_v48 }
 0xc42   : > { %29152 = vmatpush3.bf16.msra.mxu1 %v29149_v62  ;;  %28086 = vmatprep.mubr.msk.f32.mxu1 %vm378_vm6, %v35791_v9  ;;  %v29197_v62 = vpack.c.bf16 %v23452_v46, %v23451_v27 }
 0xc43   : > { %29154 = vmatprep.subr.bf16.mxu1 %v29153_v8 }
 0xc45   : > { %28087 = vmatmul.mubr.msk.f32.gmra.mrb[62].mxu1 %vm378_vm6, %v35795_v26 }
 0xc46   : > { %29156 = vmatpush3.bf16.msra.mxu1 %v29153_v8  ;;  %28105 = vmatprep.mubr.msk.f32.mxu1 %vm378_vm6, %v35634_v33  ;;  %v23421_v33 = vld [vmem:[%s36868_s5 + $0x3b0] sm:$0xff]  ;;  %v23464_v8 = vld [vmem:[%s36868_s5 + $0x448] sm:$0xff] }
 0xc47   : > { %29158 = vmatprep.subr.bf16.mxu1 %v29157_v49 }
 0xc49   : > { %28106 = vmatmul.mubr.msk.f32.vlgmr.msra.gmra.mrb[56].mxu1 %vm378_vm6, %v35639_v45  ;;  %v29169_v45 = vpack.c.bf16 %v23422_v4, %v23421_v33 }
 0xc4a   : > { %29160 = vmatpush3.bf16.msra.mxu1 %v29157_v49  ;;  %28108 = vmatprep.mubr.msk.f32.mxu1 %vm378_vm6, %v35644_v15 }
 0xc4b   : > { %29162 = vmatprep.subr.bf16.mxu1 %v29161_v20 }
 0xc4d   : > { %28109 = vmatmul.mubr.msk.f32.gmra.mrb[58].mxu1 %vm378_vm6, %v35649_v41 }
 0xc4e   : > { %29164 = vmatpush3.bf16.msra.mxu1 %v29161_v20  ;;  %28111 = vmatprep.mubr.msk.f32.mxu1 %vm378_vm6, %v35653_v39  ;;  %v23470_v20 = vld [vmem:[%s36868_s5 + $0x478] sm:$0xff] }
 0xc4f   : > { %29166 = vmatprep.subr.bf16.mxu1 %v29165_v30 }
 0xc51   : > { %28112 = vmatmul.mubr.msk.f32.gmra.mrb[60].mxu1 %vm378_vm6, %v35657_v51 }
 0xc52   : > { %29168 = vmatpush3.bf16.msra.mxu1 %v29165_v30  ;;  %28114 = vmatprep.mubr.msk.f32.mxu1 %vm378_vm6, %v35835_v40  ;;  %v23491_v30 = vld [vmem:[%s36868_s5 + $0x4d8] sm:$0xff] }
 0xc53   : > { %29170 = vmatprep.subr.bf16.mxu1 %v29169_v45  ;;  %v29225_v33 = vpack.c.bf16 %v23491_v30, %v23490_v43 }
 0xc55   : > { %28115 = vmatmul.mubr.msk.f32.gmra.mrb[62].mxu1 %vm378_vm6, %v35839_v36 }
 0xc56   : > { %29172 = vmatpush3.bf16.msra.mxu1 %v29169_v45  ;;  %28133 = vmatprep.mubr.msk.f32.mxu1 %vm378_vm6, %v35678_v58  ;;  %v23437_v58 = vld [vmem:[%s36868_s5 + $0x3f0] sm:$0xff] }
 0xc57   : > { %29174 = vmatprep.subr.bf16.mxu1 %v29173_v29  ;;  %v36009_v45 = vld [vmem:[#allocation4 + $0xc] sm:$0xff] }
 0xc59   : > { %28134 = vmatmul.mubr.msk.f32.vlgmr.msra.gmra.mrb[56].mxu1 %vm378_vm6, %v35728_v16  ;;  %v29185_v16 = vpack.c.bf16 %v23438_v22, %v23437_v58  ;;  %v23479_v22 = vld [vmem:[%s36869_s6 + $0x1] ss:$0 sm:$0xff] }
 0xc5a   : > { %29176 = vmatpush3.bf16.msra.mxu1 %v29173_v29  ;;  %28136 = vmatprep.mubr.msk.f32.mxu1 %vm378_vm6, %v35692_v52  ;;  %v29241_v29 = vpack.c.bf16 %v23483_v60, %v23482_v10  ;;  %v23530_v60 = vld [vmem:[%s36868_s5 + $0x550] sm:$0xff] }
 0xc5b   : > { %29178 = vmatprep.subr.bf16.mxu1 %v29177_v2 }
 0xc5d   : > { %28137 = vmatmul.mubr.msk.f32.gmra.mrb[58].mxu1 %vm378_vm6, %v35740_v12 }
 0xc5e   : > { %29180 = vmatpush3.bf16.msra.mxu1 %v29177_v2  ;;  %28139 = vmatprep.mubr.msk.f32.mxu1 %vm378_vm6, %v35706_v48  ;;  %v23487_v2 = vld [vmem:[%s36868_s5 + $0x4b8] sm:$0xff] }
 0xc5f   : > { %29182 = vmatprep.subr.bf16.mxu1 %v29181_v14  ;;  %v29249_v38 = vpack.c.bf16 %v23487_v2, %v23486_v37  ;;  %v23533_v37 = vld [vmem:[%s36868_s5 + $0x568] sm:$0xff] }
 0xc61   : > { %28140 = vmatmul.mubr.msk.f32.gmra.mrb[60].mxu1 %vm378_vm6, %v35752_v55 }
 0xc62   : > { %29184 = vmatpush3.bf16.msra.mxu1 %v29181_v14  ;;  %28142 = vmatprep.mubr.msk.f32.mxu1 %vm378_vm6, %v35795_v26  ;;  %v23513_v14 = vld [vmem:[%s36868_s5 + $0x508] sm:$0xff] }
 0xc63   : > { %29186 = vmatprep.subr.bf16.mxu1 %v29185_v16  ;;  %v29253_v58 = vpack.c.bf16 %v23513_v14, %v23512_v19  ;;  %v23534_v19 = vld [vmem:[%s36868_s5 + $0x570] sm:$0xff]  ;;  %v23535_v14 = vld [vmem:[%s36868_s5 + $0x578] sm:$0xff] }
 0xc65   : > { %28143 = vmatmul.mubr.msk.f32.gmra.mrb[62].mxu1 %vm378_vm6, %v35881_v21 }
 0xc66   : > { %29188 = vmatpush3.bf16.msra.mxu1 %v29185_v16  ;;  %28161 = vmatprep.mubr.msk.f32.mxu1 %vm378_vm6, %v35688_v25  ;;  %v23453_v25 = vld [vmem:[%s36868_s5 + $0x430] sm:$0xff] }
 0xc67   : > { %29190 = vmatprep.subr.bf16.mxu1 %v29189_v50  ;;  %v29201_v61 = vpack.c.bf16 %v23454_v28, %v23453_v25 }
 0xc69   : > { %28162 = vmatmul.mubr.msk.f32.vlgmr.msra.gmra.mrb[56].mxu1 %vm378_vm6, %v35692_v52 }
 0xc6a   : > { %29192 = vmatpush3.bf16.msra.mxu1 %v29189_v50  ;;  %28164 = vmatprep.mubr.msk.f32.mxu1 %vm378_vm6, %v35702_v11  ;;  %v23463_v11 = vld [vmem:[%s36868_s5 + $0x440] sm:$0xff] }
 0xc6b   : > { %29194 = vmatprep.subr.bf16.mxu1 %v29193_v56  ;;  %v29205_v6 = vpack.c.bf16 %v23464_v8, %v23463_v11 }
 0xc6d   : > { %28165 = vmatmul.mubr.msk.f32.gmra.mrb[58].mxu1 %vm378_vm6, %v35706_v48 }
 0xc6e   : > { %29196 = vmatpush3.bf16.msra.mxu1 %v29193_v56  ;;  %28167 = vmatprep.mubr.msk.f32.mxu1 %vm378_vm6, %v35791_v9  ;;  %v23466_v9 = vld [vmem:[%s36868_s5 + $0x458] sm:$0xff] }
 0xc6f   : > { %29198 = vmatprep.subr.bf16.mxu1 %v29197_v62  ;;  %v29209_v49 = vpack.c.bf16 %v23466_v9, %v23465_v17 }
 0xc71   : > { %28168 = vmatmul.mubr.msk.f32.gmra.mrb[60].mxu1 %vm378_vm6, %v35795_v26 }
 0xc72   : > { %29200 = vmatpush3.bf16.msra.mxu1 %v29197_v62  ;;  %28170 = vmatprep.mubr.msk.f32.mxu1 %vm378_vm6, %v35496_v23  ;;  %v23467_v23 = vld [vmem:[%s36868_s5 + $0x460] sm:$0xff] }
 0xc73   : > { %29202 = vmatprep.subr.bf16.mxu1 %v29201_v61  ;;  %v29213_v31 = vpack.c.bf16 %v23468_v18, %v23467_v23 }
 0xc75   : > { %28171 = vmatmul.mubr.msk.f32.gmra.mrb[62].mxu1 %vm378_vm6, %v35508_v5 }
 0xc76   : > { %29204 = vmatpush3.bf16.msra.mxu1 %v29201_v61  ;;  %28189 = vmatprep.mubr.msk.f32.mxu1 %vm378_vm6, %v35644_v15  ;;  %v23469_v15 = vld [vmem:[%s36868_s5 + $0x470] sm:$0xff] }
 0xc77   : > { %29206 = vmatprep.subr.bf16.mxu1 %v29205_v6 }
 0xc79   : > { %28190 = vmatmul.mubr.msk.f32.vlgmr.msra.gmra.mrb[56].mxu1 %vm378_vm6, %v35649_v41  ;;  %v29217_v41 = vpack.c.bf16 %v23470_v20, %v23469_v15  ;;  %v23514_v15 = vld [vmem:[%s36868_s5 + $0x510] sm:$0xff]  ;;  %v23515_v20 = vld [vmem:[%s36868_s5 + $0x518] sm:$0xff] }
 0xc7a   : > { %29208 = vmatpush3.bf16.msra.mxu1 %v29205_v6  ;;  %28192 = vmatprep.mubr.msk.f32.mxu1 %vm378_vm6, %v35653_v39  ;;  %v23488_v39 = vld [vmem:[%s36868_s5 + $0x4c0] sm:$0xff] }
 0xc7b   : > { %29210 = vmatprep.subr.bf16.mxu1 %v29209_v49 }
 0xc7d   : > { %28193 = vmatmul.mubr.msk.f32.gmra.mrb[58].mxu1 %vm378_vm6, %v35657_v51  ;;  %v29221_v51 = vpack.c.bf16 %v23489_v42, %v23488_v39  ;;  %v29257_v39 = vpack.c.bf16 %v23515_v20, %v23514_v15  ;;  %v23516_v42 = vld [vmem:[%s36868_s5 + $0x520] sm:$0xff] }
 0xc7e   : > { %29212 = vmatpush3.bf16.msra.mxu1 %v29209_v49  ;;  %28195 = vmatprep.mubr.msk.f32.mxu1 %vm378_vm6, %v35835_v40  ;;  %v23484_v40 = vld [vmem:[%s36868_s5 + $0x4a0] sm:$0xff] }
 0xc7f   : > { %29214 = vmatprep.subr.bf16.mxu1 %v29213_v31 }
 0xc81   : > { %28196 = vmatmul.mubr.msk.f32.gmra.mrb[60].mxu1 %vm378_vm6, %v35839_v36  ;;  %v23485_v36 = vld [vmem:[%s36868_s5 + $0x4a8] sm:$0xff] }
 0xc82   : > { %29216 = vmatpush3.bf16.msra.mxu1 %v29213_v31  ;;  %28198 = vmatprep.mubr.msk.f32.mxu1 %vm378_vm6, %v35540_v35  ;;  %v23492_v35 = vld [vmem:[%s36868_s5 + $0x4e0] sm:$0xff]  ;;  %v29245_v32 = vpack.c.bf16 %v23485_v36, %v23484_v40  ;;  %v23531_v40 = vld [vmem:[%s36868_s5 + $0x558] sm:$0xff] }
 0xc83   : > { %29218 = vmatprep.subr.bf16.mxu1 %v29217_v41  ;;  %v29273_v36 = vpack.c.bf16 %v23531_v40, %v23530_v60  ;;  %v23578_v40 = vld [vmem:[%s36868_s5 + $0x610] sm:$0xff] }
 0xc85   : > { %28199 = vmatmul.mubr.msk.f32.gmra.mrb[62].mxu1 %vm378_vm6, %v35552_v57  ;;  %v23493_v57 = vld [vmem:[%s36868_s5 + $0x4e8] sm:$0xff] }
 0xc86   : > { %29220 = vmatpush3.bf16.msra.mxu1 %v29217_v41  ;;  %28217 = vmatprep.mubr.msk.f32.mxu1 %vm378_vm6, %v35692_v52  ;;  %v29229_v52 = vpack.c.bf16 %v23493_v57, %v23492_v35  ;;  %v36114_v41 = vld [vmem:[#allocation4 + $0x8] sm:$0xff]  ;;  %v23518_v35 = vld [vmem:[%s36868_s5 + $0x530] sm:$0xff]  ;;  %v23519_v57 = vld [vmem:[%s36868_s5 + $0x538] sm:$0xff] }
 0xc87   : > { %29222 = vmatprep.subr.bf16.mxu1 %v29221_v51 }
 0xc89   : > { %28218 = vmatmul.mubr.msk.f32.vlgmr.msra.gmra.mrb[56].mxu1 %vm378_vm6, %v35740_v12  ;;  %v35999_v12 = vld [vmem:[#allocation4 + $0x4] sm:$0xff] }
 0xc8a   : > { %28220 = vmatprep.mubr.msk.f32.mxu1 %vm378_vm6, %v35706_v48  ;;  %29224 = vmatpush3.bf16.msra.mxu1 %v29221_v51  ;;  %v23494_v48 = vld [vmem:[%s36868_s5 + $0x4f0] sm:$0xff]  ;;  %v23517_v51 = vld [vmem:[%s36868_s5 + $0x528] sm:$0xff] }
 0xc8b   : > { %29226 = vmatprep.subr.bf16.mxu1 %v29225_v33  ;;  %v29261_v30 = vpack.c.bf16 %v23517_v51, %v23516_v42  ;;  %v23563_v42 = vld [vmem:[%s36868_s5 + $0x5d8] sm:$0xff] }
 0xc8d   : > { %28221 = vmatmul.mubr.msk.f32.gmra.mrb[58].mxu1 %vm378_vm6, %v35752_v55  ;;  %v23480_v55 = vld [vmem:[%s36868_s5 + $0x480] sm:$0xff] }
 0xc8e   : > { %28223 = vmatprep.mubr.msk.f32.mxu1 %vm378_vm6, %v35795_v26  ;;  %29228 = vmatpush3.bf16.msra.mxu1 %v29225_v33  ;;  %v23481_v26 = vld [vmem:[%s36868_s5 + $0x488] sm:$0xff] }
 0xc8f   : > { %29230 = vmatprep.subr.bf16.mxu1 %v29229_v52  ;;  %v29237_v4 = vpack.c.bf16 %v23481_v26, %v23480_v55  ;;  %v23529_v55 = vld [vmem:[%s36868_s5 + $0x548] sm:$0xff] }
 0xc91   : > { %28224 = vmatmul.mubr.msk.f32.gmra.mrb[60].mxu1 %vm378_vm6, %v35881_v21 }
 0xc92   : > { %28226 = vmatprep.mubr.msk.f32.mxu1 %vm378_vm6, %v35508_v5  ;;  %29232 = vmatpush3.bf16.msra.mxu1 %v29229_v52  ;;  %v23495_v5 = vld [vmem:[%s36868_s5 + $0x4f8] sm:$0xff] }
 0xc95   : > { %28227 = vmatmul.mubr.msk.f32.gmra.mrb[62].mxu1 %vm378_vm6, %v35576_v44  ;;  %v29233_v44 = vpack.c.bf16 %v23495_v5, %v23494_v48  ;;  %v29265_v48 = vpack.c.bf16 %v23519_v57, %v23518_v35  ;;  %v23567_v57 = vld [vmem:[%s36868_s5 + $0x5f8] sm:$0xff] }
 0xc96   : > { %28245 = vmatprep.mubr.msk.f32.mxu1 %vm378_vm6, %v35999_v12 }
 0xc97   : > { %29234 = vmatprep.subr.bf16.mxu1 %v29233_v44 }
 0xc98   : > { %29236 = vmatpush3.bf16.msra.mxu1 %v29233_v44  ;;  %v23528_v44 = vld [vmem:[%s36868_s5 + $0x540] sm:$0xff] }
 0xc99   : > { %29238 = vmatprep.subr.bf16.mxu1 %v29237_v4 }
 0xc9b   : > { %28246 = vmatmul.mubr.msk.f32.vlgmr.msra.gmra.mrb[64].mxu1 %vm378_vm6, %v36009_v45 }
 0xc9c   : > { %29240 = vmatpush3.bf16.msra.mxu1 %v29237_v4  ;;  %v29269_v4 = vpack.c.bf16 %v23529_v55, %v23528_v44  ;;  %v23577_v44 = vld [vmem:[%s36868_s5 + $0x608] sm:$0xff] }
 0xc9d   : > { %29242 = vmatprep.subr.bf16.mxu1 %v29241_v29 }
 0xca0   : > { %29244 = vmatpush3.bf16.msra.mxu1 %v29241_v29  ;;  %v36165_v29 = vld [vmem:[#allocation4 + $0x10] sm:$0xff] }
 0xca1   : > { %29246 = vmatprep.subr.bf16.mxu1 %v29245_v32 }
 0xca4   : > { %29248 = vmatpush3.bf16.msra.mxu1 %v29245_v32  ;;  %v23532_v32 = vld [vmem:[%s36868_s5 + $0x560] sm:$0xff] }
 0xca5   : > { %29250 = vmatprep.subr.bf16.mxu1 %v29249_v38  ;;  %v29277_v2 = vpack.c.bf16 %v23533_v37, %v23532_v32  ;;  %v23580_v37 = vld [vmem:[%s36868_s5 + $0x620] sm:$0xff] }
 0xca8   : > { %29252 = vmatpush3.bf16.msra.mxu1 %v29249_v38 }
 0xca9   : > { %29254 = vmatprep.subr.bf16.mxu1 %v29253_v58 }
 0xd5c   : > { %v28219_v16 = vpop.f32.mrb[56].mxu1 }
 0xd5d   : > { %v18966_v63 = vadd.f32 %v28219_v16, %v23479_v22  ;;  %v18913_v54 = vpop.f32.mrb[57].mxu1  ;;  %v23544_v16 = vld [vmem:[%s36868_s5 + $0x580] sm:$0xff] }
 0xd5e   : > { %v18965_v50 = vadd.f32 %v23479_v22, %v18913_v54 }
 0xd5f   : > { %v36041_v21 = vadd.f32 %v18966_v63, %v35205_v34  ;;  %v23545_v63 = vld [vmem:[%s36868_s5 + $0x588] sm:$0xff] }
 0xd60   : > { %v36044_v3 = vadd.f32 %v18965_v50, %v35197_v0  ;;  %v28222_v59 = vpop.f32.mrb[58].mxu1  ;;  %v29285_v54 = vpack.c.bf16 %v23545_v63, %v23544_v16  ;;  %v23593_v16 = vld [vmem:[%s36868_s5 + $0x648] sm:$0xff] }
 0xd61   : > { %18982 = vst.msk [vmem:[#allocation4 + $0x24] sm:$0xff] %vm378_vm6, %v36041_v21  ;;  %v18968_v56 = vadd.f32 %v28222_v59, %v23479_v22  ;;  %v18923_v27 = vpop.f32.mrb[59].mxu1  ;;  %v23546_v59 = vld [vmem:[%s36868_s5 + $0x590] sm:$0xff] }
 0xd62   : > { %18981 = vst.msk [vmem:[#allocation4 + $0x1c] sm:$0xff] %vm378_vm6, %v36044_v3  ;;  %v18967_v46 = vadd.f32 %v23479_v22, %v18923_v27 }
 0xd63   : > { %v36051_v62 = vadd.f32 %v18968_v56, %v35222_v47  ;;  %v23547_v56 = vld [vmem:[%s36868_s5 + $0x598] sm:$0xff] }
 0xd64   : > { %v36054_v25 = vadd.f32 %v18967_v46, %v35215_v7  ;;  %v28225_v34 = vpop.f32.mrb[60].mxu1  ;;  %v29289_v27 = vpack.c.bf16 %v23547_v56, %v23546_v59  ;;  %v23548_v46 = vld [vmem:[%s36868_s5 + $0x5a0] sm:$0xff]  ;;  %v23594_v59 = vld [vmem:[%s36868_s5 + $0x650] sm:$0xff]  ;;  %v23595_v56 = vld [vmem:[%s36868_s5 + $0x658] sm:$0xff] }
 0xd65   : > { %18984 = vst.msk [vmem:[#allocation4 + $0x3c] sm:$0xff] %vm378_vm6, %v36051_v62  ;;  %v18970_v0 = vadd.f32 %v28225_v34, %v23479_v22  ;;  %v18933_v28 = vpop.f32.mrb[61].mxu1  ;;  %v23549_v34 = vld [vmem:[%s36868_s5 + $0x5a8] sm:$0xff] }
 0xd66   : > { %18983 = vst.msk [vmem:[#allocation4 + $0x34] sm:$0xff] %vm378_vm6, %v36054_v25  ;;  %v18969_v61 = vadd.f32 %v23479_v22, %v18933_v28  ;;  %v23550_v28 = vld [vmem:[%s36868_s5 + $0x5b0] sm:$0xff] }
 0xd67   : > { %v36061_v11 = vadd.f32 %v18970_v0, %v35235_v13  ;;  %v29293_v0 = vpack.c.bf16 %v23549_v34, %v23548_v46  ;;  %v23596_v46 = vld [vmem:[%s36868_s5 + $0x660] sm:$0xff]  ;;  %v23597_v34 = vld [vmem:[%s36868_s5 + $0x668] sm:$0xff] }
 0xd68   : > { %v36064_v8 = vadd.f32 %v18969_v61, %v35228_v53  ;;  %v28228_v47 = vpop.f32.mrb[62].mxu1  ;;  %v36074_v13 = vld [vmem:[#allocation4 + $0x24] sm:$0xff]  ;;  %v23551_v61 = vld [vmem:[%s36868_s5 + $0x5b8] sm:$0xff] }
 0xd69   : > { %18986 = vst.msk [vmem:[#allocation4 + $0x54] sm:$0xff] %vm378_vm6, %v36061_v11  ;;  %v18972_v7 = vadd.f32 %v28228_v47, %v23479_v22  ;;  %v18943_v6 = vpop.f32.mrb[63].mxu1  ;;  %v36068_v17 = vld [vmem:[#allocation4 + $0x1c] sm:$0xff]  ;;  %v36177_v38 = vld [vmem:[#allocation4 + $0x28] sm:$0xff]  ;;  %v29297_v47 = vpack.c.bf16 %v23551_v61, %v23550_v28 }
 0xd6a   : > { %18985 = vst.msk [vmem:[#allocation4 + $0x4c] sm:$0xff] %vm378_vm6, %v36064_v8  ;;  %v18971_v9 = vadd.f32 %v23479_v22, %v18943_v6  ;;  %28248 = vmatprep.mubr.msk.f32.mxu1 %vm378_vm6, %v36068_v17  ;;  %v18991_v43 = vld [vmem:[#allocation4 + $0x18] sm:$0xff]  ;;  %v36125_v33 = vld [vmem:[#allocation4 + $0x20] sm:$0xff]  ;;  %v23561_v6 = vld [vmem:[%s36868_s5 + $0x5c8] sm:$0xff] }
 0xd6b   : > { %v36077_v53 = vadd.f32 %v18972_v7, %v35422_v1  ;;  %28249 = vmatmul.mubr.msk.f32.gmra.mrb[66].mxu1 %vm378_vm6, %v36074_v13  ;;  %v23560_v7 = vld [vmem:[%s36868_s5 + $0x5c0] sm:$0xff]  ;;  %v23599_v28 = vld [vmem:[%s36868_s5 + $0x678] sm:$0xff] }
 0xd6c   : > { %v36082_v49 = vadd.f32 %v18971_v9, %v35418_v24  ;;  %v36092_v18 = vld [vmem:[#allocation4 + $0x3c] sm:$0xff]  ;;  %v29301_v15 = vpack.c.bf16 %v23561_v6, %v23560_v7  ;;  %v23609_v7 = vld [vmem:[%s36868_s5 + $0x688] sm:$0xff] }
 0xd6d   : > { %18988 = vst.msk [vmem:[#allocation4 + $0x6c] sm:$0xff] %vm378_vm6, %v36077_v53  ;;  %v36086_v23 = vld [vmem:[#allocation4 + $0x34] sm:$0xff]  ;;  %v36098_v24 = vld [vmem:[#allocation4] sm:$0xff] }
 0xd6e   : > { %18987 = vst.msk [vmem:[#allocation4 + $0x64] sm:$0xff] %vm378_vm6, %v36082_v49  ;;  %28251 = vmatprep.mubr.msk.f32.mxu1 %vm378_vm6, %v36086_v23  ;;  %v36135_v52 = vld [vmem:[#allocation4 + $0x30] sm:$0xff]  ;;  %v36139_v5 = vld [vmem:[#allocation4 + $0x38] sm:$0xff]  ;;  %v36189_v22 = vld [vmem:[#allocation4 + $0x40] sm:$0xff] }
 0xd6f   : > { %28252 = vmatmul.mubr.msk.f32.gmra.mrb[68].mxu1 %vm378_vm6, %v36092_v18  ;;  %v36362_v61 = vld [vmem:[#allocation4 + $0x78] sm:$0xff]  ;;  %v36374_v6 = vld [vmem:[#allocation4 + $0x80] sm:$0xff] }
 0xd70   : > { %v36102_v31 = vld [vmem:[#allocation4 + $0x54] sm:$0xff] }
 0xd71   : > { %v36096_v1 = vld [vmem:[#allocation4 + $0x4c] sm:$0xff]  ;;  %v36201_v50 = vld [vmem:[#allocation4 + $0x58] sm:$0xff] }
 0xd72   : > { %28254 = vmatprep.mubr.msk.f32.mxu1 %vm378_vm6, %v36096_v1  ;;  %v36149_v26 = vld [vmem:[#allocation4 + $0x48] sm:$0xff]  ;;  %v36153_v10 = vld [vmem:[#allocation4 + $0x50] sm:$0xff] }
 0xd73   : > { %28255 = vmatmul.mubr.msk.f32.gmra.mrb[70].mxu1 %vm378_vm6, %v36102_v31 }
 0xd74   : > { %28273 = vmatprep.mubr.msk.f32.mxu1 %vm378_vm6, %v36098_v24  ;;  %v36288_v60 = vld [vmem:[#allocation4 + $0x6c] sm:$0xff] }
 0xd75   : > { %v36240_v9 = vld [vmem:[#allocation4 + $0x60] sm:$0xff]  ;;  %v36244_v20 = vld [vmem:[#allocation4 + $0x68] sm:$0xff] }
 0xd76   : > { %v36284_v55 = vld [vmem:[#allocation4 + $0x64] sm:$0xff] }
 0xd77   : > { %28274 = vmatmul.mubr.msk.f32.vlgmr.msra.gmra.mrb[64].mxu1 %vm378_vm6, %v36114_v41 }
 0xd78   : > { %29256 = vmatpush3.bf16.msra.mxu1 %v29253_v58  ;;  %28276 = vmatprep.mubr.msk.f32.mxu1 %vm378_vm6, %v18991_v43  ;;  %v29281_v58 = vpack.c.bf16 %v23535_v14, %v23534_v19  ;;  %v23583_v14 = vld [vmem:[%s36868_s5 + $0x638] sm:$0xff] }
 0xd79   : > { %29258 = vmatprep.subr.bf16.mxu1 %v29257_v39 }
 0xd7b   : > { %28277 = vmatmul.mubr.msk.f32.gmra.mrb[66].mxu1 %vm378_vm6, %v36125_v33 }
 0xd7c   : > { %29260 = vmatpush3.bf16.msra.mxu1 %v29257_v39  ;;  %28279 = vmatprep.mubr.msk.f32.mxu1 %vm378_vm6, %v36135_v52  ;;  %v23562_v39 = vld [vmem:[%s36868_s5 + $0x5d0] sm:$0xff] }
 0xd7d   : > { %29262 = vmatprep.subr.bf16.mxu1 %v29261_v30  ;;  %v29305_v51 = vpack.c.bf16 %v23563_v42, %v23562_v39  ;;  %v23611_v39 = vld [vmem:[%s36868_s5 + $0x698] sm:$0xff] }
 0xd7f   : > { %28280 = vmatmul.mubr.msk.f32.gmra.mrb[68].mxu1 %vm378_vm6, %v36139_v5 }
 0xd80   : > { %29264 = vmatpush3.bf16.msra.mxu1 %v29261_v30  ;;  %28282 = vmatprep.mubr.msk.f32.mxu1 %vm378_vm6, %v36149_v26  ;;  %v23565_v30 = vld [vmem:[%s36868_s5 + $0x5e8] sm:$0xff] }
 0xd81   : > { %29266 = vmatprep.subr.bf16.mxu1 %v29265_v48 }
 0xd83   : > { %28283 = vmatmul.mubr.msk.f32.gmra.mrb[70].mxu1 %vm378_vm6, %v36153_v10 }
 0xd84   : > { %29268 = vmatpush3.bf16.msra.mxu1 %v29265_v48  ;;  %28301 = vmatprep.mubr.msk.f32.mxu1 %vm378_vm6, %v36114_v41  ;;  %v23576_v48 = vld [vmem:[%s36868_s5 + $0x600] sm:$0xff] }
 0xd85   : > { %29270 = vmatprep.subr.bf16.mxu1 %v29269_v4 }
 0xd87   : > { %28302 = vmatmul.mubr.msk.f32.vlgmr.msra.gmra.mrb[64].mxu1 %vm378_vm6, %v36165_v29 }
 0xd88   : > { %29272 = vmatpush3.bf16.msra.mxu1 %v29269_v4  ;;  %28304 = vmatprep.mubr.msk.f32.mxu1 %vm378_vm6, %v36125_v33  ;;  %v29317_v4 = vpack.c.bf16 %v23577_v44, %v23576_v48  ;;  %v23635_v48 = vld [vmem:[%s36868_s5 + $0x710] sm:$0xff]  ;;  %v23636_v44 = vld [vmem:[%s36868_s5 + $0x718] sm:$0xff] }
 0xd89   : > { %29274 = vmatprep.subr.bf16.mxu1 %v29273_v36 }
 0xd8b   : > { %28305 = vmatmul.mubr.msk.f32.gmra.mrb[66].mxu1 %vm378_vm6, %v36177_v38 }
 0xd8c   : > { %29276 = vmatpush3.bf16.msra.mxu1 %v29273_v36  ;;  %28307 = vmatprep.mubr.msk.f32.mxu1 %vm378_vm6, %v36139_v5  ;;  %v23579_v36 = vld [vmem:[%s36868_s5 + $0x618] sm:$0xff] }
 0xd8d   : > { %29278 = vmatprep.subr.bf16.mxu1 %v29277_v2  ;;  %v29321_v32 = vpack.c.bf16 %v23579_v36, %v23578_v40  ;;  %v23626_v40 = vld [vmem:[%s36868_s5 + $0x6c8] sm:$0xff] }
 0xd8f   : > { %28308 = vmatmul.mubr.msk.f32.gmra.mrb[68].mxu1 %vm378_vm6, %v36189_v22 }
 0xd90   : > { %29280 = vmatpush3.bf16.msra.mxu1 %v29277_v2  ;;  %28310 = vmatprep.mubr.msk.f32.mxu1 %vm378_vm6, %v36153_v10  ;;  %v23581_v2 = vld [vmem:[%s36868_s5 + $0x628] sm:$0xff] }
 0xd91   : > { %29282 = vmatprep.subr.bf16.mxu1 %v29281_v58  ;;  %v29325_v19 = vpack.c.bf16 %v23581_v2, %v23580_v37  ;;  %v23628_v37 = vld [vmem:[%s36868_s5 + $0x6d8] sm:$0xff]  ;;  %v23629_v2 = vld [vmem:[%s36868_s5 + $0x6e0] sm:$0xff] }
 0xd93   : > { %28311 = vmatmul.mubr.msk.f32.gmra.mrb[70].mxu1 %vm378_vm6, %v36201_v50 }
 0xd94   : > { %29284 = vmatpush3.bf16.msra.mxu1 %v29281_v58  ;;  %28329 = vmatprep.mubr.msk.f32.mxu1 %vm378_vm6, %v18991_v43  ;;  %v23564_v43 = vld [vmem:[%s36868_s5 + $0x5e0] sm:$0xff] }
 0xd95   : > { %29286 = vmatprep.subr.bf16.mxu1 %v29285_v54  ;;  %v29309_v35 = vpack.c.bf16 %v23565_v30, %v23564_v43  ;;  %v23592_v58 = vld [vmem:[%s36868_s5 + $0x640] sm:$0xff]  ;;  %v23613_v43 = vld [vmem:[%s36868_s5 + $0x6a8] sm:$0xff] }
 0xd96   : > { %v29333_v63 = vpack.c.bf16 %v23593_v16, %v23592_v58  ;;  %v23657_v16 = vld [vmem:[%s36868_s5 + $0x740] sm:$0xff] }
 0xd97   : > { %28330 = vmatmul.mubr.msk.f32.vlgmr.msra.gmra.mrb[64].mxu1 %vm378_vm6, %v36125_v33 }
 0xd98   : > { %29288 = vmatpush3.bf16.msra.mxu1 %v29285_v54  ;;  %28332 = vmatprep.mubr.msk.f32.mxu1 %vm378_vm6, %v36135_v52  ;;  %v36330_v54 = vld [vmem:[#allocation4 + $0x70] sm:$0xff] }
 0xd99   : > { %29290 = vmatprep.subr.bf16.mxu1 %v29289_v27 }
 0xd9b   : > { %28333 = vmatmul.mubr.msk.f32.gmra.mrb[66].mxu1 %vm378_vm6, %v36139_v5 }
 0xd9c   : > { %29292 = vmatpush3.bf16.msra.mxu1 %v29289_v27  ;;  %28335 = vmatprep.mubr.msk.f32.mxu1 %vm378_vm6, %v36149_v26  ;;  %v29337_v27 = vpack.c.bf16 %v23595_v56, %v23594_v59  ;;  %v23624_v59 = vld [vmem:[%s36869_s6 + $0x2] ss:$0 sm:$0xff] }
 0xd9d   : > { %29294 = vmatprep.subr.bf16.mxu1 %v29293_v0 }
 0xd9f   : > { %28336 = vmatmul.mubr.msk.f32.gmra.mrb[68].mxu1 %vm378_vm6, %v36153_v10 }
 0xda0   : > { %29296 = vmatpush3.bf16.msra.mxu1 %v29293_v0  ;;  %28338 = vmatprep.mubr.msk.f32.mxu1 %vm378_vm6, %v36240_v9  ;;  %v29341_v0 = vpack.c.bf16 %v23597_v34, %v23596_v46 }
 0xda1   : > { %29298 = vmatprep.subr.bf16.mxu1 %v29297_v47 }
 0xda3   : > { %28339 = vmatmul.mubr.msk.f32.gmra.mrb[70].mxu1 %vm378_vm6, %v36244_v20 }
 0xda4   : > { %29300 = vmatpush3.bf16.msra.mxu1 %v29297_v47  ;;  %28357 = vmatprep.mubr.msk.f32.mxu1 %vm378_vm6, %v36068_v17  ;;  %v23566_v17 = vld [vmem:[%s36868_s5 + $0x5f0] sm:$0xff]  ;;  %v23608_v47 = vld [vmem:[%s36868_s5 + $0x680] sm:$0xff] }
 0xda5   : > { %29302 = vmatprep.subr.bf16.mxu1 %v29301_v15 }
 0xda7   : > { %28358 = vmatmul.mubr.msk.f32.vlgmr.msra.gmra.mrb[64].mxu1 %vm378_vm6, %v36074_v13  ;;  %v29313_v13 = vpack.c.bf16 %v23567_v57, %v23566_v17  ;;  %v23633_v17 = vld [vmem:[%s36868_s5 + $0x700] sm:$0xff]  ;;  %v23634_v57 = vld [vmem:[%s36868_s5 + $0x708] sm:$0xff] }
 0xda8   : > { %29304 = vmatpush3.bf16.msra.mxu1 %v29301_v15  ;;  %28360 = vmatprep.mubr.msk.f32.mxu1 %vm378_vm6, %v36086_v23  ;;  %v23610_v15 = vld [vmem:[%s36868_s5 + $0x690] sm:$0xff] }
 0xda9   : > { %29306 = vmatprep.subr.bf16.mxu1 %v29305_v51  ;;  %v29353_v42 = vpack.c.bf16 %v23611_v39, %v23610_v15 }
 0xdab   : > { %28361 = vmatmul.mubr.msk.f32.gmra.mrb[66].mxu1 %vm378_vm6, %v36092_v18 }
 0xdac   : > { %29308 = vmatpush3.bf16.msra.mxu1 %v29305_v51  ;;  %28363 = vmatprep.mubr.msk.f32.mxu1 %vm378_vm6, %v36096_v1  ;;  %v23612_v51 = vld [vmem:[%s36868_s5 + $0x6a0] sm:$0xff] }
 0xdad   : > { %29310 = vmatprep.subr.bf16.mxu1 %v29309_v35  ;;  %v29357_v30 = vpack.c.bf16 %v23613_v43, %v23612_v51 }
 0xdaf   : > { %28364 = vmatmul.mubr.msk.f32.gmra.mrb[68].mxu1 %vm378_vm6, %v36102_v31 }
 0xdb0   : > { %29312 = vmatpush3.bf16.msra.mxu1 %v29309_v35  ;;  %28366 = vmatprep.mubr.msk.f32.mxu1 %vm378_vm6, %v36284_v55  ;;  %v23615_v35 = vld [vmem:[%s36868_s5 + $0x6b8] sm:$0xff] }
 0xdb1   : > { %29314 = vmatprep.subr.bf16.mxu1 %v29313_v13 }
 0xdb3   : > { %28367 = vmatmul.mubr.msk.f32.gmra.mrb[70].mxu1 %vm378_vm6, %v36288_v60 }
 0xdb4   : > { %29316 = vmatpush3.bf16.msra.mxu1 %v29313_v13  ;;  %28385 = vmatprep.mubr.msk.f32.mxu1 %vm378_vm6, %v36125_v33  ;;  %v23582_v33 = vld [vmem:[%s36868_s5 + $0x630] sm:$0xff]  ;;  %v29365_v13 = vpack.c.bf16 %v23634_v57, %v23633_v17 }
 0xdb5   : > { %29318 = vmatprep.subr.bf16.mxu1 %v29317_v4 }
 0xdb7   : > { %28386 = vmatmul.mubr.msk.f32.vlgmr.msra.gmra.mrb[64].mxu1 %vm378_vm6, %v36177_v38  ;;  %v29329_v38 = vpack.c.bf16 %v23583_v14, %v23582_v33  ;;  %v23630_v33 = vld [vmem:[%s36868_s5 + $0x6e8] sm:$0xff] }
 0xdb8   : > { %29320 = vmatpush3.bf16.msra.mxu1 %v29317_v4  ;;  %28388 = vmatprep.mubr.msk.f32.mxu1 %vm378_vm6, %v36139_v5  ;;  %v23640_v4 = vld [vmem:[%s36868_s5 + $0x738] sm:$0xff]  ;;  %v29389_v14 = vpack.c.bf16 %v23630_v33, %v23629_v2 }
 0xdb9   : > { %29322 = vmatprep.subr.bf16.mxu1 %v29321_v32 }
 0xdbb   : > { %28389 = vmatmul.mubr.msk.f32.gmra.mrb[66].mxu1 %vm378_vm6, %v36189_v22 }
 0xdbc   : > { %29324 = vmatpush3.bf16.msra.mxu1 %v29321_v32  ;;  %28391 = vmatprep.mubr.msk.f32.mxu1 %vm378_vm6, %v36153_v10  ;;  %v23627_v32 = vld [vmem:[%s36868_s5 + $0x6d0] sm:$0xff] }
 0xdbd   : > { %29326 = vmatprep.subr.bf16.mxu1 %v29325_v19 }
 0xdbf   : > { %28392 = vmatmul.mubr.msk.f32.gmra.mrb[68].mxu1 %vm378_vm6, %v36201_v50 }
 0xdc0   : > { %29328 = vmatpush3.bf16.msra.mxu1 %v29325_v19  ;;  %28394 = vmatprep.mubr.msk.f32.mxu1 %vm378_vm6, %v36244_v20  ;;  %v29385_v19 = vpack.c.bf16 %v23628_v37, %v23627_v32 }
 0xdc1   : > { %29330 = vmatprep.subr.bf16.mxu1 %v29329_v38 }
 0xdc3   : > { %28395 = vmatmul.mubr.msk.f32.gmra.mrb[70].mxu1 %vm378_vm6, %v36330_v54 }
 0xdc4   : > { %29332 = vmatpush3.bf16.msra.mxu1 %v29329_v38  ;;  %28413 = vmatprep.mubr.msk.f32.mxu1 %vm378_vm6, %v36135_v52  ;;  %v23598_v52 = vld [vmem:[%s36868_s5 + $0x670] sm:$0xff]  ;;  %v23632_v38 = vld [vmem:[%s36868_s5 + $0x6f8] sm:$0xff] }
 0xdc5   : > { %29334 = vmatprep.subr.bf16.mxu1 %v29333_v63 }
 0xdc7   : > { %28414 = vmatmul.mubr.msk.f32.vlgmr.msra.gmra.mrb[64].mxu1 %vm378_vm6, %v36139_v5 }
 0xdc8   : > { %29336 = vmatpush3.bf16.msra.mxu1 %v29333_v63  ;;  %28416 = vmatprep.mubr.msk.f32.mxu1 %vm378_vm6, %v36149_v26  ;;  %v29345_v26 = vpack.c.bf16 %v23599_v28, %v23598_v52  ;;  %v23658_v63 = vld [vmem:[%s36868_s5 + $0x748] sm:$0xff] }
 0xdc9   : > { %29338 = vmatprep.subr.bf16.mxu1 %v29337_v27 }
 0xdcb   : > { %28417 = vmatmul.mubr.msk.f32.gmra.mrb[66].mxu1 %vm378_vm6, %v36153_v10 }
 0xdcc   : > { %29340 = vmatpush3.bf16.msra.mxu1 %v29337_v27  ;;  %28419 = vmatprep.mubr.msk.f32.mxu1 %vm378_vm6, %v36240_v9  ;;  %v29349_v9 = vpack.c.bf16 %v23609_v7, %v23608_v47 }
 0xdcd   : > { %29342 = vmatprep.subr.bf16.mxu1 %v29341_v0 }
 0xdcf   : > { %28420 = vmatmul.mubr.msk.f32.gmra.mrb[68].mxu1 %vm378_vm6, %v36244_v20 }
 0xdd0   : > { %29344 = vmatpush3.bf16.msra.mxu1 %v29341_v0  ;;  %28422 = vmatprep.mubr.msk.f32.mxu1 %vm378_vm6, %v36362_v61 }
 0xdd1   : > { %29346 = vmatprep.subr.bf16.mxu1 %v29345_v26 }
 0xdd3   : > { %28423 = vmatmul.mubr.msk.f32.gmra.mrb[70].mxu1 %vm378_vm6, %v36374_v6 }
 0xdd4   : > { %29348 = vmatpush3.bf16.msra.mxu1 %v29345_v26  ;;  %28441 = vmatprep.mubr.msk.f32.mxu1 %vm378_vm6, %v36086_v23  ;;  %v23614_v23 = vld [vmem:[%s36868_s5 + $0x6b0] sm:$0xff] }
 0xdd5   : > { %29350 = vmatprep.subr.bf16.mxu1 %v29349_v9 }
 0xdd7   : > { %28442 = vmatmul.mubr.msk.f32.vlgmr.msra.gmra.mrb[64].mxu1 %vm378_vm6, %v36092_v18  ;;  %v36406_v18 = vld [vmem:[#allocation4 + $0x7c] sm:$0xff] }
 0xdd8   : > { %29352 = vmatpush3.bf16.msra.mxu1 %v29349_v9  ;;  %28444 = vmatprep.mubr.msk.f32.mxu1 %vm378_vm6, %v36096_v1  ;;  %v29361_v1 = vpack.c.bf16 %v23615_v35, %v23614_v23 }
 0xdd9   : > { %29354 = vmatprep.subr.bf16.mxu1 %v29353_v42 }
 0xddb   : > { %28445 = vmatmul.mubr.msk.f32.gmra.mrb[66].mxu1 %vm378_vm6, %v36102_v31  ;;  %v36418_v31 = vld [vmem:[#allocation4 + $0x84] sm:$0xff] }
 0xddc   : > { %29356 = vmatpush3.bf16.msra.mxu1 %v29353_v42  ;;  %28447 = vmatprep.mubr.msk.f32.mxu1 %vm378_vm6, %v36284_v55  ;;  %v29369_v55 = vpack.c.bf16 %v23636_v44, %v23635_v48 }
 0xddd   : > { %29358 = vmatprep.subr.bf16.mxu1 %v29357_v30 }
 0xddf   : > { %28448 = vmatmul.mubr.msk.f32.gmra.mrb[68].mxu1 %vm378_vm6, %v36288_v60  ;;  %v23625_v60 = vld [vmem:[%s36868_s5 + $0x6c0] sm:$0xff] }
 0xde0   : > { %29360 = vmatpush3.bf16.msra.mxu1 %v29357_v30  ;;  %28450 = vmatprep.mubr.msk.f32.mxu1 %vm378_vm6, %v36406_v18  ;;  %v29381_v36 = vpack.c.bf16 %v23626_v40, %v23625_v60  ;;  %v23661_v40 = vld [vmem:[%s36868_s5 + $0x760] sm:$0xff] }
 0xde1   : > { %29362 = vmatprep.subr.bf16.mxu1 %v29361_v1 }
 0xde3   : > { %28451 = vmatmul.mubr.msk.f32.gmra.mrb[70].mxu1 %vm378_vm6, %v36418_v31 }
 0xde4   : > { %29364 = vmatpush3.bf16.msra.mxu1 %v29361_v1  ;;  %28469 = vmatprep.mubr.msk.f32.mxu1 %vm378_vm6, %v36139_v5  ;;  %v36442_v5 = vld [vmem:[#allocation4 + $0x88] sm:$0xff] }
 0xde5   : > { %29366 = vmatprep.subr.bf16.mxu1 %v29365_v13 }
 0xde7   : > { %28470 = vmatmul.mubr.msk.f32.vlgmr.msra.gmra.mrb[64].mxu1 %vm378_vm6, %v36189_v22  ;;  %v23638_v22 = vld [vmem:[%s36868_s5 + $0x728] sm:$0xff] }
 0xde8   : > { %28472 = vmatprep.mubr.msk.f32.mxu1 %vm378_vm6, %v36153_v10  ;;  %29368 = vmatpush3.bf16.msra.mxu1 %v29365_v13  ;;  %v23637_v10 = vld [vmem:[%s36868_s5 + $0x720] sm:$0xff] }
 0xde9   : > { %29370 = vmatprep.subr.bf16.mxu1 %v29369_v55 }
 0xdeb   : > { %28473 = vmatmul.mubr.msk.f32.gmra.mrb[66].mxu1 %vm378_vm6, %v36201_v50  ;;  %v29373_v50 = vpack.c.bf16 %v23638_v22, %v23637_v10 }
 0xdec   : > { %28475 = vmatprep.mubr.msk.f32.mxu1 %vm378_vm6, %v36244_v20  ;;  %29372 = vmatpush3.bf16.msra.mxu1 %v29369_v55  ;;  %v23639_v20 = vld [vmem:[%s36868_s5 + $0x730] sm:$0xff] }
 0xded   : > { %29374 = vmatprep.subr.bf16.mxu1 %v29373_v50 }
 0xdef   : > { %28476 = vmatmul.mubr.msk.f32.gmra.mrb[68].mxu1 %vm378_vm6, %v36330_v54  ;;  %v29397_v54 = vpack.c.bf16 %v23658_v63, %v23657_v16 }
 0xdf0   : > { %28478 = vmatprep.mubr.msk.f32.mxu1 %vm378_vm6, %v36374_v6  ;;  %29376 = vmatpush3.bf16.msra.mxu1 %v29373_v50 }
 0xdf3   : > { %28479 = vmatmul.mubr.msk.f32.gmra.mrb[70].mxu1 %vm378_vm6, %v36442_v5 }
 0xdf4   : > { %28497 = vmatprep.mubr.msk.f32.mxu1 %vm378_vm6, %v35999_v12  ;;  %v29377_v12 = vpack.c.bf16 %v23640_v4, %v23639_v20  ;;  %v23659_v4 = vld [vmem:[%s36868_s5 + $0x750] sm:$0xff] }
 0xdf6   : > { %29378 = vmatprep.subr.bf16.mxu1 %v29377_v12 }
 0xdf7   : > { %29380 = vmatpush3.bf16.msra.mxu1 %v29377_v12  ;;  %v23660_v12 = vld [vmem:[%s36868_s5 + $0x758] sm:$0xff] }
 0xdf8   : > { %29382 = vmatprep.subr.bf16.mxu1 %v29381_v36  ;;  %v29401_v60 = vpack.c.bf16 %v23660_v12, %v23659_v4 }
 0xdfa   : > { %28498 = vmatmul.mubr.msk.f32.vlgmr.msra.gmra.mrb[72].mxu1 %vm378_vm6, %v36009_v45  ;;  %v23631_v45 = vld [vmem:[%s36868_s5 + $0x6f0] sm:$0xff] }
 0xdfb   : > { %29384 = vmatpush3.bf16.msra.mxu1 %v29381_v36  ;;  %v29393_v58 = vpack.c.bf16 %v23632_v38, %v23631_v45  ;;  %v23662_v36 = vld [vmem:[%s36868_s5 + $0x768] sm:$0xff]  ;;  %v23673_v38 = vld [vmem:[%s36868_s5 + $0x780] sm:$0xff] }
 0xdfc   : > { %29386 = vmatprep.subr.bf16.mxu1 %v29385_v19  ;;  %v29405_v37 = vpack.c.bf16 %v23662_v36, %v23661_v40  ;;  %v23708_v40 = vld [vmem:[%s36868_s5 + $0x818] sm:$0xff] }
 0xdff   : > { %29388 = vmatpush3.bf16.msra.mxu1 %v29385_v19  ;;  %v23664_v19 = vld [vmem:[%s36868_s5 + $0x778] sm:$0xff] }
 0xe00   : > { %29390 = vmatprep.subr.bf16.mxu1 %v29389_v14 }
 0xe03   : > { %29392 = vmatpush3.bf16.msra.mxu1 %v29389_v14 }
 0xe04   : > { %29394 = vmatprep.subr.bf16.mxu1 %v29393_v58 }
 0xe07   : > { %29396 = vmatpush3.bf16.msra.mxu1 %v29393_v58  ;;  %v23674_v58 = vld [vmem:[%s36868_s5 + $0x788] sm:$0xff] }
 0xe08   : > { %29398 = vmatprep.subr.bf16.mxu1 %v29397_v54  ;;  %v29413_v63 = vpack.c.bf16 %v23674_v58, %v23673_v38  ;;  %v23722_v38 = vld [vmem:[%s36868_s5 + $0x848] sm:$0xff] }
 0xeba   : > { %v28471_v56 = vpop.f32.mrb[64].mxu1 }
 0xebb   : > { %v20365_v27 = vadd.f32 %v28471_v56, %v23624_v59  ;;  %v20312_v46 = vpop.f32.mrb[65].mxu1  ;;  %v23676_v56 = vld [vmem:[%s36868_s5 + $0x798] sm:$0xff] }
 0xebc   : > { %v20364_v34 = vadd.f32 %v23624_v59, %v20312_v46  ;;  %v23677_v46 = vld [vmem:[%s36868_s5 + $0x7a0] sm:$0xff] }
 0xebd   : > { %v20373_v0 = vmax.f32 %v20365_v27, 0.0 }
 0xebe   : > { %v20372_v52 = vmax.f32 %v20364_v34, 0.0  ;;  %v28474_v28 = vpop.f32.mrb[66].mxu1  ;;  %v23678_v34 = vld [vmem:[%s36868_s5 + $0x7a8] sm:$0xff] }
 0xebf   : > { %20381 = vst.msk [vmem:[#allocation4 + $0x24] sm:$0xff] %vm378_vm6, %v20373_v0  ;;  %v20367_v26 = vadd.f32 %v28474_v28, %v23624_v59  ;;  %v20322_v47 = vpop.f32.mrb[67].mxu1  ;;  %v29421_v0 = vpack.c.bf16 %v23678_v34, %v23677_v46  ;;  %v23680_v28 = vld [vmem:[%s36868_s5 + $0x7b8] sm:$0xff]  ;;  %v23725_v34 = vld [vmem:[%s36868_s5 + $0x860] sm:$0xff] }
 0xec0   : > { %20380 = vst.msk [vmem:[#allocation4 + $0x1c] sm:$0xff] %vm378_vm6, %v20372_v52  ;;  %v20366_v7 = vadd.f32 %v23624_v59, %v20322_v47  ;;  %v23679_v52 = vld [vmem:[%s36868_s5 + $0x7b0] sm:$0xff]  ;;  %v23689_v47 = vld [vmem:[%s36868_s5 + $0x7c0] sm:$0xff] }
 0xec1   : > { %v20375_v9 = vmax.f32 %v20367_v26, 0.0 }
 0xec2   : > { %v20374_v15 = vmax.f32 %v20366_v7, 0.0  ;;  %v28477_v39 = vpop.f32.mrb[68].mxu1  ;;  %v23690_v7 = vld [vmem:[%s36868_s5 + $0x7c8] sm:$0xff] }
 0xec3   : > { %20383 = vst.msk [vmem:[#allocation4 + $0x3c] sm:$0xff] %vm378_vm6, %v20375_v9  ;;  %v20369_v42 = vadd.f32 %v28477_v39, %v23624_v59  ;;  %v20332_v51 = vpop.f32.mrb[69].mxu1  ;;  %v29429_v9 = vpack.c.bf16 %v23690_v7, %v23689_v47  ;;  %v23691_v39 = vld [vmem:[%s36868_s5 + $0x7d0] sm:$0xff]  ;;  %v23738_v47 = vld [vmem:[%s36868_s5 + $0x888] sm:$0xff] }
 0xec4   : > { %20382 = vst.msk [vmem:[#allocation4 + $0x34] sm:$0xff] %vm378_vm6, %v20374_v15  ;;  %v20368_v43 = vadd.f32 %v23624_v59, %v20332_v51 }
 0xec5   : > { %v20377_v30 = vmax.f32 %v20369_v42, 0.0  ;;  %v23692_v42 = vld [vmem:[%s36868_s5 + $0x7d8] sm:$0xff] }
 0xec6   : > { %v20376_v23 = vmax.f32 %v20368_v43, 0.0  ;;  %v28480_v35 = vpop.f32.mrb[70].mxu1  ;;  %v36505_v48 = vld [vmem:[#allocation4 + $0x24] sm:$0xff]  ;;  %v29433_v51 = vpack.c.bf16 %v23692_v42, %v23691_v39  ;;  %v23739_v39 = vld [vmem:[%s36868_s5 + $0x890] sm:$0xff]  ;;  %v23740_v42 = vld [vmem:[%s36868_s5 + $0x898] sm:$0xff] }
 0xec7   : > { %20385 = vst.msk [vmem:[#allocation4 + $0x54] sm:$0xff] %vm378_vm6, %v20377_v30  ;;  %v20371_v1 = vadd.f32 %v28480_v35, %v23624_v59  ;;  %v20342_v17 = vpop.f32.mrb[71].mxu1  ;;  %v36500_v57 = vld [vmem:[#allocation4 + $0x1c] sm:$0xff]  ;;  %v23694_v30 = vld [vmem:[%s36868_s5 + $0x7e8] sm:$0xff]  ;;  %v23695_v35 = vld [vmem:[%s36868_s5 + $0x7f0] sm:$0xff] }
 0xec8   : > { %20384 = vst.msk [vmem:[#allocation4 + $0x4c] sm:$0xff] %vm378_vm6, %v20376_v23  ;;  %v20370_v13 = vadd.f32 %v23624_v59, %v20342_v17  ;;  %28500 = vmatprep.mubr.msk.f32.mxu1 %vm378_vm6, %v36500_v57  ;;  %v20390_v32 = vld [vmem:[#allocation4 + $0x18] sm:$0xff]  ;;  %v36544_v2 = vld [vmem:[#allocation4 + $0x20] sm:$0xff]  ;;  %v23675_v59 = vld [vmem:[%s36868_s5 + $0x790] sm:$0xff] }
 0xec9   : > { %v20379_v44 = vmax.f32 %v20371_v1, 0.0  ;;  %28501 = vmatmul.mubr.msk.f32.gmra.mrb[74].mxu1 %vm378_vm6, %v36505_v48  ;;  %v29417_v27 = vpack.c.bf16 %v23676_v56, %v23675_v59  ;;  %v23693_v43 = vld [vmem:[%s36868_s5 + $0x7e0] sm:$0xff]  ;;  %v23696_v1 = vld [vmem:[%s36868_s5 + $0x7f8] sm:$0xff]  ;;  %v23723_v56 = vld [vmem:[%s36868_s5 + $0x850] sm:$0xff] }
 0xeca   : > { %v20378_v55 = vmax.f32 %v20370_v13, 0.0  ;;  %v36515_v22 = vld [vmem:[#allocation4 + $0x3c] sm:$0xff]  ;;  %v29437_v23 = vpack.c.bf16 %v23694_v30, %v23693_v43  ;;  %v29441_v17 = vpack.c.bf16 %v23696_v1, %v23695_v35  ;;  %v23742_v30 = vld [vmem:[%s36868_s5 + $0x8a8] sm:$0xff] }
 0xecb   : > { %20387 = vst.msk [vmem:[#allocation4 + $0x6c] sm:$0xff] %vm378_vm6, %v20379_v44  ;;  %v36510_v10 = vld [vmem:[#allocation4 + $0x34] sm:$0xff]  ;;  %v36606_v26 = vld [vmem:[#allocation4 + $0x40] sm:$0xff]  ;;  %v23706_v44 = vld [vmem:[%s36868_s5 + $0x808] sm:$0xff] }
 0xecc   : > { %20386 = vst.msk [vmem:[#allocation4 + $0x64] sm:$0xff] %vm378_vm6, %v20378_v55  ;;  %28503 = vmatprep.mubr.msk.f32.mxu1 %vm378_vm6, %v36510_v10  ;;  %v36554_v33 = vld [vmem:[#allocation4 + $0x30] sm:$0xff]  ;;  %v36558_v45 = vld [vmem:[#allocation4 + $0x38] sm:$0xff]  ;;  %v23705_v13 = vld [vmem:[%s36868_s5 + $0x800] sm:$0xff] }
 0xecd   : > { %28504 = vmatmul.mubr.msk.f32.gmra.mrb[76].mxu1 %vm378_vm6, %v36515_v22  ;;  %v29445_v4 = vpack.c.bf16 %v23706_v44, %v23705_v13  ;;  %v23741_v43 = vld [vmem:[%s36868_s5 + $0x8a0] sm:$0xff]  ;;  %v23744_v35 = vld [vmem:[%s36868_s5 + $0x8b8] sm:$0xff]  ;;  %v23755_v44 = vld [vmem:[%s36868_s5 + $0x8d0] sm:$0xff] }
 0xece   : > { %v36523_v20 = vld [vmem:[#allocation4 + $0x54] sm:$0xff] }
 0xecf   : > { %v36519_v50 = vld [vmem:[#allocation4 + $0x4c] sm:$0xff]  ;;  %v36618_v15 = vld [vmem:[#allocation4 + $0x58] sm:$0xff] }
 0xed0   : > { %28506 = vmatprep.mubr.msk.f32.mxu1 %vm378_vm6, %v36519_v50  ;;  %v36568_v16 = vld [vmem:[#allocation4 + $0x48] sm:$0xff] }
 0xed1   : > { %28507 = vmatmul.mubr.msk.f32.gmra.mrb[78].mxu1 %vm378_vm6, %v36523_v20 }
 0xed2   : > { %28525 = vmatprep.mubr.msk.f32.mxu1 %vm378_vm6, %v36098_v24  ;;  %v23663_v24 = vld [vmem:[%s36868_s5 + $0x770] sm:$0xff] }
 0xed3   : > { %v29409_v14 = vpack.c.bf16 %v23664_v19, %v23663_v24  ;;  %v36657_v55 = vld [vmem:[#allocation4 + $0x60] sm:$0xff]  ;;  %v36661_v12 = vld [vmem:[#allocation4 + $0x68] sm:$0xff]  ;;  %v23712_v19 = vld [vmem:[%s36868_s5 + $0x838] sm:$0xff] }
 0xed4   : > { %v36701_v58 = vld [vmem:[#allocation4 + $0x64] sm:$0xff]  ;;  %v36705_v59 = vld [vmem:[#allocation4 + $0x6c] sm:$0xff] }
 0xed5   : > { %28526 = vmatmul.mubr.msk.f32.vlgmr.msra.gmra.mrb[72].mxu1 %vm378_vm6, %v36114_v41 }
 0xed6   : > { %29400 = vmatpush3.bf16.msra.mxu1 %v29397_v54  ;;  %28528 = vmatprep.mubr.msk.f32.mxu1 %vm378_vm6, %v20390_v32  ;;  %v36572_v54 = vld [vmem:[#allocation4 + $0x50] sm:$0xff] }
 0xed7   : > { %29402 = vmatprep.subr.bf16.mxu1 %v29401_v60 }
 0xed9   : > { %28529 = vmatmul.mubr.msk.f32.gmra.mrb[74].mxu1 %vm378_vm6, %v36544_v2 }
 0xeda   : > { %29404 = vmatpush3.bf16.msra.mxu1 %v29401_v60  ;;  %28531 = vmatprep.mubr.msk.f32.mxu1 %vm378_vm6, %v36554_v33  ;;  %v23707_v60 = vld [vmem:[%s36868_s5 + $0x810] sm:$0xff] }
 0xedb   : > { %29406 = vmatprep.subr.bf16.mxu1 %v29405_v37  ;;  %v29449_v36 = vpack.c.bf16 %v23708_v40, %v23707_v60  ;;  %v23758_v60 = vld [vmem:[%s36868_s5 + $0x8e8] sm:$0xff] }
 0xedd   : > { %28532 = vmatmul.mubr.msk.f32.gmra.mrb[76].mxu1 %vm378_vm6, %v36558_v45 }
 0xede   : > { %29408 = vmatpush3.bf16.msra.mxu1 %v29405_v37  ;;  %28534 = vmatprep.mubr.msk.f32.mxu1 %vm378_vm6, %v36568_v16  ;;  %v23710_v37 = vld [vmem:[%s36868_s5 + $0x828] sm:$0xff] }
 0xedf   : > { %29410 = vmatprep.subr.bf16.mxu1 %v29409_v14 }
 0xee1   : > { %28535 = vmatmul.mubr.msk.f32.gmra.mrb[78].mxu1 %vm378_vm6, %v36572_v54 }
 0xee2   : > { %29412 = vmatpush3.bf16.msra.mxu1 %v29409_v14  ;;  %28553 = vmatprep.mubr.msk.f32.mxu1 %vm378_vm6, %v36114_v41  ;;  %v36594_v41 = vld [vmem:[#allocation4 + $0x28] sm:$0xff]  ;;  %v23721_v14 = vld [vmem:[%s36868_s5 + $0x840] sm:$0xff] }
 0xee3   : > { %29414 = vmatprep.subr.bf16.mxu1 %v29413_v63 }
 0xee5   : > { %28554 = vmatmul.mubr.msk.f32.vlgmr.msra.gmra.mrb[72].mxu1 %vm378_vm6, %v36165_v29  ;;  %v29425_v29 = vpack.c.bf16 %v23680_v28, %v23679_v52  ;;  %v23728_v28 = vld [vmem:[%s36868_s5 + $0x878] sm:$0xff] }
 0xee6   : > { %29416 = vmatpush3.bf16.msra.mxu1 %v29413_v63  ;;  %28556 = vmatprep.mubr.msk.f32.mxu1 %vm378_vm6, %v36544_v2  ;;  %v29461_v63 = vpack.c.bf16 %v23722_v38, %v23721_v14 }
 0xee7   : > { %29418 = vmatprep.subr.bf16.mxu1 %v29417_v27 }
 0xee9   : > { %28557 = vmatmul.mubr.msk.f32.gmra.mrb[74].mxu1 %vm378_vm6, %v36594_v41 }
 0xeea   : > { %29420 = vmatpush3.bf16.msra.mxu1 %v29417_v27  ;;  %28559 = vmatprep.mubr.msk.f32.mxu1 %vm378_vm6, %v36558_v45  ;;  %v23724_v27 = vld [vmem:[%s36868_s5 + $0x858] sm:$0xff] }
 0xeeb   : > { %29422 = vmatprep.subr.bf16.mxu1 %v29421_v0  ;;  %v29465_v46 = vpack.c.bf16 %v23724_v27, %v23723_v56 }
 0xeed   : > { %28560 = vmatmul.mubr.msk.f32.gmra.mrb[76].mxu1 %vm378_vm6, %v36606_v26 }
 0xeee   : > { %29424 = vmatpush3.bf16.msra.mxu1 %v29421_v0  ;;  %28562 = vmatprep.mubr.msk.f32.mxu1 %vm378_vm6, %v36572_v54  ;;  %v23726_v0 = vld [vmem:[%s36868_s5 + $0x868] sm:$0xff] }
 0xeef   : > { %29426 = vmatprep.subr.bf16.mxu1 %v29425_v29  ;;  %v29469_v52 = vpack.c.bf16 %v23726_v0, %v23725_v34 }
 0xef1   : > { %28563 = vmatmul.mubr.msk.f32.gmra.mrb[78].mxu1 %vm378_vm6, %v36618_v15 }
 0xef2   : > { %29428 = vmatpush3.bf16.msra.mxu1 %v29425_v29  ;;  %28581 = vmatprep.mubr.msk.f32.mxu1 %vm378_vm6, %v20390_v32  ;;  %v23709_v32 = vld [vmem:[%s36868_s5 + $0x820] sm:$0xff] }
 0xef3   : > { %29430 = vmatprep.subr.bf16.mxu1 %v29429_v9  ;;  %v29453_v24 = vpack.c.bf16 %v23710_v37, %v23709_v32  ;;  %v23737_v29 = vld [vmem:[%s36868_s5 + $0x880] sm:$0xff] }
 0xef4   : > { %v29477_v7 = vpack.c.bf16 %v23738_v47, %v23737_v29 }
 0xef5   : > { %28582 = vmatmul.mubr.msk.f32.vlgmr.msra.gmra.mrb[72].mxu1 %vm378_vm6, %v36544_v2 }
 0xef6   : > { %29432 = vmatpush3.bf16.msra.mxu1 %v29429_v9  ;;  %28584 = vmatprep.mubr.msk.f32.mxu1 %vm378_vm6, %v36554_v33  ;;  %v21149_v9 = vld [vmem:[#allocation4 + $0x70] sm:$0xff] }
 0xef7   : > { %29434 = vmatprep.subr.bf16.mxu1 %v29433_v51 }
 0xef9   : > { %28585 = vmatmul.mubr.msk.f32.gmra.mrb[74].mxu1 %vm378_vm6, %v36558_v45 }
 0xefa   : > { %29436 = vmatpush3.bf16.msra.mxu1 %v29433_v51  ;;  %28587 = vmatprep.mubr.msk.f32.mxu1 %vm378_vm6, %v36568_v16  ;;  %v29481_v51 = vpack.c.bf16 %v23740_v42, %v23739_v39 }
 0xefb   : > { %29438 = vmatprep.subr.bf16.mxu1 %v29437_v23 }
 0xefd   : > { %28588 = vmatmul.mubr.msk.f32.gmra.mrb[76].mxu1 %vm378_vm6, %v36572_v54 }
 0xefe   : > { %29440 = vmatpush3.bf16.msra.mxu1 %v29437_v23  ;;  %28590 = vmatprep.mubr.msk.f32.mxu1 %vm378_vm6, %v36657_v55  ;;  %v29485_v23 = vpack.c.bf16 %v23742_v30, %v23741_v43 }
 0xeff   : > { %29442 = vmatprep.subr.bf16.mxu1 %v29441_v17 }
 0xf01   : > { %28591 = vmatmul.mubr.msk.f32.gmra.mrb[78].mxu1 %vm378_vm6, %v36661_v12 }
 0xf02   : > { %29444 = vmatpush3.bf16.msra.mxu1 %v29441_v17  ;;  %28609 = vmatprep.mubr.msk.f32.mxu1 %vm378_vm6, %v36500_v57  ;;  %v23711_v57 = vld [vmem:[%s36868_s5 + $0x830] sm:$0xff]  ;;  %v23754_v17 = vld [vmem:[%s36868_s5 + $0x8c8] sm:$0xff] }
 0xf03   : > { %29446 = vmatprep.subr.bf16.mxu1 %v29445_v4 }
 0xf05   : > { %28610 = vmatmul.mubr.msk.f32.vlgmr.msra.gmra.mrb[72].mxu1 %vm378_vm6, %v36505_v48  ;;  %v29457_v48 = vpack.c.bf16 %v23712_v19, %v23711_v57 }
 0xf06   : > { %29448 = vmatpush3.bf16.msra.mxu1 %v29445_v4  ;;  %28612 = vmatprep.mubr.msk.f32.mxu1 %vm378_vm6, %v36510_v10 }
 0xf07   : > { %29450 = vmatprep.subr.bf16.mxu1 %v29449_v36 }
 0xf09   : > { %28613 = vmatmul.mubr.msk.f32.gmra.mrb[74].mxu1 %vm378_vm6, %v36515_v22 }
 0xf0a   : > { %29452 = vmatpush3.bf16.msra.mxu1 %v29449_v36  ;;  %28615 = vmatprep.mubr.msk.f32.mxu1 %vm378_vm6, %v36519_v50  ;;  %v23760_v36 = vld [vmem:[%s36868_s5 + $0x8f8] sm:$0xff] }
 0xf0b   : > { %29454 = vmatprep.subr.bf16.mxu1 %v29453_v24 }
 0xf0d   : > { %28616 = vmatmul.mubr.msk.f32.gmra.mrb[76].mxu1 %vm378_vm6, %v36523_v20 }
 0xf0e   : > { %29456 = vmatpush3.bf16.msra.mxu1 %v29453_v24  ;;  %28618 = vmatprep.mubr.msk.f32.mxu1 %vm378_vm6, %v36701_v58 }
 0xf0f   : > { %29458 = vmatprep.subr.bf16.mxu1 %v29457_v48 }
 0xf11   : > { %28619 = vmatmul.mubr.msk.f32.gmra.mrb[78].mxu1 %vm378_vm6, %v36705_v59 }
 0xf12   : > { %29460 = vmatpush3.bf16.msra.mxu1 %v29457_v48  ;;  %28637 = vmatprep.mubr.msk.f32.mxu1 %vm378_vm6, %v36544_v2  ;;  %v23727_v2 = vld [vmem:[%s36868_s5 + $0x870] sm:$0xff] }
 0xf13   : > { %29462 = vmatprep.subr.bf16.mxu1 %v29461_v63 }
 0xf15   : > { %28638 = vmatmul.mubr.msk.f32.vlgmr.msra.gmra.mrb[72].mxu1 %vm378_vm6, %v36594_v41  ;;  %v29473_v41 = vpack.c.bf16 %v23728_v28, %v23727_v2 }
 0xf16   : > { %29464 = vmatpush3.bf16.msra.mxu1 %v29461_v63  ;;  %28640 = vmatprep.mubr.msk.f32.mxu1 %vm378_vm6, %v36558_v45 }
 0xf17   : > { %29466 = vmatprep.subr.bf16.mxu1 %v29465_v46 }
 0xf19   : > { %28641 = vmatmul.mubr.msk.f32.gmra.mrb[74].mxu1 %vm378_vm6, %v36606_v26 }
 0xf1a   : > { %29468 = vmatpush3.bf16.msra.mxu1 %v29465_v46  ;;  %28643 = vmatprep.mubr.msk.f32.mxu1 %vm378_vm6, %v36572_v54 }
 0xf1b   : > { %29470 = vmatprep.subr.bf16.mxu1 %v29469_v52 }
 0xf1d   : > { %28644 = vmatmul.mubr.msk.f32.gmra.mrb[76].mxu1 %vm378_vm6, %v36618_v15 }
 0xf1e   : > { %29472 = vmatpush3.bf16.msra.mxu1 %v29469_v52  ;;  %28646 = vmatprep.mubr.msk.f32.mxu1 %vm378_vm6, %v36661_v12 }
 0xf1f   : > { %29474 = vmatprep.subr.bf16.mxu1 %v29473_v41 }
 0xf21   : > { %28647 = vmatmul.mubr.msk.f32.gmra.mrb[78].mxu1 %vm378_vm6, %v21149_v9 }
 0xf22   : > { %29476 = vmatpush3.bf16.msra.mxu1 %v29473_v41  ;;  %28665 = vmatprep.mubr.msk.f32.mxu1 %vm378_vm6, %v36554_v33  ;;  %v23743_v33 = vld [vmem:[%s36868_s5 + $0x8b0] sm:$0xff] }
 0xf23   : > { %29478 = vmatprep.subr.bf16.mxu1 %v29477_v7  ;;  %v29489_v1 = vpack.c.bf16 %v23744_v35, %v23743_v33 }
 0xf25   : > { %28666 = vmatmul.mubr.msk.f32.vlgmr.msra.gmra.mrb[72].mxu1 %vm378_vm6, %v36558_v45 }
 0xf26   : > { %29480 = vmatpush3.bf16.msra.mxu1 %v29477_v7  ;;  %28668 = vmatprep.mubr.msk.f32.mxu1 %vm378_vm6, %v36568_v16  ;;  %v23753_v16 = vld [vmem:[%s36868_s5 + $0x8c0] sm:$0xff] }
 0xf27   : > { %29482 = vmatprep.subr.bf16.mxu1 %v29481_v51  ;;  %v29493_v13 = vpack.c.bf16 %v23754_v17, %v23753_v16 }
 0xf29   : > { %28669 = vmatmul.mubr.msk.f32.gmra.mrb[74].mxu1 %vm378_vm6, %v36572_v54 }
 0xf2a   : > { %29484 = vmatpush3.bf16.msra.mxu1 %v29481_v51  ;;  %28671 = vmatprep.mubr.msk.f32.mxu1 %vm378_vm6, %v36657_v55  ;;  %v23756_v55 = vld [vmem:[%s36868_s5 + $0x8d8] sm:$0xff] }
 0xf2b   : > { %29486 = vmatprep.subr.bf16.mxu1 %v29485_v23  ;;  %v29497_v4 = vpack.c.bf16 %v23756_v55, %v23755_v44 }
 0xf2d   : > { %28672 = vmatmul.mubr.msk.f32.gmra.mrb[76].mxu1 %vm378_vm6, %v36661_v12 }
 0xf2e   : > { %29488 = vmatpush3.bf16.msra.mxu1 %v29485_v23  ;;  %28674 = vmatprep.mubr.msk.f32.mxu1 %vm378_vm6, %v36362_v61  ;;  %v23757_v61 = vld [vmem:[%s36868_s5 + $0x8e0] sm:$0xff] }
 0xf2f   : > { %29490 = vmatprep.subr.bf16.mxu1 %v29489_v1  ;;  %v29501_v40 = vpack.c.bf16 %v23758_v60, %v23757_v61 }
 0xf31   : > { %28675 = vmatmul.mubr.msk.f32.gmra.mrb[78].mxu1 %vm378_vm6, %v36374_v6 }
 0xf32   : > { %29492 = vmatpush3.bf16.msra.mxu1 %v29489_v1  ;;  %28693 = vmatprep.mubr.msk.f32.mxu1 %vm378_vm6, %v36510_v10  ;;  %v23759_v10 = vld [vmem:[%s36868_s5 + $0x8f0] sm:$0xff] }
 0xf33   : > { %29494 = vmatprep.subr.bf16.mxu1 %v29493_v13 }
 0xf35   : > { %28694 = vmatmul.mubr.msk.f32.vlgmr.msra.gmra.mrb[72].mxu1 %vm378_vm6, %v36515_v22  ;;  %v29505_v22 = vpack.c.bf16 %v23760_v36, %v23759_v10 }
 0xf36   : > { %29496 = vmatpush3.bf16.msra.mxu1 %v29493_v13  ;;  %28696 = vmatprep.mubr.msk.f32.mxu1 %vm378_vm6, %v36519_v50 }
 0xf37   : > { %29498 = vmatprep.subr.bf16.mxu1 %v29497_v4 }
 0xf39   : > { %28697 = vmatmul.mubr.msk.f32.gmra.mrb[74].mxu1 %vm378_vm6, %v36523_v20 }
 0xf3a   : > { %29500 = vmatpush3.bf16.msra.mxu1 %v29497_v4  ;;  %28699 = vmatprep.mubr.msk.f32.mxu1 %vm378_vm6, %v36701_v58 }
 0xf3b   : > { %29502 = vmatprep.subr.bf16.mxu1 %v29501_v40 }
 0xf3d   : > { %28700 = vmatmul.mubr.msk.f32.gmra.mrb[76].mxu1 %vm378_vm6, %v36705_v59 }
 0xf3e   : > { %29504 = vmatpush3.bf16.msra.mxu1 %v29501_v40  ;;  %28702 = vmatprep.mubr.msk.f32.mxu1 %vm378_vm6, %v36406_v18  ;;  %v23769_v18 = vld [vmem:[%s36869_s6 + $0x3] ss:$0 sm:$0xff] }
 0xf3f   : > { %29506 = vmatprep.subr.bf16.mxu1 %v29505_v22 }
 0xf41   : > { %28703 = vmatmul.mubr.msk.f32.gmra.mrb[78].mxu1 %vm378_vm6, %v36418_v31 }
 0xf42   : > { %29508 = vmatpush3.bf16.msra.mxu1 %v29505_v22  ;;  %28721 = vmatprep.mubr.msk.f32.mxu1 %vm378_vm6, %v36558_v45 }
 0xf45   : > { %28722 = vmatmul.mubr.msk.f32.vlgmr.msra.gmra.mrb[72].mxu1 %vm378_vm6, %v36606_v26 }
 0xf46   : > { %28724 = vmatprep.mubr.msk.f32.mxu1 %vm378_vm6, %v36572_v54 }
 0xf49   : > { %28725 = vmatmul.mubr.msk.f32.gmra.mrb[74].mxu1 %vm378_vm6, %v36618_v15 }
 0xf4a   : > { %28727 = vmatprep.mubr.msk.f32.mxu1 %vm378_vm6, %v36661_v12 }
 0xf4d   : > { %28728 = vmatmul.mubr.msk.f32.gmra.mrb[76].mxu1 %vm378_vm6, %v21149_v9 }
 0xf4e   : > { %28730 = vmatprep.mubr.msk.f32.mxu1 %vm378_vm6, %v36374_v6 }
 0xf51   : > { %28731 = vmatmul.mubr.msk.f32.gmra.mrb[78].mxu1 %vm378_vm6, %v36442_v5 }
0x1018   : > { %v28723_v31 = vpop.f32.mrb[72].mxu1 }
0x1019   : > { %v21764_v50 = vadd.f32 %v28723_v31, %v23769_v18  ;;  %v21711_v20 = vpop.f32.mrb[73].mxu1 }
0x101a   : > { %v21763_v45 = vadd.f32 %v23769_v18, %v21711_v20 }
0x101b   : > { %v21772_v54 = vadd.f32 %v21764_v50, %v36041_v21 }
0x101c   : > { %v21771_v6 = vadd.f32 %v21763_v45, %v36044_v3  ;;  %v28726_v26 = vpop.f32.mrb[74].mxu1 }
0x101d   : > { %21780 = vst.msk [vmem:[%s278_s11 + $0x8] sm:$0xff] %vm378_vm6, %v21772_v54  ;;  %v21766_v5 = vadd.f32 %v28726_v26, %v23769_v18  ;;  %v21721_v15 = vpop.f32.mrb[75].mxu1 }
0x101e   : > { %21779 = vst.msk [vmem:[%s278_s11] sm:$0xff] %vm378_vm6, %v21771_v6  ;;  %v21765_v12 = vadd.f32 %v23769_v18, %v21721_v15 }
0x101f   : > { %v21774_v32 = vadd.f32 %v21766_v5, %v36051_v62 }
0x1020   : > { %v21773_v37 = vadd.f32 %v21765_v12, %v36054_v25  ;;  %v28729_v24 = vpop.f32.mrb[76].mxu1 }
0x1021   : > { %21782 = vst.msk [vmem:[%s278_s11 + $0x18] sm:$0xff] %vm378_vm6, %v21774_v32  ;;  %v21768_v57 = vadd.f32 %v28729_v24, %v23769_v18  ;;  %v21731_v19 = vpop.f32.mrb[77].mxu1 }
0x1022   : > { %21781 = vst.msk [vmem:[%s278_s11 + $0x10] sm:$0xff] %vm378_vm6, %v21773_v37  ;;  %v21767_v21 = vadd.f32 %v23769_v18, %v21731_v19 }
0x1023   : > { %v21776_v3 = vadd.f32 %v21768_v57, %v36061_v11 }
0x1024   : > { %v21775_v48 = vadd.f32 %v21767_v21, %v36064_v8  ;;  %v28732_v14 = vpop.f32.mrb[78].mxu1 }
0x1025   : > { %21784 = vst.msk [vmem:[%s278_s11 + $0x28] sm:$0xff] %vm378_vm6, %v21776_v3  ;;  %v21770_v38 = vadd.f32 %v28732_v14, %v23769_v18  ;;  %v21741_v58 = vpop.f32.mrb[79].mxu1 }
0x1026   : > { %21783 = vst.msk [vmem:[%s278_s11 + $0x20] sm:$0xff] %vm378_vm6, %v21775_v48  ;;  %v21769_v62 = vadd.f32 %v23769_v18, %v21741_v58 }
0x1027   : > { %v21778_v25 = vadd.f32 %v21770_v38, %v36077_v53 }
0x1028   : > { %v21777_v63 = vadd.f32 %v21769_v62, %v36082_v49 }
0x1029   : > { %21786 = vst.msk [vmem:[%s278_s11 + $0x38] sm:$0xff] %vm378_vm6, %v21778_v25 }
0x102a   : > { %21785 = vst.msk [vmem:[%s278_s11 + $0x30] sm:$0xff] %vm378_vm6, %v21777_v63 }
0x102b PF: > { %s17_s24 = sadd.s32 1, %s30935_s24  }
0x102c   : > { %p14_p4 = scmp.ge.s32.totalorder %s17_s24, 4  }
0x102e   :  { %16 = sbr.rel (!%p14_p4) target bundleno = 1 (0x1), region = 171 }

</bundles_post_ra>
